<compile_context>
chip_gen: v6e
topology: v6e:2x2x1
jax: 0.10.0
libtpu: 0.0.40
codegen_flags: <defaults>
</compile_context>

<pallas_src>
import functools

import numpy as np
import jax
import jax.numpy as jnp
from jax.experimental import pallas as pl
from jax.experimental.pallas import tpu as pltpu

MAX_DIFFUSION_STEP = 2
K_CHEB = MAX_DIFFUSION_STEP + 1   # filter_type='laplacian' -> 1 support -> 3 Chebyshev terms


# --------------------------------------------------------------------------
# Fused encoder + decoder kernel (one batch element per grid step).
#   x_ref   : (1, N, T)      input window, nodes on sublanes, time on lanes
#   sup_ref : (N, N)         scaled-Laplacian support (VMEM-resident)
#   *w refs : split gconv weights (VMEM-resident), see init_params()
#   y_ref   : (1, N, horizon) decoder outputs (columns written in-VMEM,
#                             one write-back DMA per grid step)
# --------------------------------------------------------------------------
def _dcrnn_kernel(x_ref, sup_ref,
                  ewgx, ewgh, ebg, ewcx, ewch, ebc,      # encoder DCGRU cell
                  dwgx, dwgh, dbg, dwcx, dwch, dbc,      # decoder DCGRU cell
                  wp_ref, bp_ref, y_ref,
                  *, seq_len, horizon, nodes, units):
    sup = sup_ref[...]                                   # (N, N)

    def cheb(z):
        # Chebyshev terms of z (N, F): T0 = z, T1 = L z, Tk = 2 L T(k-1) - T(k-2).
        terms = [z]
        zk1 = jnp.dot(sup, z, preferred_element_type=jnp.float32)
        terms.append(zk1)
        zk2 = z
        for _ in range(2, K_CHEB):
            zk = 2.0 * jnp.dot(sup, zk1, preferred_element_type=jnp.float32) - zk2
            terms.append(zk)
            zk2, zk1 = zk1, zk
        return terms

    def gconv(xc, hz, wx_ref, wh_ref, b_ref):
        # xc: list of K (N, 1) diffused-x terms (shared by gate & candidate)
        # hz: (N, U) hidden-side input (h or r*h); output (N, O)
        hc = cheb(hz)
        out = b_ref[...]                                  # (1, O) -> broadcasts over N
        for k in range(K_CHEB):
            out = out + xc[k] * wx_ref[k:k + 1, :]        # (N,1)*(1,O) VPU outer product
            out = out + jnp.dot(hc[k], wh_ref[k],         # (N,U)@(U,O) MXU
                                preferred_element_type=jnp.float32)
        return out

    def dcgru(x_col, h, wgx, wgh, bg, wcx, wch, bc):
        xc = cheb(x_col)                                  # x diffusion computed once
        gates = jax.nn.sigmoid(gconv(xc, h, wgx, wgh, bg))   # (N, 2U)
        r = gates[:, :units]
        u = gates[:, units:]
        c = jnp.tanh(gconv(xc, r * h, wcx, wch, bc))
        return u * h + (1.0 - u) * c

    # ---- encoder: static unrolled time loop, x resident in VMEM ----
    h = jnp.zeros((nodes, units), jnp.float32)
    for t in range(seq_len):
        x_t = x_ref[0, :, t:t + 1]                        # (N, 1) static lane slice
        h = dcgru(x_t, h, ewgx, ewgh, ebg, ewcx, ewch, ebc)

    # ---- decoder: autoregressive feedback stays in VMEM ----
    wp = wp_ref[...]                                      # (U, 1)
    bp = bp_ref[...]                                      # (1, 1)
    x_col = jnp.zeros((nodes, 1), jnp.float32)            # GO symbol
    for t in range(horizon):
        h = dcgru(x_col, h, dwgx, dwgh, dbg, dwcx, dwch, dbc)
        y = jnp.dot(h, wp, preferred_element_type=jnp.float32) + bp   # (N, 1)
        y_ref[0, :, t:t + 1] = y
        x_col = y


def _const_spec(shape):
    # Whole-array, grid-invariant block: DMA'd once, stays VMEM-resident.
    return pl.BlockSpec(shape, lambda *_: (0,) * len(shape))


def make_forward(seq_len, horizon, rnn_units, batch, num_nodes):
    U, N, K = rnn_units, num_nodes, K_CHEB

    kernel = functools.partial(_dcrnn_kernel, seq_len=seq_len, horizon=horizon,
                               nodes=N, units=U)

    fwd_call = pl.pallas_call(
        kernel,
        grid=(batch,),
        in_specs=[
            pl.BlockSpec((1, N, seq_len), lambda b: (b, 0, 0)),   # x (per-batch slab)
            _const_spec((N, N)),                                  # support
            # encoder cell
            _const_spec((K, 2 * U)), _const_spec((K, U, 2 * U)), _const_spec((1, 2 * U)),
            _const_spec((K, U)),     _const_spec((K, U, U)),      _const_spec((1, U)),
            # decoder cell
            _const_spec((K, 2 * U)), _const_spec((K, U, 2 * U)), _const_spec((1, 2 * U)),
            _const_spec((K, U)),     _const_spec((K, U, U)),      _const_spec((1, U)),
            # projection Linear(U -> 1)
            _const_spec((U, 1)), _const_spec((1, 1)),
        ],
        out_specs=pl.BlockSpec((1, N, horizon), lambda b: (b, 0, 0)),
        out_shape=jax.ShapeDtypeStruct((batch, N, horizon), jnp.float32),
        compiler_params=pltpu.CompilerParams(
            dimension_semantics=("parallel",),        # batch sharded across TCs on v7x
            vmem_limit_bytes=32 * 1024 * 1024,
        ),
    )

    @jax.jit
    def forward(inputs, sup, enc, dec, proj):
        # inputs: (B, T, N); torch does inputs.permute(1, 0, 2) before the encoder.
        # Kernel wants per-batch (N, T) columns; transpose once in the wrapper (XLA-side).
        x_bnt = jnp.transpose(inputs, (0, 2, 1))                  # (B, N, T)
        y_bnh = fwd_call(x_bnt, sup, *enc, *dec, proj[0], proj[1])  # (B, N, horizon)
        return jnp.transpose(y_bnh, (0, 2, 1))                    # (B, horizon, N)

    return forward
    # TODO(synk): curriculum-learning teacher forcing (training-only, np.random
    # driven) is a no-op in the inference forward pass and is not implemented.


# --------------------------------------------------------------------------
# Glue: scaled-Laplacian support, parameter init, pure-JAX reference.
# --------------------------------------------------------------------------
def scaled_laplacian_np(adj):
    # Mirrors DCRNN's calculate_scaled_laplacian (filter_type='laplacian').
    adj = np.maximum(adj, adj.T)
    d = adj.sum(axis=1)
    with np.errstate(divide='ignore'):
        d_inv_sqrt = np.power(d, -0.5)
    d_inv_sqrt[np.isinf(d_inv_sqrt)] = 0.0
    n = adj.shape[0]
    lap = np.eye(n) - d_inv_sqrt[:, None] * adj * d_inv_sqrt[None, :]
    lambda_max = float(np.linalg.eigvalsh(lap).max())
    return ((2.0 / lambda_max) * lap - np.eye(n)).astype(np.float32)


def init_params(key, rnn_units):
    U, K = rnn_units, K_CHEB
    kc_e, kc_d, kp = jax.random.split(key, 3)

    def w(k, shape, scale=0.1):
        return scale * jax.random.normal(k, shape, jnp.float32)

    def cell(k):
        k0, k1, k2, k3 = jax.random.split(k, 4)
        return (
            w(k0, (K, 2 * U)),                           # gate gconv W_x
            w(k1, (K, U, 2 * U)),                        # gate gconv W_h
            jnp.full((1, 2 * U), 1.0, jnp.float32),      # gate bias (bias_start=1.0)
            w(k2, (K, U)),                               # candidate gconv W_x
            w(k3, (K, U, U)),                            # candidate gconv W_h
            jnp.zeros((1, U), jnp.float32),              # candidate bias (bias_start=0.0)
        )

    enc = cell(kc_e)
    dec = cell(kc_d)
    proj = (w(kp, (U, 1)), jnp.zeros((1, 1), jnp.float32))   # Linear(U -> 1)
    return enc, dec, proj


def _reference_cell(x, h, sup, wgx, wgh, bg, wcx, wch, bc):
    # Unfused, torch-DCGRUCell-structured math on (B, N, .) tensors; joint
    # diffusion of [x ‖ h] with the split-weight layout applied per Chebyshev order.
    u_dim = h.shape[-1]

    def gconv(inp, state, w_x, w_h, bias):
        z0 = jnp.concatenate([inp, state], axis=-1)          # (B, N, 1+U)
        terms = [z0]
        z1 = jnp.einsum('nm,bmf->bnf', sup, z0)
        terms.append(z1)
        zk2, zk1 = z0, z1
        for _ in range(2, K_CHEB):
            zk = 2.0 * jnp.einsum('nm,bmf->bnf', sup, zk1) - zk2
            terms.append(zk)
            zk2, zk1 = zk1, zk
        out = bias[0]
        for k in range(K_CHEB):
            out = out + terms[k][..., :1] * w_x[k]           # x part
            out = out + jnp.einsum('bnu,uo->bno', terms[k][..., 1:], w_h[k])  # h part
        return out

    gates = jax.nn.sigmoid(gconv(x, h, wgx, wgh, bg))
    r, u = gates[..., :u_dim], gates[..., u_dim:]
    c = jnp.tanh(gconv(x, r * h, wcx, wch, bc))
    return u * h + (1.0 - u) * c


def reference_forward(inputs, sup, enc, dec, proj, seq_len, horizon, rnn_units):
    B, _, N = inputs.shape
    x_tbn = jnp.transpose(inputs, (1, 0, 2))
    h = jnp.zeros((B, N, rnn_units), jnp.float32)
    for t in range(seq_len):
        h = _reference_cell(x_tbn[t][..., None], h, sup, *enc)
    wp, bp = proj
    dec_in = jnp.zeros((B, N, 1), jnp.float32)
    ys = []
    for _ in range(horizon):
        h = _reference_cell(dec_in, h, sup, *dec)
        y = jnp.einsum('bnu,uo->bno', h, wp)[..., 0] + bp[0, 0]
        dec_in = y[..., None]
        ys.append(y)
    return jnp.transpose(jnp.stack(ys, axis=0), (1, 0, 2))       # (B, horizon, N)


if __name__ == "__main__":
    B, T, HORIZON, N, U = 2, 8, 4, 16, 32   # batch, window, horizon, num_nodes, n_hidden

    key = jax.random.PRNGKey(0)
    k_adj, k_x, k_p = jax.random.split(key, 3)

    # Deterministic synthetic adjacency -> scaled Laplacian support (host-side glue).
    adj = np.array(jax.random.uniform(k_adj, (N, N), jnp.float32))
    np.fill_diagonal(adj, 0.0)
    sup = jnp.asarray(scaled_laplacian_np(adj))

    enc_params, dec_params, proj_params = init_params(k_p, U)

    # Model input: (batch, seq_len, num_nodes * input_dim), input_dim = 1.
    x = jax.random.normal(k_x, (B, T, N), jnp.float32)

    forward = make_forward(T, HORIZON, U, B, N)
    out = jax.block_until_ready(forward(x, sup, enc_params, dec_params, proj_params))
    assert out.shape == (B, HORIZON, N), out.shape

    ref = reference_forward(x, sup, enc_params, dec_params, proj_params, T, HORIZON, U)
    np.testing.assert_allclose(np.array(out), np.array(ref), rtol=1e-2, atol=1e-2)

    print("KERNEL_OK")
</pallas_src>

<mosaic_0001>
module attributes {stable_mosaic.version = 11 : i64} {
  func.func @_dcrnn_kernel(%arg0: i32, %arg1: memref<1x16x8xf32, #tpu.memory_space<vmem>>, %arg2: memref<16x16xf32, #tpu.memory_space<vmem>>, %arg3: memref<3x64xf32, #tpu.memory_space<vmem>>, %arg4: memref<3x32x64xf32, #tpu.memory_space<vmem>>, %arg5: memref<1x64xf32, #tpu.memory_space<vmem>>, %arg6: memref<3x32xf32, #tpu.memory_space<vmem>>, %arg7: memref<3x32x32xf32, #tpu.memory_space<vmem>>, %arg8: memref<1x32xf32, #tpu.memory_space<vmem>>, %arg9: memref<3x64xf32, #tpu.memory_space<vmem>>, %arg10: memref<3x32x64xf32, #tpu.memory_space<vmem>>, %arg11: memref<1x64xf32, #tpu.memory_space<vmem>>, %arg12: memref<3x32xf32, #tpu.memory_space<vmem>>, %arg13: memref<3x32x32xf32, #tpu.memory_space<vmem>>, %arg14: memref<1x32xf32, #tpu.memory_space<vmem>>, %arg15: memref<32x1xf32, #tpu.memory_space<vmem>>, %arg16: memref<1x1xf32, #tpu.memory_space<vmem>>, %arg17: memref<1x16x4xf32, #tpu.memory_space<vmem>>) attributes {dimension_semantics = [#tpu.dimension_semantics<parallel>], iteration_bounds = array<i64: 2>, scalar_prefetch = 0 : i64, scratch_operands = 0 : i64, tpu.core_type = #tpu.core_type<tc>, window_params = [{transform_indices = @transform_0, window_bounds = array<i64: 1, 16, 8>}, {pipeline_mode = #tpu.pipeline_mode<synchronous>, transform_indices = @transform_1, window_bounds = array<i64: 16, 16>}, {pipeline_mode = #tpu.pipeline_mode<synchronous>, transform_indices = @transform_2, window_bounds = array<i64: 3, 64>}, {pipeline_mode = #tpu.pipeline_mode<synchronous>, transform_indices = @transform_3, window_bounds = array<i64: 3, 32, 64>}, {pipeline_mode = #tpu.pipeline_mode<synchronous>, transform_indices = @transform_4, window_bounds = array<i64: 1, 64>}, {pipeline_mode = #tpu.pipeline_mode<synchronous>, transform_indices = @transform_5, window_bounds = array<i64: 3, 32>}, {pipeline_mode = #tpu.pipeline_mode<synchronous>, transform_indices = @transform_6, window_bounds = array<i64: 3, 32, 32>}, {pipeline_mode = #tpu.pipeline_mode<synchronous>, transform_indices = @transform_7, window_bounds = array<i64: 1, 32>}, {pipeline_mode = #tpu.pipeline_mode<synchronous>, transform_indices = @transform_8, window_bounds = array<i64: 3, 64>}, {pipeline_mode = #tpu.pipeline_mode<synchronous>, transform_indices = @transform_9, window_bounds = array<i64: 3, 32, 64>}, {pipeline_mode = #tpu.pipeline_mode<synchronous>, transform_indices = @transform_10, window_bounds = array<i64: 1, 64>}, {pipeline_mode = #tpu.pipeline_mode<synchronous>, transform_indices = @transform_11, window_bounds = array<i64: 3, 32>}, {pipeline_mode = #tpu.pipeline_mode<synchronous>, transform_indices = @transform_12, window_bounds = array<i64: 3, 32, 32>}, {pipeline_mode = #tpu.pipeline_mode<synchronous>, transform_indices = @transform_13, window_bounds = array<i64: 1, 32>}, {pipeline_mode = #tpu.pipeline_mode<synchronous>, transform_indices = @transform_14, window_bounds = array<i64: 32, 1>}, {pipeline_mode = #tpu.pipeline_mode<synchronous>, transform_indices = @transform_15, window_bounds = array<i64: 1, 1>}, {transform_indices = @transform_16, window_bounds = array<i64: 1, 16, 4>}]} {
    %c0 = arith.constant 0 : index
    %c0_0 = arith.constant 0 : index
    %0 = vector.load %arg2[%c0, %c0_0] : memref<16x16xf32, #tpu.memory_space<vmem>>, vector<16x16xf32>
    %cst = arith.constant 0.000000e+00 : f32
    %1 = vector.broadcast %cst : f32 to vector<16x32xf32>
    %c0_1 = arith.constant 0 : index
    %c0_2 = arith.constant 0 : index
    %c0_3 = arith.constant 0 : index
    %2 = vector.load %arg1[%c0_1, %c0_2, %c0_3] : memref<1x16x8xf32, #tpu.memory_space<vmem>>, vector<1x16x1xf32>
    %3 = vector.shape_cast %2 : vector<1x16x1xf32> to vector<16x1xf32>
    %cst_4 = arith.constant dense<0.000000e+00> : vector<16x1xf32>
    %4 = tpu.matmul %0, %3, %cst_4 {dimension_numbers = #tpu.dot_dimension_numbers<[1], [0], [0], [1], [0, 0, 1, 1], [], []>} : vector<16x16xf32>, vector<16x1xf32>, vector<16x1xf32> -> vector<16x1xf32>
    %cst_5 = arith.constant dense<0.000000e+00> : vector<16x1xf32>
    %5 = tpu.matmul %0, %4, %cst_5 {dimension_numbers = #tpu.dot_dimension_numbers<[1], [0], [0], [1], [0, 0, 1, 1], [], []>} : vector<16x16xf32>, vector<16x1xf32>, vector<16x1xf32> -> vector<16x1xf32>
    %cst_6 = arith.constant 2.000000e+00 : f32
    %6 = vector.broadcast %cst_6 : f32 to vector<16x1xf32>
    %7 = arith.mulf %6, %5 : vector<16x1xf32>
    %8 = arith.subf %7, %3 : vector<16x1xf32>
    %cst_7 = arith.constant dense<0.000000e+00> : vector<16x32xf32>
    %9 = tpu.matmul %0, %1, %cst_7 {dimension_numbers = #tpu.dot_dimension_numbers<[1], [0], [0], [1], [0, 0, 1, 1], [], []>} : vector<16x16xf32>, vector<16x32xf32>, vector<16x32xf32> -> vector<16x32xf32>
    %cst_8 = arith.constant dense<0.000000e+00> : vector<16x32xf32>
    %10 = tpu.matmul %0, %9, %cst_8 {dimension_numbers = #tpu.dot_dimension_numbers<[1], [0], [0], [1], [0, 0, 1, 1], [], []>} : vector<16x16xf32>, vector<16x32xf32>, vector<16x32xf32> -> vector<16x32xf32>
    %cst_9 = arith.constant 2.000000e+00 : f32
    %11 = vector.broadcast %cst_9 : f32 to vector<16x32xf32>
    %12 = arith.mulf %11, %10 : vector<16x32xf32>
    %13 = arith.subf %12, %1 : vector<16x32xf32>
    %c0_10 = arith.constant 0 : index
    %c0_11 = arith.constant 0 : index
    %14 = vector.load %arg5[%c0_10, %c0_11] : memref<1x64xf32, #tpu.memory_space<vmem>>, vector<1x64xf32>
    %c0_12 = arith.constant 0 : index
    %c0_13 = arith.constant 0 : index
    %15 = vector.load %arg3[%c0_12, %c0_13] : memref<3x64xf32, #tpu.memory_space<vmem>>, vector<1x64xf32>
    %16 = vector.broadcast %3 : vector<16x1xf32> to vector<16x64xf32>
    %17 = vector.broadcast %15 : vector<1x64xf32> to vector<16x64xf32>
    %18 = arith.mulf %16, %17 : vector<16x64xf32>
    %19 = vector.broadcast %14 : vector<1x64xf32> to vector<16x64xf32>
    %20 = arith.addf %19, %18 : vector<16x64xf32>
    %c0_14 = arith.constant 0 : index
    %c0_15 = arith.constant 0 : index
    %c0_16 = arith.constant 0 : index
    %21 = vector.load %arg4[%c0_14, %c0_15, %c0_16] : memref<3x32x64xf32, #tpu.memory_space<vmem>>, vector<1x32x64xf32>
    %22 = vector.shape_cast %21 : vector<1x32x64xf32> to vector<32x64xf32>
    %cst_17 = arith.constant dense<0.000000e+00> : vector<16x64xf32>
    %23 = tpu.matmul %1, %22, %cst_17 {dimension_numbers = #tpu.dot_dimension_numbers<[1], [0], [0], [1], [0, 0, 1, 1], [], []>} : vector<16x32xf32>, vector<32x64xf32>, vector<16x64xf32> -> vector<16x64xf32>
    %24 = arith.addf %20, %23 : vector<16x64xf32>
    %c1 = arith.constant 1 : index
    %c0_18 = arith.constant 0 : index
    %25 = vector.load %arg3[%c1, %c0_18] : memref<3x64xf32, #tpu.memory_space<vmem>>, vector<1x64xf32>
    %26 = vector.broadcast %4 : vector<16x1xf32> to vector<16x64xf32>
    %27 = vector.broadcast %25 : vector<1x64xf32> to vector<16x64xf32>
    %28 = arith.mulf %26, %27 : vector<16x64xf32>
    %29 = arith.addf %24, %28 : vector<16x64xf32>
    %c1_19 = arith.constant 1 : index
    %c0_20 = arith.constant 0 : index
    %c0_21 = arith.constant 0 : index
    %30 = vector.load %arg4[%c1_19, %c0_20, %c0_21] : memref<3x32x64xf32, #tpu.memory_space<vmem>>, vector<1x32x64xf32>
    %31 = vector.shape_cast %30 : vector<1x32x64xf32> to vector<32x64xf32>
    %cst_22 = arith.constant dense<0.000000e+00> : vector<16x64xf32>
    %32 = tpu.matmul %9, %31, %cst_22 {dimension_numbers = #tpu.dot_dimension_numbers<[1], [0], [0], [1], [0, 0, 1, 1], [], []>} : vector<16x32xf32>, vector<32x64xf32>, vector<16x64xf32> -> vector<16x64xf32>
    %33 = arith.addf %29, %32 : vector<16x64xf32>
    %c2 = arith.constant 2 : index
    %c0_23 = arith.constant 0 : index
    %34 = vector.load %arg3[%c2, %c0_23] : memref<3x64xf32, #tpu.memory_space<vmem>>, vector<1x64xf32>
    %35 = vector.broadcast %8 : vector<16x1xf32> to vector<16x64xf32>
    %36 = vector.broadcast %34 : vector<1x64xf32> to vector<16x64xf32>
    %37 = arith.mulf %35, %36 : vector<16x64xf32>
    %38 = arith.addf %33, %37 : vector<16x64xf32>
    %c2_24 = arith.constant 2 : index
    %c0_25 = arith.constant 0 : index
    %c0_26 = arith.constant 0 : index
    %39 = vector.load %arg4[%c2_24, %c0_25, %c0_26] : memref<3x32x64xf32, #tpu.memory_space<vmem>>, vector<1x32x64xf32>
    %40 = vector.shape_cast %39 : vector<1x32x64xf32> to vector<32x64xf32>
    %cst_27 = arith.constant dense<0.000000e+00> : vector<16x64xf32>
    %41 = tpu.matmul %13, %40, %cst_27 {dimension_numbers = #tpu.dot_dimension_numbers<[1], [0], [0], [1], [0, 0, 1, 1], [], []>} : vector<16x32xf32>, vector<32x64xf32>, vector<16x64xf32> -> vector<16x64xf32>
    %42 = arith.addf %38, %41 : vector<16x64xf32>
    %43 = arith.negf %42 : vector<16x64xf32>
    %44 = math.exp %43 : vector<16x64xf32>
    %cst_28 = arith.constant 1.000000e+00 : f32
    %45 = vector.broadcast %cst_28 : f32 to vector<16x64xf32>
    %46 = arith.addf %45, %44 : vector<16x64xf32>
    %47 = arith.divf %45, %46 : vector<16x64xf32>
    %48 = vector.extract_strided_slice %47 {offsets = [0, 0], sizes = [16, 32], strides = [1, 1]} : vector<16x64xf32> to vector<16x32xf32>
    %49 = vector.extract_strided_slice %47 {offsets = [0, 32], sizes = [16, 32], strides = [1, 1]} : vector<16x64xf32> to vector<16x32xf32>
    %50 = arith.mulf %48, %1 : vector<16x32xf32>
    %cst_29 = arith.constant dense<0.000000e+00> : vector<16x32xf32>
    %51 = tpu.matmul %0, %50, %cst_29 {dimension_numbers = #tpu.dot_dimension_numbers<[1], [0], [0], [1], [0, 0, 1, 1], [], []>} : vector<16x16xf32>, vector<16x32xf32>, vector<16x32xf32> -> vector<16x32xf32>
    %cst_30 = arith.constant dense<0.000000e+00> : vector<16x32xf32>
    %52 = tpu.matmul %0, %51, %cst_30 {dimension_numbers = #tpu.dot_dimension_numbers<[1], [0], [0], [1], [0, 0, 1, 1], [], []>} : vector<16x16xf32>, vector<16x32xf32>, vector<16x32xf32> -> vector<16x32xf32>
    %cst_31 = arith.constant 2.000000e+00 : f32
    %53 = vector.broadcast %cst_31 : f32 to vector<16x32xf32>
    %54 = arith.mulf %53, %52 : vector<16x32xf32>
    %55 = arith.subf %54, %50 : vector<16x32xf32>
    %c0_32 = arith.constant 0 : index
    %c0_33 = arith.constant 0 : index
    %56 = vector.load %arg8[%c0_32, %c0_33] : memref<1x32xf32, #tpu.memory_space<vmem>>, vector<1x32xf32>
    %c0_34 = arith.constant 0 : index
    %c0_35 = arith.constant 0 : index
    %57 = vector.load %arg6[%c0_34, %c0_35] : memref<3x32xf32, #tpu.memory_space<vmem>>, vector<1x32xf32>
    %58 = vector.broadcast %3 : vector<16x1xf32> to vector<16x32xf32>
    %59 = vector.broadcast %57 : vector<1x32xf32> to vector<16x32xf32>
    %60 = arith.mulf %58, %59 : vector<16x32xf32>
    %61 = vector.broadcast %56 : vector<1x32xf32> to vector<16x32xf32>
    %62 = arith.addf %61, %60 : vector<16x32xf32>
    %c0_36 = arith.constant 0 : index
    %c0_37 = arith.constant 0 : index
    %c0_38 = arith.constant 0 : index
    %63 = vector.load %arg7[%c0_36, %c0_37, %c0_38] : memref<3x32x32xf32, #tpu.memory_space<vmem>>, vector<1x32x32xf32>
    %64 = vector.shape_cast %63 : vector<1x32x32xf32> to vector<32x32xf32>
    %cst_39 = arith.constant dense<0.000000e+00> : vector<16x32xf32>
    %65 = tpu.matmul %50, %64, %cst_39 {dimension_numbers = #tpu.dot_dimension_numbers<[1], [0], [0], [1], [0, 0, 1, 1], [], []>} : vector<16x32xf32>, vector<32x32xf32>, vector<16x32xf32> -> vector<16x32xf32>
    %66 = arith.addf %62, %65 : vector<16x32xf32>
    %c1_40 = arith.constant 1 : index
    %c0_41 = arith.constant 0 : index
    %67 = vector.load %arg6[%c1_40, %c0_41] : memref<3x32xf32, #tpu.memory_space<vmem>>, vector<1x32xf32>
    %68 = vector.broadcast %4 : vector<16x1xf32> to vector<16x32xf32>
    %69 = vector.broadcast %67 : vector<1x32xf32> to vector<16x32xf32>
    %70 = arith.mulf %68, %69 : vector<16x32xf32>
    %71 = arith.addf %66, %70 : vector<16x32xf32>
    %c1_42 = arith.constant 1 : index
    %c0_43 = arith.constant 0 : index
    %c0_44 = arith.constant 0 : index
    %72 = vector.load %arg7[%c1_42, %c0_43, %c0_44] : memref<3x32x32xf32, #tpu.memory_space<vmem>>, vector<1x32x32xf32>
    %73 = vector.shape_cast %72 : vector<1x32x32xf32> to vector<32x32xf32>
    %cst_45 = arith.constant dense<0.000000e+00> : vector<16x32xf32>
    %74 = tpu.matmul %51, %73, %cst_45 {dimension_numbers = #tpu.dot_dimension_numbers<[1], [0], [0], [1], [0, 0, 1, 1], [], []>} : vector<16x32xf32>, vector<32x32xf32>, vector<16x32xf32> -> vector<16x32xf32>
    %75 = arith.addf %71, %74 : vector<16x32xf32>
    %c2_46 = arith.constant 2 : index
    %c0_47 = arith.constant 0 : index
    %76 = vector.load %arg6[%c2_46, %c0_47] : memref<3x32xf32, #tpu.memory_space<vmem>>, vector<1x32xf32>
    %77 = vector.broadcast %8 : vector<16x1xf32> to vector<16x32xf32>
    %78 = vector.broadcast %76 : vector<1x32xf32> to vector<16x32xf32>
    %79 = arith.mulf %77, %78 : vector<16x32xf32>
    %80 = arith.addf %75, %79 : vector<16x32xf32>
    %c2_48 = arith.constant 2 : index
    %c0_49 = arith.constant 0 : index
    %c0_50 = arith.constant 0 : index
    %81 = vector.load %arg7[%c2_48, %c0_49, %c0_50] : memref<3x32x32xf32, #tpu.memory_space<vmem>>, vector<1x32x32xf32>
    %82 = vector.shape_cast %81 : vector<1x32x32xf32> to vector<32x32xf32>
    %cst_51 = arith.constant dense<0.000000e+00> : vector<16x32xf32>
    %83 = tpu.matmul %55, %82, %cst_51 {dimension_numbers = #tpu.dot_dimension_numbers<[1], [0], [0], [1], [0, 0, 1, 1], [], []>} : vector<16x32xf32>, vector<32x32xf32>, vector<16x32xf32> -> vector<16x32xf32>
    %84 = arith.addf %80, %83 : vector<16x32xf32>
    %85 = math.tanh %84 : vector<16x32xf32>
    %86 = arith.mulf %49, %1 : vector<16x32xf32>
    %cst_52 = arith.constant 1.000000e+00 : f32
    %87 = vector.broadcast %cst_52 : f32 to vector<16x32xf32>
    %88 = arith.subf %87, %49 : vector<16x32xf32>
    %89 = arith.mulf %88, %85 : vector<16x32xf32>
    %90 = arith.addf %86, %89 : vector<16x32xf32>
    %c0_53 = arith.constant 0 : index
    %c0_54 = arith.constant 0 : index
    %c1_55 = arith.constant 1 : index
    %91 = vector.load %arg1[%c0_53, %c0_54, %c1_55] : memref<1x16x8xf32, #tpu.memory_space<vmem>>, vector<1x16x1xf32>
    %92 = vector.shape_cast %91 : vector<1x16x1xf32> to vector<16x1xf32>
    %cst_56 = arith.constant dense<0.000000e+00> : vector<16x1xf32>
    %93 = tpu.matmul %0, %92, %cst_56 {dimension_numbers = #tpu.dot_dimension_numbers<[1], [0], [0], [1], [0, 0, 1, 1], [], []>} : vector<16x16xf32>, vector<16x1xf32>, vector<16x1xf32> -> vector<16x1xf32>
    %cst_57 = arith.constant dense<0.000000e+00> : vector<16x1xf32>
    %94 = tpu.matmul %0, %93, %cst_57 {dimension_numbers = #tpu.dot_dimension_numbers<[1], [0], [0], [1], [0, 0, 1, 1], [], []>} : vector<16x16xf32>, vector<16x1xf32>, vector<16x1xf32> -> vector<16x1xf32>
    %cst_58 = arith.constant 2.000000e+00 : f32
    %95 = vector.broadcast %cst_58 : f32 to vector<16x1xf32>
    %96 = arith.mulf %95, %94 : vector<16x1xf32>
    %97 = arith.subf %96, %92 : vector<16x1xf32>
    %cst_59 = arith.constant dense<0.000000e+00> : vector<16x32xf32>
    %98 = tpu.matmul %0, %90, %cst_59 {dimension_numbers = #tpu.dot_dimension_numbers<[1], [0], [0], [1], [0, 0, 1, 1], [], []>} : vector<16x16xf32>, vector<16x32xf32>, vector<16x32xf32> -> vector<16x32xf32>
    %cst_60 = arith.constant dense<0.000000e+00> : vector<16x32xf32>
    %99 = tpu.matmul %0, %98, %cst_60 {dimension_numbers = #tpu.dot_dimension_numbers<[1], [0], [0], [1], [0, 0, 1, 1], [], []>} : vector<16x16xf32>, vector<16x32xf32>, vector<16x32xf32> -> vector<16x32xf32>
    %cst_61 = arith.constant 2.000000e+00 : f32
    %100 = vector.broadcast %cst_61 : f32 to vector<16x32xf32>
    %101 = arith.mulf %100, %99 : vector<16x32xf32>
    %102 = arith.subf %101, %90 : vector<16x32xf32>
    %c0_62 = arith.constant 0 : index
    %c0_63 = arith.constant 0 : index
    %103 = vector.load %arg5[%c0_62, %c0_63] : memref<1x64xf32, #tpu.memory_space<vmem>>, vector<1x64xf32>
    %c0_64 = arith.constant 0 : index
    %c0_65 = arith.constant 0 : index
    %104 = vector.load %arg3[%c0_64, %c0_65] : memref<3x64xf32, #tpu.memory_space<vmem>>, vector<1x64xf32>
    %105 = vector.broadcast %92 : vector<16x1xf32> to vector<16x64xf32>
    %106 = vector.broadcast %104 : vector<1x64xf32> to vector<16x64xf32>
    %107 = arith.mulf %105, %106 : vector<16x64xf32>
    %108 = vector.broadcast %103 : vector<1x64xf32> to vector<16x64xf32>
    %109 = arith.addf %108, %107 : vector<16x64xf32>
    %c0_66 = arith.constant 0 : index
    %c0_67 = arith.constant 0 : index
    %c0_68 = arith.constant 0 : index
    %110 = vector.load %arg4[%c0_66, %c0_67, %c0_68] : memref<3x32x64xf32, #tpu.memory_space<vmem>>, vector<1x32x64xf32>
    %111 = vector.shape_cast %110 : vector<1x32x64xf32> to vector<32x64xf32>
    %cst_69 = arith.constant dense<0.000000e+00> : vector<16x64xf32>
    %112 = tpu.matmul %90, %111, %cst_69 {dimension_numbers = #tpu.dot_dimension_numbers<[1], [0], [0], [1], [0, 0, 1, 1], [], []>} : vector<16x32xf32>, vector<32x64xf32>, vector<16x64xf32> -> vector<16x64xf32>
    %113 = arith.addf %109, %112 : vector<16x64xf32>
    %c1_70 = arith.constant 1 : index
    %c0_71 = arith.constant 0 : index
    %114 = vector.load %arg3[%c1_70, %c0_71] : memref<3x64xf32, #tpu.memory_space<vmem>>, vector<1x64xf32>
    %115 = vector.broadcast %93 : vector<16x1xf32> to vector<16x64xf32>
    %116 = vector.broadcast %114 : vector<1x64xf32> to vector<16x64xf32>
    %117 = arith.mulf %115, %116 : vector<16x64xf32>
    %118 = arith.addf %113, %117 : vector<16x64xf32>
    %c1_72 = arith.constant 1 : index
    %c0_73 = arith.constant 0 : index
    %c0_74 = arith.constant 0 : index
    %119 = vector.load %arg4[%c1_72, %c0_73, %c0_74] : memref<3x32x64xf32, #tpu.memory_space<vmem>>, vector<1x32x64xf32>
    %120 = vector.shape_cast %119 : vector<1x32x64xf32> to vector<32x64xf32>
    %cst_75 = arith.constant dense<0.000000e+00> : vector<16x64xf32>
    %121 = tpu.matmul %98, %120, %cst_75 {dimension_numbers = #tpu.dot_dimension_numbers<[1], [0], [0], [1], [0, 0, 1, 1], [], []>} : vector<16x32xf32>, vector<32x64xf32>, vector<16x64xf32> -> vector<16x64xf32>
    %122 = arith.addf %118, %121 : vector<16x64xf32>
    %c2_76 = arith.constant 2 : index
    %c0_77 = arith.constant 0 : index
    %123 = vector.load %arg3[%c2_76, %c0_77] : memref<3x64xf32, #tpu.memory_space<vmem>>, vector<1x64xf32>
    %124 = vector.broadcast %97 : vector<16x1xf32> to vector<16x64xf32>
    %125 = vector.broadcast %123 : vector<1x64xf32> to vector<16x64xf32>
    %126 = arith.mulf %124, %125 : vector<16x64xf32>
    %127 = arith.addf %122, %126 : vector<16x64xf32>
    %c2_78 = arith.constant 2 : index
    %c0_79 = arith.constant 0 : index
    %c0_80 = arith.constant 0 : index
    %128 = vector.load %arg4[%c2_78, %c0_79, %c0_80] : memref<3x32x64xf32, #tpu.memory_space<vmem>>, vector<1x32x64xf32>
    %129 = vector.shape_cast %128 : vector<1x32x64xf32> to vector<32x64xf32>
    %cst_81 = arith.constant dense<0.000000e+00> : vector<16x64xf32>
    %130 = tpu.matmul %102, %129, %cst_81 {dimension_numbers = #tpu.dot_dimension_numbers<[1], [0], [0], [1], [0, 0, 1, 1], [], []>} : vector<16x32xf32>, vector<32x64xf32>, vector<16x64xf32> -> vector<16x64xf32>
    %131 = arith.addf %127, %130 : vector<16x64xf32>
    %132 = arith.negf %131 : vector<16x64xf32>
    %133 = math.exp %132 : vector<16x64xf32>
    %cst_82 = arith.constant 1.000000e+00 : f32
    %134 = vector.broadcast %cst_82 : f32 to vector<16x64xf32>
    %135 = arith.addf %134, %133 : vector<16x64xf32>
    %136 = arith.divf %134, %135 : vector<16x64xf32>
    %137 = vector.extract_strided_slice %136 {offsets = [0, 0], sizes = [16, 32], strides = [1, 1]} : vector<16x64xf32> to vector<16x32xf32>
    %138 = vector.extract_strided_slice %136 {offsets = [0, 32], sizes = [16, 32], strides = [1, 1]} : vector<16x64xf32> to vector<16x32xf32>
    %139 = arith.mulf %137, %90 : vector<16x32xf32>
    %cst_83 = arith.constant dense<0.000000e+00> : vector<16x32xf32>
    %140 = tpu.matmul %0, %139, %cst_83 {dimension_numbers = #tpu.dot_dimension_numbers<[1], [0], [0], [1], [0, 0, 1, 1], [], []>} : vector<16x16xf32>, vector<16x32xf32>, vector<16x32xf32> -> vector<16x32xf32>
    %cst_84 = arith.constant dense<0.000000e+00> : vector<16x32xf32>
    %141 = tpu.matmul %0, %140, %cst_84 {dimension_numbers = #tpu.dot_dimension_numbers<[1], [0], [0], [1], [0, 0, 1, 1], [], []>} : vector<16x16xf32>, vector<16x32xf32>, vector<16x32xf32> -> vector<16x32xf32>
    %cst_85 = arith.constant 2.000000e+00 : f32
    %142 = vector.broadcast %cst_85 : f32 to vector<16x32xf32>
    %143 = arith.mulf %142, %141 : vector<16x32xf32>
    %144 = arith.subf %143, %139 : vector<16x32xf32>
    %c0_86 = arith.constant 0 : index
    %c0_87 = arith.constant 0 : index
    %145 = vector.load %arg8[%c0_86, %c0_87] : memref<1x32xf32, #tpu.memory_space<vmem>>, vector<1x32xf32>
    %c0_88 = arith.constant 0 : index
    %c0_89 = arith.constant 0 : index
    %146 = vector.load %arg6[%c0_88, %c0_89] : memref<3x32xf32, #tpu.memory_space<vmem>>, vector<1x32xf32>
    %147 = vector.broadcast %92 : vector<16x1xf32> to vector<16x32xf32>
    %148 = vector.broadcast %146 : vector<1x32xf32> to vector<16x32xf32>
    %149 = arith.mulf %147, %148 : vector<16x32xf32>
    %150 = vector.broadcast %145 : vector<1x32xf32> to vector<16x32xf32>
    %151 = arith.addf %150, %149 : vector<16x32xf32>
    %c0_90 = arith.constant 0 : index
    %c0_91 = arith.constant 0 : index
    %c0_92 = arith.constant 0 : index
    %152 = vector.load %arg7[%c0_90, %c0_91, %c0_92] : memref<3x32x32xf32, #tpu.memory_space<vmem>>, vector<1x32x32xf32>
    %153 = vector.shape_cast %152 : vector<1x32x32xf32> to vector<32x32xf32>
    %cst_93 = arith.constant dense<0.000000e+00> : vector<16x32xf32>
    %154 = tpu.matmul %139, %153, %cst_93 {dimension_numbers = #tpu.dot_dimension_numbers<[1], [0], [0], [1], [0, 0, 1, 1], [], []>} : vector<16x32xf32>, vector<32x32xf32>, vector<16x32xf32> -> vector<16x32xf32>
    %155 = arith.addf %151, %154 : vector<16x32xf32>
    %c1_94 = arith.constant 1 : index
    %c0_95 = arith.constant 0 : index
    %156 = vector.load %arg6[%c1_94, %c0_95] : memref<3x32xf32, #tpu.memory_space<vmem>>, vector<1x32xf32>
    %157 = vector.broadcast %93 : vector<16x1xf32> to vector<16x32xf32>
    %158 = vector.broadcast %156 : vector<1x32xf32> to vector<16x32xf32>
    %159 = arith.mulf %157, %158 : vector<16x32xf32>
    %160 = arith.addf %155, %159 : vector<16x32xf32>
    %c1_96 = arith.constant 1 : index
    %c0_97 = arith.constant 0 : index
    %c0_98 = arith.constant 0 : index
    %161 = vector.load %arg7[%c1_96, %c0_97, %c0_98] : memref<3x32x32xf32, #tpu.memory_space<vmem>>, vector<1x32x32xf32>
    %162 = vector.shape_cast %161 : vector<1x32x32xf32> to vector<32x32xf32>
    %cst_99 = arith.constant dense<0.000000e+00> : vector<16x32xf32>
    %163 = tpu.matmul %140, %162, %cst_99 {dimension_numbers = #tpu.dot_dimension_numbers<[1], [0], [0], [1], [0, 0, 1, 1], [], []>} : vector<16x32xf32>, vector<32x32xf32>, vector<16x32xf32> -> vector<16x32xf32>
    %164 = arith.addf %160, %163 : vector<16x32xf32>
    %c2_100 = arith.constant 2 : index
    %c0_101 = arith.constant 0 : index
    %165 = vector.load %arg6[%c2_100, %c0_101] : memref<3x32xf32, #tpu.memory_space<vmem>>, vector<1x32xf32>
    %166 = vector.broadcast %97 : vector<16x1xf32> to vector<16x32xf32>
    %167 = vector.broadcast %165 : vector<1x32xf32> to vector<16x32xf32>
    %168 = arith.mulf %166, %167 : vector<16x32xf32>
    %169 = arith.addf %164, %168 : vector<16x32xf32>
    %c2_102 = arith.constant 2 : index
    %c0_103 = arith.constant 0 : index
    %c0_104 = arith.constant 0 : index
    %170 = vector.load %arg7[%c2_102, %c0_103, %c0_104] : memref<3x32x32xf32, #tpu.memory_space<vmem>>, vector<1x32x32xf32>
    %171 = vector.shape_cast %170 : vector<1x32x32xf32> to vector<32x32xf32>
    %cst_105 = arith.constant dense<0.000000e+00> : vector<16x32xf32>
    %172 = tpu.matmul %144, %171, %cst_105 {dimension_numbers = #tpu.dot_dimension_numbers<[1], [0], [0], [1], [0, 0, 1, 1], [], []>} : vector<16x32xf32>, vector<32x32xf32>, vector<16x32xf32> -> vector<16x32xf32>
    %173 = arith.addf %169, %172 : vector<16x32xf32>
    %174 = math.tanh %173 : vector<16x32xf32>
    %175 = arith.mulf %138, %90 : vector<16x32xf32>
    %cst_106 = arith.constant 1.000000e+00 : f32
    %176 = vector.broadcast %cst_106 : f32 to vector<16x32xf32>
    %177 = arith.subf %176, %138 : vector<16x32xf32>
    %178 = arith.mulf %177, %174 : vector<16x32xf32>
    %179 = arith.addf %175, %178 : vector<16x32xf32>
    %c0_107 = arith.constant 0 : index
    %c0_108 = arith.constant 0 : index
    %c2_109 = arith.constant 2 : index
    %180 = vector.load %arg1[%c0_107, %c0_108, %c2_109] : memref<1x16x8xf32, #tpu.memory_space<vmem>>, vector<1x16x1xf32>
    %181 = vector.shape_cast %180 : vector<1x16x1xf32> to vector<16x1xf32>
    %cst_110 = arith.constant dense<0.000000e+00> : vector<16x1xf32>
    %182 = tpu.matmul %0, %181, %cst_110 {dimension_numbers = #tpu.dot_dimension_numbers<[1], [0], [0], [1], [0, 0, 1, 1], [], []>} : vector<16x16xf32>, vector<16x1xf32>, vector<16x1xf32> -> vector<16x1xf32>
    %cst_111 = arith.constant dense<0.000000e+00> : vector<16x1xf32>
    %183 = tpu.matmul %0, %182, %cst_111 {dimension_numbers = #tpu.dot_dimension_numbers<[1], [0], [0], [1], [0, 0, 1, 1], [], []>} : vector<16x16xf32>, vector<16x1xf32>, vector<16x1xf32> -> vector<16x1xf32>
    %cst_112 = arith.constant 2.000000e+00 : f32
    %184 = vector.broadcast %cst_112 : f32 to vector<16x1xf32>
    %185 = arith.mulf %184, %183 : vector<16x1xf32>
    %186 = arith.subf %185, %181 : vector<16x1xf32>
    %cst_113 = arith.constant dense<0.000000e+00> : vector<16x32xf32>
    %187 = tpu.matmul %0, %179, %cst_113 {dimension_numbers = #tpu.dot_dimension_numbers<[1], [0], [0], [1], [0, 0, 1, 1], [], []>} : vector<16x16xf32>, vector<16x32xf32>, vector<16x32xf32> -> vector<16x32xf32>
    %cst_114 = arith.constant dense<0.000000e+00> : vector<16x32xf32>
    %188 = tpu.matmul %0, %187, %cst_114 {dimension_numbers = #tpu.dot_dimension_numbers<[1], [0], [0], [1], [0, 0, 1, 1], [], []>} : vector<16x16xf32>, vector<16x32xf32>, vector<16x32xf32> -> vector<16x32xf32>
    %cst_115 = arith.constant 2.000000e+00 : f32
    %189 = vector.broadcast %cst_115 : f32 to vector<16x32xf32>
    %190 = arith.mulf %189, %188 : vector<16x32xf32>
    %191 = arith.subf %190, %179 : vector<16x32xf32>
    %c0_116 = arith.constant 0 : index
    %c0_117 = arith.constant 0 : index
    %192 = vector.load %arg5[%c0_116, %c0_117] : memref<1x64xf32, #tpu.memory_space<vmem>>, vector<1x64xf32>
    %c0_118 = arith.constant 0 : index
    %c0_119 = arith.constant 0 : index
    %193 = vector.load %arg3[%c0_118, %c0_119] : memref<3x64xf32, #tpu.memory_space<vmem>>, vector<1x64xf32>
    %194 = vector.broadcast %181 : vector<16x1xf32> to vector<16x64xf32>
    %195 = vector.broadcast %193 : vector<1x64xf32> to vector<16x64xf32>
    %196 = arith.mulf %194, %195 : vector<16x64xf32>
    %197 = vector.broadcast %192 : vector<1x64xf32> to vector<16x64xf32>
    %198 = arith.addf %197, %196 : vector<16x64xf32>
    %c0_120 = arith.constant 0 : index
    %c0_121 = arith.constant 0 : index
    %c0_122 = arith.constant 0 : index
    %199 = vector.load %arg4[%c0_120, %c0_121, %c0_122] : memref<3x32x64xf32, #tpu.memory_space<vmem>>, vector<1x32x64xf32>
    %200 = vector.shape_cast %199 : vector<1x32x64xf32> to vector<32x64xf32>
    %cst_123 = arith.constant dense<0.000000e+00> : vector<16x64xf32>
    %201 = tpu.matmul %179, %200, %cst_123 {dimension_numbers = #tpu.dot_dimension_numbers<[1], [0], [0], [1], [0, 0, 1, 1], [], []>} : vector<16x32xf32>, vector<32x64xf32>, vector<16x64xf32> -> vector<16x64xf32>
    %202 = arith.addf %198, %201 : vector<16x64xf32>
    %c1_124 = arith.constant 1 : index
    %c0_125 = arith.constant 0 : index
    %203 = vector.load %arg3[%c1_124, %c0_125] : memref<3x64xf32, #tpu.memory_space<vmem>>, vector<1x64xf32>
    %204 = vector.broadcast %182 : vector<16x1xf32> to vector<16x64xf32>
    %205 = vector.broadcast %203 : vector<1x64xf32> to vector<16x64xf32>
    %206 = arith.mulf %204, %205 : vector<16x64xf32>
    %207 = arith.addf %202, %206 : vector<16x64xf32>
    %c1_126 = arith.constant 1 : index
    %c0_127 = arith.constant 0 : index
    %c0_128 = arith.constant 0 : index
    %208 = vector.load %arg4[%c1_126, %c0_127, %c0_128] : memref<3x32x64xf32, #tpu.memory_space<vmem>>, vector<1x32x64xf32>
    %209 = vector.shape_cast %208 : vector<1x32x64xf32> to vector<32x64xf32>
    %cst_129 = arith.constant dense<0.000000e+00> : vector<16x64xf32>
    %210 = tpu.matmul %187, %209, %cst_129 {dimension_numbers = #tpu.dot_dimension_numbers<[1], [0], [0], [1], [0, 0, 1, 1], [], []>} : vector<16x32xf32>, vector<32x64xf32>, vector<16x64xf32> -> vector<16x64xf32>
    %211 = arith.addf %207, %210 : vector<16x64xf32>
    %c2_130 = arith.constant 2 : index
    %c0_131 = arith.constant 0 : index
    %212 = vector.load %arg3[%c2_130, %c0_131] : memref<3x64xf32, #tpu.memory_space<vmem>>, vector<1x64xf32>
    %213 = vector.broadcast %186 : vector<16x1xf32> to vector<16x64xf32>
    %214 = vector.broadcast %212 : vector<1x64xf32> to vector<16x64xf32>
    %215 = arith.mulf %213, %214 : vector<16x64xf32>
    %216 = arith.addf %211, %215 : vector<16x64xf32>
    %c2_132 = arith.constant 2 : index
    %c0_133 = arith.constant 0 : index
    %c0_134 = arith.constant 0 : index
    %217 = vector.load %arg4[%c2_132, %c0_133, %c0_134] : memref<3x32x64xf32, #tpu.memory_space<vmem>>, vector<1x32x64xf32>
    %218 = vector.shape_cast %217 : vector<1x32x64xf32> to vector<32x64xf32>
    %cst_135 = arith.constant dense<0.000000e+00> : vector<16x64xf32>
    %219 = tpu.matmul %191, %218, %cst_135 {dimension_numbers = #tpu.dot_dimension_numbers<[1], [0], [0], [1], [0, 0, 1, 1], [], []>} : vector<16x32xf32>, vector<32x64xf32>, vector<16x64xf32> -> vector<16x64xf32>
    %220 = arith.addf %216, %219 : vector<16x64xf32>
    %221 = arith.negf %220 : vector<16x64xf32>
    %222 = math.exp %221 : vector<16x64xf32>
    %cst_136 = arith.constant 1.000000e+00 : f32
    %223 = vector.broadcast %cst_136 : f32 to vector<16x64xf32>
    %224 = arith.addf %223, %222 : vector<16x64xf32>
    %225 = arith.divf %223, %224 : vector<16x64xf32>
    %226 = vector.extract_strided_slice %225 {offsets = [0, 0], sizes = [16, 32], strides = [1, 1]} : vector<16x64xf32> to vector<16x32xf32>
    %227 = vector.extract_strided_slice %225 {offsets = [0, 32], sizes = [16, 32], strides = [1, 1]} : vector<16x64xf32> to vector<16x32xf32>
    %228 = arith.mulf %226, %179 : vector<16x32xf32>
    %cst_137 = arith.constant dense<0.000000e+00> : vector<16x32xf32>
    %229 = tpu.matmul %0, %228, %cst_137 {dimension_numbers = #tpu.dot_dimension_numbers<[1], [0], [0], [1], [0, 0, 1, 1], [], []>} : vector<16x16xf32>, vector<16x32xf32>, vector<16x32xf32> -> vector<16x32xf32>
    %cst_138 = arith.constant dense<0.000000e+00> : vector<16x32xf32>
    %230 = tpu.matmul %0, %229, %cst_138 {dimension_numbers = #tpu.dot_dimension_numbers<[1], [0], [0], [1], [0, 0, 1, 1], [], []>} : vector<16x16xf32>, vector<16x32xf32>, vector<16x32xf32> -> vector<16x32xf32>
    %cst_139 = arith.constant 2.000000e+00 : f32
    %231 = vector.broadcast %cst_139 : f32 to vector<16x32xf32>
    %232 = arith.mulf %231, %230 : vector<16x32xf32>
    %233 = arith.subf %232, %228 : vector<16x32xf32>
    %c0_140 = arith.constant 0 : index
    %c0_141 = arith.constant 0 : index
    %234 = vector.load %arg8[%c0_140, %c0_141] : memref<1x32xf32, #tpu.memory_space<vmem>>, vector<1x32xf32>
    %c0_142 = arith.constant 0 : index
    %c0_143 = arith.constant 0 : index
    %235 = vector.load %arg6[%c0_142, %c0_143] : memref<3x32xf32, #tpu.memory_space<vmem>>, vector<1x32xf32>
    %236 = vector.broadcast %181 : vector<16x1xf32> to vector<16x32xf32>
    %237 = vector.broadcast %235 : vector<1x32xf32> to vector<16x32xf32>
    %238 = arith.mulf %236, %237 : vector<16x32xf32>
    %239 = vector.broadcast %234 : vector<1x32xf32> to vector<16x32xf32>
    %240 = arith.addf %239, %238 : vector<16x32xf32>
    %c0_144 = arith.constant 0 : index
    %c0_145 = arith.constant 0 : index
    %c0_146 = arith.constant 0 : index
    %241 = vector.load %arg7[%c0_144, %c0_145, %c0_146] : memref<3x32x32xf32, #tpu.memory_space<vmem>>, vector<1x32x32xf32>
    %242 = vector.shape_cast %241 : vector<1x32x32xf32> to vector<32x32xf32>
    %cst_147 = arith.constant dense<0.000000e+00> : vector<16x32xf32>
    %243 = tpu.matmul %228, %242, %cst_147 {dimension_numbers = #tpu.dot_dimension_numbers<[1], [0], [0], [1], [0, 0, 1, 1], [], []>} : vector<16x32xf32>, vector<32x32xf32>, vector<16x32xf32> -> vector<16x32xf32>
    %244 = arith.addf %240, %243 : vector<16x32xf32>
    %c1_148 = arith.constant 1 : index
    %c0_149 = arith.constant 0 : index
    %245 = vector.load %arg6[%c1_148, %c0_149] : memref<3x32xf32, #tpu.memory_space<vmem>>, vector<1x32xf32>
    %246 = vector.broadcast %182 : vector<16x1xf32> to vector<16x32xf32>
    %247 = vector.broadcast %245 : vector<1x32xf32> to vector<16x32xf32>
    %248 = arith.mulf %246, %247 : vector<16x32xf32>
    %249 = arith.addf %244, %248 : vector<16x32xf32>
    %c1_150 = arith.constant 1 : index
    %c0_151 = arith.constant 0 : index
    %c0_152 = arith.constant 0 : index
    %250 = vector.load %arg7[%c1_150, %c0_151, %c0_152] : memref<3x32x32xf32, #tpu.memory_space<vmem>>, vector<1x32x32xf32>
    %251 = vector.shape_cast %250 : vector<1x32x32xf32> to vector<32x32xf32>
    %cst_153 = arith.constant dense<0.000000e+00> : vector<16x32xf32>
    %252 = tpu.matmul %229, %251, %cst_153 {dimension_numbers = #tpu.dot_dimension_numbers<[1], [0], [0], [1], [0, 0, 1, 1], [], []>} : vector<16x32xf32>, vector<32x32xf32>, vector<16x32xf32> -> vector<16x32xf32>
    %253 = arith.addf %249, %252 : vector<16x32xf32>
    %c2_154 = arith.constant 2 : index
    %c0_155 = arith.constant 0 : index
    %254 = vector.load %arg6[%c2_154, %c0_155] : memref<3x32xf32, #tpu.memory_space<vmem>>, vector<1x32xf32>
    %255 = vector.broadcast %186 : vector<16x1xf32> to vector<16x32xf32>
    %256 = vector.broadcast %254 : vector<1x32xf32> to vector<16x32xf32>
    %257 = arith.mulf %255, %256 : vector<16x32xf32>
    %258 = arith.addf %253, %257 : vector<16x32xf32>
    %c2_156 = arith.constant 2 : index
    %c0_157 = arith.constant 0 : index
    %c0_158 = arith.constant 0 : index
    %259 = vector.load %arg7[%c2_156, %c0_157, %c0_158] : memref<3x32x32xf32, #tpu.memory_space<vmem>>, vector<1x32x32xf32>
    %260 = vector.shape_cast %259 : vector<1x32x32xf32> to vector<32x32xf32>
    %cst_159 = arith.constant dense<0.000000e+00> : vector<16x32xf32>
    %261 = tpu.matmul %233, %260, %cst_159 {dimension_numbers = #tpu.dot_dimension_numbers<[1], [0], [0], [1], [0, 0, 1, 1], [], []>} : vector<16x32xf32>, vector<32x32xf32>, vector<16x32xf32> -> vector<16x32xf32>
    %262 = arith.addf %258, %261 : vector<16x32xf32>
    %263 = math.tanh %262 : vector<16x32xf32>
    %264 = arith.mulf %227, %179 : vector<16x32xf32>
    %cst_160 = arith.constant 1.000000e+00 : f32
    %265 = vector.broadcast %cst_160 : f32 to vector<16x32xf32>
    %266 = arith.subf %265, %227 : vector<16x32xf32>
    %267 = arith.mulf %266, %263 : vector<16x32xf32>
    %268 = arith.addf %264, %267 : vector<16x32xf32>
    %c0_161 = arith.constant 0 : index
    %c0_162 = arith.constant 0 : index
    %c3 = arith.constant 3 : index
    %269 = vector.load %arg1[%c0_161, %c0_162, %c3] : memref<1x16x8xf32, #tpu.memory_space<vmem>>, vector<1x16x1xf32>
    %270 = vector.shape_cast %269 : vector<1x16x1xf32> to vector<16x1xf32>
    %cst_163 = arith.constant dense<0.000000e+00> : vector<16x1xf32>
    %271 = tpu.matmul %0, %270, %cst_163 {dimension_numbers = #tpu.dot_dimension_numbers<[1], [0], [0], [1], [0, 0, 1, 1], [], []>} : vector<16x16xf32>, vector<16x1xf32>, vector<16x1xf32> -> vector<16x1xf32>
    %cst_164 = arith.constant dense<0.000000e+00> : vector<16x1xf32>
    %272 = tpu.matmul %0, %271, %cst_164 {dimension_numbers = #tpu.dot_dimension_numbers<[1], [0], [0], [1], [0, 0, 1, 1], [], []>} : vector<16x16xf32>, vector<16x1xf32>, vector<16x1xf32> -> vector<16x1xf32>
    %cst_165 = arith.constant 2.000000e+00 : f32
    %273 = vector.broadcast %cst_165 : f32 to vector<16x1xf32>
    %274 = arith.mulf %273, %272 : vector<16x1xf32>
    %275 = arith.subf %274, %270 : vector<16x1xf32>
    %cst_166 = arith.constant dense<0.000000e+00> : vector<16x32xf32>
    %276 = tpu.matmul %0, %268, %cst_166 {dimension_numbers = #tpu.dot_dimension_numbers<[1], [0], [0], [1], [0, 0, 1, 1], [], []>} : vector<16x16xf32>, vector<16x32xf32>, vector<16x32xf32> -> vector<16x32xf32>
    %cst_167 = arith.constant dense<0.000000e+00> : vector<16x32xf32>
    %277 = tpu.matmul %0, %276, %cst_167 {dimension_numbers = #tpu.dot_dimension_numbers<[1], [0], [0], [1], [0, 0, 1, 1], [], []>} : vector<16x16xf32>, vector<16x32xf32>, vector<16x32xf32> -> vector<16x32xf32>
    %cst_168 = arith.constant 2.000000e+00 : f32
    %278 = vector.broadcast %cst_168 : f32 to vector<16x32xf32>
    %279 = arith.mulf %278, %277 : vector<16x32xf32>
    %280 = arith.subf %279, %268 : vector<16x32xf32>
    %c0_169 = arith.constant 0 : index
    %c0_170 = arith.constant 0 : index
    %281 = vector.load %arg5[%c0_169, %c0_170] : memref<1x64xf32, #tpu.memory_space<vmem>>, vector<1x64xf32>
    %c0_171 = arith.constant 0 : index
    %c0_172 = arith.constant 0 : index
    %282 = vector.load %arg3[%c0_171, %c0_172] : memref<3x64xf32, #tpu.memory_space<vmem>>, vector<1x64xf32>
    %283 = vector.broadcast %270 : vector<16x1xf32> to vector<16x64xf32>
    %284 = vector.broadcast %282 : vector<1x64xf32> to vector<16x64xf32>
    %285 = arith.mulf %283, %284 : vector<16x64xf32>
    %286 = vector.broadcast %281 : vector<1x64xf32> to vector<16x64xf32>
    %287 = arith.addf %286, %285 : vector<16x64xf32>
    %c0_173 = arith.constant 0 : index
    %c0_174 = arith.constant 0 : index
    %c0_175 = arith.constant 0 : index
    %288 = vector.load %arg4[%c0_173, %c0_174, %c0_175] : memref<3x32x64xf32, #tpu.memory_space<vmem>>, vector<1x32x64xf32>
    %289 = vector.shape_cast %288 : vector<1x32x64xf32> to vector<32x64xf32>
    %cst_176 = arith.constant dense<0.000000e+00> : vector<16x64xf32>
    %290 = tpu.matmul %268, %289, %cst_176 {dimension_numbers = #tpu.dot_dimension_numbers<[1], [0], [0], [1], [0, 0, 1, 1], [], []>} : vector<16x32xf32>, vector<32x64xf32>, vector<16x64xf32> -> vector<16x64xf32>
    %291 = arith.addf %287, %290 : vector<16x64xf32>
    %c1_177 = arith.constant 1 : index
    %c0_178 = arith.constant 0 : index
    %292 = vector.load %arg3[%c1_177, %c0_178] : memref<3x64xf32, #tpu.memory_space<vmem>>, vector<1x64xf32>
    %293 = vector.broadcast %271 : vector<16x1xf32> to vector<16x64xf32>
    %294 = vector.broadcast %292 : vector<1x64xf32> to vector<16x64xf32>
    %295 = arith.mulf %293, %294 : vector<16x64xf32>
    %296 = arith.addf %291, %295 : vector<16x64xf32>
    %c1_179 = arith.constant 1 : index
    %c0_180 = arith.constant 0 : index
    %c0_181 = arith.constant 0 : index
    %297 = vector.load %arg4[%c1_179, %c0_180, %c0_181] : memref<3x32x64xf32, #tpu.memory_space<vmem>>, vector<1x32x64xf32>
    %298 = vector.shape_cast %297 : vector<1x32x64xf32> to vector<32x64xf32>
    %cst_182 = arith.constant dense<0.000000e+00> : vector<16x64xf32>
    %299 = tpu.matmul %276, %298, %cst_182 {dimension_numbers = #tpu.dot_dimension_numbers<[1], [0], [0], [1], [0, 0, 1, 1], [], []>} : vector<16x32xf32>, vector<32x64xf32>, vector<16x64xf32> -> vector<16x64xf32>
    %300 = arith.addf %296, %299 : vector<16x64xf32>
    %c2_183 = arith.constant 2 : index
    %c0_184 = arith.constant 0 : index
    %301 = vector.load %arg3[%c2_183, %c0_184] : memref<3x64xf32, #tpu.memory_space<vmem>>, vector<1x64xf32>
    %302 = vector.broadcast %275 : vector<16x1xf32> to vector<16x64xf32>
    %303 = vector.broadcast %301 : vector<1x64xf32> to vector<16x64xf32>
    %304 = arith.mulf %302, %303 : vector<16x64xf32>
    %305 = arith.addf %300, %304 : vector<16x64xf32>
    %c2_185 = arith.constant 2 : index
    %c0_186 = arith.constant 0 : index
    %c0_187 = arith.constant 0 : index
    %306 = vector.load %arg4[%c2_185, %c0_186, %c0_187] : memref<3x32x64xf32, #tpu.memory_space<vmem>>, vector<1x32x64xf32>
    %307 = vector.shape_cast %306 : vector<1x32x64xf32> to vector<32x64xf32>
    %cst_188 = arith.constant dense<0.000000e+00> : vector<16x64xf32>
    %308 = tpu.matmul %280, %307, %cst_188 {dimension_numbers = #tpu.dot_dimension_numbers<[1], [0], [0], [1], [0, 0, 1, 1], [], []>} : vector<16x32xf32>, vector<32x64xf32>, vector<16x64xf32> -> vector<16x64xf32>
    %309 = arith.addf %305, %308 : vector<16x64xf32>
    %310 = arith.negf %309 : vector<16x64xf32>
    %311 = math.exp %310 : vector<16x64xf32>
    %cst_189 = arith.constant 1.000000e+00 : f32
    %312 = vector.broadcast %cst_189 : f32 to vector<16x64xf32>
    %313 = arith.addf %312, %311 : vector<16x64xf32>
    %314 = arith.divf %312, %313 : vector<16x64xf32>
    %315 = vector.extract_strided_slice %314 {offsets = [0, 0], sizes = [16, 32], strides = [1, 1]} : vector<16x64xf32> to vector<16x32xf32>
    %316 = vector.extract_strided_slice %314 {offsets = [0, 32], sizes = [16, 32], strides = [1, 1]} : vector<16x64xf32> to vector<16x32xf32>
    %317 = arith.mulf %315, %268 : vector<16x32xf32>
    %cst_190 = arith.constant dense<0.000000e+00> : vector<16x32xf32>
    %318 = tpu.matmul %0, %317, %cst_190 {dimension_numbers = #tpu.dot_dimension_numbers<[1], [0], [0], [1], [0, 0, 1, 1], [], []>} : vector<16x16xf32>, vector<16x32xf32>, vector<16x32xf32> -> vector<16x32xf32>
    %cst_191 = arith.constant dense<0.000000e+00> : vector<16x32xf32>
    %319 = tpu.matmul %0, %318, %cst_191 {dimension_numbers = #tpu.dot_dimension_numbers<[1], [0], [0], [1], [0, 0, 1, 1], [], []>} : vector<16x16xf32>, vector<16x32xf32>, vector<16x32xf32> -> vector<16x32xf32>
    %cst_192 = arith.constant 2.000000e+00 : f32
    %320 = vector.broadcast %cst_192 : f32 to vector<16x32xf32>
    %321 = arith.mulf %320, %319 : vector<16x32xf32>
    %322 = arith.subf %321, %317 : vector<16x32xf32>
    %c0_193 = arith.constant 0 : index
    %c0_194 = arith.constant 0 : index
    %323 = vector.load %arg8[%c0_193, %c0_194] : memref<1x32xf32, #tpu.memory_space<vmem>>, vector<1x32xf32>
    %c0_195 = arith.constant 0 : index
    %c0_196 = arith.constant 0 : index
    %324 = vector.load %arg6[%c0_195, %c0_196] : memref<3x32xf32, #tpu.memory_space<vmem>>, vector<1x32xf32>
    %325 = vector.broadcast %270 : vector<16x1xf32> to vector<16x32xf32>
    %326 = vector.broadcast %324 : vector<1x32xf32> to vector<16x32xf32>
    %327 = arith.mulf %325, %326 : vector<16x32xf32>
    %328 = vector.broadcast %323 : vector<1x32xf32> to vector<16x32xf32>
    %329 = arith.addf %328, %327 : vector<16x32xf32>
    %c0_197 = arith.constant 0 : index
    %c0_198 = arith.constant 0 : index
    %c0_199 = arith.constant 0 : index
    %330 = vector.load %arg7[%c0_197, %c0_198, %c0_199] : memref<3x32x32xf32, #tpu.memory_space<vmem>>, vector<1x32x32xf32>
    %331 = vector.shape_cast %330 : vector<1x32x32xf32> to vector<32x32xf32>
    %cst_200 = arith.constant dense<0.000000e+00> : vector<16x32xf32>
    %332 = tpu.matmul %317, %331, %cst_200 {dimension_numbers = #tpu.dot_dimension_numbers<[1], [0], [0], [1], [0, 0, 1, 1], [], []>} : vector<16x32xf32>, vector<32x32xf32>, vector<16x32xf32> -> vector<16x32xf32>
    %333 = arith.addf %329, %332 : vector<16x32xf32>
    %c1_201 = arith.constant 1 : index
    %c0_202 = arith.constant 0 : index
    %334 = vector.load %arg6[%c1_201, %c0_202] : memref<3x32xf32, #tpu.memory_space<vmem>>, vector<1x32xf32>
    %335 = vector.broadcast %271 : vector<16x1xf32> to vector<16x32xf32>
    %336 = vector.broadcast %334 : vector<1x32xf32> to vector<16x32xf32>
    %337 = arith.mulf %335, %336 : vector<16x32xf32>
    %338 = arith.addf %333, %337 : vector<16x32xf32>
    %c1_203 = arith.constant 1 : index
    %c0_204 = arith.constant 0 : index
    %c0_205 = arith.constant 0 : index
    %339 = vector.load %arg7[%c1_203, %c0_204, %c0_205] : memref<3x32x32xf32, #tpu.memory_space<vmem>>, vector<1x32x32xf32>
    %340 = vector.shape_cast %339 : vector<1x32x32xf32> to vector<32x32xf32>
    %cst_206 = arith.constant dense<0.000000e+00> : vector<16x32xf32>
    %341 = tpu.matmul %318, %340, %cst_206 {dimension_numbers = #tpu.dot_dimension_numbers<[1], [0], [0], [1], [0, 0, 1, 1], [], []>} : vector<16x32xf32>, vector<32x32xf32>, vector<16x32xf32> -> vector<16x32xf32>
    %342 = arith.addf %338, %341 : vector<16x32xf32>
    %c2_207 = arith.constant 2 : index
    %c0_208 = arith.constant 0 : index
    %343 = vector.load %arg6[%c2_207, %c0_208] : memref<3x32xf32, #tpu.memory_space<vmem>>, vector<1x32xf32>
    %344 = vector.broadcast %275 : vector<16x1xf32> to vector<16x32xf32>
    %345 = vector.broadcast %343 : vector<1x32xf32> to vector<16x32xf32>
    %346 = arith.mulf %344, %345 : vector<16x32xf32>
    %347 = arith.addf %342, %346 : vector<16x32xf32>
    %c2_209 = arith.constant 2 : index
    %c0_210 = arith.constant 0 : index
    %c0_211 = arith.constant 0 : index
    %348 = vector.load %arg7[%c2_209, %c0_210, %c0_211] : memref<3x32x32xf32, #tpu.memory_space<vmem>>, vector<1x32x32xf32>
    %349 = vector.shape_cast %348 : vector<1x32x32xf32> to vector<32x32xf32>
    %cst_212 = arith.constant dense<0.000000e+00> : vector<16x32xf32>
    %350 = tpu.matmul %322, %349, %cst_212 {dimension_numbers = #tpu.dot_dimension_numbers<[1], [0], [0], [1], [0, 0, 1, 1], [], []>} : vector<16x32xf32>, vector<32x32xf32>, vector<16x32xf32> -> vector<16x32xf32>
    %351 = arith.addf %347, %350 : vector<16x32xf32>
    %352 = math.tanh %351 : vector<16x32xf32>
    %353 = arith.mulf %316, %268 : vector<16x32xf32>
    %cst_213 = arith.constant 1.000000e+00 : f32
    %354 = vector.broadcast %cst_213 : f32 to vector<16x32xf32>
    %355 = arith.subf %354, %316 : vector<16x32xf32>
    %356 = arith.mulf %355, %352 : vector<16x32xf32>
    %357 = arith.addf %353, %356 : vector<16x32xf32>
    %c0_214 = arith.constant 0 : index
    %c0_215 = arith.constant 0 : index
    %c4 = arith.constant 4 : index
    %358 = vector.load %arg1[%c0_214, %c0_215, %c4] : memref<1x16x8xf32, #tpu.memory_space<vmem>>, vector<1x16x1xf32>
    %359 = vector.shape_cast %358 : vector<1x16x1xf32> to vector<16x1xf32>
    %cst_216 = arith.constant dense<0.000000e+00> : vector<16x1xf32>
    %360 = tpu.matmul %0, %359, %cst_216 {dimension_numbers = #tpu.dot_dimension_numbers<[1], [0], [0], [1], [0, 0, 1, 1], [], []>} : vector<16x16xf32>, vector<16x1xf32>, vector<16x1xf32> -> vector<16x1xf32>
    %cst_217 = arith.constant dense<0.000000e+00> : vector<16x1xf32>
    %361 = tpu.matmul %0, %360, %cst_217 {dimension_numbers = #tpu.dot_dimension_numbers<[1], [0], [0], [1], [0, 0, 1, 1], [], []>} : vector<16x16xf32>, vector<16x1xf32>, vector<16x1xf32> -> vector<16x1xf32>
    %cst_218 = arith.constant 2.000000e+00 : f32
    %362 = vector.broadcast %cst_218 : f32 to vector<16x1xf32>
    %363 = arith.mulf %362, %361 : vector<16x1xf32>
    %364 = arith.subf %363, %359 : vector<16x1xf32>
    %cst_219 = arith.constant dense<0.000000e+00> : vector<16x32xf32>
    %365 = tpu.matmul %0, %357, %cst_219 {dimension_numbers = #tpu.dot_dimension_numbers<[1], [0], [0], [1], [0, 0, 1, 1], [], []>} : vector<16x16xf32>, vector<16x32xf32>, vector<16x32xf32> -> vector<16x32xf32>
    %cst_220 = arith.constant dense<0.000000e+00> : vector<16x32xf32>
    %366 = tpu.matmul %0, %365, %cst_220 {dimension_numbers = #tpu.dot_dimension_numbers<[1], [0], [0], [1], [0, 0, 1, 1], [], []>} : vector<16x16xf32>, vector<16x32xf32>, vector<16x32xf32> -> vector<16x32xf32>
    %cst_221 = arith.constant 2.000000e+00 : f32
    %367 = vector.broadcast %cst_221 : f32 to vector<16x32xf32>
    %368 = arith.mulf %367, %366 : vector<16x32xf32>
    %369 = arith.subf %368, %357 : vector<16x32xf32>
    %c0_222 = arith.constant 0 : index
    %c0_223 = arith.constant 0 : index
    %370 = vector.load %arg5[%c0_222, %c0_223] : memref<1x64xf32, #tpu.memory_space<vmem>>, vector<1x64xf32>
    %c0_224 = arith.constant 0 : index
    %c0_225 = arith.constant 0 : index
    %371 = vector.load %arg3[%c0_224, %c0_225] : memref<3x64xf32, #tpu.memory_space<vmem>>, vector<1x64xf32>
    %372 = vector.broadcast %359 : vector<16x1xf32> to vector<16x64xf32>
    %373 = vector.broadcast %371 : vector<1x64xf32> to vector<16x64xf32>
    %374 = arith.mulf %372, %373 : vector<16x64xf32>
    %375 = vector.broadcast %370 : vector<1x64xf32> to vector<16x64xf32>
    %376 = arith.addf %375, %374 : vector<16x64xf32>
    %c0_226 = arith.constant 0 : index
    %c0_227 = arith.constant 0 : index
    %c0_228 = arith.constant 0 : index
    %377 = vector.load %arg4[%c0_226, %c0_227, %c0_228] : memref<3x32x64xf32, #tpu.memory_space<vmem>>, vector<1x32x64xf32>
    %378 = vector.shape_cast %377 : vector<1x32x64xf32> to vector<32x64xf32>
    %cst_229 = arith.constant dense<0.000000e+00> : vector<16x64xf32>
    %379 = tpu.matmul %357, %378, %cst_229 {dimension_numbers = #tpu.dot_dimension_numbers<[1], [0], [0], [1], [0, 0, 1, 1], [], []>} : vector<16x32xf32>, vector<32x64xf32>, vector<16x64xf32> -> vector<16x64xf32>
    %380 = arith.addf %376, %379 : vector<16x64xf32>
    %c1_230 = arith.constant 1 : index
    %c0_231 = arith.constant 0 : index
    %381 = vector.load %arg3[%c1_230, %c0_231] : memref<3x64xf32, #tpu.memory_space<vmem>>, vector<1x64xf32>
    %382 = vector.broadcast %360 : vector<16x1xf32> to vector<16x64xf32>
    %383 = vector.broadcast %381 : vector<1x64xf32> to vector<16x64xf32>
    %384 = arith.mulf %382, %383 : vector<16x64xf32>
    %385 = arith.addf %380, %384 : vector<16x64xf32>
    %c1_232 = arith.constant 1 : index
    %c0_233 = arith.constant 0 : index
    %c0_234 = arith.constant 0 : index
    %386 = vector.load %arg4[%c1_232, %c0_233, %c0_234] : memref<3x32x64xf32, #tpu.memory_space<vmem>>, vector<1x32x64xf32>
    %387 = vector.shape_cast %386 : vector<1x32x64xf32> to vector<32x64xf32>
    %cst_235 = arith.constant dense<0.000000e+00> : vector<16x64xf32>
    %388 = tpu.matmul %365, %387, %cst_235 {dimension_numbers = #tpu.dot_dimension_numbers<[1], [0], [0], [1], [0, 0, 1, 1], [], []>} : vector<16x32xf32>, vector<32x64xf32>, vector<16x64xf32> -> vector<16x64xf32>
    %389 = arith.addf %385, %388 : vector<16x64xf32>
    %c2_236 = arith.constant 2 : index
    %c0_237 = arith.constant 0 : index
    %390 = vector.load %arg3[%c2_236, %c0_237] : memref<3x64xf32, #tpu.memory_space<vmem>>, vector<1x64xf32>
    %391 = vector.broadcast %364 : vector<16x1xf32> to vector<16x64xf32>
    %392 = vector.broadcast %390 : vector<1x64xf32> to vector<16x64xf32>
    %393 = arith.mulf %391, %392 : vector<16x64xf32>
    %394 = arith.addf %389, %393 : vector<16x64xf32>
    %c2_238 = arith.constant 2 : index
    %c0_239 = arith.constant 0 : index
    %c0_240 = arith.constant 0 : index
    %395 = vector.load %arg4[%c2_238, %c0_239, %c0_240] : memref<3x32x64xf32, #tpu.memory_space<vmem>>, vector<1x32x64xf32>
    %396 = vector.shape_cast %395 : vector<1x32x64xf32> to vector<32x64xf32>
    %cst_241 = arith.constant dense<0.000000e+00> : vector<16x64xf32>
    %397 = tpu.matmul %369, %396, %cst_241 {dimension_numbers = #tpu.dot_dimension_numbers<[1], [0], [0], [1], [0, 0, 1, 1], [], []>} : vector<16x32xf32>, vector<32x64xf32>, vector<16x64xf32> -> vector<16x64xf32>
    %398 = arith.addf %394, %397 : vector<16x64xf32>
    %399 = arith.negf %398 : vector<16x64xf32>
    %400 = math.exp %399 : vector<16x64xf32>
    %cst_242 = arith.constant 1.000000e+00 : f32
    %401 = vector.broadcast %cst_242 : f32 to vector<16x64xf32>
    %402 = arith.addf %401, %400 : vector<16x64xf32>
    %403 = arith.divf %401, %402 : vector<16x64xf32>
    %404 = vector.extract_strided_slice %403 {offsets = [0, 0], sizes = [16, 32], strides = [1, 1]} : vector<16x64xf32> to vector<16x32xf32>
    %405 = vector.extract_strided_slice %403 {offsets = [0, 32], sizes = [16, 32], strides = [1, 1]} : vector<16x64xf32> to vector<16x32xf32>
    %406 = arith.mulf %404, %357 : vector<16x32xf32>
    %cst_243 = arith.constant dense<0.000000e+00> : vector<16x32xf32>
    %407 = tpu.matmul %0, %406, %cst_243 {dimension_numbers = #tpu.dot_dimension_numbers<[1], [0], [0], [1], [0, 0, 1, 1], [], []>} : vector<16x16xf32>, vector<16x32xf32>, vector<16x32xf32> -> vector<16x32xf32>
    %cst_244 = arith.constant dense<0.000000e+00> : vector<16x32xf32>
    %408 = tpu.matmul %0, %407, %cst_244 {dimension_numbers = #tpu.dot_dimension_numbers<[1], [0], [0], [1], [0, 0, 1, 1], [], []>} : vector<16x16xf32>, vector<16x32xf32>, vector<16x32xf32> -> vector<16x32xf32>
    %cst_245 = arith.constant 2.000000e+00 : f32
    %409 = vector.broadcast %cst_245 : f32 to vector<16x32xf32>
    %410 = arith.mulf %409, %408 : vector<16x32xf32>
    %411 = arith.subf %410, %406 : vector<16x32xf32>
    %c0_246 = arith.constant 0 : index
    %c0_247 = arith.constant 0 : index
    %412 = vector.load %arg8[%c0_246, %c0_247] : memref<1x32xf32, #tpu.memory_space<vmem>>, vector<1x32xf32>
    %c0_248 = arith.constant 0 : index
    %c0_249 = arith.constant 0 : index
    %413 = vector.load %arg6[%c0_248, %c0_249] : memref<3x32xf32, #tpu.memory_space<vmem>>, vector<1x32xf32>
    %414 = vector.broadcast %359 : vector<16x1xf32> to vector<16x32xf32>
    %415 = vector.broadcast %413 : vector<1x32xf32> to vector<16x32xf32>
    %416 = arith.mulf %414, %415 : vector<16x32xf32>
    %417 = vector.broadcast %412 : vector<1x32xf32> to vector<16x32xf32>
    %418 = arith.addf %417, %416 : vector<16x32xf32>
    %c0_250 = arith.constant 0 : index
    %c0_251 = arith.constant 0 : index
    %c0_252 = arith.constant 0 : index
    %419 = vector.load %arg7[%c0_250, %c0_251, %c0_252] : memref<3x32x32xf32, #tpu.memory_space<vmem>>, vector<1x32x32xf32>
    %420 = vector.shape_cast %419 : vector<1x32x32xf32> to vector<32x32xf32>
    %cst_253 = arith.constant dense<0.000000e+00> : vector<16x32xf32>
    %421 = tpu.matmul %406, %420, %cst_253 {dimension_numbers = #tpu.dot_dimension_numbers<[1], [0], [0], [1], [0, 0, 1, 1], [], []>} : vector<16x32xf32>, vector<32x32xf32>, vector<16x32xf32> -> vector<16x32xf32>
    %422 = arith.addf %418, %421 : vector<16x32xf32>
    %c1_254 = arith.constant 1 : index
    %c0_255 = arith.constant 0 : index
    %423 = vector.load %arg6[%c1_254, %c0_255] : memref<3x32xf32, #tpu.memory_space<vmem>>, vector<1x32xf32>
    %424 = vector.broadcast %360 : vector<16x1xf32> to vector<16x32xf32>
    %425 = vector.broadcast %423 : vector<1x32xf32> to vector<16x32xf32>
    %426 = arith.mulf %424, %425 : vector<16x32xf32>
    %427 = arith.addf %422, %426 : vector<16x32xf32>
    %c1_256 = arith.constant 1 : index
    %c0_257 = arith.constant 0 : index
    %c0_258 = arith.constant 0 : index
    %428 = vector.load %arg7[%c1_256, %c0_257, %c0_258] : memref<3x32x32xf32, #tpu.memory_space<vmem>>, vector<1x32x32xf32>
    %429 = vector.shape_cast %428 : vector<1x32x32xf32> to vector<32x32xf32>
    %cst_259 = arith.constant dense<0.000000e+00> : vector<16x32xf32>
    %430 = tpu.matmul %407, %429, %cst_259 {dimension_numbers = #tpu.dot_dimension_numbers<[1], [0], [0], [1], [0, 0, 1, 1], [], []>} : vector<16x32xf32>, vector<32x32xf32>, vector<16x32xf32> -> vector<16x32xf32>
    %431 = arith.addf %427, %430 : vector<16x32xf32>
    %c2_260 = arith.constant 2 : index
    %c0_261 = arith.constant 0 : index
    %432 = vector.load %arg6[%c2_260, %c0_261] : memref<3x32xf32, #tpu.memory_space<vmem>>, vector<1x32xf32>
    %433 = vector.broadcast %364 : vector<16x1xf32> to vector<16x32xf32>
    %434 = vector.broadcast %432 : vector<1x32xf32> to vector<16x32xf32>
    %435 = arith.mulf %433, %434 : vector<16x32xf32>
    %436 = arith.addf %431, %435 : vector<16x32xf32>
    %c2_262 = arith.constant 2 : index
    %c0_263 = arith.constant 0 : index
    %c0_264 = arith.constant 0 : index
    %437 = vector.load %arg7[%c2_262, %c0_263, %c0_264] : memref<3x32x32xf32, #tpu.memory_space<vmem>>, vector<1x32x32xf32>
    %438 = vector.shape_cast %437 : vector<1x32x32xf32> to vector<32x32xf32>
    %cst_265 = arith.constant dense<0.000000e+00> : vector<16x32xf32>
    %439 = tpu.matmul %411, %438, %cst_265 {dimension_numbers = #tpu.dot_dimension_numbers<[1], [0], [0], [1], [0, 0, 1, 1], [], []>} : vector<16x32xf32>, vector<32x32xf32>, vector<16x32xf32> -> vector<16x32xf32>
    %440 = arith.addf %436, %439 : vector<16x32xf32>
    %441 = math.tanh %440 : vector<16x32xf32>
    %442 = arith.mulf %405, %357 : vector<16x32xf32>
    %cst_266 = arith.constant 1.000000e+00 : f32
    %443 = vector.broadcast %cst_266 : f32 to vector<16x32xf32>
    %444 = arith.subf %443, %405 : vector<16x32xf32>
    %445 = arith.mulf %444, %441 : vector<16x32xf32>
    %446 = arith.addf %442, %445 : vector<16x32xf32>
    %c0_267 = arith.constant 0 : index
    %c0_268 = arith.constant 0 : index
    %c5 = arith.constant 5 : index
    %447 = vector.load %arg1[%c0_267, %c0_268, %c5] : memref<1x16x8xf32, #tpu.memory_space<vmem>>, vector<1x16x1xf32>
    %448 = vector.shape_cast %447 : vector<1x16x1xf32> to vector<16x1xf32>
    %cst_269 = arith.constant dense<0.000000e+00> : vector<16x1xf32>
    %449 = tpu.matmul %0, %448, %cst_269 {dimension_numbers = #tpu.dot_dimension_numbers<[1], [0], [0], [1], [0, 0, 1, 1], [], []>} : vector<16x16xf32>, vector<16x1xf32>, vector<16x1xf32> -> vector<16x1xf32>
    %cst_270 = arith.constant dense<0.000000e+00> : vector<16x1xf32>
    %450 = tpu.matmul %0, %449, %cst_270 {dimension_numbers = #tpu.dot_dimension_numbers<[1], [0], [0], [1], [0, 0, 1, 1], [], []>} : vector<16x16xf32>, vector<16x1xf32>, vector<16x1xf32> -> vector<16x1xf32>
    %cst_271 = arith.constant 2.000000e+00 : f32
    %451 = vector.broadcast %cst_271 : f32 to vector<16x1xf32>
    %452 = arith.mulf %451, %450 : vector<16x1xf32>
    %453 = arith.subf %452, %448 : vector<16x1xf32>
    %cst_272 = arith.constant dense<0.000000e+00> : vector<16x32xf32>
    %454 = tpu.matmul %0, %446, %cst_272 {dimension_numbers = #tpu.dot_dimension_numbers<[1], [0], [0], [1], [0, 0, 1, 1], [], []>} : vector<16x16xf32>, vector<16x32xf32>, vector<16x32xf32> -> vector<16x32xf32>
    %cst_273 = arith.constant dense<0.000000e+00> : vector<16x32xf32>
    %455 = tpu.matmul %0, %454, %cst_273 {dimension_numbers = #tpu.dot_dimension_numbers<[1], [0], [0], [1], [0, 0, 1, 1], [], []>} : vector<16x16xf32>, vector<16x32xf32>, vector<16x32xf32> -> vector<16x32xf32>
    %cst_274 = arith.constant 2.000000e+00 : f32
    %456 = vector.broadcast %cst_274 : f32 to vector<16x32xf32>
    %457 = arith.mulf %456, %455 : vector<16x32xf32>
    %458 = arith.subf %457, %446 : vector<16x32xf32>
    %c0_275 = arith.constant 0 : index
    %c0_276 = arith.constant 0 : index
    %459 = vector.load %arg5[%c0_275, %c0_276] : memref<1x64xf32, #tpu.memory_space<vmem>>, vector<1x64xf32>
    %c0_277 = arith.constant 0 : index
    %c0_278 = arith.constant 0 : index
    %460 = vector.load %arg3[%c0_277, %c0_278] : memref<3x64xf32, #tpu.memory_space<vmem>>, vector<1x64xf32>
    %461 = vector.broadcast %448 : vector<16x1xf32> to vector<16x64xf32>
    %462 = vector.broadcast %460 : vector<1x64xf32> to vector<16x64xf32>
    %463 = arith.mulf %461, %462 : vector<16x64xf32>
    %464 = vector.broadcast %459 : vector<1x64xf32> to vector<16x64xf32>
    %465 = arith.addf %464, %463 : vector<16x64xf32>
    %c0_279 = arith.constant 0 : index
    %c0_280 = arith.constant 0 : index
    %c0_281 = arith.constant 0 : index
    %466 = vector.load %arg4[%c0_279, %c0_280, %c0_281] : memref<3x32x64xf32, #tpu.memory_space<vmem>>, vector<1x32x64xf32>
    %467 = vector.shape_cast %466 : vector<1x32x64xf32> to vector<32x64xf32>
    %cst_282 = arith.constant dense<0.000000e+00> : vector<16x64xf32>
    %468 = tpu.matmul %446, %467, %cst_282 {dimension_numbers = #tpu.dot_dimension_numbers<[1], [0], [0], [1], [0, 0, 1, 1], [], []>} : vector<16x32xf32>, vector<32x64xf32>, vector<16x64xf32> -> vector<16x64xf32>
    %469 = arith.addf %465, %468 : vector<16x64xf32>
    %c1_283 = arith.constant 1 : index
    %c0_284 = arith.constant 0 : index
    %470 = vector.load %arg3[%c1_283, %c0_284] : memref<3x64xf32, #tpu.memory_space<vmem>>, vector<1x64xf32>
    %471 = vector.broadcast %449 : vector<16x1xf32> to vector<16x64xf32>
    %472 = vector.broadcast %470 : vector<1x64xf32> to vector<16x64xf32>
    %473 = arith.mulf %471, %472 : vector<16x64xf32>
    %474 = arith.addf %469, %473 : vector<16x64xf32>
    %c1_285 = arith.constant 1 : index
    %c0_286 = arith.constant 0 : index
    %c0_287 = arith.constant 0 : index
    %475 = vector.load %arg4[%c1_285, %c0_286, %c0_287] : memref<3x32x64xf32, #tpu.memory_space<vmem>>, vector<1x32x64xf32>
    %476 = vector.shape_cast %475 : vector<1x32x64xf32> to vector<32x64xf32>
    %cst_288 = arith.constant dense<0.000000e+00> : vector<16x64xf32>
    %477 = tpu.matmul %454, %476, %cst_288 {dimension_numbers = #tpu.dot_dimension_numbers<[1], [0], [0], [1], [0, 0, 1, 1], [], []>} : vector<16x32xf32>, vector<32x64xf32>, vector<16x64xf32> -> vector<16x64xf32>
    %478 = arith.addf %474, %477 : vector<16x64xf32>
    %c2_289 = arith.constant 2 : index
    %c0_290 = arith.constant 0 : index
    %479 = vector.load %arg3[%c2_289, %c0_290] : memref<3x64xf32, #tpu.memory_space<vmem>>, vector<1x64xf32>
    %480 = vector.broadcast %453 : vector<16x1xf32> to vector<16x64xf32>
    %481 = vector.broadcast %479 : vector<1x64xf32> to vector<16x64xf32>
    %482 = arith.mulf %480, %481 : vector<16x64xf32>
    %483 = arith.addf %478, %482 : vector<16x64xf32>
    %c2_291 = arith.constant 2 : index
    %c0_292 = arith.constant 0 : index
    %c0_293 = arith.constant 0 : index
    %484 = vector.load %arg4[%c2_291, %c0_292, %c0_293] : memref<3x32x64xf32, #tpu.memory_space<vmem>>, vector<1x32x64xf32>
    %485 = vector.shape_cast %484 : vector<1x32x64xf32> to vector<32x64xf32>
    %cst_294 = arith.constant dense<0.000000e+00> : vector<16x64xf32>
    %486 = tpu.matmul %458, %485, %cst_294 {dimension_numbers = #tpu.dot_dimension_numbers<[1], [0], [0], [1], [0, 0, 1, 1], [], []>} : vector<16x32xf32>, vector<32x64xf32>, vector<16x64xf32> -> vector<16x64xf32>
    %487 = arith.addf %483, %486 : vector<16x64xf32>
    %488 = arith.negf %487 : vector<16x64xf32>
    %489 = math.exp %488 : vector<16x64xf32>
    %cst_295 = arith.constant 1.000000e+00 : f32
    %490 = vector.broadcast %cst_295 : f32 to vector<16x64xf32>
    %491 = arith.addf %490, %489 : vector<16x64xf32>
    %492 = arith.divf %490, %491 : vector<16x64xf32>
    %493 = vector.extract_strided_slice %492 {offsets = [0, 0], sizes = [16, 32], strides = [1, 1]} : vector<16x64xf32> to vector<16x32xf32>
    %494 = vector.extract_strided_slice %492 {offsets = [0, 32], sizes = [16, 32], strides = [1, 1]} : vector<16x64xf32> to vector<16x32xf32>
    %495 = arith.mulf %493, %446 : vector<16x32xf32>
    %cst_296 = arith.constant dense<0.000000e+00> : vector<16x32xf32>
    %496 = tpu.matmul %0, %495, %cst_296 {dimension_numbers = #tpu.dot_dimension_numbers<[1], [0], [0], [1], [0, 0, 1, 1], [], []>} : vector<16x16xf32>, vector<16x32xf32>, vector<16x32xf32> -> vector<16x32xf32>
    %cst_297 = arith.constant dense<0.000000e+00> : vector<16x32xf32>
    %497 = tpu.matmul %0, %496, %cst_297 {dimension_numbers = #tpu.dot_dimension_numbers<[1], [0], [0], [1], [0, 0, 1, 1], [], []>} : vector<16x16xf32>, vector<16x32xf32>, vector<16x32xf32> -> vector<16x32xf32>
    %cst_298 = arith.constant 2.000000e+00 : f32
    %498 = vector.broadcast %cst_298 : f32 to vector<16x32xf32>
    %499 = arith.mulf %498, %497 : vector<16x32xf32>
    %500 = arith.subf %499, %495 : vector<16x32xf32>
    %c0_299 = arith.constant 0 : index
    %c0_300 = arith.constant 0 : index
    %501 = vector.load %arg8[%c0_299, %c0_300] : memref<1x32xf32, #tpu.memory_space<vmem>>, vector<1x32xf32>
    %c0_301 = arith.constant 0 : index
    %c0_302 = arith.constant 0 : index
    %502 = vector.load %arg6[%c0_301, %c0_302] : memref<3x32xf32, #tpu.memory_space<vmem>>, vector<1x32xf32>
    %503 = vector.broadcast %448 : vector<16x1xf32> to vector<16x32xf32>
    %504 = vector.broadcast %502 : vector<1x32xf32> to vector<16x32xf32>
    %505 = arith.mulf %503, %504 : vector<16x32xf32>
    %506 = vector.broadcast %501 : vector<1x32xf32> to vector<16x32xf32>
    %507 = arith.addf %506, %505 : vector<16x32xf32>
    %c0_303 = arith.constant 0 : index
    %c0_304 = arith.constant 0 : index
    %c0_305 = arith.constant 0 : index
    %508 = vector.load %arg7[%c0_303, %c0_304, %c0_305] : memref<3x32x32xf32, #tpu.memory_space<vmem>>, vector<1x32x32xf32>
    %509 = vector.shape_cast %508 : vector<1x32x32xf32> to vector<32x32xf32>
    %cst_306 = arith.constant dense<0.000000e+00> : vector<16x32xf32>
    %510 = tpu.matmul %495, %509, %cst_306 {dimension_numbers = #tpu.dot_dimension_numbers<[1], [0], [0], [1], [0, 0, 1, 1], [], []>} : vector<16x32xf32>, vector<32x32xf32>, vector<16x32xf32> -> vector<16x32xf32>
    %511 = arith.addf %507, %510 : vector<16x32xf32>
    %c1_307 = arith.constant 1 : index
    %c0_308 = arith.constant 0 : index
    %512 = vector.load %arg6[%c1_307, %c0_308] : memref<3x32xf32, #tpu.memory_space<vmem>>, vector<1x32xf32>
    %513 = vector.broadcast %449 : vector<16x1xf32> to vector<16x32xf32>
    %514 = vector.broadcast %512 : vector<1x32xf32> to vector<16x32xf32>
    %515 = arith.mulf %513, %514 : vector<16x32xf32>
    %516 = arith.addf %511, %515 : vector<16x32xf32>
    %c1_309 = arith.constant 1 : index
    %c0_310 = arith.constant 0 : index
    %c0_311 = arith.constant 0 : index
    %517 = vector.load %arg7[%c1_309, %c0_310, %c0_311] : memref<3x32x32xf32, #tpu.memory_space<vmem>>, vector<1x32x32xf32>
    %518 = vector.shape_cast %517 : vector<1x32x32xf32> to vector<32x32xf32>
    %cst_312 = arith.constant dense<0.000000e+00> : vector<16x32xf32>
    %519 = tpu.matmul %496, %518, %cst_312 {dimension_numbers = #tpu.dot_dimension_numbers<[1], [0], [0], [1], [0, 0, 1, 1], [], []>} : vector<16x32xf32>, vector<32x32xf32>, vector<16x32xf32> -> vector<16x32xf32>
    %520 = arith.addf %516, %519 : vector<16x32xf32>
    %c2_313 = arith.constant 2 : index
    %c0_314 = arith.constant 0 : index
    %521 = vector.load %arg6[%c2_313, %c0_314] : memref<3x32xf32, #tpu.memory_space<vmem>>, vector<1x32xf32>
    %522 = vector.broadcast %453 : vector<16x1xf32> to vector<16x32xf32>
    %523 = vector.broadcast %521 : vector<1x32xf32> to vector<16x32xf32>
    %524 = arith.mulf %522, %523 : vector<16x32xf32>
    %525 = arith.addf %520, %524 : vector<16x32xf32>
    %c2_315 = arith.constant 2 : index
    %c0_316 = arith.constant 0 : index
    %c0_317 = arith.constant 0 : index
    %526 = vector.load %arg7[%c2_315, %c0_316, %c0_317] : memref<3x32x32xf32, #tpu.memory_space<vmem>>, vector<1x32x32xf32>
    %527 = vector.shape_cast %526 : vector<1x32x32xf32> to vector<32x32xf32>
    %cst_318 = arith.constant dense<0.000000e+00> : vector<16x32xf32>
    %528 = tpu.matmul %500, %527, %cst_318 {dimension_numbers = #tpu.dot_dimension_numbers<[1], [0], [0], [1], [0, 0, 1, 1], [], []>} : vector<16x32xf32>, vector<32x32xf32>, vector<16x32xf32> -> vector<16x32xf32>
    %529 = arith.addf %525, %528 : vector<16x32xf32>
    %530 = math.tanh %529 : vector<16x32xf32>
    %531 = arith.mulf %494, %446 : vector<16x32xf32>
    %cst_319 = arith.constant 1.000000e+00 : f32
    %532 = vector.broadcast %cst_319 : f32 to vector<16x32xf32>
    %533 = arith.subf %532, %494 : vector<16x32xf32>
    %534 = arith.mulf %533, %530 : vector<16x32xf32>
    %535 = arith.addf %531, %534 : vector<16x32xf32>
    %c0_320 = arith.constant 0 : index
    %c0_321 = arith.constant 0 : index
    %c6 = arith.constant 6 : index
    %536 = vector.load %arg1[%c0_320, %c0_321, %c6] : memref<1x16x8xf32, #tpu.memory_space<vmem>>, vector<1x16x1xf32>
    %537 = vector.shape_cast %536 : vector<1x16x1xf32> to vector<16x1xf32>
    %cst_322 = arith.constant dense<0.000000e+00> : vector<16x1xf32>
    %538 = tpu.matmul %0, %537, %cst_322 {dimension_numbers = #tpu.dot_dimension_numbers<[1], [0], [0], [1], [0, 0, 1, 1], [], []>} : vector<16x16xf32>, vector<16x1xf32>, vector<16x1xf32> -> vector<16x1xf32>
    %cst_323 = arith.constant dense<0.000000e+00> : vector<16x1xf32>
    %539 = tpu.matmul %0, %538, %cst_323 {dimension_numbers = #tpu.dot_dimension_numbers<[1], [0], [0], [1], [0, 0, 1, 1], [], []>} : vector<16x16xf32>, vector<16x1xf32>, vector<16x1xf32> -> vector<16x1xf32>
    %cst_324 = arith.constant 2.000000e+00 : f32
    %540 = vector.broadcast %cst_324 : f32 to vector<16x1xf32>
    %541 = arith.mulf %540, %539 : vector<16x1xf32>
    %542 = arith.subf %541, %537 : vector<16x1xf32>
    %cst_325 = arith.constant dense<0.000000e+00> : vector<16x32xf32>
    %543 = tpu.matmul %0, %535, %cst_325 {dimension_numbers = #tpu.dot_dimension_numbers<[1], [0], [0], [1], [0, 0, 1, 1], [], []>} : vector<16x16xf32>, vector<16x32xf32>, vector<16x32xf32> -> vector<16x32xf32>
    %cst_326 = arith.constant dense<0.000000e+00> : vector<16x32xf32>
    %544 = tpu.matmul %0, %543, %cst_326 {dimension_numbers = #tpu.dot_dimension_numbers<[1], [0], [0], [1], [0, 0, 1, 1], [], []>} : vector<16x16xf32>, vector<16x32xf32>, vector<16x32xf32> -> vector<16x32xf32>
    %cst_327 = arith.constant 2.000000e+00 : f32
    %545 = vector.broadcast %cst_327 : f32 to vector<16x32xf32>
    %546 = arith.mulf %545, %544 : vector<16x32xf32>
    %547 = arith.subf %546, %535 : vector<16x32xf32>
    %c0_328 = arith.constant 0 : index
    %c0_329 = arith.constant 0 : index
    %548 = vector.load %arg5[%c0_328, %c0_329] : memref<1x64xf32, #tpu.memory_space<vmem>>, vector<1x64xf32>
    %c0_330 = arith.constant 0 : index
    %c0_331 = arith.constant 0 : index
    %549 = vector.load %arg3[%c0_330, %c0_331] : memref<3x64xf32, #tpu.memory_space<vmem>>, vector<1x64xf32>
    %550 = vector.broadcast %537 : vector<16x1xf32> to vector<16x64xf32>
    %551 = vector.broadcast %549 : vector<1x64xf32> to vector<16x64xf32>
    %552 = arith.mulf %550, %551 : vector<16x64xf32>
    %553 = vector.broadcast %548 : vector<1x64xf32> to vector<16x64xf32>
    %554 = arith.addf %553, %552 : vector<16x64xf32>
    %c0_332 = arith.constant 0 : index
    %c0_333 = arith.constant 0 : index
    %c0_334 = arith.constant 0 : index
    %555 = vector.load %arg4[%c0_332, %c0_333, %c0_334] : memref<3x32x64xf32, #tpu.memory_space<vmem>>, vector<1x32x64xf32>
    %556 = vector.shape_cast %555 : vector<1x32x64xf32> to vector<32x64xf32>
    %cst_335 = arith.constant dense<0.000000e+00> : vector<16x64xf32>
    %557 = tpu.matmul %535, %556, %cst_335 {dimension_numbers = #tpu.dot_dimension_numbers<[1], [0], [0], [1], [0, 0, 1, 1], [], []>} : vector<16x32xf32>, vector<32x64xf32>, vector<16x64xf32> -> vector<16x64xf32>
    %558 = arith.addf %554, %557 : vector<16x64xf32>
    %c1_336 = arith.constant 1 : index
    %c0_337 = arith.constant 0 : index
    %559 = vector.load %arg3[%c1_336, %c0_337] : memref<3x64xf32, #tpu.memory_space<vmem>>, vector<1x64xf32>
    %560 = vector.broadcast %538 : vector<16x1xf32> to vector<16x64xf32>
    %561 = vector.broadcast %559 : vector<1x64xf32> to vector<16x64xf32>
    %562 = arith.mulf %560, %561 : vector<16x64xf32>
    %563 = arith.addf %558, %562 : vector<16x64xf32>
    %c1_338 = arith.constant 1 : index
    %c0_339 = arith.constant 0 : index
    %c0_340 = arith.constant 0 : index
    %564 = vector.load %arg4[%c1_338, %c0_339, %c0_340] : memref<3x32x64xf32, #tpu.memory_space<vmem>>, vector<1x32x64xf32>
    %565 = vector.shape_cast %564 : vector<1x32x64xf32> to vector<32x64xf32>
    %cst_341 = arith.constant dense<0.000000e+00> : vector<16x64xf32>
    %566 = tpu.matmul %543, %565, %cst_341 {dimension_numbers = #tpu.dot_dimension_numbers<[1], [0], [0], [1], [0, 0, 1, 1], [], []>} : vector<16x32xf32>, vector<32x64xf32>, vector<16x64xf32> -> vector<16x64xf32>
    %567 = arith.addf %563, %566 : vector<16x64xf32>
    %c2_342 = arith.constant 2 : index
    %c0_343 = arith.constant 0 : index
    %568 = vector.load %arg3[%c2_342, %c0_343] : memref<3x64xf32, #tpu.memory_space<vmem>>, vector<1x64xf32>
    %569 = vector.broadcast %542 : vector<16x1xf32> to vector<16x64xf32>
    %570 = vector.broadcast %568 : vector<1x64xf32> to vector<16x64xf32>
    %571 = arith.mulf %569, %570 : vector<16x64xf32>
    %572 = arith.addf %567, %571 : vector<16x64xf32>
    %c2_344 = arith.constant 2 : index
    %c0_345 = arith.constant 0 : index
    %c0_346 = arith.constant 0 : index
    %573 = vector.load %arg4[%c2_344, %c0_345, %c0_346] : memref<3x32x64xf32, #tpu.memory_space<vmem>>, vector<1x32x64xf32>
    %574 = vector.shape_cast %573 : vector<1x32x64xf32> to vector<32x64xf32>
    %cst_347 = arith.constant dense<0.000000e+00> : vector<16x64xf32>
    %575 = tpu.matmul %547, %574, %cst_347 {dimension_numbers = #tpu.dot_dimension_numbers<[1], [0], [0], [1], [0, 0, 1, 1], [], []>} : vector<16x32xf32>, vector<32x64xf32>, vector<16x64xf32> -> vector<16x64xf32>
    %576 = arith.addf %572, %575 : vector<16x64xf32>
    %577 = arith.negf %576 : vector<16x64xf32>
    %578 = math.exp %577 : vector<16x64xf32>
    %cst_348 = arith.constant 1.000000e+00 : f32
    %579 = vector.broadcast %cst_348 : f32 to vector<16x64xf32>
    %580 = arith.addf %579, %578 : vector<16x64xf32>
    %581 = arith.divf %579, %580 : vector<16x64xf32>
    %582 = vector.extract_strided_slice %581 {offsets = [0, 0], sizes = [16, 32], strides = [1, 1]} : vector<16x64xf32> to vector<16x32xf32>
    %583 = vector.extract_strided_slice %581 {offsets = [0, 32], sizes = [16, 32], strides = [1, 1]} : vector<16x64xf32> to vector<16x32xf32>
    %584 = arith.mulf %582, %535 : vector<16x32xf32>
    %cst_349 = arith.constant dense<0.000000e+00> : vector<16x32xf32>
    %585 = tpu.matmul %0, %584, %cst_349 {dimension_numbers = #tpu.dot_dimension_numbers<[1], [0], [0], [1], [0, 0, 1, 1], [], []>} : vector<16x16xf32>, vector<16x32xf32>, vector<16x32xf32> -> vector<16x32xf32>
    %cst_350 = arith.constant dense<0.000000e+00> : vector<16x32xf32>
    %586 = tpu.matmul %0, %585, %cst_350 {dimension_numbers = #tpu.dot_dimension_numbers<[1], [0], [0], [1], [0, 0, 1, 1], [], []>} : vector<16x16xf32>, vector<16x32xf32>, vector<16x32xf32> -> vector<16x32xf32>
    %cst_351 = arith.constant 2.000000e+00 : f32
    %587 = vector.broadcast %cst_351 : f32 to vector<16x32xf32>
    %588 = arith.mulf %587, %586 : vector<16x32xf32>
    %589 = arith.subf %588, %584 : vector<16x32xf32>
    %c0_352 = arith.constant 0 : index
    %c0_353 = arith.constant 0 : index
    %590 = vector.load %arg8[%c0_352, %c0_353] : memref<1x32xf32, #tpu.memory_space<vmem>>, vector<1x32xf32>
    %c0_354 = arith.constant 0 : index
    %c0_355 = arith.constant 0 : index
    %591 = vector.load %arg6[%c0_354, %c0_355] : memref<3x32xf32, #tpu.memory_space<vmem>>, vector<1x32xf32>
    %592 = vector.broadcast %537 : vector<16x1xf32> to vector<16x32xf32>
    %593 = vector.broadcast %591 : vector<1x32xf32> to vector<16x32xf32>
    %594 = arith.mulf %592, %593 : vector<16x32xf32>
    %595 = vector.broadcast %590 : vector<1x32xf32> to vector<16x32xf32>
    %596 = arith.addf %595, %594 : vector<16x32xf32>
    %c0_356 = arith.constant 0 : index
    %c0_357 = arith.constant 0 : index
    %c0_358 = arith.constant 0 : index
    %597 = vector.load %arg7[%c0_356, %c0_357, %c0_358] : memref<3x32x32xf32, #tpu.memory_space<vmem>>, vector<1x32x32xf32>
    %598 = vector.shape_cast %597 : vector<1x32x32xf32> to vector<32x32xf32>
    %cst_359 = arith.constant dense<0.000000e+00> : vector<16x32xf32>
    %599 = tpu.matmul %584, %598, %cst_359 {dimension_numbers = #tpu.dot_dimension_numbers<[1], [0], [0], [1], [0, 0, 1, 1], [], []>} : vector<16x32xf32>, vector<32x32xf32>, vector<16x32xf32> -> vector<16x32xf32>
    %600 = arith.addf %596, %599 : vector<16x32xf32>
    %c1_360 = arith.constant 1 : index
    %c0_361 = arith.constant 0 : index
    %601 = vector.load %arg6[%c1_360, %c0_361] : memref<3x32xf32, #tpu.memory_space<vmem>>, vector<1x32xf32>
    %602 = vector.broadcast %538 : vector<16x1xf32> to vector<16x32xf32>
    %603 = vector.broadcast %601 : vector<1x32xf32> to vector<16x32xf32>
    %604 = arith.mulf %602, %603 : vector<16x32xf32>
    %605 = arith.addf %600, %604 : vector<16x32xf32>
    %c1_362 = arith.constant 1 : index
    %c0_363 = arith.constant 0 : index
    %c0_364 = arith.constant 0 : index
    %606 = vector.load %arg7[%c1_362, %c0_363, %c0_364] : memref<3x32x32xf32, #tpu.memory_space<vmem>>, vector<1x32x32xf32>
    %607 = vector.shape_cast %606 : vector<1x32x32xf32> to vector<32x32xf32>
    %cst_365 = arith.constant dense<0.000000e+00> : vector<16x32xf32>
    %608 = tpu.matmul %585, %607, %cst_365 {dimension_numbers = #tpu.dot_dimension_numbers<[1], [0], [0], [1], [0, 0, 1, 1], [], []>} : vector<16x32xf32>, vector<32x32xf32>, vector<16x32xf32> -> vector<16x32xf32>
    %609 = arith.addf %605, %608 : vector<16x32xf32>
    %c2_366 = arith.constant 2 : index
    %c0_367 = arith.constant 0 : index
    %610 = vector.load %arg6[%c2_366, %c0_367] : memref<3x32xf32, #tpu.memory_space<vmem>>, vector<1x32xf32>
    %611 = vector.broadcast %542 : vector<16x1xf32> to vector<16x32xf32>
    %612 = vector.broadcast %610 : vector<1x32xf32> to vector<16x32xf32>
    %613 = arith.mulf %611, %612 : vector<16x32xf32>
    %614 = arith.addf %609, %613 : vector<16x32xf32>
    %c2_368 = arith.constant 2 : index
    %c0_369 = arith.constant 0 : index
    %c0_370 = arith.constant 0 : index
    %615 = vector.load %arg7[%c2_368, %c0_369, %c0_370] : memref<3x32x32xf32, #tpu.memory_space<vmem>>, vector<1x32x32xf32>
    %616 = vector.shape_cast %615 : vector<1x32x32xf32> to vector<32x32xf32>
    %cst_371 = arith.constant dense<0.000000e+00> : vector<16x32xf32>
    %617 = tpu.matmul %589, %616, %cst_371 {dimension_numbers = #tpu.dot_dimension_numbers<[1], [0], [0], [1], [0, 0, 1, 1], [], []>} : vector<16x32xf32>, vector<32x32xf32>, vector<16x32xf32> -> vector<16x32xf32>
    %618 = arith.addf %614, %617 : vector<16x32xf32>
    %619 = math.tanh %618 : vector<16x32xf32>
    %620 = arith.mulf %583, %535 : vector<16x32xf32>
    %cst_372 = arith.constant 1.000000e+00 : f32
    %621 = vector.broadcast %cst_372 : f32 to vector<16x32xf32>
    %622 = arith.subf %621, %583 : vector<16x32xf32>
    %623 = arith.mulf %622, %619 : vector<16x32xf32>
    %624 = arith.addf %620, %623 : vector<16x32xf32>
    %c0_373 = arith.constant 0 : index
    %c0_374 = arith.constant 0 : index
    %c7 = arith.constant 7 : index
    %625 = vector.load %arg1[%c0_373, %c0_374, %c7] : memref<1x16x8xf32, #tpu.memory_space<vmem>>, vector<1x16x1xf32>
    %626 = vector.shape_cast %625 : vector<1x16x1xf32> to vector<16x1xf32>
    %cst_375 = arith.constant dense<0.000000e+00> : vector<16x1xf32>
    %627 = tpu.matmul %0, %626, %cst_375 {dimension_numbers = #tpu.dot_dimension_numbers<[1], [0], [0], [1], [0, 0, 1, 1], [], []>} : vector<16x16xf32>, vector<16x1xf32>, vector<16x1xf32> -> vector<16x1xf32>
    %cst_376 = arith.constant dense<0.000000e+00> : vector<16x1xf32>
    %628 = tpu.matmul %0, %627, %cst_376 {dimension_numbers = #tpu.dot_dimension_numbers<[1], [0], [0], [1], [0, 0, 1, 1], [], []>} : vector<16x16xf32>, vector<16x1xf32>, vector<16x1xf32> -> vector<16x1xf32>
    %cst_377 = arith.constant 2.000000e+00 : f32
    %629 = vector.broadcast %cst_377 : f32 to vector<16x1xf32>
    %630 = arith.mulf %629, %628 : vector<16x1xf32>
    %631 = arith.subf %630, %626 : vector<16x1xf32>
    %cst_378 = arith.constant dense<0.000000e+00> : vector<16x32xf32>
    %632 = tpu.matmul %0, %624, %cst_378 {dimension_numbers = #tpu.dot_dimension_numbers<[1], [0], [0], [1], [0, 0, 1, 1], [], []>} : vector<16x16xf32>, vector<16x32xf32>, vector<16x32xf32> -> vector<16x32xf32>
    %cst_379 = arith.constant dense<0.000000e+00> : vector<16x32xf32>
    %633 = tpu.matmul %0, %632, %cst_379 {dimension_numbers = #tpu.dot_dimension_numbers<[1], [0], [0], [1], [0, 0, 1, 1], [], []>} : vector<16x16xf32>, vector<16x32xf32>, vector<16x32xf32> -> vector<16x32xf32>
    %cst_380 = arith.constant 2.000000e+00 : f32
    %634 = vector.broadcast %cst_380 : f32 to vector<16x32xf32>
    %635 = arith.mulf %634, %633 : vector<16x32xf32>
    %636 = arith.subf %635, %624 : vector<16x32xf32>
    %c0_381 = arith.constant 0 : index
    %c0_382 = arith.constant 0 : index
    %637 = vector.load %arg5[%c0_381, %c0_382] : memref<1x64xf32, #tpu.memory_space<vmem>>, vector<1x64xf32>
    %c0_383 = arith.constant 0 : index
    %c0_384 = arith.constant 0 : index
    %638 = vector.load %arg3[%c0_383, %c0_384] : memref<3x64xf32, #tpu.memory_space<vmem>>, vector<1x64xf32>
    %639 = vector.broadcast %626 : vector<16x1xf32> to vector<16x64xf32>
    %640 = vector.broadcast %638 : vector<1x64xf32> to vector<16x64xf32>
    %641 = arith.mulf %639, %640 : vector<16x64xf32>
    %642 = vector.broadcast %637 : vector<1x64xf32> to vector<16x64xf32>
    %643 = arith.addf %642, %641 : vector<16x64xf32>
    %c0_385 = arith.constant 0 : index
    %c0_386 = arith.constant 0 : index
    %c0_387 = arith.constant 0 : index
    %644 = vector.load %arg4[%c0_385, %c0_386, %c0_387] : memref<3x32x64xf32, #tpu.memory_space<vmem>>, vector<1x32x64xf32>
    %645 = vector.shape_cast %644 : vector<1x32x64xf32> to vector<32x64xf32>
    %cst_388 = arith.constant dense<0.000000e+00> : vector<16x64xf32>
    %646 = tpu.matmul %624, %645, %cst_388 {dimension_numbers = #tpu.dot_dimension_numbers<[1], [0], [0], [1], [0, 0, 1, 1], [], []>} : vector<16x32xf32>, vector<32x64xf32>, vector<16x64xf32> -> vector<16x64xf32>
    %647 = arith.addf %643, %646 : vector<16x64xf32>
    %c1_389 = arith.constant 1 : index
    %c0_390 = arith.constant 0 : index
    %648 = vector.load %arg3[%c1_389, %c0_390] : memref<3x64xf32, #tpu.memory_space<vmem>>, vector<1x64xf32>
    %649 = vector.broadcast %627 : vector<16x1xf32> to vector<16x64xf32>
    %650 = vector.broadcast %648 : vector<1x64xf32> to vector<16x64xf32>
    %651 = arith.mulf %649, %650 : vector<16x64xf32>
    %652 = arith.addf %647, %651 : vector<16x64xf32>
    %c1_391 = arith.constant 1 : index
    %c0_392 = arith.constant 0 : index
    %c0_393 = arith.constant 0 : index
    %653 = vector.load %arg4[%c1_391, %c0_392, %c0_393] : memref<3x32x64xf32, #tpu.memory_space<vmem>>, vector<1x32x64xf32>
    %654 = vector.shape_cast %653 : vector<1x32x64xf32> to vector<32x64xf32>
    %cst_394 = arith.constant dense<0.000000e+00> : vector<16x64xf32>
    %655 = tpu.matmul %632, %654, %cst_394 {dimension_numbers = #tpu.dot_dimension_numbers<[1], [0], [0], [1], [0, 0, 1, 1], [], []>} : vector<16x32xf32>, vector<32x64xf32>, vector<16x64xf32> -> vector<16x64xf32>
    %656 = arith.addf %652, %655 : vector<16x64xf32>
    %c2_395 = arith.constant 2 : index
    %c0_396 = arith.constant 0 : index
    %657 = vector.load %arg3[%c2_395, %c0_396] : memref<3x64xf32, #tpu.memory_space<vmem>>, vector<1x64xf32>
    %658 = vector.broadcast %631 : vector<16x1xf32> to vector<16x64xf32>
    %659 = vector.broadcast %657 : vector<1x64xf32> to vector<16x64xf32>
    %660 = arith.mulf %658, %659 : vector<16x64xf32>
    %661 = arith.addf %656, %660 : vector<16x64xf32>
    %c2_397 = arith.constant 2 : index
    %c0_398 = arith.constant 0 : index
    %c0_399 = arith.constant 0 : index
    %662 = vector.load %arg4[%c2_397, %c0_398, %c0_399] : memref<3x32x64xf32, #tpu.memory_space<vmem>>, vector<1x32x64xf32>
    %663 = vector.shape_cast %662 : vector<1x32x64xf32> to vector<32x64xf32>
    %cst_400 = arith.constant dense<0.000000e+00> : vector<16x64xf32>
    %664 = tpu.matmul %636, %663, %cst_400 {dimension_numbers = #tpu.dot_dimension_numbers<[1], [0], [0], [1], [0, 0, 1, 1], [], []>} : vector<16x32xf32>, vector<32x64xf32>, vector<16x64xf32> -> vector<16x64xf32>
    %665 = arith.addf %661, %664 : vector<16x64xf32>
    %666 = arith.negf %665 : vector<16x64xf32>
    %667 = math.exp %666 : vector<16x64xf32>
    %cst_401 = arith.constant 1.000000e+00 : f32
    %668 = vector.broadcast %cst_401 : f32 to vector<16x64xf32>
    %669 = arith.addf %668, %667 : vector<16x64xf32>
    %670 = arith.divf %668, %669 : vector<16x64xf32>
    %671 = vector.extract_strided_slice %670 {offsets = [0, 0], sizes = [16, 32], strides = [1, 1]} : vector<16x64xf32> to vector<16x32xf32>
    %672 = vector.extract_strided_slice %670 {offsets = [0, 32], sizes = [16, 32], strides = [1, 1]} : vector<16x64xf32> to vector<16x32xf32>
    %673 = arith.mulf %671, %624 : vector<16x32xf32>
    %cst_402 = arith.constant dense<0.000000e+00> : vector<16x32xf32>
    %674 = tpu.matmul %0, %673, %cst_402 {dimension_numbers = #tpu.dot_dimension_numbers<[1], [0], [0], [1], [0, 0, 1, 1], [], []>} : vector<16x16xf32>, vector<16x32xf32>, vector<16x32xf32> -> vector<16x32xf32>
    %cst_403 = arith.constant dense<0.000000e+00> : vector<16x32xf32>
    %675 = tpu.matmul %0, %674, %cst_403 {dimension_numbers = #tpu.dot_dimension_numbers<[1], [0], [0], [1], [0, 0, 1, 1], [], []>} : vector<16x16xf32>, vector<16x32xf32>, vector<16x32xf32> -> vector<16x32xf32>
    %cst_404 = arith.constant 2.000000e+00 : f32
    %676 = vector.broadcast %cst_404 : f32 to vector<16x32xf32>
    %677 = arith.mulf %676, %675 : vector<16x32xf32>
    %678 = arith.subf %677, %673 : vector<16x32xf32>
    %c0_405 = arith.constant 0 : index
    %c0_406 = arith.constant 0 : index
    %679 = vector.load %arg8[%c0_405, %c0_406] : memref<1x32xf32, #tpu.memory_space<vmem>>, vector<1x32xf32>
    %c0_407 = arith.constant 0 : index
    %c0_408 = arith.constant 0 : index
    %680 = vector.load %arg6[%c0_407, %c0_408] : memref<3x32xf32, #tpu.memory_space<vmem>>, vector<1x32xf32>
    %681 = vector.broadcast %626 : vector<16x1xf32> to vector<16x32xf32>
    %682 = vector.broadcast %680 : vector<1x32xf32> to vector<16x32xf32>
    %683 = arith.mulf %681, %682 : vector<16x32xf32>
    %684 = vector.broadcast %679 : vector<1x32xf32> to vector<16x32xf32>
    %685 = arith.addf %684, %683 : vector<16x32xf32>
    %c0_409 = arith.constant 0 : index
    %c0_410 = arith.constant 0 : index
    %c0_411 = arith.constant 0 : index
    %686 = vector.load %arg7[%c0_409, %c0_410, %c0_411] : memref<3x32x32xf32, #tpu.memory_space<vmem>>, vector<1x32x32xf32>
    %687 = vector.shape_cast %686 : vector<1x32x32xf32> to vector<32x32xf32>
    %cst_412 = arith.constant dense<0.000000e+00> : vector<16x32xf32>
    %688 = tpu.matmul %673, %687, %cst_412 {dimension_numbers = #tpu.dot_dimension_numbers<[1], [0], [0], [1], [0, 0, 1, 1], [], []>} : vector<16x32xf32>, vector<32x32xf32>, vector<16x32xf32> -> vector<16x32xf32>
    %689 = arith.addf %685, %688 : vector<16x32xf32>
    %c1_413 = arith.constant 1 : index
    %c0_414 = arith.constant 0 : index
    %690 = vector.load %arg6[%c1_413, %c0_414] : memref<3x32xf32, #tpu.memory_space<vmem>>, vector<1x32xf32>
    %691 = vector.broadcast %627 : vector<16x1xf32> to vector<16x32xf32>
    %692 = vector.broadcast %690 : vector<1x32xf32> to vector<16x32xf32>
    %693 = arith.mulf %691, %692 : vector<16x32xf32>
    %694 = arith.addf %689, %693 : vector<16x32xf32>
    %c1_415 = arith.constant 1 : index
    %c0_416 = arith.constant 0 : index
    %c0_417 = arith.constant 0 : index
    %695 = vector.load %arg7[%c1_415, %c0_416, %c0_417] : memref<3x32x32xf32, #tpu.memory_space<vmem>>, vector<1x32x32xf32>
    %696 = vector.shape_cast %695 : vector<1x32x32xf32> to vector<32x32xf32>
    %cst_418 = arith.constant dense<0.000000e+00> : vector<16x32xf32>
    %697 = tpu.matmul %674, %696, %cst_418 {dimension_numbers = #tpu.dot_dimension_numbers<[1], [0], [0], [1], [0, 0, 1, 1], [], []>} : vector<16x32xf32>, vector<32x32xf32>, vector<16x32xf32> -> vector<16x32xf32>
    %698 = arith.addf %694, %697 : vector<16x32xf32>
    %c2_419 = arith.constant 2 : index
    %c0_420 = arith.constant 0 : index
    %699 = vector.load %arg6[%c2_419, %c0_420] : memref<3x32xf32, #tpu.memory_space<vmem>>, vector<1x32xf32>
    %700 = vector.broadcast %631 : vector<16x1xf32> to vector<16x32xf32>
    %701 = vector.broadcast %699 : vector<1x32xf32> to vector<16x32xf32>
    %702 = arith.mulf %700, %701 : vector<16x32xf32>
    %703 = arith.addf %698, %702 : vector<16x32xf32>
    %c2_421 = arith.constant 2 : index
    %c0_422 = arith.constant 0 : index
    %c0_423 = arith.constant 0 : index
    %704 = vector.load %arg7[%c2_421, %c0_422, %c0_423] : memref<3x32x32xf32, #tpu.memory_space<vmem>>, vector<1x32x32xf32>
    %705 = vector.shape_cast %704 : vector<1x32x32xf32> to vector<32x32xf32>
    %cst_424 = arith.constant dense<0.000000e+00> : vector<16x32xf32>
    %706 = tpu.matmul %678, %705, %cst_424 {dimension_numbers = #tpu.dot_dimension_numbers<[1], [0], [0], [1], [0, 0, 1, 1], [], []>} : vector<16x32xf32>, vector<32x32xf32>, vector<16x32xf32> -> vector<16x32xf32>
    %707 = arith.addf %703, %706 : vector<16x32xf32>
    %708 = math.tanh %707 : vector<16x32xf32>
    %709 = arith.mulf %672, %624 : vector<16x32xf32>
    %cst_425 = arith.constant 1.000000e+00 : f32
    %710 = vector.broadcast %cst_425 : f32 to vector<16x32xf32>
    %711 = arith.subf %710, %672 : vector<16x32xf32>
    %712 = arith.mulf %711, %708 : vector<16x32xf32>
    %713 = arith.addf %709, %712 : vector<16x32xf32>
    %c0_426 = arith.constant 0 : index
    %c0_427 = arith.constant 0 : index
    %714 = vector.load %arg15[%c0_426, %c0_427] : memref<32x1xf32, #tpu.memory_space<vmem>>, vector<32x1xf32>
    %c0_428 = arith.constant 0 : index
    %c0_429 = arith.constant 0 : index
    %715 = vector.load %arg16[%c0_428, %c0_429] : memref<1x1xf32, #tpu.memory_space<vmem>>, vector<1x1xf32>
    %cst_430 = arith.constant 0.000000e+00 : f32
    %716 = vector.broadcast %cst_430 : f32 to vector<16x1xf32>
    %cst_431 = arith.constant dense<0.000000e+00> : vector<16x1xf32>
    %717 = tpu.matmul %0, %716, %cst_431 {dimension_numbers = #tpu.dot_dimension_numbers<[1], [0], [0], [1], [0, 0, 1, 1], [], []>} : vector<16x16xf32>, vector<16x1xf32>, vector<16x1xf32> -> vector<16x1xf32>
    %cst_432 = arith.constant dense<0.000000e+00> : vector<16x1xf32>
    %718 = tpu.matmul %0, %717, %cst_432 {dimension_numbers = #tpu.dot_dimension_numbers<[1], [0], [0], [1], [0, 0, 1, 1], [], []>} : vector<16x16xf32>, vector<16x1xf32>, vector<16x1xf32> -> vector<16x1xf32>
    %cst_433 = arith.constant 2.000000e+00 : f32
    %719 = vector.broadcast %cst_433 : f32 to vector<16x1xf32>
    %720 = arith.mulf %719, %718 : vector<16x1xf32>
    %721 = arith.subf %720, %716 : vector<16x1xf32>
    %cst_434 = arith.constant dense<0.000000e+00> : vector<16x32xf32>
    %722 = tpu.matmul %0, %713, %cst_434 {dimension_numbers = #tpu.dot_dimension_numbers<[1], [0], [0], [1], [0, 0, 1, 1], [], []>} : vector<16x16xf32>, vector<16x32xf32>, vector<16x32xf32> -> vector<16x32xf32>
    %cst_435 = arith.constant dense<0.000000e+00> : vector<16x32xf32>
    %723 = tpu.matmul %0, %722, %cst_435 {dimension_numbers = #tpu.dot_dimension_numbers<[1], [0], [0], [1], [0, 0, 1, 1], [], []>} : vector<16x16xf32>, vector<16x32xf32>, vector<16x32xf32> -> vector<16x32xf32>
    %cst_436 = arith.constant 2.000000e+00 : f32
    %724 = vector.broadcast %cst_436 : f32 to vector<16x32xf32>
    %725 = arith.mulf %724, %723 : vector<16x32xf32>
    %726 = arith.subf %725, %713 : vector<16x32xf32>
    %c0_437 = arith.constant 0 : index
    %c0_438 = arith.constant 0 : index
    %727 = vector.load %arg11[%c0_437, %c0_438] : memref<1x64xf32, #tpu.memory_space<vmem>>, vector<1x64xf32>
    %c0_439 = arith.constant 0 : index
    %c0_440 = arith.constant 0 : index
    %728 = vector.load %arg9[%c0_439, %c0_440] : memref<3x64xf32, #tpu.memory_space<vmem>>, vector<1x64xf32>
    %729 = vector.broadcast %716 : vector<16x1xf32> to vector<16x64xf32>
    %730 = vector.broadcast %728 : vector<1x64xf32> to vector<16x64xf32>
    %731 = arith.mulf %729, %730 : vector<16x64xf32>
    %732 = vector.broadcast %727 : vector<1x64xf32> to vector<16x64xf32>
    %733 = arith.addf %732, %731 : vector<16x64xf32>
    %c0_441 = arith.constant 0 : index
    %c0_442 = arith.constant 0 : index
    %c0_443 = arith.constant 0 : index
    %734 = vector.load %arg10[%c0_441, %c0_442, %c0_443] : memref<3x32x64xf32, #tpu.memory_space<vmem>>, vector<1x32x64xf32>
    %735 = vector.shape_cast %734 : vector<1x32x64xf32> to vector<32x64xf32>
    %cst_444 = arith.constant dense<0.000000e+00> : vector<16x64xf32>
    %736 = tpu.matmul %713, %735, %cst_444 {dimension_numbers = #tpu.dot_dimension_numbers<[1], [0], [0], [1], [0, 0, 1, 1], [], []>} : vector<16x32xf32>, vector<32x64xf32>, vector<16x64xf32> -> vector<16x64xf32>
    %737 = arith.addf %733, %736 : vector<16x64xf32>
    %c1_445 = arith.constant 1 : index
    %c0_446 = arith.constant 0 : index
    %738 = vector.load %arg9[%c1_445, %c0_446] : memref<3x64xf32, #tpu.memory_space<vmem>>, vector<1x64xf32>
    %739 = vector.broadcast %717 : vector<16x1xf32> to vector<16x64xf32>
    %740 = vector.broadcast %738 : vector<1x64xf32> to vector<16x64xf32>
    %741 = arith.mulf %739, %740 : vector<16x64xf32>
    %742 = arith.addf %737, %741 : vector<16x64xf32>
    %c1_447 = arith.constant 1 : index
    %c0_448 = arith.constant 0 : index
    %c0_449 = arith.constant 0 : index
    %743 = vector.load %arg10[%c1_447, %c0_448, %c0_449] : memref<3x32x64xf32, #tpu.memory_space<vmem>>, vector<1x32x64xf32>
    %744 = vector.shape_cast %743 : vector<1x32x64xf32> to vector<32x64xf32>
    %cst_450 = arith.constant dense<0.000000e+00> : vector<16x64xf32>
    %745 = tpu.matmul %722, %744, %cst_450 {dimension_numbers = #tpu.dot_dimension_numbers<[1], [0], [0], [1], [0, 0, 1, 1], [], []>} : vector<16x32xf32>, vector<32x64xf32>, vector<16x64xf32> -> vector<16x64xf32>
    %746 = arith.addf %742, %745 : vector<16x64xf32>
    %c2_451 = arith.constant 2 : index
    %c0_452 = arith.constant 0 : index
    %747 = vector.load %arg9[%c2_451, %c0_452] : memref<3x64xf32, #tpu.memory_space<vmem>>, vector<1x64xf32>
    %748 = vector.broadcast %721 : vector<16x1xf32> to vector<16x64xf32>
    %749 = vector.broadcast %747 : vector<1x64xf32> to vector<16x64xf32>
    %750 = arith.mulf %748, %749 : vector<16x64xf32>
    %751 = arith.addf %746, %750 : vector<16x64xf32>
    %c2_453 = arith.constant 2 : index
    %c0_454 = arith.constant 0 : index
    %c0_455 = arith.constant 0 : index
    %752 = vector.load %arg10[%c2_453, %c0_454, %c0_455] : memref<3x32x64xf32, #tpu.memory_space<vmem>>, vector<1x32x64xf32>
    %753 = vector.shape_cast %752 : vector<1x32x64xf32> to vector<32x64xf32>
    %cst_456 = arith.constant dense<0.000000e+00> : vector<16x64xf32>
    %754 = tpu.matmul %726, %753, %cst_456 {dimension_numbers = #tpu.dot_dimension_numbers<[1], [0], [0], [1], [0, 0, 1, 1], [], []>} : vector<16x32xf32>, vector<32x64xf32>, vector<16x64xf32> -> vector<16x64xf32>
    %755 = arith.addf %751, %754 : vector<16x64xf32>
    %756 = arith.negf %755 : vector<16x64xf32>
    %757 = math.exp %756 : vector<16x64xf32>
    %cst_457 = arith.constant 1.000000e+00 : f32
    %758 = vector.broadcast %cst_457 : f32 to vector<16x64xf32>
    %759 = arith.addf %758, %757 : vector<16x64xf32>
    %760 = arith.divf %758, %759 : vector<16x64xf32>
    %761 = vector.extract_strided_slice %760 {offsets = [0, 0], sizes = [16, 32], strides = [1, 1]} : vector<16x64xf32> to vector<16x32xf32>
    %762 = vector.extract_strided_slice %760 {offsets = [0, 32], sizes = [16, 32], strides = [1, 1]} : vector<16x64xf32> to vector<16x32xf32>
    %763 = arith.mulf %761, %713 : vector<16x32xf32>
    %cst_458 = arith.constant dense<0.000000e+00> : vector<16x32xf32>
    %764 = tpu.matmul %0, %763, %cst_458 {dimension_numbers = #tpu.dot_dimension_numbers<[1], [0], [0], [1], [0, 0, 1, 1], [], []>} : vector<16x16xf32>, vector<16x32xf32>, vector<16x32xf32> -> vector<16x32xf32>
    %cst_459 = arith.constant dense<0.000000e+00> : vector<16x32xf32>
    %765 = tpu.matmul %0, %764, %cst_459 {dimension_numbers = #tpu.dot_dimension_numbers<[1], [0], [0], [1], [0, 0, 1, 1], [], []>} : vector<16x16xf32>, vector<16x32xf32>, vector<16x32xf32> -> vector<16x32xf32>
    %cst_460 = arith.constant 2.000000e+00 : f32
    %766 = vector.broadcast %cst_460 : f32 to vector<16x32xf32>
    %767 = arith.mulf %766, %765 : vector<16x32xf32>
    %768 = arith.subf %767, %763 : vector<16x32xf32>
    %c0_461 = arith.constant 0 : index
    %c0_462 = arith.constant 0 : index
    %769 = vector.load %arg14[%c0_461, %c0_462] : memref<1x32xf32, #tpu.memory_space<vmem>>, vector<1x32xf32>
    %c0_463 = arith.constant 0 : index
    %c0_464 = arith.constant 0 : index
    %770 = vector.load %arg12[%c0_463, %c0_464] : memref<3x32xf32, #tpu.memory_space<vmem>>, vector<1x32xf32>
    %771 = vector.broadcast %716 : vector<16x1xf32> to vector<16x32xf32>
    %772 = vector.broadcast %770 : vector<1x32xf32> to vector<16x32xf32>
    %773 = arith.mulf %771, %772 : vector<16x32xf32>
    %774 = vector.broadcast %769 : vector<1x32xf32> to vector<16x32xf32>
    %775 = arith.addf %774, %773 : vector<16x32xf32>
    %c0_465 = arith.constant 0 : index
    %c0_466 = arith.constant 0 : index
    %c0_467 = arith.constant 0 : index
    %776 = vector.load %arg13[%c0_465, %c0_466, %c0_467] : memref<3x32x32xf32, #tpu.memory_space<vmem>>, vector<1x32x32xf32>
    %777 = vector.shape_cast %776 : vector<1x32x32xf32> to vector<32x32xf32>
    %cst_468 = arith.constant dense<0.000000e+00> : vector<16x32xf32>
    %778 = tpu.matmul %763, %777, %cst_468 {dimension_numbers = #tpu.dot_dimension_numbers<[1], [0], [0], [1], [0, 0, 1, 1], [], []>} : vector<16x32xf32>, vector<32x32xf32>, vector<16x32xf32> -> vector<16x32xf32>
    %779 = arith.addf %775, %778 : vector<16x32xf32>
    %c1_469 = arith.constant 1 : index
    %c0_470 = arith.constant 0 : index
    %780 = vector.load %arg12[%c1_469, %c0_470] : memref<3x32xf32, #tpu.memory_space<vmem>>, vector<1x32xf32>
    %781 = vector.broadcast %717 : vector<16x1xf32> to vector<16x32xf32>
    %782 = vector.broadcast %780 : vector<1x32xf32> to vector<16x32xf32>
    %783 = arith.mulf %781, %782 : vector<16x32xf32>
    %784 = arith.addf %779, %783 : vector<16x32xf32>
    %c1_471 = arith.constant 1 : index
    %c0_472 = arith.constant 0 : index
    %c0_473 = arith.constant 0 : index
    %785 = vector.load %arg13[%c1_471, %c0_472, %c0_473] : memref<3x32x32xf32, #tpu.memory_space<vmem>>, vector<1x32x32xf32>
    %786 = vector.shape_cast %785 : vector<1x32x32xf32> to vector<32x32xf32>
    %cst_474 = arith.constant dense<0.000000e+00> : vector<16x32xf32>
    %787 = tpu.matmul %764, %786, %cst_474 {dimension_numbers = #tpu.dot_dimension_numbers<[1], [0], [0], [1], [0, 0, 1, 1], [], []>} : vector<16x32xf32>, vector<32x32xf32>, vector<16x32xf32> -> vector<16x32xf32>
    %788 = arith.addf %784, %787 : vector<16x32xf32>
    %c2_475 = arith.constant 2 : index
    %c0_476 = arith.constant 0 : index
    %789 = vector.load %arg12[%c2_475, %c0_476] : memref<3x32xf32, #tpu.memory_space<vmem>>, vector<1x32xf32>
    %790 = vector.broadcast %721 : vector<16x1xf32> to vector<16x32xf32>
    %791 = vector.broadcast %789 : vector<1x32xf32> to vector<16x32xf32>
    %792 = arith.mulf %790, %791 : vector<16x32xf32>
    %793 = arith.addf %788, %792 : vector<16x32xf32>
    %c2_477 = arith.constant 2 : index
    %c0_478 = arith.constant 0 : index
    %c0_479 = arith.constant 0 : index
    %794 = vector.load %arg13[%c2_477, %c0_478, %c0_479] : memref<3x32x32xf32, #tpu.memory_space<vmem>>, vector<1x32x32xf32>
    %795 = vector.shape_cast %794 : vector<1x32x32xf32> to vector<32x32xf32>
    %cst_480 = arith.constant dense<0.000000e+00> : vector<16x32xf32>
    %796 = tpu.matmul %768, %795, %cst_480 {dimension_numbers = #tpu.dot_dimension_numbers<[1], [0], [0], [1], [0, 0, 1, 1], [], []>} : vector<16x32xf32>, vector<32x32xf32>, vector<16x32xf32> -> vector<16x32xf32>
    %797 = arith.addf %793, %796 : vector<16x32xf32>
    %798 = math.tanh %797 : vector<16x32xf32>
    %799 = arith.mulf %762, %713 : vector<16x32xf32>
    %cst_481 = arith.constant 1.000000e+00 : f32
    %800 = vector.broadcast %cst_481 : f32 to vector<16x32xf32>
    %801 = arith.subf %800, %762 : vector<16x32xf32>
    %802 = arith.mulf %801, %798 : vector<16x32xf32>
    %803 = arith.addf %799, %802 : vector<16x32xf32>
    %cst_482 = arith.constant dense<0.000000e+00> : vector<16x1xf32>
    %804 = tpu.matmul %803, %714, %cst_482 {dimension_numbers = #tpu.dot_dimension_numbers<[1], [0], [0], [1], [0, 0, 1, 1], [], []>} : vector<16x32xf32>, vector<32x1xf32>, vector<16x1xf32> -> vector<16x1xf32>
    %805 = vector.broadcast %715 : vector<1x1xf32> to vector<16x1xf32>
    %806 = arith.addf %804, %805 : vector<16x1xf32>
    %c0_483 = arith.constant 0 : index
    %c0_484 = arith.constant 0 : index
    %c0_485 = arith.constant 0 : index
    %807 = vector.load %arg17[%c0_483, %c0_484, %c0_485] : memref<1x16x4xf32, #tpu.memory_space<vmem>>, vector<1x16x1xf32>
    %808 = vector.shape_cast %807 : vector<1x16x1xf32> to vector<16x1xf32>
    %809 = vector.shape_cast %806 : vector<16x1xf32> to vector<1x16x1xf32>
    tpu.vector_store %arg17[%c0_483, %c0_484, %c0_485], %809 {strides = array<i32>} : memref<1x16x4xf32, #tpu.memory_space<vmem>>, vector<1x16x1xf32>,
    %cst_486 = arith.constant dense<0.000000e+00> : vector<16x1xf32>
    %810 = tpu.matmul %0, %806, %cst_486 {dimension_numbers = #tpu.dot_dimension_numbers<[1], [0], [0], [1], [0, 0, 1, 1], [], []>} : vector<16x16xf32>, vector<16x1xf32>, vector<16x1xf32> -> vector<16x1xf32>
    %cst_487 = arith.constant dense<0.000000e+00> : vector<16x1xf32>
    %811 = tpu.matmul %0, %810, %cst_487 {dimension_numbers = #tpu.dot_dimension_numbers<[1], [0], [0], [1], [0, 0, 1, 1], [], []>} : vector<16x16xf32>, vector<16x1xf32>, vector<16x1xf32> -> vector<16x1xf32>
    %cst_488 = arith.constant 2.000000e+00 : f32
    %812 = vector.broadcast %cst_488 : f32 to vector<16x1xf32>
    %813 = arith.mulf %812, %811 : vector<16x1xf32>
    %814 = arith.subf %813, %806 : vector<16x1xf32>
    %cst_489 = arith.constant dense<0.000000e+00> : vector<16x32xf32>
    %815 = tpu.matmul %0, %803, %cst_489 {dimension_numbers = #tpu.dot_dimension_numbers<[1], [0], [0], [1], [0, 0, 1, 1], [], []>} : vector<16x16xf32>, vector<16x32xf32>, vector<16x32xf32> -> vector<16x32xf32>
    %cst_490 = arith.constant dense<0.000000e+00> : vector<16x32xf32>
    %816 = tpu.matmul %0, %815, %cst_490 {dimension_numbers = #tpu.dot_dimension_numbers<[1], [0], [0], [1], [0, 0, 1, 1], [], []>} : vector<16x16xf32>, vector<16x32xf32>, vector<16x32xf32> -> vector<16x32xf32>
    %cst_491 = arith.constant 2.000000e+00 : f32
    %817 = vector.broadcast %cst_491 : f32 to vector<16x32xf32>
    %818 = arith.mulf %817, %816 : vector<16x32xf32>
    %819 = arith.subf %818, %803 : vector<16x32xf32>
    %c0_492 = arith.constant 0 : index
    %c0_493 = arith.constant 0 : index
    %820 = vector.load %arg11[%c0_492, %c0_493] : memref<1x64xf32, #tpu.memory_space<vmem>>, vector<1x64xf32>
    %c0_494 = arith.constant 0 : index
    %c0_495 = arith.constant 0 : index
    %821 = vector.load %arg9[%c0_494, %c0_495] : memref<3x64xf32, #tpu.memory_space<vmem>>, vector<1x64xf32>
    %822 = vector.broadcast %806 : vector<16x1xf32> to vector<16x64xf32>
    %823 = vector.broadcast %821 : vector<1x64xf32> to vector<16x64xf32>
    %824 = arith.mulf %822, %823 : vector<16x64xf32>
    %825 = vector.broadcast %820 : vector<1x64xf32> to vector<16x64xf32>
    %826 = arith.addf %825, %824 : vector<16x64xf32>
    %c0_496 = arith.constant 0 : index
    %c0_497 = arith.constant 0 : index
    %c0_498 = arith.constant 0 : index
    %827 = vector.load %arg10[%c0_496, %c0_497, %c0_498] : memref<3x32x64xf32, #tpu.memory_space<vmem>>, vector<1x32x64xf32>
    %828 = vector.shape_cast %827 : vector<1x32x64xf32> to vector<32x64xf32>
    %cst_499 = arith.constant dense<0.000000e+00> : vector<16x64xf32>
    %829 = tpu.matmul %803, %828, %cst_499 {dimension_numbers = #tpu.dot_dimension_numbers<[1], [0], [0], [1], [0, 0, 1, 1], [], []>} : vector<16x32xf32>, vector<32x64xf32>, vector<16x64xf32> -> vector<16x64xf32>
    %830 = arith.addf %826, %829 : vector<16x64xf32>
    %c1_500 = arith.constant 1 : index
    %c0_501 = arith.constant 0 : index
    %831 = vector.load %arg9[%c1_500, %c0_501] : memref<3x64xf32, #tpu.memory_space<vmem>>, vector<1x64xf32>
    %832 = vector.broadcast %810 : vector<16x1xf32> to vector<16x64xf32>
    %833 = vector.broadcast %831 : vector<1x64xf32> to vector<16x64xf32>
    %834 = arith.mulf %832, %833 : vector<16x64xf32>
    %835 = arith.addf %830, %834 : vector<16x64xf32>
    %c1_502 = arith.constant 1 : index
    %c0_503 = arith.constant 0 : index
    %c0_504 = arith.constant 0 : index
    %836 = vector.load %arg10[%c1_502, %c0_503, %c0_504] : memref<3x32x64xf32, #tpu.memory_space<vmem>>, vector<1x32x64xf32>
    %837 = vector.shape_cast %836 : vector<1x32x64xf32> to vector<32x64xf32>
    %cst_505 = arith.constant dense<0.000000e+00> : vector<16x64xf32>
    %838 = tpu.matmul %815, %837, %cst_505 {dimension_numbers = #tpu.dot_dimension_numbers<[1], [0], [0], [1], [0, 0, 1, 1], [], []>} : vector<16x32xf32>, vector<32x64xf32>, vector<16x64xf32> -> vector<16x64xf32>
    %839 = arith.addf %835, %838 : vector<16x64xf32>
    %c2_506 = arith.constant 2 : index
    %c0_507 = arith.constant 0 : index
    %840 = vector.load %arg9[%c2_506, %c0_507] : memref<3x64xf32, #tpu.memory_space<vmem>>, vector<1x64xf32>
    %841 = vector.broadcast %814 : vector<16x1xf32> to vector<16x64xf32>
    %842 = vector.broadcast %840 : vector<1x64xf32> to vector<16x64xf32>
    %843 = arith.mulf %841, %842 : vector<16x64xf32>
    %844 = arith.addf %839, %843 : vector<16x64xf32>
    %c2_508 = arith.constant 2 : index
    %c0_509 = arith.constant 0 : index
    %c0_510 = arith.constant 0 : index
    %845 = vector.load %arg10[%c2_508, %c0_509, %c0_510] : memref<3x32x64xf32, #tpu.memory_space<vmem>>, vector<1x32x64xf32>
    %846 = vector.shape_cast %845 : vector<1x32x64xf32> to vector<32x64xf32>
    %cst_511 = arith.constant dense<0.000000e+00> : vector<16x64xf32>
    %847 = tpu.matmul %819, %846, %cst_511 {dimension_numbers = #tpu.dot_dimension_numbers<[1], [0], [0], [1], [0, 0, 1, 1], [], []>} : vector<16x32xf32>, vector<32x64xf32>, vector<16x64xf32> -> vector<16x64xf32>
    %848 = arith.addf %844, %847 : vector<16x64xf32>
    %849 = arith.negf %848 : vector<16x64xf32>
    %850 = math.exp %849 : vector<16x64xf32>
    %cst_512 = arith.constant 1.000000e+00 : f32
    %851 = vector.broadcast %cst_512 : f32 to vector<16x64xf32>
    %852 = arith.addf %851, %850 : vector<16x64xf32>
    %853 = arith.divf %851, %852 : vector<16x64xf32>
    %854 = vector.extract_strided_slice %853 {offsets = [0, 0], sizes = [16, 32], strides = [1, 1]} : vector<16x64xf32> to vector<16x32xf32>
    %855 = vector.extract_strided_slice %853 {offsets = [0, 32], sizes = [16, 32], strides = [1, 1]} : vector<16x64xf32> to vector<16x32xf32>
    %856 = arith.mulf %854, %803 : vector<16x32xf32>
    %cst_513 = arith.constant dense<0.000000e+00> : vector<16x32xf32>
    %857 = tpu.matmul %0, %856, %cst_513 {dimension_numbers = #tpu.dot_dimension_numbers<[1], [0], [0], [1], [0, 0, 1, 1], [], []>} : vector<16x16xf32>, vector<16x32xf32>, vector<16x32xf32> -> vector<16x32xf32>
    %cst_514 = arith.constant dense<0.000000e+00> : vector<16x32xf32>
    %858 = tpu.matmul %0, %857, %cst_514 {dimension_numbers = #tpu.dot_dimension_numbers<[1], [0], [0], [1], [0, 0, 1, 1], [], []>} : vector<16x16xf32>, vector<16x32xf32>, vector<16x32xf32> -> vector<16x32xf32>
    %cst_515 = arith.constant 2.000000e+00 : f32
    %859 = vector.broadcast %cst_515 : f32 to vector<16x32xf32>
    %860 = arith.mulf %859, %858 : vector<16x32xf32>
    %861 = arith.subf %860, %856 : vector<16x32xf32>
    %c0_516 = arith.constant 0 : index
    %c0_517 = arith.constant 0 : index
    %862 = vector.load %arg14[%c0_516, %c0_517] : memref<1x32xf32, #tpu.memory_space<vmem>>, vector<1x32xf32>
    %c0_518 = arith.constant 0 : index
    %c0_519 = arith.constant 0 : index
    %863 = vector.load %arg12[%c0_518, %c0_519] : memref<3x32xf32, #tpu.memory_space<vmem>>, vector<1x32xf32>
    %864 = vector.broadcast %806 : vector<16x1xf32> to vector<16x32xf32>
    %865 = vector.broadcast %863 : vector<1x32xf32> to vector<16x32xf32>
    %866 = arith.mulf %864, %865 : vector<16x32xf32>
    %867 = vector.broadcast %862 : vector<1x32xf32> to vector<16x32xf32>
    %868 = arith.addf %867, %866 : vector<16x32xf32>
    %c0_520 = arith.constant 0 : index
    %c0_521 = arith.constant 0 : index
    %c0_522 = arith.constant 0 : index
    %869 = vector.load %arg13[%c0_520, %c0_521, %c0_522] : memref<3x32x32xf32, #tpu.memory_space<vmem>>, vector<1x32x32xf32>
    %870 = vector.shape_cast %869 : vector<1x32x32xf32> to vector<32x32xf32>
    %cst_523 = arith.constant dense<0.000000e+00> : vector<16x32xf32>
    %871 = tpu.matmul %856, %870, %cst_523 {dimension_numbers = #tpu.dot_dimension_numbers<[1], [0], [0], [1], [0, 0, 1, 1], [], []>} : vector<16x32xf32>, vector<32x32xf32>, vector<16x32xf32> -> vector<16x32xf32>
    %872 = arith.addf %868, %871 : vector<16x32xf32>
    %c1_524 = arith.constant 1 : index
    %c0_525 = arith.constant 0 : index
    %873 = vector.load %arg12[%c1_524, %c0_525] : memref<3x32xf32, #tpu.memory_space<vmem>>, vector<1x32xf32>
    %874 = vector.broadcast %810 : vector<16x1xf32> to vector<16x32xf32>
    %875 = vector.broadcast %873 : vector<1x32xf32> to vector<16x32xf32>
    %876 = arith.mulf %874, %875 : vector<16x32xf32>
    %877 = arith.addf %872, %876 : vector<16x32xf32>
    %c1_526 = arith.constant 1 : index
    %c0_527 = arith.constant 0 : index
    %c0_528 = arith.constant 0 : index
    %878 = vector.load %arg13[%c1_526, %c0_527, %c0_528] : memref<3x32x32xf32, #tpu.memory_space<vmem>>, vector<1x32x32xf32>
    %879 = vector.shape_cast %878 : vector<1x32x32xf32> to vector<32x32xf32>
    %cst_529 = arith.constant dense<0.000000e+00> : vector<16x32xf32>
    %880 = tpu.matmul %857, %879, %cst_529 {dimension_numbers = #tpu.dot_dimension_numbers<[1], [0], [0], [1], [0, 0, 1, 1], [], []>} : vector<16x32xf32>, vector<32x32xf32>, vector<16x32xf32> -> vector<16x32xf32>
    %881 = arith.addf %877, %880 : vector<16x32xf32>
    %c2_530 = arith.constant 2 : index
    %c0_531 = arith.constant 0 : index
    %882 = vector.load %arg12[%c2_530, %c0_531] : memref<3x32xf32, #tpu.memory_space<vmem>>, vector<1x32xf32>
    %883 = vector.broadcast %814 : vector<16x1xf32> to vector<16x32xf32>
    %884 = vector.broadcast %882 : vector<1x32xf32> to vector<16x32xf32>
    %885 = arith.mulf %883, %884 : vector<16x32xf32>
    %886 = arith.addf %881, %885 : vector<16x32xf32>
    %c2_532 = arith.constant 2 : index
    %c0_533 = arith.constant 0 : index
    %c0_534 = arith.constant 0 : index
    %887 = vector.load %arg13[%c2_532, %c0_533, %c0_534] : memref<3x32x32xf32, #tpu.memory_space<vmem>>, vector<1x32x32xf32>
    %888 = vector.shape_cast %887 : vector<1x32x32xf32> to vector<32x32xf32>
    %cst_535 = arith.constant dense<0.000000e+00> : vector<16x32xf32>
    %889 = tpu.matmul %861, %888, %cst_535 {dimension_numbers = #tpu.dot_dimension_numbers<[1], [0], [0], [1], [0, 0, 1, 1], [], []>} : vector<16x32xf32>, vector<32x32xf32>, vector<16x32xf32> -> vector<16x32xf32>
    %890 = arith.addf %886, %889 : vector<16x32xf32>
    %891 = math.tanh %890 : vector<16x32xf32>
    %892 = arith.mulf %855, %803 : vector<16x32xf32>
    %cst_536 = arith.constant 1.000000e+00 : f32
    %893 = vector.broadcast %cst_536 : f32 to vector<16x32xf32>
    %894 = arith.subf %893, %855 : vector<16x32xf32>
    %895 = arith.mulf %894, %891 : vector<16x32xf32>
    %896 = arith.addf %892, %895 : vector<16x32xf32>
    %cst_537 = arith.constant dense<0.000000e+00> : vector<16x1xf32>
    %897 = tpu.matmul %896, %714, %cst_537 {dimension_numbers = #tpu.dot_dimension_numbers<[1], [0], [0], [1], [0, 0, 1, 1], [], []>} : vector<16x32xf32>, vector<32x1xf32>, vector<16x1xf32> -> vector<16x1xf32>
    %898 = vector.broadcast %715 : vector<1x1xf32> to vector<16x1xf32>
    %899 = arith.addf %897, %898 : vector<16x1xf32>
    %c0_538 = arith.constant 0 : index
    %c0_539 = arith.constant 0 : index
    %c1_540 = arith.constant 1 : index
    %900 = vector.load %arg17[%c0_538, %c0_539, %c1_540] : memref<1x16x4xf32, #tpu.memory_space<vmem>>, vector<1x16x1xf32>
    %901 = vector.shape_cast %900 : vector<1x16x1xf32> to vector<16x1xf32>
    %902 = vector.shape_cast %899 : vector<16x1xf32> to vector<1x16x1xf32>
    tpu.vector_store %arg17[%c0_538, %c0_539, %c1_540], %902 {strides = array<i32>} : memref<1x16x4xf32, #tpu.memory_space<vmem>>, vector<1x16x1xf32>,
    %cst_541 = arith.constant dense<0.000000e+00> : vector<16x1xf32>
    %903 = tpu.matmul %0, %899, %cst_541 {dimension_numbers = #tpu.dot_dimension_numbers<[1], [0], [0], [1], [0, 0, 1, 1], [], []>} : vector<16x16xf32>, vector<16x1xf32>, vector<16x1xf32> -> vector<16x1xf32>
    %cst_542 = arith.constant dense<0.000000e+00> : vector<16x1xf32>
    %904 = tpu.matmul %0, %903, %cst_542 {dimension_numbers = #tpu.dot_dimension_numbers<[1], [0], [0], [1], [0, 0, 1, 1], [], []>} : vector<16x16xf32>, vector<16x1xf32>, vector<16x1xf32> -> vector<16x1xf32>
    %cst_543 = arith.constant 2.000000e+00 : f32
    %905 = vector.broadcast %cst_543 : f32 to vector<16x1xf32>
    %906 = arith.mulf %905, %904 : vector<16x1xf32>
    %907 = arith.subf %906, %899 : vector<16x1xf32>
    %cst_544 = arith.constant dense<0.000000e+00> : vector<16x32xf32>
    %908 = tpu.matmul %0, %896, %cst_544 {dimension_numbers = #tpu.dot_dimension_numbers<[1], [0], [0], [1], [0, 0, 1, 1], [], []>} : vector<16x16xf32>, vector<16x32xf32>, vector<16x32xf32> -> vector<16x32xf32>
    %cst_545 = arith.constant dense<0.000000e+00> : vector<16x32xf32>
    %909 = tpu.matmul %0, %908, %cst_545 {dimension_numbers = #tpu.dot_dimension_numbers<[1], [0], [0], [1], [0, 0, 1, 1], [], []>} : vector<16x16xf32>, vector<16x32xf32>, vector<16x32xf32> -> vector<16x32xf32>
    %cst_546 = arith.constant 2.000000e+00 : f32
    %910 = vector.broadcast %cst_546 : f32 to vector<16x32xf32>
    %911 = arith.mulf %910, %909 : vector<16x32xf32>
    %912 = arith.subf %911, %896 : vector<16x32xf32>
    %c0_547 = arith.constant 0 : index
    %c0_548 = arith.constant 0 : index
    %913 = vector.load %arg11[%c0_547, %c0_548] : memref<1x64xf32, #tpu.memory_space<vmem>>, vector<1x64xf32>
    %c0_549 = arith.constant 0 : index
    %c0_550 = arith.constant 0 : index
    %914 = vector.load %arg9[%c0_549, %c0_550] : memref<3x64xf32, #tpu.memory_space<vmem>>, vector<1x64xf32>
    %915 = vector.broadcast %899 : vector<16x1xf32> to vector<16x64xf32>
    %916 = vector.broadcast %914 : vector<1x64xf32> to vector<16x64xf32>
    %917 = arith.mulf %915, %916 : vector<16x64xf32>
    %918 = vector.broadcast %913 : vector<1x64xf32> to vector<16x64xf32>
    %919 = arith.addf %918, %917 : vector<16x64xf32>
    %c0_551 = arith.constant 0 : index
    %c0_552 = arith.constant 0 : index
    %c0_553 = arith.constant 0 : index
    %920 = vector.load %arg10[%c0_551, %c0_552, %c0_553] : memref<3x32x64xf32, #tpu.memory_space<vmem>>, vector<1x32x64xf32>
    %921 = vector.shape_cast %920 : vector<1x32x64xf32> to vector<32x64xf32>
    %cst_554 = arith.constant dense<0.000000e+00> : vector<16x64xf32>
    %922 = tpu.matmul %896, %921, %cst_554 {dimension_numbers = #tpu.dot_dimension_numbers<[1], [0], [0], [1], [0, 0, 1, 1], [], []>} : vector<16x32xf32>, vector<32x64xf32>, vector<16x64xf32> -> vector<16x64xf32>
    %923 = arith.addf %919, %922 : vector<16x64xf32>
    %c1_555 = arith.constant 1 : index
    %c0_556 = arith.constant 0 : index
    %924 = vector.load %arg9[%c1_555, %c0_556] : memref<3x64xf32, #tpu.memory_space<vmem>>, vector<1x64xf32>
    %925 = vector.broadcast %903 : vector<16x1xf32> to vector<16x64xf32>
    %926 = vector.broadcast %924 : vector<1x64xf32> to vector<16x64xf32>
    %927 = arith.mulf %925, %926 : vector<16x64xf32>
    %928 = arith.addf %923, %927 : vector<16x64xf32>
    %c1_557 = arith.constant 1 : index
    %c0_558 = arith.constant 0 : index
    %c0_559 = arith.constant 0 : index
    %929 = vector.load %arg10[%c1_557, %c0_558, %c0_559] : memref<3x32x64xf32, #tpu.memory_space<vmem>>, vector<1x32x64xf32>
    %930 = vector.shape_cast %929 : vector<1x32x64xf32> to vector<32x64xf32>
    %cst_560 = arith.constant dense<0.000000e+00> : vector<16x64xf32>
    %931 = tpu.matmul %908, %930, %cst_560 {dimension_numbers = #tpu.dot_dimension_numbers<[1], [0], [0], [1], [0, 0, 1, 1], [], []>} : vector<16x32xf32>, vector<32x64xf32>, vector<16x64xf32> -> vector<16x64xf32>
    %932 = arith.addf %928, %931 : vector<16x64xf32>
    %c2_561 = arith.constant 2 : index
    %c0_562 = arith.constant 0 : index
    %933 = vector.load %arg9[%c2_561, %c0_562] : memref<3x64xf32, #tpu.memory_space<vmem>>, vector<1x64xf32>
    %934 = vector.broadcast %907 : vector<16x1xf32> to vector<16x64xf32>
    %935 = vector.broadcast %933 : vector<1x64xf32> to vector<16x64xf32>
    %936 = arith.mulf %934, %935 : vector<16x64xf32>
    %937 = arith.addf %932, %936 : vector<16x64xf32>
    %c2_563 = arith.constant 2 : index
    %c0_564 = arith.constant 0 : index
    %c0_565 = arith.constant 0 : index
    %938 = vector.load %arg10[%c2_563, %c0_564, %c0_565] : memref<3x32x64xf32, #tpu.memory_space<vmem>>, vector<1x32x64xf32>
    %939 = vector.shape_cast %938 : vector<1x32x64xf32> to vector<32x64xf32>
    %cst_566 = arith.constant dense<0.000000e+00> : vector<16x64xf32>
    %940 = tpu.matmul %912, %939, %cst_566 {dimension_numbers = #tpu.dot_dimension_numbers<[1], [0], [0], [1], [0, 0, 1, 1], [], []>} : vector<16x32xf32>, vector<32x64xf32>, vector<16x64xf32> -> vector<16x64xf32>
    %941 = arith.addf %937, %940 : vector<16x64xf32>
    %942 = arith.negf %941 : vector<16x64xf32>
    %943 = math.exp %942 : vector<16x64xf32>
    %cst_567 = arith.constant 1.000000e+00 : f32
    %944 = vector.broadcast %cst_567 : f32 to vector<16x64xf32>
    %945 = arith.addf %944, %943 : vector<16x64xf32>
    %946 = arith.divf %944, %945 : vector<16x64xf32>
    %947 = vector.extract_strided_slice %946 {offsets = [0, 0], sizes = [16, 32], strides = [1, 1]} : vector<16x64xf32> to vector<16x32xf32>
    %948 = vector.extract_strided_slice %946 {offsets = [0, 32], sizes = [16, 32], strides = [1, 1]} : vector<16x64xf32> to vector<16x32xf32>
    %949 = arith.mulf %947, %896 : vector<16x32xf32>
    %cst_568 = arith.constant dense<0.000000e+00> : vector<16x32xf32>
    %950 = tpu.matmul %0, %949, %cst_568 {dimension_numbers = #tpu.dot_dimension_numbers<[1], [0], [0], [1], [0, 0, 1, 1], [], []>} : vector<16x16xf32>, vector<16x32xf32>, vector<16x32xf32> -> vector<16x32xf32>
    %cst_569 = arith.constant dense<0.000000e+00> : vector<16x32xf32>
    %951 = tpu.matmul %0, %950, %cst_569 {dimension_numbers = #tpu.dot_dimension_numbers<[1], [0], [0], [1], [0, 0, 1, 1], [], []>} : vector<16x16xf32>, vector<16x32xf32>, vector<16x32xf32> -> vector<16x32xf32>
    %cst_570 = arith.constant 2.000000e+00 : f32
    %952 = vector.broadcast %cst_570 : f32 to vector<16x32xf32>
    %953 = arith.mulf %952, %951 : vector<16x32xf32>
    %954 = arith.subf %953, %949 : vector<16x32xf32>
    %c0_571 = arith.constant 0 : index
    %c0_572 = arith.constant 0 : index
    %955 = vector.load %arg14[%c0_571, %c0_572] : memref<1x32xf32, #tpu.memory_space<vmem>>, vector<1x32xf32>
    %c0_573 = arith.constant 0 : index
    %c0_574 = arith.constant 0 : index
    %956 = vector.load %arg12[%c0_573, %c0_574] : memref<3x32xf32, #tpu.memory_space<vmem>>, vector<1x32xf32>
    %957 = vector.broadcast %899 : vector<16x1xf32> to vector<16x32xf32>
    %958 = vector.broadcast %956 : vector<1x32xf32> to vector<16x32xf32>
    %959 = arith.mulf %957, %958 : vector<16x32xf32>
    %960 = vector.broadcast %955 : vector<1x32xf32> to vector<16x32xf32>
    %961 = arith.addf %960, %959 : vector<16x32xf32>
    %c0_575 = arith.constant 0 : index
    %c0_576 = arith.constant 0 : index
    %c0_577 = arith.constant 0 : index
    %962 = vector.load %arg13[%c0_575, %c0_576, %c0_577] : memref<3x32x32xf32, #tpu.memory_space<vmem>>, vector<1x32x32xf32>
    %963 = vector.shape_cast %962 : vector<1x32x32xf32> to vector<32x32xf32>
    %cst_578 = arith.constant dense<0.000000e+00> : vector<16x32xf32>
    %964 = tpu.matmul %949, %963, %cst_578 {dimension_numbers = #tpu.dot_dimension_numbers<[1], [0], [0], [1], [0, 0, 1, 1], [], []>} : vector<16x32xf32>, vector<32x32xf32>, vector<16x32xf32> -> vector<16x32xf32>
    %965 = arith.addf %961, %964 : vector<16x32xf32>
    %c1_579 = arith.constant 1 : index
    %c0_580 = arith.constant 0 : index
    %966 = vector.load %arg12[%c1_579, %c0_580] : memref<3x32xf32, #tpu.memory_space<vmem>>, vector<1x32xf32>
    %967 = vector.broadcast %903 : vector<16x1xf32> to vector<16x32xf32>
    %968 = vector.broadcast %966 : vector<1x32xf32> to vector<16x32xf32>
    %969 = arith.mulf %967, %968 : vector<16x32xf32>
    %970 = arith.addf %965, %969 : vector<16x32xf32>
    %c1_581 = arith.constant 1 : index
    %c0_582 = arith.constant 0 : index
    %c0_583 = arith.constant 0 : index
    %971 = vector.load %arg13[%c1_581, %c0_582, %c0_583] : memref<3x32x32xf32, #tpu.memory_space<vmem>>, vector<1x32x32xf32>
    %972 = vector.shape_cast %971 : vector<1x32x32xf32> to vector<32x32xf32>
    %cst_584 = arith.constant dense<0.000000e+00> : vector<16x32xf32>
    %973 = tpu.matmul %950, %972, %cst_584 {dimension_numbers = #tpu.dot_dimension_numbers<[1], [0], [0], [1], [0, 0, 1, 1], [], []>} : vector<16x32xf32>, vector<32x32xf32>, vector<16x32xf32> -> vector<16x32xf32>
    %974 = arith.addf %970, %973 : vector<16x32xf32>
    %c2_585 = arith.constant 2 : index
    %c0_586 = arith.constant 0 : index
    %975 = vector.load %arg12[%c2_585, %c0_586] : memref<3x32xf32, #tpu.memory_space<vmem>>, vector<1x32xf32>
    %976 = vector.broadcast %907 : vector<16x1xf32> to vector<16x32xf32>
    %977 = vector.broadcast %975 : vector<1x32xf32> to vector<16x32xf32>
    %978 = arith.mulf %976, %977 : vector<16x32xf32>
    %979 = arith.addf %974, %978 : vector<16x32xf32>
    %c2_587 = arith.constant 2 : index
    %c0_588 = arith.constant 0 : index
    %c0_589 = arith.constant 0 : index
    %980 = vector.load %arg13[%c2_587, %c0_588, %c0_589] : memref<3x32x32xf32, #tpu.memory_space<vmem>>, vector<1x32x32xf32>
    %981 = vector.shape_cast %980 : vector<1x32x32xf32> to vector<32x32xf32>
    %cst_590 = arith.constant dense<0.000000e+00> : vector<16x32xf32>
    %982 = tpu.matmul %954, %981, %cst_590 {dimension_numbers = #tpu.dot_dimension_numbers<[1], [0], [0], [1], [0, 0, 1, 1], [], []>} : vector<16x32xf32>, vector<32x32xf32>, vector<16x32xf32> -> vector<16x32xf32>
    %983 = arith.addf %979, %982 : vector<16x32xf32>
    %984 = math.tanh %983 : vector<16x32xf32>
    %985 = arith.mulf %948, %896 : vector<16x32xf32>
    %cst_591 = arith.constant 1.000000e+00 : f32
    %986 = vector.broadcast %cst_591 : f32 to vector<16x32xf32>
    %987 = arith.subf %986, %948 : vector<16x32xf32>
    %988 = arith.mulf %987, %984 : vector<16x32xf32>
    %989 = arith.addf %985, %988 : vector<16x32xf32>
    %cst_592 = arith.constant dense<0.000000e+00> : vector<16x1xf32>
    %990 = tpu.matmul %989, %714, %cst_592 {dimension_numbers = #tpu.dot_dimension_numbers<[1], [0], [0], [1], [0, 0, 1, 1], [], []>} : vector<16x32xf32>, vector<32x1xf32>, vector<16x1xf32> -> vector<16x1xf32>
    %991 = vector.broadcast %715 : vector<1x1xf32> to vector<16x1xf32>
    %992 = arith.addf %990, %991 : vector<16x1xf32>
    %c0_593 = arith.constant 0 : index
    %c0_594 = arith.constant 0 : index
    %c2_595 = arith.constant 2 : index
    %993 = vector.load %arg17[%c0_593, %c0_594, %c2_595] : memref<1x16x4xf32, #tpu.memory_space<vmem>>, vector<1x16x1xf32>
    %994 = vector.shape_cast %993 : vector<1x16x1xf32> to vector<16x1xf32>
    %995 = vector.shape_cast %992 : vector<16x1xf32> to vector<1x16x1xf32>
    tpu.vector_store %arg17[%c0_593, %c0_594, %c2_595], %995 {strides = array<i32>} : memref<1x16x4xf32, #tpu.memory_space<vmem>>, vector<1x16x1xf32>,
    %cst_596 = arith.constant dense<0.000000e+00> : vector<16x1xf32>
    %996 = tpu.matmul %0, %992, %cst_596 {dimension_numbers = #tpu.dot_dimension_numbers<[1], [0], [0], [1], [0, 0, 1, 1], [], []>} : vector<16x16xf32>, vector<16x1xf32>, vector<16x1xf32> -> vector<16x1xf32>
    %cst_597 = arith.constant dense<0.000000e+00> : vector<16x1xf32>
    %997 = tpu.matmul %0, %996, %cst_597 {dimension_numbers = #tpu.dot_dimension_numbers<[1], [0], [0], [1], [0, 0, 1, 1], [], []>} : vector<16x16xf32>, vector<16x1xf32>, vector<16x1xf32> -> vector<16x1xf32>
    %cst_598 = arith.constant 2.000000e+00 : f32
    %998 = vector.broadcast %cst_598 : f32 to vector<16x1xf32>
    %999 = arith.mulf %998, %997 : vector<16x1xf32>
    %1000 = arith.subf %999, %992 : vector<16x1xf32>
    %cst_599 = arith.constant dense<0.000000e+00> : vector<16x32xf32>
    %1001 = tpu.matmul %0, %989, %cst_599 {dimension_numbers = #tpu.dot_dimension_numbers<[1], [0], [0], [1], [0, 0, 1, 1], [], []>} : vector<16x16xf32>, vector<16x32xf32>, vector<16x32xf32> -> vector<16x32xf32>
    %cst_600 = arith.constant dense<0.000000e+00> : vector<16x32xf32>
    %1002 = tpu.matmul %0, %1001, %cst_600 {dimension_numbers = #tpu.dot_dimension_numbers<[1], [0], [0], [1], [0, 0, 1, 1], [], []>} : vector<16x16xf32>, vector<16x32xf32>, vector<16x32xf32> -> vector<16x32xf32>
    %cst_601 = arith.constant 2.000000e+00 : f32
    %1003 = vector.broadcast %cst_601 : f32 to vector<16x32xf32>
    %1004 = arith.mulf %1003, %1002 : vector<16x32xf32>
    %1005 = arith.subf %1004, %989 : vector<16x32xf32>
    %c0_602 = arith.constant 0 : index
    %c0_603 = arith.constant 0 : index
    %1006 = vector.load %arg11[%c0_602, %c0_603] : memref<1x64xf32, #tpu.memory_space<vmem>>, vector<1x64xf32>
    %c0_604 = arith.constant 0 : index
    %c0_605 = arith.constant 0 : index
    %1007 = vector.load %arg9[%c0_604, %c0_605] : memref<3x64xf32, #tpu.memory_space<vmem>>, vector<1x64xf32>
    %1008 = vector.broadcast %992 : vector<16x1xf32> to vector<16x64xf32>
    %1009 = vector.broadcast %1007 : vector<1x64xf32> to vector<16x64xf32>
    %1010 = arith.mulf %1008, %1009 : vector<16x64xf32>
    %1011 = vector.broadcast %1006 : vector<1x64xf32> to vector<16x64xf32>
    %1012 = arith.addf %1011, %1010 : vector<16x64xf32>
    %c0_606 = arith.constant 0 : index
    %c0_607 = arith.constant 0 : index
    %c0_608 = arith.constant 0 : index
    %1013 = vector.load %arg10[%c0_606, %c0_607, %c0_608] : memref<3x32x64xf32, #tpu.memory_space<vmem>>, vector<1x32x64xf32>
    %1014 = vector.shape_cast %1013 : vector<1x32x64xf32> to vector<32x64xf32>
    %cst_609 = arith.constant dense<0.000000e+00> : vector<16x64xf32>
    %1015 = tpu.matmul %989, %1014, %cst_609 {dimension_numbers = #tpu.dot_dimension_numbers<[1], [0], [0], [1], [0, 0, 1, 1], [], []>} : vector<16x32xf32>, vector<32x64xf32>, vector<16x64xf32> -> vector<16x64xf32>
    %1016 = arith.addf %1012, %1015 : vector<16x64xf32>
    %c1_610 = arith.constant 1 : index
    %c0_611 = arith.constant 0 : index
    %1017 = vector.load %arg9[%c1_610, %c0_611] : memref<3x64xf32, #tpu.memory_space<vmem>>, vector<1x64xf32>
    %1018 = vector.broadcast %996 : vector<16x1xf32> to vector<16x64xf32>
    %1019 = vector.broadcast %1017 : vector<1x64xf32> to vector<16x64xf32>
    %1020 = arith.mulf %1018, %1019 : vector<16x64xf32>
    %1021 = arith.addf %1016, %1020 : vector<16x64xf32>
    %c1_612 = arith.constant 1 : index
    %c0_613 = arith.constant 0 : index
    %c0_614 = arith.constant 0 : index
    %1022 = vector.load %arg10[%c1_612, %c0_613, %c0_614] : memref<3x32x64xf32, #tpu.memory_space<vmem>>, vector<1x32x64xf32>
    %1023 = vector.shape_cast %1022 : vector<1x32x64xf32> to vector<32x64xf32>
    %cst_615 = arith.constant dense<0.000000e+00> : vector<16x64xf32>
    %1024 = tpu.matmul %1001, %1023, %cst_615 {dimension_numbers = #tpu.dot_dimension_numbers<[1], [0], [0], [1], [0, 0, 1, 1], [], []>} : vector<16x32xf32>, vector<32x64xf32>, vector<16x64xf32> -> vector<16x64xf32>
    %1025 = arith.addf %1021, %1024 : vector<16x64xf32>
    %c2_616 = arith.constant 2 : index
    %c0_617 = arith.constant 0 : index
    %1026 = vector.load %arg9[%c2_616, %c0_617] : memref<3x64xf32, #tpu.memory_space<vmem>>, vector<1x64xf32>
    %1027 = vector.broadcast %1000 : vector<16x1xf32> to vector<16x64xf32>
    %1028 = vector.broadcast %1026 : vector<1x64xf32> to vector<16x64xf32>
    %1029 = arith.mulf %1027, %1028 : vector<16x64xf32>
    %1030 = arith.addf %1025, %1029 : vector<16x64xf32>
    %c2_618 = arith.constant 2 : index
    %c0_619 = arith.constant 0 : index
    %c0_620 = arith.constant 0 : index
    %1031 = vector.load %arg10[%c2_618, %c0_619, %c0_620] : memref<3x32x64xf32, #tpu.memory_space<vmem>>, vector<1x32x64xf32>
    %1032 = vector.shape_cast %1031 : vector<1x32x64xf32> to vector<32x64xf32>
    %cst_621 = arith.constant dense<0.000000e+00> : vector<16x64xf32>
    %1033 = tpu.matmul %1005, %1032, %cst_621 {dimension_numbers = #tpu.dot_dimension_numbers<[1], [0], [0], [1], [0, 0, 1, 1], [], []>} : vector<16x32xf32>, vector<32x64xf32>, vector<16x64xf32> -> vector<16x64xf32>
    %1034 = arith.addf %1030, %1033 : vector<16x64xf32>
    %1035 = arith.negf %1034 : vector<16x64xf32>
    %1036 = math.exp %1035 : vector<16x64xf32>
    %cst_622 = arith.constant 1.000000e+00 : f32
    %1037 = vector.broadcast %cst_622 : f32 to vector<16x64xf32>
    %1038 = arith.addf %1037, %1036 : vector<16x64xf32>
    %1039 = arith.divf %1037, %1038 : vector<16x64xf32>
    %1040 = vector.extract_strided_slice %1039 {offsets = [0, 0], sizes = [16, 32], strides = [1, 1]} : vector<16x64xf32> to vector<16x32xf32>
    %1041 = vector.extract_strided_slice %1039 {offsets = [0, 32], sizes = [16, 32], strides = [1, 1]} : vector<16x64xf32> to vector<16x32xf32>
    %1042 = arith.mulf %1040, %989 : vector<16x32xf32>
    %cst_623 = arith.constant dense<0.000000e+00> : vector<16x32xf32>
    %1043 = tpu.matmul %0, %1042, %cst_623 {dimension_numbers = #tpu.dot_dimension_numbers<[1], [0], [0], [1], [0, 0, 1, 1], [], []>} : vector<16x16xf32>, vector<16x32xf32>, vector<16x32xf32> -> vector<16x32xf32>
    %cst_624 = arith.constant dense<0.000000e+00> : vector<16x32xf32>
    %1044 = tpu.matmul %0, %1043, %cst_624 {dimension_numbers = #tpu.dot_dimension_numbers<[1], [0], [0], [1], [0, 0, 1, 1], [], []>} : vector<16x16xf32>, vector<16x32xf32>, vector<16x32xf32> -> vector<16x32xf32>
    %cst_625 = arith.constant 2.000000e+00 : f32
    %1045 = vector.broadcast %cst_625 : f32 to vector<16x32xf32>
    %1046 = arith.mulf %1045, %1044 : vector<16x32xf32>
    %1047 = arith.subf %1046, %1042 : vector<16x32xf32>
    %c0_626 = arith.constant 0 : index
    %c0_627 = arith.constant 0 : index
    %1048 = vector.load %arg14[%c0_626, %c0_627] : memref<1x32xf32, #tpu.memory_space<vmem>>, vector<1x32xf32>
    %c0_628 = arith.constant 0 : index
    %c0_629 = arith.constant 0 : index
    %1049 = vector.load %arg12[%c0_628, %c0_629] : memref<3x32xf32, #tpu.memory_space<vmem>>, vector<1x32xf32>
    %1050 = vector.broadcast %992 : vector<16x1xf32> to vector<16x32xf32>
    %1051 = vector.broadcast %1049 : vector<1x32xf32> to vector<16x32xf32>
    %1052 = arith.mulf %1050, %1051 : vector<16x32xf32>
    %1053 = vector.broadcast %1048 : vector<1x32xf32> to vector<16x32xf32>
    %1054 = arith.addf %1053, %1052 : vector<16x32xf32>
    %c0_630 = arith.constant 0 : index
    %c0_631 = arith.constant 0 : index
    %c0_632 = arith.constant 0 : index
    %1055 = vector.load %arg13[%c0_630, %c0_631, %c0_632] : memref<3x32x32xf32, #tpu.memory_space<vmem>>, vector<1x32x32xf32>
    %1056 = vector.shape_cast %1055 : vector<1x32x32xf32> to vector<32x32xf32>
    %cst_633 = arith.constant dense<0.000000e+00> : vector<16x32xf32>
    %1057 = tpu.matmul %1042, %1056, %cst_633 {dimension_numbers = #tpu.dot_dimension_numbers<[1], [0], [0], [1], [0, 0, 1, 1], [], []>} : vector<16x32xf32>, vector<32x32xf32>, vector<16x32xf32> -> vector<16x32xf32>
    %1058 = arith.addf %1054, %1057 : vector<16x32xf32>
    %c1_634 = arith.constant 1 : index
    %c0_635 = arith.constant 0 : index
    %1059 = vector.load %arg12[%c1_634, %c0_635] : memref<3x32xf32, #tpu.memory_space<vmem>>, vector<1x32xf32>
    %1060 = vector.broadcast %996 : vector<16x1xf32> to vector<16x32xf32>
    %1061 = vector.broadcast %1059 : vector<1x32xf32> to vector<16x32xf32>
    %1062 = arith.mulf %1060, %1061 : vector<16x32xf32>
    %1063 = arith.addf %1058, %1062 : vector<16x32xf32>
    %c1_636 = arith.constant 1 : index
    %c0_637 = arith.constant 0 : index
    %c0_638 = arith.constant 0 : index
    %1064 = vector.load %arg13[%c1_636, %c0_637, %c0_638] : memref<3x32x32xf32, #tpu.memory_space<vmem>>, vector<1x32x32xf32>
    %1065 = vector.shape_cast %1064 : vector<1x32x32xf32> to vector<32x32xf32>
    %cst_639 = arith.constant dense<0.000000e+00> : vector<16x32xf32>
    %1066 = tpu.matmul %1043, %1065, %cst_639 {dimension_numbers = #tpu.dot_dimension_numbers<[1], [0], [0], [1], [0, 0, 1, 1], [], []>} : vector<16x32xf32>, vector<32x32xf32>, vector<16x32xf32> -> vector<16x32xf32>
    %1067 = arith.addf %1063, %1066 : vector<16x32xf32>
    %c2_640 = arith.constant 2 : index
    %c0_641 = arith.constant 0 : index
    %1068 = vector.load %arg12[%c2_640, %c0_641] : memref<3x32xf32, #tpu.memory_space<vmem>>, vector<1x32xf32>
    %1069 = vector.broadcast %1000 : vector<16x1xf32> to vector<16x32xf32>
    %1070 = vector.broadcast %1068 : vector<1x32xf32> to vector<16x32xf32>
    %1071 = arith.mulf %1069, %1070 : vector<16x32xf32>
    %1072 = arith.addf %1067, %1071 : vector<16x32xf32>
    %c2_642 = arith.constant 2 : index
    %c0_643 = arith.constant 0 : index
    %c0_644 = arith.constant 0 : index
    %1073 = vector.load %arg13[%c2_642, %c0_643, %c0_644] : memref<3x32x32xf32, #tpu.memory_space<vmem>>, vector<1x32x32xf32>
    %1074 = vector.shape_cast %1073 : vector<1x32x32xf32> to vector<32x32xf32>
    %cst_645 = arith.constant dense<0.000000e+00> : vector<16x32xf32>
    %1075 = tpu.matmul %1047, %1074, %cst_645 {dimension_numbers = #tpu.dot_dimension_numbers<[1], [0], [0], [1], [0, 0, 1, 1], [], []>} : vector<16x32xf32>, vector<32x32xf32>, vector<16x32xf32> -> vector<16x32xf32>
    %1076 = arith.addf %1072, %1075 : vector<16x32xf32>
    %1077 = math.tanh %1076 : vector<16x32xf32>
    %1078 = arith.mulf %1041, %989 : vector<16x32xf32>
    %cst_646 = arith.constant 1.000000e+00 : f32
    %1079 = vector.broadcast %cst_646 : f32 to vector<16x32xf32>
    %1080 = arith.subf %1079, %1041 : vector<16x32xf32>
    %1081 = arith.mulf %1080, %1077 : vector<16x32xf32>
    %1082 = arith.addf %1078, %1081 : vector<16x32xf32>
    %cst_647 = arith.constant dense<0.000000e+00> : vector<16x1xf32>
    %1083 = tpu.matmul %1082, %714, %cst_647 {dimension_numbers = #tpu.dot_dimension_numbers<[1], [0], [0], [1], [0, 0, 1, 1], [], []>} : vector<16x32xf32>, vector<32x1xf32>, vector<16x1xf32> -> vector<16x1xf32>
    %1084 = vector.broadcast %715 : vector<1x1xf32> to vector<16x1xf32>
    %1085 = arith.addf %1083, %1084 : vector<16x1xf32>
    %c0_648 = arith.constant 0 : index
    %c0_649 = arith.constant 0 : index
    %c3_650 = arith.constant 3 : index
    %1086 = vector.load %arg17[%c0_648, %c0_649, %c3_650] : memref<1x16x4xf32, #tpu.memory_space<vmem>>, vector<1x16x1xf32>
    %1087 = vector.shape_cast %1086 : vector<1x16x1xf32> to vector<16x1xf32>
    %1088 = vector.shape_cast %1085 : vector<16x1xf32> to vector<1x16x1xf32>
    tpu.vector_store %arg17[%c0_648, %c0_649, %c3_650], %1088 {strides = array<i32>} : memref<1x16x4xf32, #tpu.memory_space<vmem>>, vector<1x16x1xf32>,
    return
  }
  func.func @transform_0(%arg0: i32) -> (i32, i32, i32) {
    %c0_i32 = arith.constant 0 : i32
    %c0_i32_0 = arith.constant 0 : i32
    %c0_i32_1 = arith.constant 0 : i32
    return %arg0, %c0_i32, %c0_i32_0 : i32, i32, i32
  }
  func.func @transform_1(%arg0: i32) -> (i32, i32) {
    %c0_i32 = arith.constant 0 : i32
    %c0_i32_0 = arith.constant 0 : i32
    %c0_i32_1 = arith.constant 0 : i32
    return %c0_i32, %c0_i32_0 : i32, i32
  }
  func.func @transform_2(%arg0: i32) -> (i32, i32) {
    %c0_i32 = arith.constant 0 : i32
    %c0_i32_0 = arith.constant 0 : i32
    %c0_i32_1 = arith.constant 0 : i32
    return %c0_i32, %c0_i32_0 : i32, i32
  }
  func.func @transform_3(%arg0: i32) -> (i32, i32, i32) {
    %c0_i32 = arith.constant 0 : i32
    %c0_i32_0 = arith.constant 0 : i32
    %c0_i32_1 = arith.constant 0 : i32
    %c0_i32_2 = arith.constant 0 : i32
    return %c0_i32, %c0_i32_0, %c0_i32_1 : i32, i32, i32
  }
  func.func @transform_4(%arg0: i32) -> (i32, i32) {
    %c0_i32 = arith.constant 0 : i32
    %c0_i32_0 = arith.constant 0 : i32
    %c0_i32_1 = arith.constant 0 : i32
    return %c0_i32, %c0_i32_0 : i32, i32
  }
  func.func @transform_5(%arg0: i32) -> (i32, i32) {
    %c0_i32 = arith.constant 0 : i32
    %c0_i32_0 = arith.constant 0 : i32
    %c0_i32_1 = arith.constant 0 : i32
    return %c0_i32, %c0_i32_0 : i32, i32
  }
  func.func @transform_6(%arg0: i32) -> (i32, i32, i32) {
    %c0_i32 = arith.constant 0 : i32
    %c0_i32_0 = arith.constant 0 : i32
    %c0_i32_1 = arith.constant 0 : i32
    %c0_i32_2 = arith.constant 0 : i32
    return %c0_i32, %c0_i32_0, %c0_i32_1 : i32, i32, i32
  }
  func.func @transform_7(%arg0: i32) -> (i32, i32) {
    %c0_i32 = arith.constant 0 : i32
    %c0_i32_0 = arith.constant 0 : i32
    %c0_i32_1 = arith.constant 0 : i32
    return %c0_i32, %c0_i32_0 : i32, i32
  }
  func.func @transform_8(%arg0: i32) -> (i32, i32) {
    %c0_i32 = arith.constant 0 : i32
    %c0_i32_0 = arith.constant 0 : i32
    %c0_i32_1 = arith.constant 0 : i32
    return %c0_i32, %c0_i32_0 : i32, i32
  }
  func.func @transform_9(%arg0: i32) -> (i32, i32, i32) {
    %c0_i32 = arith.constant 0 : i32
    %c0_i32_0 = arith.constant 0 : i32
    %c0_i32_1 = arith.constant 0 : i32
    %c0_i32_2 = arith.constant 0 : i32
    return %c0_i32, %c0_i32_0, %c0_i32_1 : i32, i32, i32
  }
  func.func @transform_10(%arg0: i32) -> (i32, i32) {
    %c0_i32 = arith.constant 0 : i32
    %c0_i32_0 = arith.constant 0 : i32
    %c0_i32_1 = arith.constant 0 : i32
    return %c0_i32, %c0_i32_0 : i32, i32
  }
  func.func @transform_11(%arg0: i32) -> (i32, i32) {
    %c0_i32 = arith.constant 0 : i32
    %c0_i32_0 = arith.constant 0 : i32
    %c0_i32_1 = arith.constant 0 : i32
    return %c0_i32, %c0_i32_0 : i32, i32
  }
  func.func @transform_12(%arg0: i32) -> (i32, i32, i32) {
    %c0_i32 = arith.constant 0 : i32
    %c0_i32_0 = arith.constant 0 : i32
    %c0_i32_1 = arith.constant 0 : i32
    %c0_i32_2 = arith.constant 0 : i32
    return %c0_i32, %c0_i32_0, %c0_i32_1 : i32, i32, i32
  }
  func.func @transform_13(%arg0: i32) -> (i32, i32) {
    %c0_i32 = arith.constant 0 : i32
    %c0_i32_0 = arith.constant 0 : i32
    %c0_i32_1 = arith.constant 0 : i32
    return %c0_i32, %c0_i32_0 : i32, i32
  }
  func.func @transform_14(%arg0: i32) -> (i32, i32) {
    %c0_i32 = arith.constant 0 : i32
    %c0_i32_0 = arith.constant 0 : i32
    %c0_i32_1 = arith.constant 0 : i32
    return %c0_i32, %c0_i32_0 : i32, i32
  }
  func.func @transform_15(%arg0: i32) -> (i32, i32) {
    %c0_i32 = arith.constant 0 : i32
    %c0_i32_0 = arith.constant 0 : i32
    %c0_i32_1 = arith.constant 0 : i32
    return %c0_i32, %c0_i32_0 : i32, i32
  }
  func.func @transform_16(%arg0: i32) -> (i32, i32, i32) {
    %c0_i32 = arith.constant 0 : i32
    %c0_i32_0 = arith.constant 0 : i32
    %c0_i32_1 = arith.constant 0 : i32
    return %arg0, %c0_i32, %c0_i32_0 : i32, i32, i32
  }
}

</mosaic_0001>

<bundles_post_ra>
// kernel: forward.1
= control target key start
LH: loop header
LB: loop body
LE: loop exit
PB: predicated region body
PF: predicated region fallthrough
CT: control target
= control target key end

     0   :  { %s19949_s0 = inlined_call_operand.vmem [shape: f32[2,16,8], index: 0, kind: input, shape index: {}]   ;;  %s19950_s1 = inlined_call_operand.hbm [shape: f32[16,16], index: 1, kind: input, shape index: {}]   ;;  %s19951_s2 = inlined_call_operand.vmem [shape: f32[3,64], index: 2, kind: input, shape index: {}]   ;;  %s19952_s3 = inlined_call_operand.hbm [shape: f32[3,32,64], index: 3, kind: input, shape index: {}]   ;;  %s19953_s4 = inlined_call_operand.hbm [shape: f32[1,64], index: 4, kind: input, shape index: {}]   ;;  %s19954_s5 = inlined_call_operand.hbm [shape: f32[3,32], index: 5, kind: input, shape index: {}]   ;;  %s19955_s6 = inlined_call_operand.hbm [shape: f32[3,32,32], index: 6, kind: input, shape index: {}]   ;;  %s19956_s7 = inlined_call_operand.hbm [shape: f32[1,32], index: 7, kind: input, shape index: {}]   ;;  %s19957_s8 = inlined_call_operand.hbm [shape: f32[3,64], index: 8, kind: input, shape index: {}]   ;;  %s19958_s9 = inlined_call_operand.vmem [shape: f32[3,32,64], index: 9, kind: input, shape index: {}]   ;;  %s19959_s10 = inlined_call_operand.hbm [shape: f32[1,64], index: 10, kind: input, shape index: {}]   ;;  %s19960_s11 = inlined_call_operand.vmem [shape: f32[3,32], index: 11, kind: input, shape index: {}]   ;;  %s19961_s12 = inlined_call_operand.hbm [shape: f32[3,32,32], index: 12, kind: input, shape index: {}]   ;;  %s19962_s13 = inlined_call_operand.vmem [shape: f32[1,32], index: 13, kind: input, shape index: {}]   ;;  %s19963_s14 = inlined_call_operand.vmem [shape: f32[32,1], index: 14, kind: input, shape index: {}]   ;;  %s19964_s15 = inlined_call_operand.<no memory space> [shape: f32[1,1], index: 15, kind: input, shape index: {}]   ;;  %s19965_s16 = inlined_call_operand.vmem [shape: f32[2,16,4], index: 16, kind: output, shape index: {}]  }
   0x1   :  { %19988 = sst [smem:[#allocation30_spill]] %s19949_s0  ;;  %v21_v0 = vstv %s19964_s15 }
   0x2   :  { %22 = vst [vmem:[#allocation2] sm:$0x1] %v21_v0 }
   0x3   :  { %23 = vsyncpa [#allocation4], 0 }
   0x4   :  { %24 = vsyncpa [#allocation6], 0 }
   0x5   :  { %25 = vsyncpa [#allocation9], 0 }
   0x6   :  { %26 = vsyncpa [#allocation12], 0 }
   0x7   :  { %27 = vsyncpa [#allocation15], 0  ;;  %s17205_s23 = smov 0  }
   0x8 LB: > { %s17211_s24 = sadd.s32 4294967295, %s17083_s23   ;;  %p13970_p0 = scmp.ge.s32.totalorder %s17083_s23, 1  ;;  %s17083_s23 = sphi %s17205_s23, %s33_s23  }
   0x9   : > { %p405_p1 = scmp.lt.s32.totalorder %s17083_s23, 3  ;;  %p16509_p2 = scmp.eq.s32.totalorder %s17211_s24, 0 }
   0xa   : > { %s17085_s25 = smov [#allocation5]   ;;  %s17086_s27 = smov [#allocation8]  }
   0xb   : > { %p17216_p3 = pnand %p13970_p0, %p405_p1  ;;  %s433_s26 = sshll.u32 %s17085_s25, 4  ;;  %s434_s26 = int_to_ptr.vmem [resolvable:$true] %s433_s26 }
   0xc   : > { %s458_s28 = sshll.u32 %s17086_s27, 4  ;;  %s17087_s30 = smov [#allocation11]   ;;  %s17222_s28 = int_to_ptr.vmem [resolvable:$true] %s458_s28 }
   0xd   : > { %p16481_p4 = pneg %p17216_p3  ;;  %s482_s0 = sshll.u32 %s17087_s30, 4  ;;  %s17230_s0 = int_to_ptr.vmem [resolvable:$true] %s482_s0 }
   0xe   : > { %s17088_s17 = smov [#allocation14]   ;;  %s16834_s20 = scalar_lea.vmem %s434_s26, 1536 }
   0xf   : > { %p17226_p5 = pnand %p16509_p2, %p16481_p4  ;;  %s17232_s18 = sshll.u32 %s17088_s17, 4  ;;  %s508_s18 = int_to_ptr.vmem [resolvable:$true] %s17232_s18 }
  0x10   : > { %p16835_p7 = scmp.ne.s32.totalorder %s434_s26, %s16834_s20  ;;  %p16842_p10 = scmp.lt.s32.totalorder %s434_s26, %s434_s26 }
  0x11   : > { %p17236_p6 = pneg %p17226_p5  ;;  %p16843_p11 = scmp.lt.s32.totalorder %s16834_s20, %s16834_s20 }
  0x13   : > { %p16837_p8 = pnand %p16835_p7, %p17236_p6  ;;  %p16844_p12 = por %p16843_p11, %p16842_p10 }
  0x15   : > { %p16838_p9 = pneg %p16837_p8 }
  0x17   : > { %p16845_p13 = pnand %p16844_p12, %p16838_p9 }
  0x19   : > { %16848 = shalt.err (!%p16845_p13)
}
  0x1a   : > { %s19966_s21 = smov 128   ;;  %s19968_s22 = smov 8  }
  0x1b   : > { %16487 = dma.hbm_to_vmem [thread:$0]  (!%p17226_p5), %s19952_s3, 1536, %s434_s26, [#allocation6], %s19966_s21, %s19966_s21, %s19968_s22  }
  0x1c   : > { %s16860_s30 = scalar_lea.vmem %s17222_s28, 64  ;;  %p16868_p7 = scmp.lt.s32.totalorder %s17222_s28, %s17222_s28 }
  0x1d   : > { %p16861_p0 = scmp.ne.s32.totalorder %s17222_s28, %s16860_s30  ;;  %p16869_p8 = scmp.lt.s32.totalorder %s16860_s30, %s16860_s30 }
  0x1f   : > { %p16863_p1 = pnand %p16861_p0, %p17236_p6  ;;  %p16870_p9 = por %p16869_p8, %p16868_p7 }
  0x21   : > { %p16864_p4 = pneg %p16863_p1 }
  0x23   : > { %p16871_p10 = pnand %p16870_p9, %p16864_p4 }
  0x25   : > { %16874 = shalt.err (!%p16871_p10)
}
  0x26   : > { %16493 = dma.hbm_to_vmem [thread:$0]  (!%p17226_p5), %s19954_s5, 64, %s17222_s28, [#allocation9]  }
  0x27   : > { %s16886_s26 = scalar_lea.vmem %s17230_s0, 16  ;;  %s16893_s25 = scalar_lea.vmem %s17230_s0, 32 }
  0x28   : > { %p16887_p11 = scmp.ne.s32.totalorder %s17230_s0, %s16886_s26  ;;  %p16894_p0 = scmp.lt.s32.totalorder %s17230_s0, %s17230_s0 }
  0x29   : > { %p16895_p1 = scmp.lt.s32.totalorder %s16893_s25, %s16886_s26 }
  0x2a   : > { %p16889_p12 = pnand %p16887_p11, %p17236_p6 }
  0x2b   : > { %p16896_p4 = por %p16895_p1, %p16894_p0 }
  0x2c   : > { %p16890_p13 = pneg %p16889_p12 }
  0x2e   : > { %p16897_p7 = pnand %p16896_p4, %p16890_p13 }
  0x30   : > { %16900 = shalt.err (!%p16897_p7)
}
  0x31   : > { %16499 = dma.hbm_to_vmem [thread:$0]  (!%p17226_p5), %s19956_s7, 16, %s17230_s0, [#allocation12]  }
  0x32   : > { %s16912_s28 = scalar_lea.vmem %s508_s18, 16  ;;  %s16919_s17 = scalar_lea.vmem %s508_s18, 32 }
  0x33   : > { %p16913_p8 = scmp.ne.s32.totalorder %s508_s18, %s16912_s28  ;;  %p16920_p11 = scmp.lt.s32.totalorder %s508_s18, %s508_s18 }
  0x34   : > { %p16921_p12 = scmp.lt.s32.totalorder %s16919_s17, %s16912_s28 }
  0x35   : > { %p16915_p9 = pnand %p16913_p8, %p17236_p6 }
  0x36   : > { %p16922_p13 = por %p16921_p12, %p16920_p11 }
  0x37   : > { %p16916_p10 = pneg %p16915_p9 }
  0x39   : > { %p16923_p0 = pnand %p16922_p13, %p16916_p10 }
  0x3b   : > { %16926 = shalt.err (!%p16923_p0)
}
  0x3c   : > { %16505 = dma.hbm_to_vmem [thread:$0]  (!%p17226_p5), %s19959_s10, 16, %s508_s18, [#allocation15]  }
  0x3d   : > { %s17091_s0 = smov [#allocation3]   ;;  %s17092_s27 = smov [#allocation7]  }
  0x3e   : > { %s417_s25 = sshll.u32 %s17091_s0, 4  ;;  %s447_s30 = sshll.u32 %s17092_s27, 4  ;;  %s418_s25 = int_to_ptr.vmem [resolvable:$true] %s417_s25  ;;  %s448_s30 = int_to_ptr.vmem [resolvable:$true] %s447_s30 }
  0x3f   : > { %s16938_s21 = scalar_lea.vmem %s418_s25, 256  ;;  %p16946_p8 = scmp.lt.s32.totalorder %s418_s25, %s418_s25 }
  0x40   : > { %p16939_p1 = scmp.ne.s32.totalorder %s418_s25, %s16938_s21  ;;  %p16947_p9 = scmp.lt.s32.totalorder %s16938_s21, %s16938_s21 }
  0x42   : > { %p16941_p4 = pnand %p16939_p1, %p17236_p6  ;;  %p16948_p10 = por %p16947_p9, %p16946_p8 }
  0x44   : > { %p16942_p7 = pneg %p16941_p4 }
  0x46   : > { %p16949_p11 = pnand %p16948_p10, %p16942_p7 }
  0x48   : > { %16952 = shalt.err (!%p16949_p11)
}
  0x49   : > { %s19992_s28 = smov 128   ;;  %s16964_s20 = scalar_lea.vmem %s448_s30, 16 }
  0x4a   : > { %16484 = dma.hbm_to_vmem [thread:$0]  (!%p17226_p5), %s19950_s1, 256, %s418_s25, [#allocation4], %s19992_s28, %s19992_s28, %s19968_s22  }
  0x4b   : > { %p16965_p12 = scmp.ne.s32.totalorder %s448_s30, %s16964_s20  ;;  %s16971_s21 = scalar_lea.vmem %s448_s30, 32 }
  0x4c   : > { %p16972_p1 = scmp.lt.s32.totalorder %s448_s30, %s448_s30  ;;  %p16973_p4 = scmp.lt.s32.totalorder %s16971_s21, %s16964_s20 }
  0x4d   : > { %p16967_p13 = pnand %p16965_p12, %p17236_p6 }
  0x4e   : > { %p16974_p7 = por %p16973_p4, %p16972_p1 }
  0x4f   : > { %p16968_p0 = pneg %p16967_p13 }
  0x51   : > { %p16975_p8 = pnand %p16974_p7, %p16968_p0 }
  0x53   : > { %16978 = shalt.err (!%p16975_p8)
}
  0x54   : > { %16490 = dma.hbm_to_vmem [thread:$0]  (!%p17226_p5), %s19953_s4, 16, %s448_s30, [#allocation6]  }
  0x55   : > { %s17093_s25 = smov [#allocation10]   ;;  %s17094_s18 = smov [#allocation13]  }
  0x56   : > { %s468_s27 = sshll.u32 %s17093_s25, 4  ;;  %s493_s17 = sshll.u32 %s17094_s18, 4  ;;  %s469_s27 = int_to_ptr.vmem [resolvable:$true] %s468_s27  ;;  %s494_s17 = int_to_ptr.vmem [resolvable:$true] %s493_s17 }
  0x57   : > { %s16990_s22 = scalar_lea.vmem %s469_s27, 1536  ;;  %p16998_p12 = scmp.lt.s32.totalorder %s469_s27, %s469_s27 }
  0x58   : > { %p16991_p9 = scmp.ne.s32.totalorder %s469_s27, %s16990_s22  ;;  %p16999_p13 = scmp.lt.s32.totalorder %s16990_s22, %s16990_s22 }
  0x5a   : > { %p16993_p10 = pnand %p16991_p9, %p17236_p6  ;;  %p17000_p0 = por %p16999_p13, %p16998_p12 }
  0x5c   : > { %p16994_p11 = pneg %p16993_p10 }
  0x5e   : > { %p17001_p1 = pnand %p17000_p0, %p16994_p11 }
  0x60   : > { %17004 = shalt.err (!%p17001_p1)
}
  0x61   : > { %s19993_s20 = smov 8   ;;  %s17016_s26 = scalar_lea.vmem %s494_s17, 64 }
  0x62   : > { %16496 = dma.hbm_to_vmem [thread:$0]  (!%p17226_p5), %s19955_s6, 1536, %s469_s27, [#allocation9], %s19992_s28, %s19992_s28, %s19993_s20  }
  0x63   : > { %p17017_p4 = scmp.ne.s32.totalorder %s494_s17, %s17016_s26  ;;  %p17024_p9 = scmp.lt.s32.totalorder %s494_s17, %s494_s17 }
  0x64   : > { %p17025_p10 = scmp.lt.s32.totalorder %s17016_s26, %s17016_s26 }
  0x65   : > { %p17019_p7 = pnand %p17017_p4, %p17236_p6 }
  0x66   : > { %p17026_p11 = por %p17025_p10, %p17024_p9 }
  0x67   : > { %p17020_p8 = pneg %p17019_p7 }
  0x69   : > { %p17027_p12 = pnand %p17026_p11, %p17020_p8 }
  0x6b   : > { %17030 = shalt.err (!%p17027_p12)
}
  0x6c   : > { %16502 = dma.hbm_to_vmem [thread:$0]  (!%p17226_p5), %s19957_s8, 64, %s494_s17, [#allocation12]  }
  0x6d   : > { %s17095_s25 = smov [#allocation16]  }
  0x6e   : > { %s520_s27 = sshll.u32 %s17095_s25, 4  ;;  %s521_s27 = int_to_ptr.vmem [resolvable:$true] %s520_s27 }
  0x6f   : > { %s17042_s18 = scalar_lea.vmem %s521_s27, 1536  ;;  %p17050_p4 = scmp.lt.s32.totalorder %s521_s27, %s521_s27 }
  0x70   : > { %p17043_p13 = scmp.ne.s32.totalorder %s521_s27, %s17042_s18  ;;  %p17051_p7 = scmp.lt.s32.totalorder %s17042_s18, %s17042_s18 }
  0x72   : > { %p17045_p0 = pnand %p17043_p13, %p17236_p6  ;;  %p17052_p9 = por %p17051_p7, %p17050_p4 }
  0x74   : > { %p17046_p1 = pneg %p17045_p0 }
  0x76   : > { %p17053_p8 = pnand %p17052_p9, %p17046_p1 }
  0x78   : > { %17056 = shalt.err (!%p17053_p8)
}
  0x79   : > { %16508 = dma.hbm_to_vmem [thread:$0]  (!%p17226_p5), %s19961_s12, 1536, %s521_s27, [#allocation15], %s19992_s28, %s19992_s28, %s19993_s20  }
  0x7a   : > { %553 = sbr.rel (%p17216_p3) target bundleno = 18757 (0x4945), region = 84 }
  0x7f   : > { %17062 = dma.done.wait (%p16509_p2), [#allocation4], 256  }
  0x80   : > { %17064 = vsyncadd (%p16509_p2), [#allocation4], 4294967040 }
  0x81   : > { %17066 = dma.done.wait (%p16509_p2), [#allocation6], 1552  }
  0x82   : > { %17068 = vsyncadd (%p16509_p2), [#allocation6], 4294965744 }
  0x83   : > { %17070 = dma.done.wait (%p16509_p2), [#allocation9], 1600  }
  0x84   : > { %17072 = vsyncadd (%p16509_p2), [#allocation9], 4294965696 }
  0x85   : > { %17074 = dma.done.wait (%p16509_p2), [#allocation12], 80  }
  0x86   : > { %17076 = vsyncadd (%p16509_p2), [#allocation12], 4294967216 }
  0x87   : > { %17078 = dma.done.wait (%p16509_p2), [#allocation15], 1552  }
  0x88   : > { %17080 = vsyncadd (%p16509_p2), [#allocation15], 4294965744  ;;  %p635_p3 = scmp.lt.s32.totalorder %s17211_s24, 1  ;;  %v19970_v1 = vmov 0   ;;  %s19994_s28 = sld [smem:[#allocation30_spill]]  ;;  %vm649_vm0 = vcmask 130048  }
  0x89   : > { %16567 = vset.pattern.permute.xlu0 %v19970_v1  ;;  %16568 = vset.pattern.permute.xlu1 %v19970_v1  ;;  %v17369_v4 = vld [vmem:[#allocation3] sm:$0xff]  ;;  %v17375_v5 = vld [vmem:[#allocation3 + $0x8] sm:$0xff]  ;;  %v17097_v7 = vmov 0.0   ;;  %v17395_v9 = vld [vmem:[#allocation5 + $0x8] sm:$0xff]  ;;  %vm992_vm1 = vcmask 261120   ;;  %s17098_s18 = smov 32  }
  0x8a   : > { %s20017_s24 = smov (!%p635_p3, %s17211_s24), 1  ;;  %15125 = vmatprep.mubr.msk.f32.mxu0 %vm649_vm0, %v17369_v4  ;;  %15132 = vmatprep.mubr.msk.f32.mxu1 %vm649_vm0, %v17369_v4  ;;  %v17382_v6 = vld [vmem:[#allocation5 + $0x18] sm:$0xff]  ;;  %v17390_v8 = vld [vmem:[#allocation5 + $0x10] sm:$0xff]  ;;  %v17399_v10 = vld [vmem:[#allocation5] sm:$0xff]  ;;  %s17099_s30 = smov 127   ;;  %vm10208_vm2 = vcmask 7168  }
  0x8b   : > { %s14384_s15 = sshll.u32 %s20017_s24, 4  ;;  %v17415_v15 = vld [vmem:[#allocation5 + $0x38] sm:$0xff]  ;;  %v17419_v16 = vld [vmem:[#allocation5 + $0x30] sm:$0xff]  ;;  %v17427_v17 = vld [vmem:[#allocation5 + $0x28] sm:$0xff]  ;;  %s17100_s17 = smov 96   ;;  %vm11414_vm3 = vcmask 15368  }
  0x8c   : > { %v17431_v18 = vld [vmem:[#allocation5 + $0x20] sm:$0xff]  ;;  %v17441_v19 = vld [vmem:[#allocation5 + $0x58] sm:$0xff]  ;;  %v17445_v20 = vld [vmem:[#allocation5 + $0x50] sm:$0xff]  ;;  %s17102_s29 = smov 126   ;;  %s17104_s19 = smov 125   ;;  %vm12618_vm4 = vcmask 23568  }
  0x8d   : > { %v17449_v21 = vld [vmem:[#allocation5 + $0x48] sm:$0xff]  ;;  %v17453_v22 = vld [vmem:[#allocation5 + $0x40] sm:$0xff]  ;;  %v17469_v34 = vld [vmem:[#allocation10 + $0x10] sm:$0xff]  ;;  %s17106_s27 = smov 124   ;;  %s17112_s0 = smov 121   ;;  %vm13822_vm5 = vcmask 31768  }
  0x8e   : > { %s17361_s20 = scalar_lea.vmem %s19994_s28, %s14384_s15  ;;  %v17467_v33 = vld [vmem:[#allocation10 + $0x18] sm:$0xff]  ;;  %v17473_v35 = vld [vmem:[#allocation10 + $0x8] sm:$0xff]  ;;  %v17479_v36 = vld [vmem:[#allocation10] sm:$0xff]  ;;  %s19329_s22 = scalar_lea.vmem %s19965_s16, %s14384_s15 }
  0x8f   : > { %v17364_v2 = vld [vmem:[%s17361_s20 + $0x8] sm:$0xff]  ;;  %v17367_v3 = vld [vmem:[%s17361_s20] sm:$0xff]  ;;  %19999 = vst [vmem:[#allocation26_spill] sm:$0xff] %v17479_v36  ;;  %v17496_v42 = vld [vmem:[#allocation7] ss:$0 sm:$0xff] }
  0x90   : > { %15121 = vmatprep.subr.mxu0 %v17364_v2  ;;  %971 = vperm.xlu0 %16567, %v17364_v2   ;;  %v17488_v38 = vld [vmem:[%s19951_s2] ss:$0 sm:$0xff]  ;;  %20001 = vst [vmem:[#allocation28_spill] sm:$0xff] %v17496_v42  ;;  %v17504_v45 = vld [vmem:[%s19951_s2 + $0x1] ss:$0 sm:$0xff] }
  0x91   : > { %15122 = vmatpush3.msra.mxu0 %v17364_v2  ;;  %20000 = vst [vmem:[#allocation27_spill] sm:$0xff] %v17488_v38  ;;  %20002 = vst [vmem:[#allocation29_spill] sm:$0xff] %v17504_v45  ;;  %v17514_v53 = vld [vmem:[%s19951_s2 + $0x2] ss:$0 sm:$0xff] }
  0x92   : > { %15123 = vmatprep.subr.mxu0 %v17367_v3 }
  0x93   : > { %15124 = vmatpush3.msra.mxu0 %v17367_v3 }
  0x94   : > { %15126 = vmatmul.mubr.msk.f32.vlgmr.msra.gmra.mxu0 %vm649_vm0, %v17375_v5  ;;  %15135 = vmatprep.subr.mxu0 %v17097_v7 }
  0x95   : > { %15136 = vmatpush3.msra.mxu0 %v17097_v7  ;;  %15137 = vmatprep.mubr.msk.f32.mxu0 %vm649_vm0, %v17369_v4 }
  0x96   : > { %15147 = vmatprep.subr.mxu0 %v17382_v6  ;;  %966 = vperm.xlu0 %16567, %v17367_v3  }
  0x98   : > { %15138 = vmatmul.mubr.msk.f32.vlgmr.msra.gmra.mxu0 %vm649_vm0, %v17375_v5 }
  0x99   : > { %15148 = vmatpush3.msra.mxu0 %v17382_v6  ;;  %15155 = vmatprep.mubr.f32.mxu0 %v17097_v7 }
  0x9a   : > { %15149 = vmatprep.subr.mxu0 %v17390_v8 }
  0x9b   : > { %15150 = vmatpush3.msra.mxu0 %v17390_v8 }
  0x9c   : > { %15151 = vmatprep.subr.mxu0 %v17395_v9 }
  0x9d   : > { %15152 = vmatpush3.msra.mxu0 %v17395_v9 }
  0x9e   : > { %15153 = vmatprep.subr.mxu0 %v17399_v10 }
  0x9f   : > { %15154 = vmatpush3.msra.mxu0 %v17399_v10 }
  0xa0   : > { %15156 = vmatmul.mubr.f32.vlgmr.msra.gmra.mxu0 %v17097_v7  ;;  %15169 = vmatprep.subr.mxu0 %v17441_v19 }
  0xa1   : > { %15170 = vmatpush3.msra.mxu0 %v17441_v19 }
  0xa2   : > { %15171 = vmatprep.subr.mxu0 %v17445_v20 }
  0xa3   : > { %15172 = vmatpush3.msra.mxu0 %v17445_v20 }
  0xa4   : > { %15173 = vmatprep.subr.mxu0 %v17449_v21 }
  0xa5   : > { %15174 = vmatpush3.msra.mxu0 %v17449_v21 }
  0xa6   : > { %15175 = vmatprep.subr.mxu0 %v17453_v22 }
  0xa7   : > { %15176 = vmatpush3.msra.mxu0 %v17453_v22 }
  0xa8   : > { %15194 = vmatprep.subr.mxu0 %v17467_v33 }
 0x10b   : > { %v17483_v37 = vpop.permute.xlu0 %971 }
 0x10c   : > { %v979_v40 = vmul.f32 %v17488_v38, %v17483_v37 }
 0x10e   : > { %v987_v44 = vadd.f32 %v17496_v42, %v979_v40 }
 0x111   : > { %v17490_v39 = vpop.permute.xlu0 %966 }
 0x112   : > { %v978_v43 = vmul.f32 %v17488_v38, %v17490_v39 }
 0x114   : > { %v986_v47 = vadd.f32 %v17496_v42, %v978_v43 }
 0x154   : > { %v15127_v11 = vpop.f32.mrf.mxu0 }
 0x155   : > { %1081 = vperm.xlu1 %16568, %v15127_v11   ;;  %15128 = vmatprep.subr.mxu1 %v15127_v11 }
 0x156   : > { %v722_v12 = vpop.f32.mrf.mxu0  ;;  %15129 = vmatpush3.msra.mxu1 %v15127_v11 }
 0x157   : > { %15130 = vmatprep.subr.mxu1 %v722_v12 }
 0x158   : > { %15131 = vmatpush3.msra.mxu1 %v722_v12  ;;  %v17405_v13 = vpop.f32.mrf.mxu0 }
 0x159   : > { %19995 = vst [vmem:[#allocation22_spill] sm:$0xff] %v17405_v13  ;;  %1076 = vperm.xlu1 %16568, %v722_v12   ;;  %15133 = vmatmul.mubr.msk.f32.vlgmr.msra.gmra.mxu1 %vm649_vm0, %v17375_v5 }
 0x15a   : > { %15140 = vmatprep.subr.mxu1 %v17405_v13  ;;  %v17410_v14 = vpop.f32.mrf.mxu0  ;;  %15144 = vmatprep.mubr.msk.f32.mxu1 %vm649_vm0, %v17369_v4 }
 0x15b   : > { %19996 = vst [vmem:[#allocation23_spill] sm:$0xff] %v17410_v14  ;;  %15141 = vmatpush3.msra.mxu1 %v17405_v13 }
 0x15c   : > { %15142 = vmatprep.subr.mxu1 %v17410_v14 }
 0x15d   : > { %15143 = vmatpush3.msra.mxu1 %v17410_v14 }
 0x15e   : > { %15145 = vmatmul.mubr.msk.f32.vlgmr.msra.gmra.mxu1 %vm649_vm0, %v17375_v5  ;;  %15158 = vmatprep.subr.mxu1 %v17415_v15 }
 0x15f   : > { %15159 = vmatpush3.msra.mxu1 %v17415_v15  ;;  %15166 = vmatprep.mubr.msk.f32.mxu1 %vm992_vm1, %v17410_v14 }
 0x160   : > { %15160 = vmatprep.subr.mxu1 %v17419_v16  ;;  %v15157_v46 = vpop.f32.mrf.mxu0 }
 0x161   : > { %15161 = vmatpush3.msra.mxu1 %v17419_v16  ;;  %v1072_v51 = vadd.f32 %v15157_v46, %v987_v44 }
 0x162   : > { %15162 = vmatprep.subr.mxu1 %v17427_v17  ;;  %v1062_v49 = vpop.f32.mrf.mxu0 }
 0x163   : > { %15163 = vmatpush3.msra.mxu1 %v17427_v17  ;;  %v1071_v56 = vadd.f32 %v1062_v49, %v986_v47 }
 0x164   : > { %15164 = vmatprep.subr.mxu1 %v17431_v18 }
 0x165   : > { %15165 = vmatpush3.msra.mxu1 %v17431_v18 }
 0x166   : > { %15167 = vmatmul.mubr.msk.f32.vlgmr.msra.gmra.mxu1 %vm992_vm1, %v17405_v13 }
 0x167   : > { %15184 = vmatprep.mubr.msk.f32.mxu1 %vm649_vm0, %v17369_v4 }
 0x1d0   : > { %v17494_v41 = vpop.permute.xlu1 %1081 }
 0x1d1   : > { %v1089_v50 = vmul.f32 %v17504_v45, %v17494_v41 }
 0x1d3   : > { %v1091_v58 = vadd.f32 %v1089_v50, %v1072_v51  ;;  %v17548_v51 = vld [vmem:[#allocation10 + $0x38] sm:$0xff] }
 0x1d4   : > { %v17507_v48 = vpop.permute.xlu1 %1076 }
 0x1d5   : > { %v1088_v55 = vmul.f32 %v17504_v45, %v17507_v48 }
 0x1d7   : > { %v1090_v62 = vadd.f32 %v1088_v55, %v1071_v56  ;;  %v17557_v55 = vld [vmem:[#allocation10 + $0x28] sm:$0xff]  ;;  %v17561_v56 = vld [vmem:[#allocation10 + $0x20] sm:$0xff] }
 0x219   : > { %v15134_v23 = vpop.f32.mrf.mxu1 }
 0x21a   : > { %v807_v24 = vmul.f32 2.0, %v15134_v23 }
 0x21b   : > { %v797_v25 = vpop.f32.mrf.mxu1 }
 0x21c   : > { %v809_v26 = vsub.f32 %v807_v24, %v17364_v2  ;;  %v806_v27 = vmul.f32 2.0, %v797_v25 }
 0x21e   : > { %v808_v28 = vsub.f32 %v806_v27, %v17367_v3  ;;  %v15146_v29 = vpop.f32.mrf.mxu1  ;;  %1188 = vperm.xlu0 %16567, %v809_v26  }
 0x21f   : > { %v17461_v32 = vmul.f32 2.0, %v15146_v29 }
 0x220   : > { %v951_v30 = vpop.f32.mrf.mxu1  ;;  %1183 = vperm.xlu1 %16568, %v808_v28  }
 0x221   : > { %v17459_v31 = vmul.f32 2.0, %v951_v30  ;;  %19998 = vst [vmem:[#allocation25_spill] sm:$0xff] %v17461_v32 }
 0x223   : > { %19997 = vst [vmem:[#allocation24_spill] sm:$0xff] %v17459_v31  ;;  %15177 = vmatprep.mubr.msk.f32.mxu0 %vm992_vm1, %v17459_v31 }
 0x224   : > { %15178 = vmatmul.mubr.msk.f32.vlgmr.msra.gmra.mxu0 %vm992_vm1, %v17461_v32 }
 0x225   : > { %15195 = vmatpush3.msra.mxu0 %v17467_v33 }
 0x226   : > { %15196 = vmatprep.subr.mxu0 %v17469_v34  ;;  %v15168_v52 = vpop.f32.mrf.mxu1 }
 0x227   : > { %15197 = vmatpush3.msra.mxu0 %v17469_v34  ;;  %v1179_v61 = vadd.f32 %v15168_v52, %v1091_v58  ;;  %v17550_v52 = vld [vmem:[#allocation10 + $0x30] sm:$0xff]  ;;  %v17570_v58 = vld [vmem:[#allocation10 + $0x58] sm:$0xff] }
 0x228   : > { %15198 = vmatprep.subr.mxu0 %v17473_v35  ;;  %v1169_v60 = vpop.f32.mrf.mxu1 }
 0x229   : > { %15199 = vmatpush3.msra.mxu0 %v17473_v35  ;;  %v1178_v0 = vadd.f32 %v1169_v60, %v1090_v62  ;;  %v17578_v60 = vld [vmem:[#allocation10 + $0x48] sm:$0xff] }
 0x22a   : > { %15200 = vmatprep.subr.mxu0 %v17479_v36 }
 0x22b   : > { %15201 = vmatpush3.msra.mxu0 %v17479_v36 }
 0x22c   : > { %15216 = vmatprep.subr.mxu0 %v17570_v58 }
 0x299   : > { %v17516_v54 = vpop.permute.xlu0 %1188 }
 0x29a   : > { %v1196_v59 = vmul.f32 %v17514_v53, %v17516_v54 }
 0x29b   : > { %v17520_v57 = vpop.permute.xlu1 %1183 }
 0x29c   : > { %v1195_v63 = vmul.f32 %v17514_v53, %v17520_v57  ;;  %v1198_v7 = vadd.f32 %v1196_v59, %v1179_v61  ;;  %v17574_v59 = vld [vmem:[#allocation10 + $0x50] sm:$0xff]  ;;  %v17582_v61 = vld [vmem:[#allocation10 + $0x40] sm:$0xff] }
 0x29e   : > { %v1197_v23 = vadd.f32 %v1195_v63, %v1178_v0 }
 0x2e4   : > { %v15179_v11 = vpop.f32.mrf.mxu0 }
 0x2e5   : > { %v1286_v12 = vadd.f32 %v15179_v11, %v1198_v7 }
 0x2e6   : > { %v1276_v24 = vpop.f32.mrf.mxu0 }
 0x2e7   : > { %v14012_v25 = vmul.f32 -1.442695, %v1286_v12  ;;  %v1285_v26 = vadd.f32 %v1276_v24, %v1197_v23  ;;  %v17592_v23 = vld [vmem:[#allocation8] ss:$0 sm:$0xff] }
 0x2e8   : > { %v1462_v24 = vmul.f32 %v17592_v23, %v17483_v37 }
 0x2e9   : > { %16597 = vpow2.f32 %v14012_v25  ;;  %v14011_v27 = vmul.f32 -1.442695, %v1285_v26  ;;  %v17596_v25 = vld [vmem:[#allocation11] ss:$0 sm:$0xff] }
 0x2eb   : > { %16599 = vpow2.f32 %v14011_v27  ;;  %v1461_v27 = vmul.f32 %v17592_v23, %v17490_v39 }
 0x2f6   : > { %v16598_v28 = vpop.eup %16597 }
 0x2f7   : > { %v1294_v29 = vadd.f32 1.0, %v16598_v28  ;;  %v1470_v28 = vadd.f32 %v17596_v25, %v1462_v24 }
 0x2f8   : > { %v16600_v30 = vpop.eup %16599 }
 0x2f9   : > { %16601 = vrcp.f32 %v1294_v29  ;;  %v1293_v40 = vadd.f32 1.0, %v16600_v30  ;;  %v17601_v29 = vld [vmem:[#allocation8 + $0x1] ss:$0 sm:$0xff] }
 0x2fa   : > { %v1563_v37 = vmul.f32 %v17601_v29, %v17507_v48 }
 0x2fb   : > { %16603 = vrcp.f32 %v1293_v40 }
 0x306   : > { %v17526_v43 = vpop.eup %16601 }
 0x307   : > { %v17529_v44 = vmul.f32 0.0, %v17526_v43 }
 0x308   : > { %v17531_v46 = vpop.eup %16603 }
 0x309   : > { %15180 = vmatprep.subr.mxu1 %v17529_v44  ;;  %v17535_v47 = vmul.f32 0.0, %v17531_v46 }
 0x30a   : > { %15181 = vmatpush3.msra.mxu1 %v17529_v44 }
 0x30b   : > { %15182 = vmatprep.subr.mxu1 %v17535_v47  ;;  %15202 = vmatprep.mubr.msk.f32.mxu0 %vm992_vm1, %v17535_v47 }
 0x30c   : > { %15183 = vmatpush3.msra.mxu1 %v17535_v47  ;;  %15203 = vmatmul.mubr.msk.f32.vlgmr.msra.gmra.mxu0 %vm992_vm1, %v17529_v44 }
 0x30d   : > { %15185 = vmatmul.mubr.msk.f32.vlgmr.msra.gmra.mxu1 %vm649_vm0, %v17375_v5  ;;  %15217 = vmatpush3.msra.mxu0 %v17570_v58 }
 0x30e   : > { %15191 = vmatprep.mubr.msk.f32.mxu1 %vm649_vm0, %v17369_v4  ;;  %15218 = vmatprep.subr.mxu0 %v17574_v59 }
 0x30f   : > { %15219 = vmatpush3.msra.mxu0 %v17574_v59 }
 0x310   : > { %15220 = vmatprep.subr.mxu0 %v17578_v60 }
 0x311   : > { %15221 = vmatpush3.msra.mxu0 %v17578_v60 }
 0x312   : > { %15222 = vmatprep.subr.mxu0 %v17582_v61 }
 0x313   : > { %15223 = vmatpush3.msra.mxu0 %v17582_v61 }
 0x3cc   : > { %v15204_v26 = vpop.f32.mrf.mxu0 }
 0x3cd   : > { %v15186_v49 = vpop.f32.mrf.mxu1  ;;  %v1557_v40 = vadd.f32 %v15204_v26, %v1470_v28 }
 0x3ce   : > { %15187 = vmatprep.subr.mxu1 %v15186_v49  ;;  %v1547_v30 = vpop.f32.mrf.mxu0 }
 0x3cf   : > { %v1367_v50 = vpop.f32.mrf.mxu1  ;;  %15188 = vmatpush3.msra.mxu1 %v15186_v49 }
 0x3d0   : > { %15189 = vmatprep.subr.mxu1 %v1367_v50 }
 0x3d1   : > { %15190 = vmatpush3.msra.mxu1 %v1367_v50 }
 0x3d2   : > { %15192 = vmatmul.mubr.msk.f32.vlgmr.msra.gmra.mxu1 %vm649_vm0, %v17375_v5  ;;  %15205 = vmatprep.subr.mxu1 %v17548_v51 }
 0x3d3   : > { %15206 = vmatpush3.msra.mxu1 %v17548_v51  ;;  %15213 = vmatprep.mubr.msk.f32.mxu1 %vm992_vm1, %v1367_v50 }
 0x3d4   : > { %15207 = vmatprep.subr.mxu1 %v17550_v52 }
 0x3d5   : > { %15208 = vmatpush3.msra.mxu1 %v17550_v52 }
 0x3d6   : > { %15209 = vmatprep.subr.mxu1 %v17557_v55 }
 0x3d7   : > { %15210 = vmatpush3.msra.mxu1 %v17557_v55 }
 0x3d8   : > { %15211 = vmatprep.subr.mxu1 %v17561_v56 }
 0x3d9   : > { %15212 = vmatpush3.msra.mxu1 %v17561_v56 }
 0x3da   : > { %15214 = vmatmul.mubr.msk.f32.vlgmr.msra.gmra.mxu1 %vm992_vm1, %v15186_v49  ;;  %v1469_v49 = vadd.f32 %v17596_v25, %v1461_v27 }
 0x3db   : > { %15231 = vmatprep.mubr.msk.f32.mxu1 %vm649_vm0, %v17369_v4 }
 0x492   : > { %v15193_v62 = vpop.f32.mrf.mxu1 }
 0x493   : > { %v1452_v63 = vmul.f32 2.0, %v15193_v62  ;;  %v1564_v62 = vmul.f32 %v17601_v29, %v17494_v41 }
 0x494   : > { %v1442_v0 = vpop.f32.mrf.mxu1 }
 0x495   : > { %v1451_v7 = vmul.f32 2.0, %v1442_v0  ;;  %v1454_v12 = vsub.f32 %v1452_v63, %v17529_v44  ;;  %v1556_v63 = vadd.f32 %v1547_v30, %v1469_v49  ;;  %v1566_v0 = vadd.f32 %v1564_v62, %v1557_v40 }
 0x496   : > { %v1754_v62 = vsub.f32 1.0, %v17531_v46  ;;  %v17101_v46 = vmov 1  }
 0x497   : > { %v1453_v11 = vsub.f32 %v1451_v7, %v17535_v47  ;;  %v17608_v7 = vld [vmem:[#allocation8 + $0x2] ss:$0 sm:$0xff]  ;;  %16569 = vset.pattern.permute.xlu0 %v17101_v46  ;;  %16570 = vset.pattern.permute.xlu1 %v17101_v46 }
 0x498   : > { %v1661_v24 = vmul.f32 %v17608_v7, %v17516_v54  ;;  %v1660_v27 = vmul.f32 %v17608_v7, %v17520_v57  ;;  %v1755_v54 = vsub.f32 1.0, %v17526_v43 }
 0x499   : > { %15224 = vmatprep.mubr.msk.f32.mxu0 %vm992_vm1, %v1453_v11 }
 0x49a   : > { %15225 = vmatmul.mubr.msk.f32.vlgmr.msra.gmra.mxu0 %vm992_vm1, %v1454_v12  ;;  %v15215_v50 = vpop.f32.mrf.mxu1  ;;  %v1565_v12 = vadd.f32 %v1563_v37, %v1556_v63 }
 0x49b   : > { %15245 = vmatprep.mubr.msk.f32.mxu0 %vm649_vm0, %v17369_v4  ;;  %v1654_v11 = vadd.f32 %v15215_v50, %v1566_v0 }
 0x49c   : > { %v1644_v39 = vpop.f32.mrf.mxu1 }
 0x49d   : > { %v1653_v26 = vadd.f32 %v1644_v39, %v1565_v12  ;;  %v1663_v28 = vadd.f32 %v1661_v24, %v1654_v11 }
 0x49f   : > { %v1662_v30 = vadd.f32 %v1660_v27, %v1653_v26 }
 0x55a   : > { %v15226_v1 = vpop.f32.mrf.mxu0 }
 0x55b   : > { %v1751_v41 = vadd.f32 %v15226_v1, %v1663_v28 }
 0x55c   : > { %v1741_v49 = vpop.f32.mrf.mxu0 }
 0x55d   : > { %16605 = vtanh.f32 %v1751_v41  ;;  %v1750_v48 = vadd.f32 %v1741_v49, %v1662_v30 }
 0x55f   : > { %16607 = vtanh.f32 %v1750_v48 }
 0x56a   : > { %v16606_v40 = vpop.eup %16605 }
 0x56b   : > { %1760 = vrot.lane.b32.xlu0 %v16606_v40, %s17098_s18 }
 0x56c   : > { %v16608_v50 = vpop.eup %16607 }
 0x56d   : > { %1758 = vrot.lane.b32.xlu1 %v16608_v50, %s17098_s18 }
 0x56f   : > { %1770 = vrot.lane.b32.xlu0 %v17364_v2, %s17099_s30 }
 0x571   : > { %1768 = vrot.lane.b32.xlu1 %v17367_v3, %s17099_s30  ;;  %s17108_s30 = smov 123  }
 0x5dd   : > { %v1761_v1 = vpop.permute.xlu0 %1760 }
 0x5de   : > { %v1765_v57 = vmul.f32 %v1761_v1, %v1755_v54 }
 0x5df   : > { %v1759_v63 = vpop.permute.xlu1 %1758 }
 0x5e0   : > { %v17621_v37 = vadd.f32 %v1765_v57, %v17529_v44  ;;  %v1764_v0 = vmul.f32 %v1759_v63, %v1754_v62  ;;  %v20003_v44 = vmov 0  }
 0x5e1   : > { %v17623_v39 = vpop.permute.xlu0 %1770 }
 0x5e2   : > { %v17626_v11 = vadd.f32 %v1764_v0, %v17535_v47  ;;  %1932 = vrot.lane.b32.xlu0 %v17621_v37, %s17100_s17  ;;  %15227 = vmatprep.subr.mxu1 %v17623_v39 }
 0x5e3   : > { %15228 = vmatpush3.msra.mxu1 %v17623_v39  ;;  %v17632_v43 = vpop.permute.xlu1 %1768 }
 0x5e4   : > { %1930 = vrot.lane.b32.xlu1 %v17626_v11, %s17100_s17  ;;  %15229 = vmatprep.subr.mxu1 %v17632_v43 }
 0x5e5   : > { %15230 = vmatpush3.msra.mxu1 %v17632_v43 }
 0x5e6   : > { %15232 = vmatmul.mubr.msk.f32.vlgmr.msra.gmra.mxu1 %vm649_vm0, %v17375_v5  ;;  %2095 = vperm.xlu0 %16569, %v17364_v2  }
 0x5e7   : > { %15238 = vmatprep.mubr.msk.f32.mxu1 %vm649_vm0, %v17369_v4 }
 0x5e8   : > { %2091 = vperm.xlu1 %16570, %v17367_v3  }
 0x5ea   : > { %16572 = vset.pattern.permute.xlu0 %v20003_v44 }
 0x5ec   : > { %16571 = vset.pattern.permute.xlu1 %v20003_v44 }
 0x654   : > { %v17646_v47 = vpop.permute.xlu0 %1932 }
 0x655   : > { %15241 = vmatprep.subr.mxu0 %v17646_v47 }
 0x656   : > { %15242 = vmatpush3.msra.mxu0 %v17646_v47  ;;  %v17650_v12 = vpop.permute.xlu1 %1930 }
 0x657   : > { %15243 = vmatprep.subr.mxu0 %v17650_v12 }
 0x658   : > { %15244 = vmatpush3.msra.mxu0 %v17650_v12 }
 0x659   : > { %15246 = vmatmul.mubr.msk.f32.vlgmr.msra.gmra.mxu0 %vm649_vm0, %v17375_v5  ;;  %15255 = vmatprep.subr.mxu0 %v17382_v6 }
 0x65a   : > { %15256 = vmatpush3.msra.mxu0 %v17382_v6  ;;  %15263 = vmatprep.mubr.msk.f32.mxu0 %vm992_vm1, %v17650_v12 }
 0x65b   : > { %15257 = vmatprep.subr.mxu0 %v17390_v8 }
 0x65c   : > { %15258 = vmatpush3.msra.mxu0 %v17390_v8 }
 0x65d   : > { %15259 = vmatprep.subr.mxu0 %v17395_v9 }
 0x65e   : > { %15260 = vmatpush3.msra.mxu0 %v17395_v9 }
 0x65f   : > { %15261 = vmatprep.subr.mxu0 %v17399_v10 }
 0x660   : > { %15262 = vmatpush3.msra.mxu0 %v17399_v10 }
 0x661   : > { %15264 = vmatmul.mubr.msk.f32.vlgmr.msra.gmra.mxu0 %vm992_vm1, %v17646_v47  ;;  %15277 = vmatprep.subr.mxu0 %v17441_v19 }
 0x662   : > { %15278 = vmatpush3.msra.mxu0 %v17441_v19 }
 0x663   : > { %15279 = vmatprep.subr.mxu0 %v17445_v20 }
 0x664   : > { %15280 = vmatpush3.msra.mxu0 %v17445_v20 }
 0x665   : > { %15281 = vmatprep.subr.mxu0 %v17449_v21 }
 0x666   : > { %15282 = vmatpush3.msra.mxu0 %v17449_v21 }
 0x667   : > { %15283 = vmatprep.subr.mxu0 %v17453_v22 }
 0x668   : > { %15284 = vmatpush3.msra.mxu0 %v17453_v22 }
 0x669   : > { %15302 = vmatprep.subr.mxu0 %v17467_v33 }
 0x6a6   : > { %v15233_v24 = vpop.f32.mrf.mxu1 }
 0x6a7   : > { %2190 = vperm.xlu1 %16571, %v15233_v24   ;;  %15234 = vmatprep.subr.mxu1 %v15233_v24 }
 0x6a8   : > { %v1840_v26 = vpop.f32.mrf.mxu1  ;;  %15235 = vmatpush3.msra.mxu1 %v15233_v24 }
 0x6a9   : > { %2185 = vperm.xlu0 %16572, %v1840_v26   ;;  %15236 = vmatprep.subr.mxu1 %v1840_v26 }
 0x6aa   : > { %15237 = vmatpush3.msra.mxu1 %v1840_v26 }
 0x6ab   : > { %15239 = vmatmul.mubr.msk.f32.vlgmr.msra.gmra.mxu1 %vm649_vm0, %v17375_v5 }
 0x6ac   : > { %15252 = vmatprep.mubr.msk.f32.mxu1 %vm649_vm0, %v17369_v4 }
 0x719   : > { %v15247_v27 = vpop.f32.mrf.mxu0 }
 0x71a   : > { %15248 = vmatprep.subr.mxu1 %v15247_v27 }
 0x71b   : > { %v2002_v28 = vpop.f32.mrf.mxu0  ;;  %15249 = vmatpush3.msra.mxu1 %v15247_v27 }
 0x71c   : > { %15250 = vmatprep.subr.mxu1 %v2002_v28 }
 0x71d   : > { %15251 = vmatpush3.msra.mxu1 %v2002_v28 }
 0x71e   : > { %15253 = vmatmul.mubr.msk.f32.vlgmr.msra.gmra.mxu1 %vm649_vm0, %v17375_v5  ;;  %15266 = vmatprep.subr.mxu1 %v17415_v15 }
 0x71f   : > { %15267 = vmatpush3.msra.mxu1 %v17415_v15  ;;  %15274 = vmatprep.mubr.msk.f32.mxu1 %vm992_vm1, %v2002_v28 }
 0x720   : > { %15268 = vmatprep.subr.mxu1 %v17419_v16 }
 0x721   : > { %15269 = vmatpush3.msra.mxu1 %v17419_v16 }
 0x722   : > { %15270 = vmatprep.subr.mxu1 %v17427_v17 }
 0x723   : > { %15271 = vmatpush3.msra.mxu1 %v17427_v17 }
 0x724   : > { %15272 = vmatprep.subr.mxu1 %v17431_v18 }
 0x725   : > { %15273 = vmatpush3.msra.mxu1 %v17431_v18 }
 0x726   : > { %15275 = vmatmul.mubr.msk.f32.vlgmr.msra.gmra.mxu1 %vm992_vm1, %v15247_v27  ;;  %v15265_v27 = vpop.f32.mrf.mxu0 }
 0x727   : > { %15292 = vmatprep.mubr.msk.f32.mxu1 %vm649_vm0, %v17369_v4 }
 0x76b   : > { %v15240_v41 = vpop.f32.mrf.mxu1 }
 0x76c   : > { %v1925_v30 = vmul.f32 2.0, %v15240_v41 }
 0x76d   : > { %v1915_v49 = vpop.f32.mrf.mxu1 }
 0x76e   : > { %v1927_v48 = vsub.f32 %v1925_v30, %v17623_v39  ;;  %v1924_v40 = vmul.f32 2.0, %v1915_v49  ;;  %v17709_v39 = vpop.permute.xlu1 %2091  ;;  %v2172_v49 = vpop.f32.mrf.mxu0 }
 0x76f   : > { %v2098_v26 = vmul.f32 %v17488_v38, %v17709_v39 }
 0x770   : > { %2287 = vperm.xlu1 %16571, %v1927_v48   ;;  %v1926_v50 = vsub.f32 %v1924_v40, %v17632_v43  ;;  %v17711_v43 = vpop.permute.xlu0 %2095 }
 0x771   : > { %v2099_v46 = vmul.f32 %v17488_v38, %v17711_v43  ;;  %v2100_v30 = vadd.f32 %v17496_v42, %v2098_v26 }
 0x772   : > { %v17715_v24 = vpop.permute.xlu1 %2190 }
 0x773   : > { %v2101_v28 = vadd.f32 %v17496_v42, %v2099_v46 }
 0x774   : > { %2282 = vperm.xlu1 %16571, %v1926_v50   ;;  %v17723_v48 = vpop.permute.xlu0 %2185  ;;  %v2194_v50 = vmul.f32 %v17504_v45, %v17715_v24 }
 0x775   : > { %v2182_v40 = vadd.f32 %v15265_v27, %v2101_v28 }
 0x7de   : > { %v15254_v54 = vpop.f32.mrf.mxu1 }
 0x7df   : > { %v2087_v1 = vmul.f32 2.0, %v15254_v54 }
 0x7e0   : > { %v2077_v57 = vpop.f32.mrf.mxu1 }
 0x7e1   : > { %v2086_v62 = vmul.f32 2.0, %v2077_v57  ;;  %v2089_v0 = vsub.f32 %v2087_v1, %v17646_v47  ;;  %v2181_v1 = vadd.f32 %v2172_v49, %v2100_v30  ;;  %v2193_v57 = vmul.f32 %v17504_v45, %v17723_v48 }
 0x7e3   : > { %v2088_v63 = vsub.f32 %v2086_v62, %v17650_v12  ;;  %v2195_v31 = vadd.f32 %v2193_v57, %v2181_v1 }
 0x7e5   : > { %15285 = vmatprep.mubr.msk.f32.mxu0 %vm992_vm1, %v2088_v63  ;;  %v2196_v63 = vadd.f32 %v2194_v50, %v2182_v40 }
 0x7e6   : > { %15286 = vmatmul.mubr.msk.f32.vlgmr.msra.gmra.mxu0 %vm992_vm1, %v2089_v0  ;;  %v15276_v54 = vpop.f32.mrf.mxu1 }
 0x7e7   : > { %15303 = vmatpush3.msra.mxu0 %v17467_v33  ;;  %v2279_v26 = vadd.f32 %v15276_v54, %v2196_v63  ;;  %v2546_v63 = vmul.f32 %v17592_v23, %v17711_v43 }
 0x7e8   : > { %15304 = vmatprep.subr.mxu0 %v17469_v34  ;;  %v2269_v46 = vpop.f32.mrf.mxu1 }
 0x7e9   : > { %15305 = vmatpush3.msra.mxu0 %v17469_v34  ;;  %v2278_v28 = vadd.f32 %v2269_v46, %v2195_v31  ;;  %v2545_v46 = vmul.f32 %v17592_v23, %v17709_v39 }
 0x7ea   : > { %15306 = vmatprep.subr.mxu0 %v17473_v35 }
 0x7eb   : > { %15307 = vmatpush3.msra.mxu0 %v17473_v35  ;;  %v17720_v41 = vpop.permute.xlu1 %2287 }
 0x7ec   : > { %15308 = vmatprep.subr.mxu0 %v17479_v36  ;;  %v2291_v0 = vmul.f32 %v17514_v53, %v17720_v41  ;;  %v2720_v39 = vmul.f32 %v17608_v7, %v17720_v41 }
 0x7ed   : > { %15309 = vmatpush3.msra.mxu0 %v17479_v36 }
 0x7ee   : > { %15324 = vmatprep.subr.mxu0 %v17570_v58  ;;  %v2293_v32 = vadd.f32 %v2291_v0, %v2279_v26  ;;  %v2548_v26 = vadd.f32 %v17596_v25, %v2546_v63 }
 0x7ef   : > { %v17729_v62 = vpop.permute.xlu1 %2282 }
 0x7f0   : > { %v2290_v27 = vmul.f32 %v17514_v53, %v17729_v62 }
 0x7f2   : > { %v2292_v30 = vadd.f32 %v2290_v27, %v2278_v28 }
 0x8a6   : > { %v15287_v14 = vpop.f32.mrf.mxu0 }
 0x8a7   : > { %v2376_v13 = vadd.f32 %v15287_v14, %v2293_v32 }
 0x8a8   : > { %v2366_v49 = vpop.f32.mrf.mxu0 }
 0x8a9   : > { %v14042_v42 = vmul.f32 -1.442695, %v2376_v13  ;;  %v2375_v45 = vadd.f32 %v2366_v49, %v2292_v30  ;;  %v2547_v30 = vadd.f32 %v17596_v25, %v2545_v46 }
 0x8ab   : > { %16609 = vpow2.f32 %v14042_v42  ;;  %v14041_v38 = vmul.f32 -1.442695, %v2375_v45 }
 0x8ad   : > { %16611 = vpow2.f32 %v14041_v38 }
 0x8b8   : > { %v16610_v40 = vpop.eup %16609 }
 0x8b9   : > { %v2384_v50 = vadd.f32 1.0, %v16610_v40  ;;  %v2633_v40 = vmul.f32 %v17601_v29, %v17715_v24 }
 0x8ba   : > { %v16612_v36 = vpop.eup %16611 }
 0x8bb   : > { %16613 = vrcp.f32 %v2384_v50  ;;  %v2383_v54 = vadd.f32 1.0, %v16612_v36 }
 0x8bd   : > { %16615 = vrcp.f32 %v2383_v54  ;;  %v2632_v54 = vmul.f32 %v17601_v29, %v17723_v48 }
 0x8c8   : > { %v17735_v1 = vpop.eup %16613 }
 0x8c9   : > { %v2390_v31 = vmul.f32 %v17735_v1, %v17646_v47  ;;  %v2811_v41 = vsub.f32 1.0, %v17735_v1 }
 0x8ca   : > { %v17739_v57 = vpop.eup %16615 }
 0x8cb   : > { %15288 = vmatprep.subr.mxu1 %v2390_v31  ;;  %v2389_v13 = vmul.f32 %v17739_v57, %v17650_v12 }
 0x8cc   : > { %15289 = vmatpush3.msra.mxu1 %v2390_v31 }
 0x8cd   : > { %15290 = vmatprep.subr.mxu1 %v2389_v13  ;;  %15310 = vmatprep.mubr.msk.f32.mxu0 %vm992_vm1, %v2389_v13 }
 0x8ce   : > { %15291 = vmatpush3.msra.mxu1 %v2389_v13  ;;  %15311 = vmatmul.mubr.msk.f32.vlgmr.msra.gmra.mxu0 %vm992_vm1, %v2390_v31 }
 0x8cf   : > { %15293 = vmatmul.mubr.msk.f32.vlgmr.msra.gmra.mxu1 %vm649_vm0, %v17375_v5  ;;  %15325 = vmatpush3.msra.mxu0 %v17570_v58 }
 0x8d0   : > { %15299 = vmatprep.mubr.msk.f32.mxu1 %vm649_vm0, %v17369_v4  ;;  %15326 = vmatprep.subr.mxu0 %v17574_v59 }
 0x8d1   : > { %15327 = vmatpush3.msra.mxu0 %v17574_v59 }
 0x8d2   : > { %15328 = vmatprep.subr.mxu0 %v17578_v60 }
 0x8d3   : > { %15329 = vmatpush3.msra.mxu0 %v17578_v60 }
 0x8d4   : > { %15330 = vmatprep.subr.mxu0 %v17582_v61 }
 0x8d5   : > { %15331 = vmatpush3.msra.mxu0 %v17582_v61 }
 0x98e   : > { %v15312_v0 = vpop.f32.mrf.mxu0 }
 0x98f   : > { %v15294_v14 = vpop.f32.mrf.mxu1  ;;  %v2631_v28 = vadd.f32 %v15312_v0, %v2548_v26  ;;  %v2809_v0 = vmul.f32 %v17735_v1, %v17621_v37  ;;  %v2810_v26 = vsub.f32 1.0, %v17739_v57  ;;  %v17103_v1 = vmov 2  }
 0x990   : > { %15295 = vmatprep.subr.mxu1 %v15294_v14  ;;  %v2621_v27 = vpop.f32.mrf.mxu0  ;;  %16573 = vset.pattern.permute.xlu0 %v17103_v1 }
 0x991   : > { %v2457_v32 = vpop.f32.mrf.mxu1  ;;  %15296 = vmatpush3.msra.mxu1 %v15294_v14  ;;  %v2630_v50 = vadd.f32 %v2621_v27, %v2547_v30  ;;  %v2808_v30 = vmul.f32 %v17739_v57, %v17626_v11  ;;  %16574 = vset.pattern.permute.xlu1 %v17103_v1 }
 0x992   : > { %15297 = vmatprep.subr.mxu1 %v2457_v32 }
 0x993   : > { %15298 = vmatpush3.msra.mxu1 %v2457_v32 }
 0x994   : > { %15300 = vmatmul.mubr.msk.f32.vlgmr.msra.gmra.mxu1 %vm649_vm0, %v17375_v5  ;;  %15313 = vmatprep.subr.mxu1 %v17548_v51 }
 0x995   : > { %15314 = vmatpush3.msra.mxu1 %v17548_v51  ;;  %15321 = vmatprep.mubr.msk.f32.mxu1 %vm992_vm1, %v2457_v32 }
 0x996   : > { %15315 = vmatprep.subr.mxu1 %v17550_v52 }
 0x997   : > { %15316 = vmatpush3.msra.mxu1 %v17550_v52 }
 0x998   : > { %15317 = vmatprep.subr.mxu1 %v17557_v55 }
 0x999   : > { %15318 = vmatpush3.msra.mxu1 %v17557_v55 }
 0x99a   : > { %15319 = vmatprep.subr.mxu1 %v17561_v56 }
 0x99b   : > { %15320 = vmatpush3.msra.mxu1 %v17561_v56 }
 0x99c   : > { %15322 = vmatmul.mubr.msk.f32.vlgmr.msra.gmra.mxu1 %vm992_vm1, %v15294_v14 }
 0x99d   : > { %15339 = vmatprep.mubr.msk.f32.mxu1 %vm649_vm0, %v17369_v4 }
 0xa54   : > { %v15301_v36 = vpop.f32.mrf.mxu1 }
 0xa55   : > { %v2542_v38 = vmul.f32 2.0, %v15301_v36  ;;  %v2719_v36 = vmul.f32 %v17608_v7, %v17729_v62 }
 0xa56   : > { %v2532_v42 = vpop.f32.mrf.mxu1 }
 0xa57   : > { %v2541_v45 = vmul.f32 2.0, %v2532_v42  ;;  %v2544_v12 = vsub.f32 %v2542_v38, %v2390_v31  ;;  %v2635_v31 = vadd.f32 %v2633_v40, %v2631_v28 }
 0xa59   : > { %v2543_v47 = vsub.f32 %v2541_v45, %v2389_v13  ;;  %v2634_v13 = vadd.f32 %v2632_v54, %v2630_v50 }
 0xa5b   : > { %15332 = vmatprep.mubr.msk.f32.mxu0 %vm992_vm1, %v2543_v47 }
 0xa5c   : > { %15333 = vmatmul.mubr.msk.f32.vlgmr.msra.gmra.mxu0 %vm992_vm1, %v2544_v12  ;;  %v15323_v49 = vpop.f32.mrf.mxu1 }
 0xa5d   : > { %15353 = vmatprep.mubr.msk.f32.mxu0 %vm649_vm0, %v17369_v4  ;;  %v2718_v14 = vadd.f32 %v15323_v49, %v2635_v31 }
 0xa5e   : > { %v2708_v43 = vpop.f32.mrf.mxu1 }
 0xa5f   : > { %v2717_v32 = vadd.f32 %v2708_v43, %v2634_v13  ;;  %v2722_v38 = vadd.f32 %v2720_v39, %v2718_v14  ;;  %v20004_v43 = vld [vmem:[#allocation26_spill] sm:$0xff] }
 0xa61   : > { %v2721_v47 = vadd.f32 %v2719_v36, %v2717_v32 }
 0xb1c   : > { %v15334_v42 = vpop.f32.mrf.mxu0 }
 0xb1d   : > { %v2805_v45 = vadd.f32 %v15334_v42, %v2722_v38 }
 0xb1e   : > { %v2795_v24 = vpop.f32.mrf.mxu0 }
 0xb1f   : > { %16617 = vtanh.f32 %v2805_v45  ;;  %v2804_v12 = vadd.f32 %v2795_v24, %v2721_v47 }
 0xb21   : > { %16619 = vtanh.f32 %v2804_v12 }
 0xb2c   : > { %v16618_v48 = vpop.eup %16617 }
 0xb2d   : > { %2816 = vrot.lane.b32.xlu0 %v16618_v48, %s17098_s18  ;;  %v20007_v48 = vld [vmem:[#allocation29_spill] sm:$0xff] }
 0xb2e   : > { %v16620_v63 = vpop.eup %16619 }
 0xb2f   : > { %2814 = vrot.lane.b32.xlu1 %v16620_v63, %s17098_s18 }
 0xb31   : > { %2826 = vrot.lane.b32.xlu0 %v17364_v2, %s17102_s29 }
 0xb33   : > { %2824 = vrot.lane.b32.xlu1 %v17367_v3, %s17102_s29  ;;  %s17110_s29 = smov 122  }
 0xb9f   : > { %v2817_v62 = vpop.permute.xlu0 %2816 }
 0xba0   : > { %v2821_v46 = vmul.f32 %v2817_v62, %v2811_v41 }
 0xba1   : > { %v2815_v27 = vpop.permute.xlu1 %2814 }
 0xba2   : > { %v17796_v28 = vadd.f32 %v2821_v46, %v2809_v0  ;;  %v2820_v49 = vmul.f32 %v2815_v27, %v2810_v26 }
 0xba3   : > { %v17800_v40 = vpop.permute.xlu0 %2826 }
 0xba4   : > { %v17802_v50 = vadd.f32 %v2820_v49, %v2808_v30  ;;  %2988 = vrot.lane.b32.xlu0 %v17796_v28, %s17100_s17  ;;  %15335 = vmatprep.subr.mxu1 %v17800_v40 }
 0xba5   : > { %15336 = vmatpush3.msra.mxu1 %v17800_v40  ;;  %v17808_v37 = vpop.permute.xlu1 %2824 }
 0xba6   : > { %2986 = vrot.lane.b32.xlu1 %v17802_v50, %s17100_s17  ;;  %15337 = vmatprep.subr.mxu1 %v17808_v37 }
 0xba7   : > { %15338 = vmatpush3.msra.mxu1 %v17808_v37 }
 0xba8   : > { %15340 = vmatmul.mubr.msk.f32.vlgmr.msra.gmra.mxu1 %vm649_vm0, %v17375_v5  ;;  %3151 = vperm.xlu0 %16573, %v17364_v2  }
 0xba9   : > { %15346 = vmatprep.mubr.msk.f32.mxu1 %vm649_vm0, %v17369_v4  ;;  %v17853_v4 = vld [vmem:[#allocation3 + $0x8] sm:$0xff] }
 0xbaa   : > { %3147 = vperm.xlu1 %16574, %v17367_v3  }
 0xbac   : > { %16576 = vset.pattern.permute.xlu0 %v20003_v44 }
 0xbae   : > { %16575 = vset.pattern.permute.xlu1 %v20003_v44 }
 0xc16   : > { %v17822_v11 = vpop.permute.xlu0 %2988 }
 0xc17   : > { %15349 = vmatprep.subr.mxu0 %v17822_v11 }
 0xc18   : > { %15350 = vmatpush3.msra.mxu0 %v17822_v11  ;;  %v17826_v57 = vpop.permute.xlu1 %2986 }
 0xc19   : > { %15351 = vmatprep.subr.mxu0 %v17826_v57 }
 0xc1a   : > { %15352 = vmatpush3.msra.mxu0 %v17826_v57 }
 0xc1b   : > { %15354 = vmatmul.mubr.msk.f32.vlgmr.msra.gmra.mxu0 %vm649_vm0, %v17375_v5  ;;  %15363 = vmatprep.subr.mxu0 %v17382_v6  ;;  %v17857_v5 = vld [vmem:[#allocation3] sm:$0xff] }
 0xc1c   : > { %15364 = vmatpush3.msra.mxu0 %v17382_v6  ;;  %15371 = vmatprep.mubr.msk.f32.mxu0 %vm992_vm1, %v17826_v57 }
 0xc1d   : > { %15365 = vmatprep.subr.mxu0 %v17390_v8 }
 0xc1e   : > { %15366 = vmatpush3.msra.mxu0 %v17390_v8 }
 0xc1f   : > { %15367 = vmatprep.subr.mxu0 %v17395_v9 }
 0xc20   : > { %15368 = vmatpush3.msra.mxu0 %v17395_v9 }
 0xc21   : > { %15369 = vmatprep.subr.mxu0 %v17399_v10 }
 0xc22   : > { %15370 = vmatpush3.msra.mxu0 %v17399_v10 }
 0xc23   : > { %15372 = vmatmul.mubr.msk.f32.vlgmr.msra.gmra.mxu0 %vm992_vm1, %v17822_v11  ;;  %15385 = vmatprep.subr.mxu0 %v17441_v19  ;;  %v17891_v14 = vpop.permute.xlu0 %3151 }
 0xc24   : > { %15386 = vmatpush3.msra.mxu0 %v17441_v19 }
 0xc25   : > { %15387 = vmatprep.subr.mxu0 %v17445_v20  ;;  %v17889_v13 = vpop.permute.xlu1 %3147 }
 0xc26   : > { %15388 = vmatpush3.msra.mxu0 %v17445_v20 }
 0xc27   : > { %15389 = vmatprep.subr.mxu0 %v17449_v21 }
 0xc28   : > { %15390 = vmatpush3.msra.mxu0 %v17449_v21 }
 0xc29   : > { %15391 = vmatprep.subr.mxu0 %v17453_v22 }
 0xc2a   : > { %15392 = vmatpush3.msra.mxu0 %v17453_v22 }
 0xc2b   : > { %15410 = vmatprep.subr.mxu0 %v17467_v33 }
 0xc68   : > { %v15341_v2 = vpop.f32.mrf.mxu1 }
 0xc69   : > { %3246 = vperm.xlu1 %16575, %v15341_v2   ;;  %15342 = vmatprep.subr.mxu1 %v15341_v2 }
 0xc6a   : > { %v2896_v3 = vpop.f32.mrf.mxu1  ;;  %15343 = vmatpush3.msra.mxu1 %v15341_v2 }
 0xc6b   : > { %3241 = vperm.xlu0 %16576, %v2896_v3   ;;  %15344 = vmatprep.subr.mxu1 %v2896_v3 }
 0xc6c   : > { %15345 = vmatpush3.msra.mxu1 %v2896_v3 }
 0xc6d   : > { %15347 = vmatmul.mubr.msk.f32.vlgmr.msra.gmra.mxu1 %vm649_vm0, %v17853_v4 }
 0xc6e   : > { %15360 = vmatprep.mubr.msk.f32.mxu1 %vm649_vm0, %v17857_v5 }
 0xcdb   : > { %v15355_v6 = vpop.f32.mrf.mxu0 }
 0xcdc   : > { %15356 = vmatprep.subr.mxu1 %v15355_v6 }
 0xcdd   : > { %v3058_v8 = vpop.f32.mrf.mxu0  ;;  %15357 = vmatpush3.msra.mxu1 %v15355_v6 }
 0xcde   : > { %15358 = vmatprep.subr.mxu1 %v3058_v8 }
 0xcdf   : > { %15359 = vmatpush3.msra.mxu1 %v3058_v8 }
 0xce0   : > { %15361 = vmatmul.mubr.msk.f32.vlgmr.msra.gmra.mxu1 %vm649_vm0, %v17853_v4  ;;  %15374 = vmatprep.subr.mxu1 %v17415_v15 }
 0xce1   : > { %15375 = vmatpush3.msra.mxu1 %v17415_v15  ;;  %15382 = vmatprep.mubr.msk.f32.mxu1 %vm992_vm1, %v3058_v8 }
 0xce2   : > { %15376 = vmatprep.subr.mxu1 %v17419_v16 }
 0xce3   : > { %15377 = vmatpush3.msra.mxu1 %v17419_v16  ;;  %v15373_v36 = vpop.f32.mrf.mxu0 }
 0xce4   : > { %15378 = vmatprep.subr.mxu1 %v17427_v17  ;;  %v17895_v32 = vpop.permute.xlu1 %3246 }
 0xce5   : > { %15379 = vmatpush3.msra.mxu1 %v17427_v17  ;;  %v3228_v47 = vpop.f32.mrf.mxu0  ;;  %v3250_v63 = vmul.f32 %v20007_v48, %v17895_v32 }
 0xce6   : > { %15380 = vmatprep.subr.mxu1 %v17431_v18  ;;  %v17903_v24 = vpop.permute.xlu0 %3241 }
 0xce7   : > { %15381 = vmatpush3.msra.mxu1 %v17431_v18  ;;  %v3249_v0 = vmul.f32 %v20007_v48, %v17903_v24 }
 0xce8   : > { %15383 = vmatmul.mubr.msk.f32.vlgmr.msra.gmra.mxu1 %vm992_vm1, %v15355_v6 }
 0xce9   : > { %15400 = vmatprep.mubr.msk.f32.mxu1 %vm649_vm0, %v17857_v5 }
 0xd2d   : > { %v15348_v9 = vpop.f32.mrf.mxu1 }
 0xd2e   : > { %v2981_v10 = vmul.f32 2.0, %v15348_v9 }
 0xd2f   : > { %v2971_v15 = vpop.f32.mrf.mxu1 }
 0xd30   : > { %v2983_v19 = vsub.f32 %v2981_v10, %v17800_v40  ;;  %v2980_v20 = vmul.f32 2.0, %v2971_v15 }
 0xd32   : > { %3343 = vperm.xlu1 %16575, %v2983_v19   ;;  %v2982_v16 = vsub.f32 %v2980_v20, %v17808_v37 }
 0xd36   : > { %3338 = vperm.xlu1 %16575, %v2982_v16  }
 0xda0   : > { %v15362_v17 = vpop.f32.mrf.mxu1 }
 0xda1   : > { %v3143_v21 = vmul.f32 2.0, %v15362_v17 }
 0xda2   : > { %v3133_v22 = vpop.f32.mrf.mxu1 }
 0xda3   : > { %v3142_v54 = vmul.f32 2.0, %v3133_v22  ;;  %v3145_v31 = vsub.f32 %v3143_v21, %v17822_v11 }
 0xda5   : > { %v3144_v18 = vsub.f32 %v3142_v54, %v17826_v57 }
 0xda7   : > { %15393 = vmatprep.mubr.msk.f32.mxu0 %vm992_vm1, %v3144_v18 }
 0xda8   : > { %15394 = vmatmul.mubr.msk.f32.vlgmr.msra.gmra.mxu0 %vm992_vm1, %v3145_v31  ;;  %v15384_v41 = vpop.f32.mrf.mxu1 }
 0xda9   : > { %15411 = vmatpush3.msra.mxu0 %v17467_v33  ;;  %v20005_v33 = vld [vmem:[#allocation27_spill] sm:$0xff] }
 0xdaa   : > { %15412 = vmatprep.subr.mxu0 %v17469_v34  ;;  %v3155_v39 = vmul.f32 %v20005_v33, %v17891_v14  ;;  %v3325_v30 = vpop.f32.mrf.mxu1 }
 0xdab   : > { %15413 = vmatpush3.msra.mxu0 %v17469_v34  ;;  %v3154_v34 = vmul.f32 %v20005_v33, %v17889_v13 }
 0xdac   : > { %15414 = vmatprep.subr.mxu0 %v17473_v35 }
 0xdad   : > { %15415 = vmatpush3.msra.mxu0 %v17473_v35  ;;  %v20006_v35 = vld [vmem:[#allocation28_spill] sm:$0xff]  ;;  %v17900_v42 = vpop.permute.xlu1 %3343 }
 0xdae   : > { %15416 = vmatprep.subr.mxu0 %v20004_v43  ;;  %v3157_v38 = vadd.f32 %v20006_v35, %v3155_v39  ;;  %v3156_v45 = vadd.f32 %v20006_v35, %v3154_v34  ;;  %v3347_v27 = vmul.f32 %v17514_v53, %v17900_v42  ;;  %v3689_v35 = vmul.f32 %v17601_v29, %v17895_v32 }
 0xdaf   : > { %15417 = vmatpush3.msra.mxu0 %v20004_v43 }
 0xdb0   : > { %15432 = vmatprep.subr.mxu0 %v17570_v58  ;;  %v3238_v12 = vadd.f32 %v15373_v36, %v3157_v38  ;;  %v3237_v62 = vadd.f32 %v3228_v47, %v3156_v45  ;;  %v3688_v45 = vmul.f32 %v17601_v29, %v17903_v24 }
 0xdb1   : > { %v17909_v46 = vpop.permute.xlu1 %3338 }
 0xdb2   : > { %v3252_v26 = vadd.f32 %v3250_v63, %v3238_v12  ;;  %v3251_v40 = vadd.f32 %v3249_v0, %v3237_v62  ;;  %v3346_v37 = vmul.f32 %v17514_v53, %v17909_v46 }
 0xdb4   : > { %v3335_v49 = vadd.f32 %v15384_v41, %v3252_v26  ;;  %v3334_v1 = vadd.f32 %v3325_v30, %v3251_v40 }
 0xdb6   : > { %v3349_v2 = vadd.f32 %v3347_v27, %v3335_v49  ;;  %v3348_v8 = vadd.f32 %v3346_v37, %v3334_v1 }
 0xe68   : > { %v15395_v3 = vpop.f32.mrf.mxu0 }
 0xe69   : > { %v3432_v6 = vadd.f32 %v15395_v3, %v3349_v2 }
 0xe6a   : > { %v3422_v9 = vpop.f32.mrf.mxu0 }
 0xe6b   : > { %v14068_v10 = vmul.f32 -1.442695, %v3432_v6  ;;  %v3431_v15 = vadd.f32 %v3422_v9, %v3348_v8  ;;  %v17105_v9 = vmov 3  }
 0xe6c   : > { %16577 = vset.pattern.permute.xlu0 %v17105_v9  ;;  %16578 = vset.pattern.permute.xlu1 %v17105_v9  ;;  %v18142_v9 = vld [vmem:[%s19951_s2 + $0x2] ss:$0 sm:$0xff] }
 0xe6d   : > { %16621 = vpow2.f32 %v14068_v10  ;;  %v14067_v19 = vmul.f32 -1.442695, %v3431_v15  ;;  %v18018_v15 = vld [vmem:[#allocation5 + $0x18] sm:$0xff] }
 0xe6f   : > { %16623 = vpow2.f32 %v14067_v19  ;;  %v18024_v19 = vld [vmem:[#allocation5 + $0x10] sm:$0xff] }
 0xe7a   : > { %v16622_v20 = vpop.eup %16621 }
 0xe7b   : > { %v3440_v16 = vadd.f32 1.0, %v16622_v20  ;;  %v18028_v20 = vld [vmem:[#allocation5 + $0x8] sm:$0xff] }
 0xe7c   : > { %v16624_v17 = vpop.eup %16623 }
 0xe7d   : > { %16625 = vrcp.f32 %v3440_v16  ;;  %v3439_v21 = vadd.f32 1.0, %v16624_v17  ;;  %v18032_v16 = vld [vmem:[#allocation5] sm:$0xff]  ;;  %v18038_v17 = vld [vmem:[#allocation5 + $0x58] sm:$0xff] }
 0xe7f   : > { %16627 = vrcp.f32 %v3439_v21  ;;  %v18042_v21 = vld [vmem:[#allocation5 + $0x50] sm:$0xff] }
 0xe8a   : > { %v17915_v22 = vpop.eup %16625 }
 0xe8b   : > { %v3446_v53 = vmul.f32 %v17915_v22, %v17822_v11  ;;  %v3865_v30 = vmul.f32 %v17915_v22, %v17796_v28 }
 0xe8c   : > { %v17919_v54 = vpop.eup %16627 }
 0xe8d   : > { %15396 = vmatprep.subr.mxu1 %v3446_v53  ;;  %v3445_v18 = vmul.f32 %v17919_v54, %v17826_v57  ;;  %v3866_v40 = vsub.f32 1.0, %v17919_v54  ;;  %v3864_v2 = vmul.f32 %v17919_v54, %v17802_v50  ;;  %v18054_v54 = vld [vmem:[#allocation10 + $0x18] sm:$0xff] }
 0xe8e   : > { %15397 = vmatpush3.msra.mxu1 %v3446_v53 }
 0xe8f   : > { %15398 = vmatprep.subr.mxu1 %v3445_v18  ;;  %15418 = vmatprep.mubr.msk.f32.mxu0 %vm992_vm1, %v3445_v18 }
 0xe90   : > { %15399 = vmatpush3.msra.mxu1 %v3445_v18  ;;  %15419 = vmatmul.mubr.msk.f32.vlgmr.msra.gmra.mxu0 %vm992_vm1, %v3446_v53 }
 0xe91   : > { %15401 = vmatmul.mubr.msk.f32.vlgmr.msra.gmra.mxu1 %vm649_vm0, %v17853_v4  ;;  %15433 = vmatpush3.msra.mxu0 %v17570_v58 }
 0xe92   : > { %15407 = vmatprep.mubr.msk.f32.mxu1 %vm649_vm0, %v17857_v5  ;;  %15434 = vmatprep.subr.mxu0 %v17574_v59 }
 0xe93   : > { %15435 = vmatpush3.msra.mxu0 %v17574_v59 }
 0xe94   : > { %15436 = vmatprep.subr.mxu0 %v17578_v60 }
 0xe95   : > { %15437 = vmatpush3.msra.mxu0 %v17578_v60 }
 0xe96   : > { %15438 = vmatprep.subr.mxu0 %v17582_v61 }
 0xe97   : > { %15439 = vmatpush3.msra.mxu0 %v17582_v61 }
 0xf51   : > { %v15402_v11 = vpop.f32.mrf.mxu1 }
 0xf52   : > { %15403 = vmatprep.subr.mxu1 %v15402_v11 }
 0xf53   : > { %v3513_v57 = vpop.f32.mrf.mxu1  ;;  %15404 = vmatpush3.msra.mxu1 %v15402_v11 }
 0xf54   : > { %15405 = vmatprep.subr.mxu1 %v3513_v57 }
 0xf55   : > { %15406 = vmatpush3.msra.mxu1 %v3513_v57 }
 0xf56   : > { %15408 = vmatmul.mubr.msk.f32.vlgmr.msra.gmra.mxu1 %vm649_vm0, %v17853_v4  ;;  %15421 = vmatprep.subr.mxu1 %v17548_v51 }
 0xf57   : > { %15422 = vmatpush3.msra.mxu1 %v17548_v51  ;;  %15429 = vmatprep.mubr.msk.f32.mxu1 %vm992_vm1, %v3513_v57 }
 0xf58   : > { %15423 = vmatprep.subr.mxu1 %v17550_v52 }
 0xf59   : > { %15424 = vmatpush3.msra.mxu1 %v17550_v52  ;;  %v3602_v52 = vmul.f32 %v17592_v23, %v17891_v14 }
 0xf5a   : > { %15425 = vmatprep.subr.mxu1 %v17557_v55 }
 0xf5b   : > { %15426 = vmatpush3.msra.mxu1 %v17557_v55  ;;  %v15420_v55 = vpop.f32.mrf.mxu0  ;;  %v3604_v43 = vadd.f32 %v17596_v25, %v3602_v52 }
 0xf5c   : > { %15427 = vmatprep.subr.mxu1 %v17561_v56 }
 0xf5d   : > { %15428 = vmatpush3.msra.mxu1 %v17561_v56  ;;  %v3601_v56 = vmul.f32 %v17592_v23, %v17889_v13  ;;  %v3677_v33 = vpop.f32.mrf.mxu0  ;;  %v3687_v39 = vadd.f32 %v15420_v55, %v3604_v43  ;;  %v3776_v23 = vmul.f32 %v17608_v7, %v17900_v42  ;;  %v17971_v42 = vld [vmem:[%s17361_s20 + $0x8] sm:$0xff] }
 0xf5e   : > { %15430 = vmatmul.mubr.msk.f32.vlgmr.msra.gmra.mxu1 %vm992_vm1, %v15402_v11 }
 0xf5f   : > { %15447 = vmatprep.mubr.msk.f32.mxu1 %vm649_vm0, %v17857_v5  ;;  %v3603_v34 = vadd.f32 %v17596_v25, %v3601_v56  ;;  %v3691_v47 = vadd.f32 %v3689_v35, %v3687_v39  ;;  %v3775_v25 = vmul.f32 %v17608_v7, %v17909_v46  ;;  %v17975_v7 = vld [vmem:[%s17361_s20] sm:$0xff]  ;;  %v3867_v46 = vsub.f32 1.0, %v17915_v22 }
 0xf60   : > { %v18046_v22 = vld [vmem:[#allocation5 + $0x48] sm:$0xff] }
 0xf61   : > { %v3686_v38 = vadd.f32 %v3677_v33, %v3603_v34 }
 0xf63   : > { %v3690_v12 = vadd.f32 %v3688_v45, %v3686_v38 }
0x1016   : > { %v15409_v51 = vpop.f32.mrf.mxu1 }
0x1017   : > { %v3598_v58 = vmul.f32 2.0, %v15409_v51 }
0x1018   : > { %v3588_v59 = vpop.f32.mrf.mxu1 }
0x1019   : > { %v3597_v60 = vmul.f32 2.0, %v3588_v59  ;;  %v3600_v31 = vsub.f32 %v3598_v58, %v3446_v53  ;;  %v18050_v53 = vld [vmem:[#allocation5 + $0x40] sm:$0xff]  ;;  %v18063_v58 = vld [vmem:[#allocation5 + $0x38] sm:$0xff]  ;;  %v18068_v59 = vld [vmem:[#allocation5 + $0x30] sm:$0xff] }
0x101b   : > { %v3599_v61 = vsub.f32 %v3597_v60, %v3445_v18  ;;  %v18072_v60 = vld [vmem:[#allocation5 + $0x28] sm:$0xff] }
0x101d   : > { %15440 = vmatprep.mubr.msk.f32.mxu0 %vm992_vm1, %v3599_v61  ;;  %v18076_v61 = vld [vmem:[#allocation5 + $0x20] sm:$0xff] }
0x101e   : > { %15441 = vmatmul.mubr.msk.f32.vlgmr.msra.gmra.mxu0 %vm992_vm1, %v3600_v31  ;;  %v15431_v36 = vpop.f32.mrf.mxu1 }
0x101f   : > { %15461 = vmatprep.mubr.msk.f32.mxu0 %vm649_vm0, %v17857_v5  ;;  %v3774_v48 = vadd.f32 %v15431_v36, %v3691_v47  ;;  %v18090_v47 = vld [vmem:[#allocation10 + $0x10] sm:$0xff] }
0x1020   : > { %v3764_v14 = vpop.f32.mrf.mxu1 }
0x1021   : > { %v3773_v13 = vadd.f32 %v3764_v14, %v3690_v12  ;;  %v3778_v63 = vadd.f32 %v3776_v23, %v3774_v48  ;;  %v18094_v14 = vld [vmem:[#allocation10 + $0x8] sm:$0xff]  ;;  %v18098_v12 = vld [vmem:[#allocation10] sm:$0xff]  ;;  %v18102_v48 = vld [vmem:[#allocation10 + $0x58] sm:$0xff] }
0x1023   : > { %v3777_v62 = vadd.f32 %v3775_v25, %v3773_v13  ;;  %v18112_v25 = vld [vmem:[%s19951_s2] ss:$0 sm:$0xff] }
0x10de   : > { %v15442_v41 = vpop.f32.mrf.mxu0 }
0x10df   : > { %v3861_v32 = vadd.f32 %v15442_v41, %v3778_v63 }
0x10e0   : > { %v3851_v0 = vpop.f32.mrf.mxu0 }
0x10e1   : > { %16629 = vtanh.f32 %v3861_v32  ;;  %v3860_v29 = vadd.f32 %v3851_v0, %v3777_v62  ;;  %v18120_v0 = vld [vmem:[#allocation7] ss:$0 sm:$0xff] }
0x10e2   : > { %20008 = vst [vmem:[#allocation26_spill] sm:$0xff] %v18120_v0 }
0x10e3   : > { %16631 = vtanh.f32 %v3860_v29 }
0x10ee   : > { %v16630_v24 = vpop.eup %16629 }
0x10ef   : > { %3872 = vrot.lane.b32.xlu0 %v16630_v24, %s17098_s18 }
0x10f0   : > { %v16632_v26 = vpop.eup %16631 }
0x10f1   : > { %3870 = vrot.lane.b32.xlu1 %v16632_v26, %s17098_s18 }
0x10f3   : > { %3882 = vrot.lane.b32.xlu0 %v17971_v42, %s17104_s19 }
0x10f5   : > { %3880 = vrot.lane.b32.xlu1 %v17975_v7, %s17104_s19 }
0x1161   : > { %v3873_v27 = vpop.permute.xlu0 %3872 }
0x1162   : > { %v3877_v49 = vmul.f32 %v3873_v27, %v3867_v46 }
0x1163   : > { %v3871_v37 = vpop.permute.xlu1 %3870 }
0x1164   : > { %v17982_v1 = vadd.f32 %v3877_v49, %v3865_v30  ;;  %v3876_v3 = vmul.f32 %v3871_v37, %v3866_v40  ;;  %v18131_v49 = vld [vmem:[%s19951_s2 + $0x1] ss:$0 sm:$0xff] }
0x1165   : > { %v17986_v6 = vpop.permute.xlu0 %3882  ;;  %20009 = vst [vmem:[#allocation27_spill] sm:$0xff] %v18131_v49 }
0x1166   : > { %v17988_v8 = vadd.f32 %v3876_v3, %v3864_v2  ;;  %4044 = vrot.lane.b32.xlu0 %v17982_v1, %s17100_s17  ;;  %15443 = vmatprep.subr.mxu1 %v17986_v6 }
0x1167   : > { %15444 = vmatpush3.msra.mxu1 %v17986_v6  ;;  %v17994_v28 = vpop.permute.xlu1 %3880 }
0x1168   : > { %4042 = vrot.lane.b32.xlu1 %v17988_v8, %s17100_s17  ;;  %15445 = vmatprep.subr.mxu1 %v17994_v28 }
0x1169   : > { %15446 = vmatpush3.msra.mxu1 %v17994_v28 }
0x116a   : > { %15448 = vmatmul.mubr.msk.f32.vlgmr.msra.gmra.mxu1 %vm649_vm0, %v17853_v4  ;;  %4207 = vperm.xlu0 %16577, %v17971_v42  }
0x116b   : > { %15454 = vmatprep.mubr.msk.f32.mxu1 %vm649_vm0, %v17857_v5 }
0x116c   : > { %4203 = vperm.xlu1 %16578, %v17975_v7  }
0x116e   : > { %16580 = vset.pattern.permute.xlu0 %v20003_v44 }
0x1170   : > { %16579 = vset.pattern.permute.xlu1 %v20003_v44 }
0x11d8   : > { %v18008_v50 = vpop.permute.xlu0 %4044 }
0x11d9   : > { %15457 = vmatprep.subr.mxu0 %v18008_v50 }
0x11da   : > { %15458 = vmatpush3.msra.mxu0 %v18008_v50  ;;  %v18012_v10 = vpop.permute.xlu1 %4042 }
0x11db   : > { %15459 = vmatprep.subr.mxu0 %v18012_v10 }
0x11dc   : > { %15460 = vmatpush3.msra.mxu0 %v18012_v10 }
0x11dd   : > { %15462 = vmatmul.mubr.msk.f32.vlgmr.msra.gmra.mxu0 %vm649_vm0, %v17853_v4  ;;  %15471 = vmatprep.subr.mxu0 %v18018_v15 }
0x11de   : > { %15472 = vmatpush3.msra.mxu0 %v18018_v15  ;;  %15479 = vmatprep.mubr.msk.f32.mxu0 %vm992_vm1, %v18012_v10 }
0x11df   : > { %15473 = vmatprep.subr.mxu0 %v18024_v19 }
0x11e0   : > { %15474 = vmatpush3.msra.mxu0 %v18024_v19 }
0x11e1   : > { %15475 = vmatprep.subr.mxu0 %v18028_v20 }
0x11e2   : > { %15476 = vmatpush3.msra.mxu0 %v18028_v20 }
0x11e3   : > { %15477 = vmatprep.subr.mxu0 %v18032_v16 }
0x11e4   : > { %15478 = vmatpush3.msra.mxu0 %v18032_v16 }
0x11e5   : > { %15480 = vmatmul.mubr.msk.f32.vlgmr.msra.gmra.mxu0 %vm992_vm1, %v18008_v50  ;;  %15493 = vmatprep.subr.mxu0 %v18038_v17  ;;  %v18107_v13 = vpop.permute.xlu0 %4207 }
0x11e6   : > { %15494 = vmatpush3.msra.mxu0 %v18038_v17  ;;  %v4211_v63 = vmul.f32 %v18112_v25, %v18107_v13 }
0x11e7   : > { %15495 = vmatprep.subr.mxu0 %v18042_v21  ;;  %v18105_v23 = vpop.permute.xlu1 %4203 }
0x11e8   : > { %15496 = vmatpush3.msra.mxu0 %v18042_v21  ;;  %v4210_v32 = vmul.f32 %v18112_v25, %v18105_v23  ;;  %v4213_v29 = vadd.f32 %v18120_v0, %v4211_v63 }
0x11e9   : > { %15497 = vmatprep.subr.mxu0 %v18046_v22 }
0x11ea   : > { %15498 = vmatpush3.msra.mxu0 %v18046_v22  ;;  %v4212_v26 = vadd.f32 %v18120_v0, %v4210_v32 }
0x11eb   : > { %15499 = vmatprep.subr.mxu0 %v18050_v53 }
0x11ec   : > { %15500 = vmatpush3.msra.mxu0 %v18050_v53 }
0x11ed   : > { %15518 = vmatprep.subr.mxu0 %v18054_v54 }
0x122a   : > { %v15449_v18 = vpop.f32.mrf.mxu1 }
0x122b   : > { %4302 = vperm.xlu1 %16579, %v15449_v18   ;;  %15450 = vmatprep.subr.mxu1 %v15449_v18 }
0x122c   : > { %v3952_v11 = vpop.f32.mrf.mxu1  ;;  %15451 = vmatpush3.msra.mxu1 %v15449_v18 }
0x122d   : > { %4297 = vperm.xlu0 %16580, %v3952_v11   ;;  %15452 = vmatprep.subr.mxu1 %v3952_v11 }
0x122e   : > { %15453 = vmatpush3.msra.mxu1 %v3952_v11 }
0x122f   : > { %15455 = vmatmul.mubr.msk.f32.vlgmr.msra.gmra.mxu1 %vm649_vm0, %v17853_v4 }
0x1230   : > { %15468 = vmatprep.mubr.msk.f32.mxu1 %vm649_vm0, %v17857_v5 }
0x129d   : > { %v15463_v57 = vpop.f32.mrf.mxu0 }
0x129e   : > { %15464 = vmatprep.subr.mxu1 %v15463_v57 }
0x129f   : > { %v4114_v51 = vpop.f32.mrf.mxu0  ;;  %15465 = vmatpush3.msra.mxu1 %v15463_v57 }
0x12a0   : > { %15466 = vmatprep.subr.mxu1 %v4114_v51 }
0x12a1   : > { %15467 = vmatpush3.msra.mxu1 %v4114_v51 }
0x12a2   : > { %15469 = vmatmul.mubr.msk.f32.vlgmr.msra.gmra.mxu1 %vm649_vm0, %v17853_v4  ;;  %15482 = vmatprep.subr.mxu1 %v18063_v58 }
0x12a3   : > { %15483 = vmatpush3.msra.mxu1 %v18063_v58  ;;  %15490 = vmatprep.mubr.msk.f32.mxu1 %vm992_vm1, %v4114_v51 }
0x12a4   : > { %15484 = vmatprep.subr.mxu1 %v18068_v59 }
0x12a5   : > { %15485 = vmatpush3.msra.mxu1 %v18068_v59  ;;  %v15481_v62 = vpop.f32.mrf.mxu0 }
0x12a6   : > { %15486 = vmatprep.subr.mxu1 %v18072_v60  ;;  %v18116_v41 = vpop.permute.xlu1 %4302  ;;  %v4294_v30 = vadd.f32 %v15481_v62, %v4213_v29 }
0x12a7   : > { %15487 = vmatpush3.msra.mxu1 %v18072_v60  ;;  %v4284_v46 = vpop.f32.mrf.mxu0  ;;  %v4306_v40 = vmul.f32 %v18131_v49, %v18116_v41 }
0x12a8   : > { %15488 = vmatprep.subr.mxu1 %v18076_v61  ;;  %v18126_v27 = vpop.permute.xlu0 %4297  ;;  %v4293_v2 = vadd.f32 %v4284_v46, %v4212_v26 }
0x12a9   : > { %15489 = vmatpush3.msra.mxu1 %v18076_v61  ;;  %v4305_v3 = vmul.f32 %v18131_v49, %v18126_v27 }
0x12aa   : > { %15491 = vmatmul.mubr.msk.f32.vlgmr.msra.gmra.mxu1 %vm992_vm1, %v15463_v57 }
0x12ab   : > { %15508 = vmatprep.mubr.msk.f32.mxu1 %vm649_vm0, %v17857_v5  ;;  %v4307_v51 = vadd.f32 %v4305_v3, %v4293_v2  ;;  %v18177_v2 = vld [vmem:[#allocation10 + $0x38] sm:$0xff]  ;;  %v18182_v3 = vld [vmem:[#allocation10 + $0x30] sm:$0xff] }
0x12ef   : > { %v15456_v31 = vpop.f32.mrf.mxu1 }
0x12f0   : > { %v4037_v52 = vmul.f32 2.0, %v15456_v31 }
0x12f1   : > { %v4027_v55 = vpop.f32.mrf.mxu1 }
0x12f2   : > { %v4039_v56 = vsub.f32 %v4037_v52, %v17986_v6  ;;  %v4036_v43 = vmul.f32 2.0, %v4027_v55 }
0x12f4   : > { %4399 = vperm.xlu1 %16579, %v4039_v56   ;;  %v4038_v33 = vsub.f32 %v4036_v43, %v17994_v28  ;;  %v4308_v28 = vadd.f32 %v4306_v40, %v4294_v30  ;;  %v18171_v30 = vld [vmem:[#allocation10 + $0x40] sm:$0xff] }
0x12f8   : > { %4394 = vperm.xlu1 %16579, %v4038_v33  }
0x1362   : > { %v15470_v39 = vpop.f32.mrf.mxu1 }
0x1363   : > { %v4199_v34 = vmul.f32 2.0, %v15470_v39 }
0x1364   : > { %v4189_v36 = vpop.f32.mrf.mxu1 }
0x1365   : > { %v4198_v35 = vmul.f32 2.0, %v4189_v36  ;;  %v4201_v45 = vsub.f32 %v4199_v34, %v18008_v50 }
0x1367   : > { %v4200_v38 = vsub.f32 %v4198_v35, %v18012_v10 }
0x1369   : > { %15501 = vmatprep.mubr.msk.f32.mxu0 %vm992_vm1, %v4200_v38 }
0x136a   : > { %15502 = vmatmul.mubr.msk.f32.vlgmr.msra.gmra.mxu0 %vm992_vm1, %v4201_v45  ;;  %v15492_v37 = vpop.f32.mrf.mxu1 }
0x136b   : > { %15519 = vmatpush3.msra.mxu0 %v18054_v54  ;;  %v4391_v57 = vadd.f32 %v15492_v37, %v4308_v28  ;;  %v18186_v28 = vld [vmem:[#allocation10 + $0x28] sm:$0xff] }
0x136c   : > { %15520 = vmatprep.subr.mxu0 %v18090_v47  ;;  %v4381_v11 = vpop.f32.mrf.mxu1 }
0x136d   : > { %15521 = vmatpush3.msra.mxu0 %v18090_v47  ;;  %v4390_v52 = vadd.f32 %v4381_v11, %v4307_v51 }
0x136e   : > { %15522 = vmatprep.subr.mxu0 %v18094_v14 }
0x136f   : > { %15523 = vmatpush3.msra.mxu0 %v18094_v14  ;;  %v18123_v24 = vpop.permute.xlu1 %4399 }
0x1370   : > { %15524 = vmatprep.subr.mxu0 %v18098_v12  ;;  %v4403_v18 = vmul.f32 %v18142_v9, %v18123_v24 }
0x1371   : > { %15525 = vmatpush3.msra.mxu0 %v18098_v12 }
0x1372   : > { %15540 = vmatprep.subr.mxu0 %v18102_v48  ;;  %v4405_v55 = vadd.f32 %v4403_v18, %v4391_v57  ;;  %v18190_v18 = vld [vmem:[#allocation10 + $0x20] sm:$0xff] }
0x1373   : > { %v18137_v6 = vpop.permute.xlu1 %4394 }
0x1374   : > { %v4402_v31 = vmul.f32 %v18142_v9, %v18137_v6 }
0x1376   : > { %v4404_v33 = vadd.f32 %v4402_v31, %v4390_v52 }
0x142a   : > { %v15503_v56 = vpop.f32.mrf.mxu0 }
0x142b   : > { %v4488_v43 = vadd.f32 %v15503_v56, %v4405_v55  ;;  %v18201_v56 = vld [vmem:[#allocation8] ss:$0 sm:$0xff] }
0x142c   : > { %v4478_v39 = vpop.f32.mrf.mxu0 }
0x142d   : > { %v14094_v34 = vmul.f32 -1.442695, %v4488_v43  ;;  %v4487_v36 = vadd.f32 %v4478_v39, %v4404_v33  ;;  %v4658_v43 = vmul.f32 %v18201_v56, %v18107_v13  ;;  %v4657_v39 = vmul.f32 %v18201_v56, %v18105_v23 }
0x142f   : > { %16633 = vpow2.f32 %v14094_v34  ;;  %v14093_v35 = vmul.f32 -1.442695, %v4487_v36  ;;  %v18207_v34 = vld [vmem:[#allocation11] ss:$0 sm:$0xff] }
0x1430   : > { %v4660_v36 = vadd.f32 %v18207_v34, %v4658_v43 }
0x1431   : > { %16635 = vpow2.f32 %v14093_v35 }
0x143c   : > { %v16634_v38 = vpop.eup %16633 }
0x143d   : > { %v4496_v45 = vadd.f32 1.0, %v16634_v38 }
0x143e   : > { %v16636_v63 = vpop.eup %16635 }
0x143f   : > { %16637 = vrcp.f32 %v4496_v45  ;;  %v4495_v32 = vadd.f32 1.0, %v16636_v63  ;;  %v4659_v45 = vadd.f32 %v18207_v34, %v4657_v39 }
0x1441   : > { %16639 = vrcp.f32 %v4495_v32  ;;  %v18211_v32 = vld [vmem:[#allocation8 + $0x1] ss:$0 sm:$0xff] }
0x1442   : > { %v4744_v13 = vmul.f32 %v18211_v32, %v18126_v27 }
0x144c   : > { %v18148_v62 = vpop.eup %16637 }
0x144d   : > { %v4502_v29 = vmul.f32 %v18148_v62, %v18008_v50  ;;  %v18163_v50 = vld [vmem:[#allocation10 + $0x50] sm:$0xff] }
0x144e   : > { %v18152_v26 = vpop.eup %16639 }
0x144f   : > { %15504 = vmatprep.subr.mxu1 %v4502_v29  ;;  %v4501_v46 = vmul.f32 %v18152_v26, %v18012_v10  ;;  %v18167_v10 = vld [vmem:[#allocation10 + $0x48] sm:$0xff] }
0x1450   : > { %15505 = vmatpush3.msra.mxu1 %v4502_v29 }
0x1451   : > { %15506 = vmatprep.subr.mxu1 %v4501_v46  ;;  %15526 = vmatprep.mubr.msk.f32.mxu0 %vm992_vm1, %v4501_v46 }
0x1452   : > { %15507 = vmatpush3.msra.mxu1 %v4501_v46  ;;  %15527 = vmatmul.mubr.msk.f32.vlgmr.msra.gmra.mxu0 %vm992_vm1, %v4502_v29 }
0x1453   : > { %15509 = vmatmul.mubr.msk.f32.vlgmr.msra.gmra.mxu1 %vm649_vm0, %v17853_v4  ;;  %15541 = vmatpush3.msra.mxu0 %v18102_v48 }
0x1454   : > { %15515 = vmatprep.mubr.msk.f32.mxu1 %vm649_vm0, %v17857_v5  ;;  %15542 = vmatprep.subr.mxu0 %v18163_v50 }
0x1455   : > { %15543 = vmatpush3.msra.mxu0 %v18163_v50 }
0x1456   : > { %15544 = vmatprep.subr.mxu0 %v18167_v10 }
0x1457   : > { %15545 = vmatpush3.msra.mxu0 %v18167_v10 }
0x1458   : > { %15546 = vmatprep.subr.mxu0 %v18171_v30 }
0x1459   : > { %15547 = vmatpush3.msra.mxu0 %v18171_v30 }
0x1512   : > { %v15528_v33 = vpop.f32.mrf.mxu0 }
0x1513   : > { %v15510_v40 = vpop.f32.mrf.mxu1  ;;  %v4743_v38 = vadd.f32 %v15528_v33, %v4660_v36 }
0x1514   : > { %15511 = vmatprep.subr.mxu1 %v15510_v40  ;;  %v4733_v35 = vpop.f32.mrf.mxu0 }
0x1515   : > { %v4569_v37 = vpop.f32.mrf.mxu1  ;;  %15512 = vmatpush3.msra.mxu1 %v15510_v40 }
0x1516   : > { %15513 = vmatprep.subr.mxu1 %v4569_v37 }
0x1517   : > { %15514 = vmatpush3.msra.mxu1 %v4569_v37 }
0x1518   : > { %15516 = vmatmul.mubr.msk.f32.vlgmr.msra.gmra.mxu1 %vm649_vm0, %v17853_v4  ;;  %15529 = vmatprep.subr.mxu1 %v18177_v2 }
0x1519   : > { %15530 = vmatpush3.msra.mxu1 %v18177_v2  ;;  %15537 = vmatprep.mubr.msk.f32.mxu1 %vm992_vm1, %v4569_v37 }
0x151a   : > { %15531 = vmatprep.subr.mxu1 %v18182_v3 }
0x151b   : > { %15532 = vmatpush3.msra.mxu1 %v18182_v3 }
0x151c   : > { %15533 = vmatprep.subr.mxu1 %v18186_v28 }
0x151d   : > { %15534 = vmatpush3.msra.mxu1 %v18186_v28 }
0x151e   : > { %15535 = vmatprep.subr.mxu1 %v18190_v18 }
0x151f   : > { %15536 = vmatpush3.msra.mxu1 %v18190_v18 }
0x1520   : > { %15538 = vmatmul.mubr.msk.f32.vlgmr.msra.gmra.mxu1 %vm992_vm1, %v15510_v40 }
0x1521   : > { %15555 = vmatprep.mubr.msk.f32.mxu1 %vm649_vm0, %v17857_v5 }
0x15d8   : > { %v15517_v11 = vpop.f32.mrf.mxu1 }
0x15d9   : > { %v4654_v57 = vmul.f32 2.0, %v15517_v11 }
0x15da   : > { %v4644_v51 = vpop.f32.mrf.mxu1 }
0x15db   : > { %v4653_v31 = vmul.f32 2.0, %v4644_v51  ;;  %v4656_v55 = vsub.f32 %v4654_v57, %v4502_v29  ;;  %v4745_v29 = vmul.f32 %v18211_v32, %v18116_v41  ;;  %v18217_v57 = vld [vmem:[#allocation8 + $0x2] ss:$0 sm:$0xff] }
0x15dc   : > { %v4832_v51 = vmul.f32 %v18217_v57, %v18123_v24  ;;  %v4923_v24 = vsub.f32 1.0, %v18148_v62 }
0x15dd   : > { %v4655_v52 = vsub.f32 %v4653_v31, %v4501_v46  ;;  %v4742_v46 = vadd.f32 %v4733_v35, %v4659_v45  ;;  %v4747_v40 = vadd.f32 %v4745_v29, %v4743_v38  ;;  %v4921_v38 = vmul.f32 %v18148_v62, %v17982_v1 }
0x15de   : > { %v17107_v62 = vmov 4  }
0x15df   : > { %15548 = vmatprep.mubr.msk.f32.mxu0 %vm992_vm1, %v4655_v52  ;;  %v4746_v37 = vadd.f32 %v4744_v13, %v4742_v46  ;;  %v4831_v52 = vmul.f32 %v18217_v57, %v18137_v6  ;;  %v4920_v13 = vmul.f32 %v18152_v26, %v17988_v8  ;;  %16581 = vset.pattern.permute.xlu0 %v17107_v62 }
0x15e0   : > { %15549 = vmatmul.mubr.msk.f32.vlgmr.msra.gmra.mxu0 %vm992_vm1, %v4656_v55  ;;  %v15539_v63 = vpop.f32.mrf.mxu1  ;;  %16582 = vset.pattern.permute.xlu1 %v17107_v62 }
0x15e1   : > { %15569 = vmatprep.mubr.msk.f32.mxu0 %vm649_vm0, %v17857_v5  ;;  %v4830_v11 = vadd.f32 %v15539_v63, %v4747_v40  ;;  %v4922_v63 = vsub.f32 1.0, %v18152_v26 }
0x15e2   : > { %v4820_v23 = vpop.f32.mrf.mxu1 }
0x15e3   : > { %v4829_v31 = vadd.f32 %v4820_v23, %v4746_v37  ;;  %v4834_v55 = vadd.f32 %v4832_v51, %v4830_v11 }
0x15e5   : > { %v4833_v33 = vadd.f32 %v4831_v52, %v4829_v31 }
0x16a0   : > { %v15550_v43 = vpop.f32.mrf.mxu0 }
0x16a1   : > { %v4917_v41 = vadd.f32 %v15550_v43, %v4834_v55 }
0x16a2   : > { %v4907_v39 = vpop.f32.mrf.mxu0 }
0x16a3   : > { %16641 = vtanh.f32 %v4917_v41  ;;  %v4916_v27 = vadd.f32 %v4907_v39, %v4833_v33 }
0x16a5   : > { %16643 = vtanh.f32 %v4916_v27 }
0x16b0   : > { %v16642_v36 = vpop.eup %16641 }
0x16b1   : > { %4928 = vrot.lane.b32.xlu0 %v16642_v36, %s17098_s18 }
0x16b2   : > { %v16644_v35 = vpop.eup %16643 }
0x16b3   : > { %4926 = vrot.lane.b32.xlu1 %v16644_v35, %s17098_s18 }
0x16b5   : > { %4938 = vrot.lane.b32.xlu0 %v17971_v42, %s17106_s27 }
0x16b7   : > { %4936 = vrot.lane.b32.xlu1 %v17975_v7, %s17106_s27  ;;  %s17115_s27 = smov 2  }
0x1723   : > { %v4929_v6 = vpop.permute.xlu0 %4928 }
0x1724   : > { %v4933_v45 = vmul.f32 %v4929_v6, %v4923_v24 }
0x1725   : > { %v4927_v29 = vpop.permute.xlu1 %4926 }
0x1726   : > { %v18231_v46 = vadd.f32 %v4933_v45, %v4921_v38  ;;  %v4932_v40 = vmul.f32 %v4927_v29, %v4922_v63 }
0x1727   : > { %v18235_v23 = vpop.permute.xlu0 %4938 }
0x1728   : > { %v18237_v37 = vadd.f32 %v4932_v40, %v4920_v13  ;;  %5100 = vrot.lane.b32.xlu0 %v18231_v46, %s17100_s17  ;;  %15551 = vmatprep.subr.mxu1 %v18235_v23 }
0x1729   : > { %15552 = vmatpush3.msra.mxu1 %v18235_v23  ;;  %v18243_v1 = vpop.permute.xlu1 %4936 }
0x172a   : > { %5098 = vrot.lane.b32.xlu1 %v18237_v37, %s17100_s17  ;;  %15553 = vmatprep.subr.mxu1 %v18243_v1 }
0x172b   : > { %15554 = vmatpush3.msra.mxu1 %v18243_v1 }
0x172c   : > { %15556 = vmatmul.mubr.msk.f32.vlgmr.msra.gmra.mxu1 %vm649_vm0, %v17853_v4  ;;  %5263 = vperm.xlu0 %16581, %v17971_v42  }
0x172d   : > { %15562 = vmatprep.mubr.msk.f32.mxu1 %vm649_vm0, %v17857_v5 }
0x172e   : > { %5259 = vperm.xlu1 %16582, %v17975_v7  }
0x1730   : > { %16584 = vset.pattern.permute.xlu0 %v20003_v44 }
0x1732   : > { %16583 = vset.pattern.permute.xlu1 %v20003_v44 }
0x179a   : > { %v18257_v8 = vpop.permute.xlu0 %5100 }
0x179b   : > { %15565 = vmatprep.subr.mxu0 %v18257_v8 }
0x179c   : > { %15566 = vmatpush3.msra.mxu0 %v18257_v8  ;;  %v18261_v26 = vpop.permute.xlu1 %5098 }
0x179d   : > { %15567 = vmatprep.subr.mxu0 %v18261_v26 }
0x179e   : > { %15568 = vmatpush3.msra.mxu0 %v18261_v26 }
0x179f   : > { %15570 = vmatmul.mubr.msk.f32.vlgmr.msra.gmra.mxu0 %vm649_vm0, %v17853_v4  ;;  %15579 = vmatprep.subr.mxu0 %v18018_v15 }
0x17a0   : > { %15580 = vmatpush3.msra.mxu0 %v18018_v15  ;;  %15587 = vmatprep.mubr.msk.f32.mxu0 %vm992_vm1, %v18261_v26 }
0x17a1   : > { %15581 = vmatprep.subr.mxu0 %v18024_v19 }
0x17a2   : > { %15582 = vmatpush3.msra.mxu0 %v18024_v19 }
0x17a3   : > { %15583 = vmatprep.subr.mxu0 %v18028_v20 }
0x17a4   : > { %15584 = vmatpush3.msra.mxu0 %v18028_v20 }
0x17a5   : > { %15585 = vmatprep.subr.mxu0 %v18032_v16 }
0x17a6   : > { %15586 = vmatpush3.msra.mxu0 %v18032_v16 }
0x17a7   : > { %15588 = vmatmul.mubr.msk.f32.vlgmr.msra.gmra.mxu0 %vm992_vm1, %v18257_v8  ;;  %15601 = vmatprep.subr.mxu0 %v18038_v17  ;;  %v18322_v45 = vpop.permute.xlu0 %5263 }
0x17a8   : > { %15602 = vmatpush3.msra.mxu0 %v18038_v17  ;;  %v5267_v63 = vmul.f32 %v18112_v25, %v18322_v45 }
0x17a9   : > { %15603 = vmatprep.subr.mxu0 %v18042_v21 }
0x17aa   : > { %15604 = vmatpush3.msra.mxu0 %v18042_v21 }
0x17ab   : > { %15605 = vmatprep.subr.mxu0 %v18046_v22 }
0x17ac   : > { %15606 = vmatpush3.msra.mxu0 %v18046_v22 }
0x17ad   : > { %15607 = vmatprep.subr.mxu0 %v18050_v53 }
0x17ae   : > { %15608 = vmatpush3.msra.mxu0 %v18050_v53 }
0x17af   : > { %15626 = vmatprep.subr.mxu0 %v18054_v54 }
0x17ec   : > { %v15557_v11 = vpop.f32.mrf.mxu1 }
0x17ed   : > { %5358 = vperm.xlu1 %16583, %v15557_v11   ;;  %15558 = vmatprep.subr.mxu1 %v15557_v11 }
0x17ee   : > { %v5008_v51 = vpop.f32.mrf.mxu1  ;;  %15559 = vmatpush3.msra.mxu1 %v15557_v11 }
0x17ef   : > { %5353 = vperm.xlu0 %16584, %v5008_v51   ;;  %15560 = vmatprep.subr.mxu1 %v5008_v51 }
0x17f0   : > { %15561 = vmatpush3.msra.mxu1 %v5008_v51 }
0x17f1   : > { %15563 = vmatmul.mubr.msk.f32.vlgmr.msra.gmra.mxu1 %vm649_vm0, %v17853_v4 }
0x17f2   : > { %15576 = vmatprep.mubr.msk.f32.mxu1 %vm649_vm0, %v17857_v5 }
0x185f   : > { %v15571_v31 = vpop.f32.mrf.mxu0 }
0x1860   : > { %15572 = vmatprep.subr.mxu1 %v15571_v31 }
0x1861   : > { %v5170_v52 = vpop.f32.mrf.mxu0  ;;  %15573 = vmatpush3.msra.mxu1 %v15571_v31 }
0x1862   : > { %15574 = vmatprep.subr.mxu1 %v5170_v52 }
0x1863   : > { %15575 = vmatpush3.msra.mxu1 %v5170_v52 }
0x1864   : > { %15577 = vmatmul.mubr.msk.f32.vlgmr.msra.gmra.mxu1 %vm649_vm0, %v17853_v4  ;;  %15590 = vmatprep.subr.mxu1 %v18063_v58 }
0x1865   : > { %15591 = vmatpush3.msra.mxu1 %v18063_v58  ;;  %15598 = vmatprep.mubr.msk.f32.mxu1 %vm992_vm1, %v5170_v52 }
0x1866   : > { %15592 = vmatprep.subr.mxu1 %v18068_v59 }
0x1867   : > { %15593 = vmatpush3.msra.mxu1 %v18068_v59  ;;  %v15589_v40 = vpop.f32.mrf.mxu0 }
0x1868   : > { %15594 = vmatprep.subr.mxu1 %v18072_v60 }
0x1869   : > { %15595 = vmatpush3.msra.mxu1 %v18072_v60  ;;  %v5340_v11 = vpop.f32.mrf.mxu0 }
0x186a   : > { %15596 = vmatprep.subr.mxu1 %v18076_v61  ;;  %v18334_v51 = vpop.permute.xlu0 %5353 }
0x186b   : > { %15597 = vmatpush3.msra.mxu1 %v18076_v61 }
0x186c   : > { %15599 = vmatmul.mubr.msk.f32.vlgmr.msra.gmra.mxu1 %vm992_vm1, %v15571_v31 }
0x186d   : > { %15616 = vmatprep.mubr.msk.f32.mxu1 %vm649_vm0, %v17857_v5  ;;  %v18320_v5 = vpop.permute.xlu1 %5259 }
0x186e   : > { %v5266_v13 = vmul.f32 %v18112_v25, %v18320_v5 }
0x1870   : > { %v5268_v62 = vadd.f32 %v18120_v0, %v5266_v13 }
0x1871   : > { %v18326_v29 = vpop.permute.xlu1 %5358 }
0x1872   : > { %v5362_v52 = vmul.f32 %v18131_v49, %v18326_v29 }
0x18b1   : > { %v15564_v4 = vpop.f32.mrf.mxu1 }
0x18b2   : > { %v5093_v55 = vmul.f32 2.0, %v15564_v4 }
0x18b3   : > { %v5083_v43 = vpop.f32.mrf.mxu1 }
0x18b4   : > { %v5095_v41 = vsub.f32 %v5093_v55, %v18235_v23  ;;  %v5092_v33 = vmul.f32 2.0, %v5083_v43  ;;  %v5269_v23 = vadd.f32 %v18120_v0, %v5267_v63  ;;  %v5349_v55 = vadd.f32 %v5340_v11, %v5268_v62 }
0x18b5   : > { %v5361_v43 = vmul.f32 %v18131_v49, %v18334_v51 }
0x18b6   : > { %5455 = vperm.xlu1 %16583, %v5095_v41   ;;  %v5094_v39 = vsub.f32 %v5092_v33, %v18243_v1  ;;  %v5350_v31 = vadd.f32 %v15589_v40, %v5269_v23 }
0x18b8   : > { %v5364_v33 = vadd.f32 %v5362_v52, %v5350_v31 }
0x18ba   : > { %5450 = vperm.xlu1 %16583, %v5094_v39  }
0x1924   : > { %v15578_v27 = vpop.f32.mrf.mxu1 }
0x1925   : > { %v5255_v36 = vmul.f32 2.0, %v15578_v27 }
0x1926   : > { %v5245_v35 = vpop.f32.mrf.mxu1 }
0x1927   : > { %v5254_v24 = vmul.f32 2.0, %v5245_v35  ;;  %v5257_v38 = vsub.f32 %v5255_v36, %v18257_v8  ;;  %v5363_v35 = vadd.f32 %v5361_v43, %v5349_v55 }
0x1929   : > { %v5256_v6 = vsub.f32 %v5254_v24, %v18261_v26 }
0x192b   : > { %15609 = vmatprep.mubr.msk.f32.mxu0 %vm992_vm1, %v5256_v6 }
0x192c   : > { %15610 = vmatmul.mubr.msk.f32.vlgmr.msra.gmra.mxu0 %vm992_vm1, %v5257_v38  ;;  %v15600_v4 = vpop.f32.mrf.mxu1 }
0x192d   : > { %15627 = vmatpush3.msra.mxu0 %v18054_v54  ;;  %v5447_v36 = vadd.f32 %v15600_v4, %v5364_v33 }
0x192e   : > { %15628 = vmatprep.subr.mxu0 %v18090_v47  ;;  %v5437_v27 = vpop.f32.mrf.mxu1 }
0x192f   : > { %15629 = vmatpush3.msra.mxu0 %v18090_v47  ;;  %v5446_v6 = vadd.f32 %v5437_v27, %v5363_v35 }
0x1930   : > { %15630 = vmatprep.subr.mxu0 %v18094_v14 }
0x1931   : > { %15631 = vmatpush3.msra.mxu0 %v18094_v14  ;;  %v18331_v1 = vpop.permute.xlu1 %5455 }
0x1932   : > { %15632 = vmatprep.subr.mxu0 %v18098_v12  ;;  %v5459_v39 = vmul.f32 %v18142_v9, %v18331_v1 }
0x1933   : > { %15633 = vmatpush3.msra.mxu0 %v18098_v12 }
0x1934   : > { %15648 = vmatprep.subr.mxu0 %v18102_v48  ;;  %v5461_v38 = vadd.f32 %v5459_v39, %v5447_v36 }
0x1935   : > { %v18340_v41 = vpop.permute.xlu1 %5450 }
0x1936   : > { %v5458_v24 = vmul.f32 %v18142_v9, %v18340_v41 }
0x1938   : > { %v5460_v40 = vadd.f32 %v5458_v24, %v5446_v6 }
0x19ec   : > { %v15611_v63 = vpop.f32.mrf.mxu0 }
0x19ed   : > { %v5544_v13 = vadd.f32 %v15611_v63, %v5461_v38  ;;  %v5714_v63 = vmul.f32 %v18201_v56, %v18322_v45 }
0x19ee   : > { %v5534_v23 = vpop.f32.mrf.mxu0 }
0x19ef   : > { %v14120_v62 = vmul.f32 -1.442695, %v5544_v13  ;;  %v5543_v11 = vadd.f32 %v5534_v23, %v5460_v40  ;;  %v5713_v40 = vmul.f32 %v18201_v56, %v18320_v5  ;;  %v5716_v23 = vadd.f32 %v18207_v34, %v5714_v63 }
0x19f0   : > { %v5888_v5 = vmul.f32 %v18217_v57, %v18331_v1 }
0x19f1   : > { %16645 = vpow2.f32 %v14120_v62  ;;  %v14119_v49 = vmul.f32 -1.442695, %v5543_v11 }
0x19f3   : > { %16647 = vpow2.f32 %v14119_v49  ;;  %v18361_v49 = vld [vmem:[#allocation3] sm:$0xff] }
0x19fe   : > { %v16646_v31 = vpop.eup %16645 }
0x19ff   : > { %v5552_v52 = vadd.f32 1.0, %v16646_v31  ;;  %v5715_v31 = vadd.f32 %v18207_v34, %v5713_v40 }
0x1a00   : > { %v16648_v0 = vpop.eup %16647 }
0x1a01   : > { %16649 = vrcp.f32 %v5552_v52  ;;  %v5551_v4 = vadd.f32 1.0, %v16648_v0  ;;  %v18356_v0 = vld [vmem:[#allocation3 + $0x8] sm:$0xff] }
0x1a03   : > { %16651 = vrcp.f32 %v5551_v4  ;;  %v5801_v4 = vmul.f32 %v18211_v32, %v18326_v29 }
0x1a0e   : > { %v18346_v55 = vpop.eup %16649 }
0x1a0f   : > { %v5558_v43 = vmul.f32 %v18346_v55, %v18257_v8  ;;  %v5979_v1 = vsub.f32 1.0, %v18346_v55 }
0x1a10   : > { %v18350_v33 = vpop.eup %16651 }
0x1a11   : > { %15612 = vmatprep.subr.mxu1 %v5558_v43  ;;  %v5557_v39 = vmul.f32 %v18350_v33, %v18261_v26 }
0x1a12   : > { %15613 = vmatpush3.msra.mxu1 %v5558_v43 }
0x1a13   : > { %15614 = vmatprep.subr.mxu1 %v5557_v39  ;;  %15634 = vmatprep.mubr.msk.f32.mxu0 %vm992_vm1, %v5557_v39 }
0x1a14   : > { %15615 = vmatpush3.msra.mxu1 %v5557_v39  ;;  %15635 = vmatmul.mubr.msk.f32.vlgmr.msra.gmra.mxu0 %vm992_vm1, %v5558_v43 }
0x1a15   : > { %15617 = vmatmul.mubr.msk.f32.vlgmr.msra.gmra.mxu1 %vm649_vm0, %v18356_v0  ;;  %15649 = vmatpush3.msra.mxu0 %v18102_v48 }
0x1a16   : > { %15623 = vmatprep.mubr.msk.f32.mxu1 %vm649_vm0, %v18361_v49  ;;  %15650 = vmatprep.subr.mxu0 %v18163_v50 }
0x1a17   : > { %15651 = vmatpush3.msra.mxu0 %v18163_v50 }
0x1a18   : > { %15652 = vmatprep.subr.mxu0 %v18167_v10 }
0x1a19   : > { %15653 = vmatpush3.msra.mxu0 %v18167_v10 }
0x1a1a   : > { %15654 = vmatprep.subr.mxu0 %v18171_v30 }
0x1a1b   : > { %15655 = vmatpush3.msra.mxu0 %v18171_v30 }
0x1ad4   : > { %v15636_v13 = vpop.f32.mrf.mxu0 }
0x1ad5   : > { %v15618_v8 = vpop.f32.mrf.mxu1  ;;  %v5799_v11 = vadd.f32 %v15636_v13, %v5716_v23  ;;  %v5977_v23 = vmul.f32 %v18346_v55, %v18231_v46  ;;  %v17109_v55 = vmov 5  }
0x1ad6   : > { %15619 = vmatprep.subr.mxu1 %v15618_v8  ;;  %v5789_v62 = vpop.f32.mrf.mxu0  ;;  %16585 = vset.pattern.permute.xlu0 %v17109_v55 }
0x1ad7   : > { %v5625_v26 = vpop.f32.mrf.mxu1  ;;  %15620 = vmatpush3.msra.mxu1 %v15618_v8  ;;  %16586 = vset.pattern.permute.xlu1 %v17109_v55 }
0x1ad8   : > { %15621 = vmatprep.subr.mxu1 %v5625_v26 }
0x1ad9   : > { %15622 = vmatpush3.msra.mxu1 %v5625_v26 }
0x1ada   : > { %15624 = vmatmul.mubr.msk.f32.vlgmr.msra.gmra.mxu1 %vm649_vm0, %v18356_v0  ;;  %15637 = vmatprep.subr.mxu1 %v18177_v2 }
0x1adb   : > { %15638 = vmatpush3.msra.mxu1 %v18177_v2  ;;  %15645 = vmatprep.mubr.msk.f32.mxu1 %vm992_vm1, %v5625_v26 }
0x1adc   : > { %15639 = vmatprep.subr.mxu1 %v18182_v3 }
0x1add   : > { %15640 = vmatpush3.msra.mxu1 %v18182_v3 }
0x1ade   : > { %15641 = vmatprep.subr.mxu1 %v18186_v28 }
0x1adf   : > { %15642 = vmatpush3.msra.mxu1 %v18186_v28 }
0x1ae0   : > { %15643 = vmatprep.subr.mxu1 %v18190_v18 }
0x1ae1   : > { %15644 = vmatpush3.msra.mxu1 %v18190_v18 }
0x1ae2   : > { %15646 = vmatmul.mubr.msk.f32.vlgmr.msra.gmra.mxu1 %vm992_vm1, %v15618_v8  ;;  %v5803_v8 = vadd.f32 %v5801_v4, %v5799_v11  ;;  %v5978_v11 = vsub.f32 1.0, %v18350_v33  ;;  %v5976_v4 = vmul.f32 %v18350_v33, %v18237_v37 }
0x1ae3   : > { %15663 = vmatprep.mubr.msk.f32.mxu1 %vm649_vm0, %v18361_v49 }
0x1b9a   : > { %v15625_v27 = vpop.f32.mrf.mxu1 }
0x1b9b   : > { %v5710_v36 = vmul.f32 2.0, %v15625_v27 }
0x1b9c   : > { %v5700_v35 = vpop.f32.mrf.mxu1 }
0x1b9d   : > { %v5709_v24 = vmul.f32 2.0, %v5700_v35  ;;  %v5712_v38 = vsub.f32 %v5710_v36, %v5558_v43  ;;  %v5798_v43 = vadd.f32 %v5789_v62, %v5715_v31  ;;  %v5887_v35 = vmul.f32 %v18217_v57, %v18340_v41 }
0x1b9f   : > { %v5711_v6 = vsub.f32 %v5709_v24, %v5557_v39  ;;  %v5800_v39 = vmul.f32 %v18211_v32, %v18334_v51 }
0x1ba1   : > { %15656 = vmatprep.mubr.msk.f32.mxu0 %vm992_vm1, %v5711_v6  ;;  %v5802_v27 = vadd.f32 %v5800_v39, %v5798_v43 }
0x1ba2   : > { %15657 = vmatmul.mubr.msk.f32.vlgmr.msra.gmra.mxu0 %vm992_vm1, %v5712_v38  ;;  %v15647_v52 = vpop.f32.mrf.mxu1 }
0x1ba3   : > { %15677 = vmatprep.mubr.msk.f32.mxu0 %vm649_vm0, %v18361_v49  ;;  %v5886_v26 = vadd.f32 %v15647_v52, %v5803_v8 }
0x1ba4   : > { %v5876_v45 = vpop.f32.mrf.mxu1 }
0x1ba5   : > { %v5885_v36 = vadd.f32 %v5876_v45, %v5802_v27  ;;  %v5890_v24 = vadd.f32 %v5888_v5, %v5886_v26 }
0x1ba7   : > { %v5889_v63 = vadd.f32 %v5887_v35, %v5885_v36 }
0x1c62   : > { %v15658_v6 = vpop.f32.mrf.mxu0 }
0x1c63   : > { %v5973_v38 = vadd.f32 %v15658_v6, %v5890_v24 }
0x1c64   : > { %v5963_v29 = vpop.f32.mrf.mxu0 }
0x1c65   : > { %16653 = vtanh.f32 %v5973_v38  ;;  %v5972_v13 = vadd.f32 %v5963_v29, %v5889_v63 }
0x1c67   : > { %16655 = vtanh.f32 %v5972_v13  ;;  %v20011_v13 = vld [vmem:[#allocation27_spill] sm:$0xff] }
0x1c72   : > { %v16654_v51 = vpop.eup %16653 }
0x1c73   : > { %5984 = vrot.lane.b32.xlu0 %v16654_v51, %s17098_s18 }
0x1c74   : > { %v16656_v40 = vpop.eup %16655 }
0x1c75   : > { %5982 = vrot.lane.b32.xlu1 %v16656_v40, %s17098_s18 }
0x1c77   : > { %5994 = vrot.lane.b32.xlu0 %v17971_v42, %s17108_s30 }
0x1c79   : > { %5992 = vrot.lane.b32.xlu1 %v17975_v7, %s17108_s30 }
0x1ce5   : > { %v5985_v41 = vpop.permute.xlu0 %5984 }
0x1ce6   : > { %v5989_v62 = vmul.f32 %v5985_v41, %v5979_v1 }
0x1ce7   : > { %v5983_v31 = vpop.permute.xlu1 %5982 }
0x1ce8   : > { %v18411_v52 = vadd.f32 %v5989_v62, %v5977_v23  ;;  %v5988_v43 = vmul.f32 %v5983_v31, %v5978_v11 }
0x1ce9   : > { %v18415_v39 = vpop.permute.xlu0 %5994 }
0x1cea   : > { %v18417_v8 = vadd.f32 %v5988_v43, %v5976_v4  ;;  %6156 = vrot.lane.b32.xlu0 %v18411_v52, %s17100_s17  ;;  %15659 = vmatprep.subr.mxu1 %v18415_v39 }
0x1ceb   : > { %15660 = vmatpush3.msra.mxu1 %v18415_v39  ;;  %v18423_v46 = vpop.permute.xlu1 %5992 }
0x1cec   : > { %6154 = vrot.lane.b32.xlu1 %v18417_v8, %s17100_s17  ;;  %15661 = vmatprep.subr.mxu1 %v18423_v46 }
0x1ced   : > { %15662 = vmatpush3.msra.mxu1 %v18423_v46 }
0x1cee   : > { %15664 = vmatmul.mubr.msk.f32.vlgmr.msra.gmra.mxu1 %vm649_vm0, %v18356_v0  ;;  %6319 = vperm.xlu0 %16585, %v17971_v42  }
0x1cef   : > { %15670 = vmatprep.mubr.msk.f32.mxu1 %vm649_vm0, %v18361_v49 }
0x1cf0   : > { %6315 = vperm.xlu1 %16586, %v17975_v7  }
0x1cf2   : > { %16588 = vset.pattern.permute.xlu0 %v20003_v44 }
0x1cf4   : > { %16587 = vset.pattern.permute.xlu1 %v20003_v44 }
0x1d5c   : > { %v18437_v37 = vpop.permute.xlu0 %6156 }
0x1d5d   : > { %15673 = vmatprep.subr.mxu0 %v18437_v37 }
0x1d5e   : > { %15674 = vmatpush3.msra.mxu0 %v18437_v37  ;;  %v18441_v33 = vpop.permute.xlu1 %6154 }
0x1d5f   : > { %15675 = vmatprep.subr.mxu0 %v18441_v33 }
0x1d60   : > { %15676 = vmatpush3.msra.mxu0 %v18441_v33 }
0x1d61   : > { %15678 = vmatmul.mubr.msk.f32.vlgmr.msra.gmra.mxu0 %vm649_vm0, %v18356_v0  ;;  %15687 = vmatprep.subr.mxu0 %v18018_v15 }
0x1d62   : > { %15688 = vmatpush3.msra.mxu0 %v18018_v15  ;;  %15695 = vmatprep.mubr.msk.f32.mxu0 %vm992_vm1, %v18441_v33 }
0x1d63   : > { %15689 = vmatprep.subr.mxu0 %v18024_v19 }
0x1d64   : > { %15690 = vmatpush3.msra.mxu0 %v18024_v19 }
0x1d65   : > { %15691 = vmatprep.subr.mxu0 %v18028_v20 }
0x1d66   : > { %15692 = vmatpush3.msra.mxu0 %v18028_v20 }
0x1d67   : > { %15693 = vmatprep.subr.mxu0 %v18032_v16 }
0x1d68   : > { %15694 = vmatpush3.msra.mxu0 %v18032_v16 }
0x1d69   : > { %15696 = vmatmul.mubr.msk.f32.vlgmr.msra.gmra.mxu0 %vm992_vm1, %v18437_v37  ;;  %15709 = vmatprep.subr.mxu0 %v18038_v17  ;;  %v18502_v5 = vpop.permute.xlu0 %6319 }
0x1d6a   : > { %15710 = vmatpush3.msra.mxu0 %v18038_v17 }
0x1d6b   : > { %15711 = vmatprep.subr.mxu0 %v18042_v21  ;;  %v18500_v27 = vpop.permute.xlu1 %6315 }
0x1d6c   : > { %15712 = vmatpush3.msra.mxu0 %v18042_v21 }
0x1d6d   : > { %15713 = vmatprep.subr.mxu0 %v18046_v22 }
0x1d6e   : > { %15714 = vmatpush3.msra.mxu0 %v18046_v22 }
0x1d6f   : > { %15715 = vmatprep.subr.mxu0 %v18050_v53 }
0x1d70   : > { %15716 = vmatpush3.msra.mxu0 %v18050_v53 }
0x1d71   : > { %15734 = vmatprep.subr.mxu0 %v18054_v54 }
0x1dae   : > { %v15665_v42 = vpop.f32.mrf.mxu1 }
0x1daf   : > { %6414 = vperm.xlu1 %16587, %v15665_v42   ;;  %15666 = vmatprep.subr.mxu1 %v15665_v42 }
0x1db0   : > { %v6064_v7 = vpop.f32.mrf.mxu1  ;;  %15667 = vmatpush3.msra.mxu1 %v15665_v42 }
0x1db1   : > { %6409 = vperm.xlu0 %16588, %v6064_v7   ;;  %15668 = vmatprep.subr.mxu1 %v6064_v7 }
0x1db2   : > { %15669 = vmatpush3.msra.mxu1 %v6064_v7 }
0x1db3   : > { %15671 = vmatmul.mubr.msk.f32.vlgmr.msra.gmra.mxu1 %vm649_vm0, %v18356_v0 }
0x1db4   : > { %15684 = vmatprep.mubr.msk.f32.mxu1 %vm649_vm0, %v18361_v49 }
0x1e21   : > { %v15679_v15 = vpop.f32.mrf.mxu0 }
0x1e22   : > { %15680 = vmatprep.subr.mxu1 %v15679_v15 }
0x1e23   : > { %v6226_v19 = vpop.f32.mrf.mxu0  ;;  %15681 = vmatpush3.msra.mxu1 %v15679_v15 }
0x1e24   : > { %15682 = vmatprep.subr.mxu1 %v6226_v19 }
0x1e25   : > { %15683 = vmatpush3.msra.mxu1 %v6226_v19 }
0x1e26   : > { %15685 = vmatmul.mubr.msk.f32.vlgmr.msra.gmra.mxu1 %vm649_vm0, %v18356_v0  ;;  %15698 = vmatprep.subr.mxu1 %v18063_v58 }
0x1e27   : > { %15699 = vmatpush3.msra.mxu1 %v18063_v58  ;;  %15706 = vmatprep.mubr.msk.f32.mxu1 %vm992_vm1, %v6226_v19 }
0x1e28   : > { %15700 = vmatprep.subr.mxu1 %v18068_v59 }
0x1e29   : > { %15701 = vmatpush3.msra.mxu1 %v18068_v59  ;;  %v15697_v35 = vpop.f32.mrf.mxu0 }
0x1e2a   : > { %15702 = vmatprep.subr.mxu1 %v18072_v60  ;;  %v18506_v36 = vpop.permute.xlu1 %6414 }
0x1e2b   : > { %15703 = vmatpush3.msra.mxu1 %v18072_v60  ;;  %v6396_v38 = vpop.f32.mrf.mxu0  ;;  %v6418_v51 = vmul.f32 %v20011_v13, %v18506_v36 }
0x1e2c   : > { %15704 = vmatprep.subr.mxu1 %v18076_v61  ;;  %v18514_v63 = vpop.permute.xlu0 %6409 }
0x1e2d   : > { %15705 = vmatpush3.msra.mxu1 %v18076_v61  ;;  %v6417_v41 = vmul.f32 %v20011_v13, %v18514_v63 }
0x1e2e   : > { %15707 = vmatmul.mubr.msk.f32.vlgmr.msra.gmra.mxu1 %vm992_vm1, %v15679_v15 }
0x1e2f   : > { %15724 = vmatprep.mubr.msk.f32.mxu1 %vm649_vm0, %v18361_v49 }
0x1e73   : > { %v15672_v20 = vpop.f32.mrf.mxu1 }
0x1e74   : > { %v6149_v16 = vmul.f32 2.0, %v15672_v20 }
0x1e75   : > { %v6139_v17 = vpop.f32.mrf.mxu1 }
0x1e76   : > { %v6151_v21 = vsub.f32 %v6149_v16, %v18415_v39  ;;  %v6148_v22 = vmul.f32 2.0, %v6139_v17 }
0x1e78   : > { %6511 = vperm.xlu1 %16587, %v6151_v21   ;;  %v6150_v53 = vsub.f32 %v6148_v22, %v18423_v46 }
0x1e7c   : > { %6506 = vperm.xlu1 %16587, %v6150_v53  }
0x1ee6   : > { %v15686_v58 = vpop.f32.mrf.mxu1 }
0x1ee7   : > { %v6311_v59 = vmul.f32 2.0, %v15686_v58 }
0x1ee8   : > { %v6301_v60 = vpop.f32.mrf.mxu1 }
0x1ee9   : > { %v6310_v45 = vmul.f32 2.0, %v6301_v60  ;;  %v6313_v26 = vsub.f32 %v6311_v59, %v18437_v37 }
0x1eeb   : > { %v6312_v61 = vsub.f32 %v6310_v45, %v18441_v33 }
0x1eed   : > { %15717 = vmatprep.mubr.msk.f32.mxu0 %vm992_vm1, %v6312_v61 }
0x1eee   : > { %15718 = vmatmul.mubr.msk.f32.vlgmr.msra.gmra.mxu0 %vm992_vm1, %v6313_v26  ;;  %v15708_v40 = vpop.f32.mrf.mxu1 }
0x1eef   : > { %15735 = vmatpush3.msra.mxu0 %v18054_v54  ;;  %v6323_v54 = vmul.f32 %v18112_v25, %v18502_v5 }
0x1ef0   : > { %15736 = vmatprep.subr.mxu0 %v18090_v47  ;;  %v6493_v11 = vpop.f32.mrf.mxu1 }
0x1ef1   : > { %15737 = vmatpush3.msra.mxu0 %v18090_v47  ;;  %v6322_v47 = vmul.f32 %v18112_v25, %v18500_v27 }
0x1ef2   : > { %15738 = vmatprep.subr.mxu0 %v18094_v14 }
0x1ef3   : > { %15739 = vmatpush3.msra.mxu0 %v18094_v14  ;;  %v20010_v14 = vld [vmem:[#allocation26_spill] sm:$0xff]  ;;  %v18511_v6 = vpop.permute.xlu1 %6511 }
0x1ef4   : > { %15740 = vmatprep.subr.mxu0 %v18098_v12  ;;  %v6325_v24 = vadd.f32 %v20010_v14, %v6323_v54  ;;  %v6515_v62 = vmul.f32 %v18142_v9, %v18511_v6 }
0x1ef5   : > { %15741 = vmatpush3.msra.mxu0 %v18098_v12  ;;  %v6324_v12 = vadd.f32 %v20010_v14, %v6322_v47  ;;  %v6857_v14 = vmul.f32 %v18211_v32, %v18506_v36 }
0x1ef6   : > { %15756 = vmatprep.subr.mxu0 %v18102_v48  ;;  %v6406_v29 = vadd.f32 %v15697_v35, %v6325_v24 }
0x1ef7   : > { %v6405_v1 = vadd.f32 %v6396_v38, %v6324_v12  ;;  %v18520_v25 = vpop.permute.xlu1 %6506  ;;  %v6856_v12 = vmul.f32 %v18211_v32, %v18514_v63 }
0x1ef8   : > { %v6420_v23 = vadd.f32 %v6418_v51, %v6406_v29  ;;  %v6514_v43 = vmul.f32 %v18142_v9, %v18520_v25 }
0x1ef9   : > { %v6419_v4 = vadd.f32 %v6417_v41, %v6405_v1 }
0x1efa   : > { %v6503_v31 = vadd.f32 %v15708_v40, %v6420_v23 }
0x1efb   : > { %v6502_v39 = vadd.f32 %v6493_v11, %v6419_v4 }
0x1efc   : > { %v6517_v46 = vadd.f32 %v6515_v62, %v6503_v31 }
0x1efd   : > { %v6516_v7 = vadd.f32 %v6514_v43, %v6502_v39 }
0x1fae   : > { %v15719_v55 = vpop.f32.mrf.mxu0 }
0x1faf   : > { %v6600_v42 = vadd.f32 %v15719_v55, %v6517_v46 }
0x1fb0   : > { %v6590_v15 = vpop.f32.mrf.mxu0 }
0x1fb1   : > { %v14146_v19 = vmul.f32 -1.442695, %v6600_v42  ;;  %v6599_v20 = vadd.f32 %v6590_v15, %v6516_v7  ;;  %v17111_v15 = vmov 6  }
0x1fb2   : > { %16589 = vset.pattern.permute.xlu0 %v17111_v15  ;;  %16590 = vset.pattern.permute.xlu1 %v17111_v15  ;;  %v18753_v15 = vld [vmem:[%s19951_s2 + $0x2] ss:$0 sm:$0xff] }
0x1fb3   : > { %16657 = vpow2.f32 %v14146_v19  ;;  %v14145_v16 = vmul.f32 -1.442695, %v6599_v20  ;;  %v18629_v20 = vld [vmem:[#allocation5 + $0x18] sm:$0xff] }
0x1fb5   : > { %16659 = vpow2.f32 %v14145_v16  ;;  %v18635_v16 = vld [vmem:[#allocation5 + $0x10] sm:$0xff] }
0x1fc0   : > { %v16658_v17 = vpop.eup %16657 }
0x1fc1   : > { %v6608_v21 = vadd.f32 1.0, %v16658_v17  ;;  %v18639_v17 = vld [vmem:[#allocation5 + $0x8] sm:$0xff] }
0x1fc2   : > { %v16660_v22 = vpop.eup %16659 }
0x1fc3   : > { %16661 = vrcp.f32 %v6608_v21  ;;  %v6607_v53 = vadd.f32 1.0, %v16660_v22  ;;  %v18643_v21 = vld [vmem:[#allocation5] sm:$0xff]  ;;  %v18649_v22 = vld [vmem:[#allocation5 + $0x58] sm:$0xff] }
0x1fc5   : > { %16663 = vrcp.f32 %v6607_v53  ;;  %v18653_v53 = vld [vmem:[#allocation5 + $0x50] sm:$0xff] }
0x1fd0   : > { %v18526_v58 = vpop.eup %16661 }
0x1fd1   : > { %v6614_v9 = vmul.f32 %v18526_v58, %v18437_v37  ;;  %v7033_v11 = vmul.f32 %v18526_v58, %v18411_v52 }
0x1fd2   : > { %v18530_v59 = vpop.eup %16663 }
0x1fd3   : > { %15720 = vmatprep.subr.mxu1 %v6614_v9  ;;  %v6613_v60 = vmul.f32 %v18530_v59, %v18441_v33  ;;  %v7034_v4 = vsub.f32 1.0, %v18530_v59  ;;  %v7032_v46 = vmul.f32 %v18530_v59, %v18417_v8  ;;  %v18665_v59 = vld [vmem:[#allocation10 + $0x18] sm:$0xff] }
0x1fd4   : > { %15721 = vmatpush3.msra.mxu1 %v6614_v9 }
0x1fd5   : > { %15722 = vmatprep.subr.mxu1 %v6613_v60  ;;  %15742 = vmatprep.mubr.msk.f32.mxu0 %vm992_vm1, %v6613_v60 }
0x1fd6   : > { %15723 = vmatpush3.msra.mxu1 %v6613_v60  ;;  %15743 = vmatmul.mubr.msk.f32.vlgmr.msra.gmra.mxu0 %vm992_vm1, %v6614_v9 }
0x1fd7   : > { %15725 = vmatmul.mubr.msk.f32.vlgmr.msra.gmra.mxu1 %vm649_vm0, %v18356_v0  ;;  %15757 = vmatpush3.msra.mxu0 %v18102_v48 }
0x1fd8   : > { %15731 = vmatprep.mubr.msk.f32.mxu1 %vm649_vm0, %v18361_v49  ;;  %15758 = vmatprep.subr.mxu0 %v18163_v50 }
0x1fd9   : > { %15759 = vmatpush3.msra.mxu0 %v18163_v50 }
0x1fda   : > { %15760 = vmatprep.subr.mxu0 %v18167_v10 }
0x1fdb   : > { %15761 = vmatpush3.msra.mxu0 %v18167_v10 }
0x1fdc   : > { %15762 = vmatprep.subr.mxu0 %v18171_v30 }
0x1fdd   : > { %15763 = vmatpush3.msra.mxu0 %v18171_v30 }
0x2097   : > { %v15726_v37 = vpop.f32.mrf.mxu1 }
0x2098   : > { %15727 = vmatprep.subr.mxu1 %v15726_v37 }
0x2099   : > { %v6681_v33 = vpop.f32.mrf.mxu1  ;;  %15728 = vmatpush3.msra.mxu1 %v15726_v37 }
0x209a   : > { %15729 = vmatprep.subr.mxu1 %v6681_v33 }
0x209b   : > { %15730 = vmatpush3.msra.mxu1 %v6681_v33 }
0x209c   : > { %15732 = vmatmul.mubr.msk.f32.vlgmr.msra.gmra.mxu1 %vm649_vm0, %v18356_v0  ;;  %15745 = vmatprep.subr.mxu1 %v18177_v2 }
0x209d   : > { %15746 = vmatpush3.msra.mxu1 %v18177_v2  ;;  %15753 = vmatprep.mubr.msk.f32.mxu1 %vm992_vm1, %v6681_v33 }
0x209e   : > { %15747 = vmatprep.subr.mxu1 %v18182_v3 }
0x209f   : > { %15748 = vmatpush3.msra.mxu1 %v18182_v3  ;;  %v6770_v3 = vmul.f32 %v18201_v56, %v18502_v5 }
0x20a0   : > { %15749 = vmatprep.subr.mxu1 %v18186_v28 }
0x20a1   : > { %15750 = vmatpush3.msra.mxu1 %v18186_v28  ;;  %v15744_v28 = vpop.f32.mrf.mxu0  ;;  %v6772_v61 = vadd.f32 %v18207_v34, %v6770_v3 }
0x20a2   : > { %15751 = vmatprep.subr.mxu1 %v18190_v18 }
0x20a3   : > { %15752 = vmatpush3.msra.mxu1 %v18190_v18  ;;  %v6769_v18 = vmul.f32 %v18201_v56, %v18500_v27  ;;  %v6845_v26 = vpop.f32.mrf.mxu0  ;;  %v6855_v54 = vadd.f32 %v15744_v28, %v6772_v61  ;;  %v6944_v56 = vmul.f32 %v18217_v57, %v18511_v6  ;;  %v18582_v6 = vld [vmem:[%s17361_s20 + $0x8] sm:$0xff] }
0x20a4   : > { %15754 = vmatmul.mubr.msk.f32.vlgmr.msra.gmra.mxu1 %vm992_vm1, %v15726_v37 }
0x20a5   : > { %15771 = vmatprep.mubr.msk.f32.mxu1 %vm649_vm0, %v18361_v49  ;;  %v6771_v47 = vadd.f32 %v18207_v34, %v6769_v18  ;;  %v6859_v38 = vadd.f32 %v6857_v14, %v6855_v54  ;;  %v6943_v34 = vmul.f32 %v18217_v57, %v18520_v25  ;;  %v18586_v57 = vld [vmem:[%s17361_s20] sm:$0xff]  ;;  %v7035_v25 = vsub.f32 1.0, %v18526_v58 }
0x20a6   : > { %v18657_v58 = vld [vmem:[#allocation5 + $0x48] sm:$0xff] }
0x20a7   : > { %v6854_v24 = vadd.f32 %v6845_v26, %v6771_v47 }
0x20a9   : > { %v6858_v13 = vadd.f32 %v6856_v12, %v6854_v24 }
0x215c   : > { %v15733_v48 = vpop.f32.mrf.mxu1 }
0x215d   : > { %v6766_v50 = vmul.f32 2.0, %v15733_v48 }
0x215e   : > { %v6756_v10 = vpop.f32.mrf.mxu1 }
0x215f   : > { %v6765_v30 = vmul.f32 2.0, %v6756_v10  ;;  %v6768_v45 = vsub.f32 %v6766_v50, %v6614_v9  ;;  %v18661_v9 = vld [vmem:[#allocation5 + $0x40] sm:$0xff]  ;;  %v18674_v50 = vld [vmem:[#allocation5 + $0x38] sm:$0xff]  ;;  %v18679_v10 = vld [vmem:[#allocation5 + $0x30] sm:$0xff] }
0x2161   : > { %v6767_v2 = vsub.f32 %v6765_v30, %v6613_v60  ;;  %v18683_v30 = vld [vmem:[#allocation5 + $0x28] sm:$0xff] }
0x2163   : > { %15764 = vmatprep.mubr.msk.f32.mxu0 %vm992_vm1, %v6767_v2  ;;  %v18687_v2 = vld [vmem:[#allocation5 + $0x20] sm:$0xff] }
0x2164   : > { %15765 = vmatmul.mubr.msk.f32.vlgmr.msra.gmra.mxu0 %vm992_vm1, %v6768_v45  ;;  %v15755_v35 = vpop.f32.mrf.mxu1 }
0x2165   : > { %15785 = vmatprep.mubr.msk.f32.mxu0 %vm649_vm0, %v18361_v49  ;;  %v6942_v29 = vadd.f32 %v15755_v35, %v6859_v38  ;;  %v18701_v38 = vld [vmem:[#allocation10 + $0x10] sm:$0xff] }
0x2166   : > { %v6932_v5 = vpop.f32.mrf.mxu1 }
0x2167   : > { %v6941_v27 = vadd.f32 %v6932_v5, %v6858_v13  ;;  %v6946_v51 = vadd.f32 %v6944_v56, %v6942_v29  ;;  %v18705_v5 = vld [vmem:[#allocation10 + $0x8] sm:$0xff]  ;;  %v18709_v29 = vld [vmem:[#allocation10] sm:$0xff]  ;;  %v18713_v13 = vld [vmem:[#allocation10 + $0x58] sm:$0xff] }
0x2169   : > { %v6945_v1 = vadd.f32 %v6943_v34, %v6941_v27  ;;  %v18723_v34 = vld [vmem:[%s19951_s2] ss:$0 sm:$0xff] }
0x2224   : > { %v15766_v40 = vpop.f32.mrf.mxu0 }
0x2225   : > { %v7029_v36 = vadd.f32 %v15766_v40, %v6946_v51 }
0x2226   : > { %v7019_v41 = vpop.f32.mrf.mxu0 }
0x2227   : > { %16665 = vtanh.f32 %v7029_v36  ;;  %v7028_v32 = vadd.f32 %v7019_v41, %v6945_v1  ;;  %v18731_v41 = vld [vmem:[#allocation7] ss:$0 sm:$0xff] }
0x2229   : > { %16667 = vtanh.f32 %v7028_v32 }
0x2234   : > { %v16666_v63 = vpop.eup %16665 }
0x2235   : > { %7040 = vrot.lane.b32.xlu0 %v16666_v63, %s17098_s18 }
0x2236   : > { %v16668_v23 = vpop.eup %16667 }
0x2237   : > { %7038 = vrot.lane.b32.xlu1 %v16668_v23, %s17098_s18 }
0x2239   : > { %7050 = vrot.lane.b32.xlu0 %v18582_v6, %s17110_s29 }
0x223b   : > { %7048 = vrot.lane.b32.xlu1 %v18586_v57, %s17110_s29 }
0x22a7   : > { %v7041_v62 = vpop.permute.xlu0 %7040 }
0x22a8   : > { %v7045_v31 = vmul.f32 %v7041_v62, %v7035_v25 }
0x22a9   : > { %v7039_v43 = vpop.permute.xlu1 %7038 }
0x22aa   : > { %v18593_v39 = vadd.f32 %v7045_v31, %v7033_v11  ;;  %v7044_v55 = vmul.f32 %v7039_v43, %v7034_v4  ;;  %v18742_v31 = vld [vmem:[%s19951_s2 + $0x1] ss:$0 sm:$0xff] }
0x22ab   : > { %v18597_v42 = vpop.permute.xlu0 %7050 }
0x22ac   : > { %v18599_v7 = vadd.f32 %v7044_v55, %v7032_v46  ;;  %7212 = vrot.lane.b32.xlu0 %v18593_v39, %s17100_s17  ;;  %15767 = vmatprep.subr.mxu1 %v18597_v42 }
0x22ad   : > { %15768 = vmatpush3.msra.mxu1 %v18597_v42  ;;  %v18605_v52 = vpop.permute.xlu1 %7048 }
0x22ae   : > { %7210 = vrot.lane.b32.xlu1 %v18599_v7, %s17100_s17  ;;  %15769 = vmatprep.subr.mxu1 %v18605_v52 }
0x22af   : > { %15770 = vmatpush3.msra.mxu1 %v18605_v52 }
0x22b0   : > { %15772 = vmatmul.mubr.msk.f32.vlgmr.msra.gmra.mxu1 %vm649_vm0, %v18356_v0  ;;  %7375 = vperm.xlu0 %16589, %v18582_v6  }
0x22b1   : > { %15778 = vmatprep.mubr.msk.f32.mxu1 %vm649_vm0, %v18361_v49 }
0x22b2   : > { %7371 = vperm.xlu1 %16590, %v18586_v57  }
0x22b4   : > { %16592 = vset.pattern.permute.xlu0 %v20003_v44 }
0x22b6   : > { %16591 = vset.pattern.permute.xlu1 %v20003_v44 }
0x231e   : > { %v18619_v8 = vpop.permute.xlu0 %7212 }
0x231f   : > { %15781 = vmatprep.subr.mxu0 %v18619_v8 }
0x2320   : > { %15782 = vmatpush3.msra.mxu0 %v18619_v8  ;;  %v18623_v19 = vpop.permute.xlu1 %7210 }
0x2321   : > { %15783 = vmatprep.subr.mxu0 %v18623_v19 }
0x2322   : > { %15784 = vmatpush3.msra.mxu0 %v18623_v19 }
0x2323   : > { %15786 = vmatmul.mubr.msk.f32.vlgmr.msra.gmra.mxu0 %vm649_vm0, %v18356_v0  ;;  %15795 = vmatprep.subr.mxu0 %v18629_v20 }
0x2324   : > { %15796 = vmatpush3.msra.mxu0 %v18629_v20  ;;  %15803 = vmatprep.mubr.msk.f32.mxu0 %vm992_vm1, %v18623_v19 }
0x2325   : > { %15797 = vmatprep.subr.mxu0 %v18635_v16 }
0x2326   : > { %15798 = vmatpush3.msra.mxu0 %v18635_v16 }
0x2327   : > { %15799 = vmatprep.subr.mxu0 %v18639_v17 }
0x2328   : > { %15800 = vmatpush3.msra.mxu0 %v18639_v17 }
0x2329   : > { %15801 = vmatprep.subr.mxu0 %v18643_v21 }
0x232a   : > { %15802 = vmatpush3.msra.mxu0 %v18643_v21 }
0x232b   : > { %15804 = vmatmul.mubr.msk.f32.vlgmr.msra.gmra.mxu0 %vm992_vm1, %v18619_v8  ;;  %15817 = vmatprep.subr.mxu0 %v18649_v22  ;;  %v18718_v27 = vpop.permute.xlu0 %7375 }
0x232c   : > { %15818 = vmatpush3.msra.mxu0 %v18649_v22  ;;  %v7379_v51 = vmul.f32 %v18723_v34, %v18718_v27 }
0x232d   : > { %15819 = vmatprep.subr.mxu0 %v18653_v53  ;;  %v18716_v56 = vpop.permute.xlu1 %7371 }
0x232e   : > { %15820 = vmatpush3.msra.mxu0 %v18653_v53  ;;  %v7378_v36 = vmul.f32 %v18723_v34, %v18716_v56  ;;  %v7381_v32 = vadd.f32 %v18731_v41, %v7379_v51 }
0x232f   : > { %15821 = vmatprep.subr.mxu0 %v18657_v58 }
0x2330   : > { %15822 = vmatpush3.msra.mxu0 %v18657_v58  ;;  %v7380_v23 = vadd.f32 %v18731_v41, %v7378_v36 }
0x2331   : > { %15823 = vmatprep.subr.mxu0 %v18661_v9 }
0x2332   : > { %15824 = vmatpush3.msra.mxu0 %v18661_v9 }
0x2333   : > { %15842 = vmatprep.subr.mxu0 %v18665_v59 }
0x2370   : > { %v15773_v60 = vpop.f32.mrf.mxu1 }
0x2371   : > { %7470 = vperm.xlu1 %16591, %v15773_v60   ;;  %15774 = vmatprep.subr.mxu1 %v15773_v60 }
0x2372   : > { %v7120_v37 = vpop.f32.mrf.mxu1  ;;  %15775 = vmatpush3.msra.mxu1 %v15773_v60 }
0x2373   : > { %7465 = vperm.xlu0 %16592, %v7120_v37   ;;  %15776 = vmatprep.subr.mxu1 %v7120_v37 }
0x2374   : > { %15777 = vmatpush3.msra.mxu1 %v7120_v37 }
0x2375   : > { %15779 = vmatmul.mubr.msk.f32.vlgmr.msra.gmra.mxu1 %vm649_vm0, %v18356_v0 }
0x2376   : > { %15792 = vmatprep.mubr.msk.f32.mxu1 %vm649_vm0, %v18361_v49 }
0x23e3   : > { %v15787_v33 = vpop.f32.mrf.mxu0 }
0x23e4   : > { %15788 = vmatprep.subr.mxu1 %v15787_v33 }
0x23e5   : > { %v7282_v48 = vpop.f32.mrf.mxu0  ;;  %15789 = vmatpush3.msra.mxu1 %v15787_v33 }
0x23e6   : > { %15790 = vmatprep.subr.mxu1 %v7282_v48 }
0x23e7   : > { %15791 = vmatpush3.msra.mxu1 %v7282_v48 }
0x23e8   : > { %15793 = vmatmul.mubr.msk.f32.vlgmr.msra.gmra.mxu1 %vm649_vm0, %v18356_v0  ;;  %15806 = vmatprep.subr.mxu1 %v18674_v50 }
0x23e9   : > { %15807 = vmatpush3.msra.mxu1 %v18674_v50  ;;  %15814 = vmatprep.mubr.msk.f32.mxu1 %vm992_vm1, %v7282_v48 }
0x23ea   : > { %15808 = vmatprep.subr.mxu1 %v18679_v10 }
0x23eb   : > { %15809 = vmatpush3.msra.mxu1 %v18679_v10  ;;  %v15805_v1 = vpop.f32.mrf.mxu0 }
0x23ec   : > { %15810 = vmatprep.subr.mxu1 %v18683_v30  ;;  %v18727_v40 = vpop.permute.xlu1 %7470  ;;  %v7462_v11 = vadd.f32 %v15805_v1, %v7381_v32 }
0x23ed   : > { %15811 = vmatpush3.msra.mxu1 %v18683_v30  ;;  %v7452_v25 = vpop.f32.mrf.mxu0  ;;  %v7474_v4 = vmul.f32 %v18742_v31, %v18727_v40 }
0x23ee   : > { %15812 = vmatprep.subr.mxu1 %v18687_v2  ;;  %v18737_v62 = vpop.permute.xlu0 %7465  ;;  %v7461_v46 = vadd.f32 %v7452_v25, %v7380_v23 }
0x23ef   : > { %15813 = vmatpush3.msra.mxu1 %v18687_v2  ;;  %v7473_v55 = vmul.f32 %v18742_v31, %v18737_v62 }
0x23f0   : > { %15815 = vmatmul.mubr.msk.f32.vlgmr.msra.gmra.mxu1 %vm992_vm1, %v15787_v33 }
0x23f1   : > { %15832 = vmatprep.mubr.msk.f32.mxu1 %vm649_vm0, %v18361_v49  ;;  %v7475_v48 = vadd.f32 %v7473_v55, %v7461_v46  ;;  %v18788_v46 = vld [vmem:[#allocation10 + $0x38] sm:$0xff]  ;;  %v18793_v55 = vld [vmem:[#allocation10 + $0x30] sm:$0xff] }
0x2435   : > { %v15780_v45 = vpop.f32.mrf.mxu1 }
0x2436   : > { %v7205_v3 = vmul.f32 2.0, %v15780_v45 }
0x2437   : > { %v7195_v28 = vpop.f32.mrf.mxu1 }
0x2438   : > { %v7207_v18 = vsub.f32 %v7205_v3, %v18597_v42  ;;  %v7204_v61 = vmul.f32 2.0, %v7195_v28 }
0x243a   : > { %7567 = vperm.xlu1 %16591, %v7207_v18   ;;  %v7206_v26 = vsub.f32 %v7204_v61, %v18605_v52  ;;  %v7476_v52 = vadd.f32 %v7474_v4, %v7462_v11  ;;  %v18782_v11 = vld [vmem:[#allocation10 + $0x40] sm:$0xff] }
0x243e   : > { %7562 = vperm.xlu1 %16591, %v7206_v26  }
0x24a8   : > { %v15794_v54 = vpop.f32.mrf.mxu1 }
0x24a9   : > { %v7367_v47 = vmul.f32 2.0, %v15794_v54 }
0x24aa   : > { %v7357_v35 = vpop.f32.mrf.mxu1 }
0x24ab   : > { %v7366_v14 = vmul.f32 2.0, %v7357_v35  ;;  %v7369_v12 = vsub.f32 %v7367_v47, %v18619_v8 }
0x24ad   : > { %v7368_v24 = vsub.f32 %v7366_v14, %v18623_v19 }
0x24af   : > { %15825 = vmatprep.mubr.msk.f32.mxu0 %vm992_vm1, %v7368_v24 }
0x24b0   : > { %15826 = vmatmul.mubr.msk.f32.vlgmr.msra.gmra.mxu0 %vm992_vm1, %v7369_v12  ;;  %v15816_v43 = vpop.f32.mrf.mxu1 }
0x24b1   : > { %15843 = vmatpush3.msra.mxu0 %v18665_v59  ;;  %v7559_v33 = vadd.f32 %v15816_v43, %v7476_v52  ;;  %v18797_v52 = vld [vmem:[#allocation10 + $0x28] sm:$0xff] }
0x24b2   : > { %15844 = vmatprep.subr.mxu0 %v18701_v38  ;;  %v7549_v37 = vpop.f32.mrf.mxu1 }
0x24b3   : > { %15845 = vmatpush3.msra.mxu0 %v18701_v38  ;;  %v7558_v3 = vadd.f32 %v7549_v37, %v7475_v48 }
0x24b4   : > { %15846 = vmatprep.subr.mxu0 %v18705_v5 }
0x24b5   : > { %15847 = vmatpush3.msra.mxu0 %v18705_v5  ;;  %v18734_v63 = vpop.permute.xlu1 %7567 }
0x24b6   : > { %15848 = vmatprep.subr.mxu0 %v18709_v29  ;;  %v7571_v60 = vmul.f32 %v18753_v15, %v18734_v63 }
0x24b7   : > { %15849 = vmatpush3.msra.mxu0 %v18709_v29 }
0x24b8   : > { %15864 = vmatprep.subr.mxu0 %v18713_v13  ;;  %v7573_v28 = vadd.f32 %v7571_v60, %v7559_v33 }
0x24b9   : > { %v18748_v42 = vpop.permute.xlu1 %7562 }
0x24ba   : > { %v7570_v45 = vmul.f32 %v18753_v15, %v18748_v42 }
0x24bc   : > { %v7572_v26 = vadd.f32 %v7570_v45, %v7558_v3 }
0x2570   : > { %v15827_v18 = vpop.f32.mrf.mxu0 }
0x2571   : > { %v7656_v61 = vadd.f32 %v15827_v18, %v7573_v28  ;;  %v18812_v28 = vld [vmem:[#allocation8] ss:$0 sm:$0xff] }
0x2572   : > { %v7646_v54 = vpop.f32.mrf.mxu0  ;;  %v7826_v18 = vmul.f32 %v18812_v28, %v18718_v27 }
0x2573   : > { %v14172_v47 = vmul.f32 -1.442695, %v7656_v61  ;;  %v7655_v35 = vadd.f32 %v7646_v54, %v7572_v26  ;;  %v7825_v26 = vmul.f32 %v18812_v28, %v18716_v56  ;;  %v18818_v54 = vld [vmem:[#allocation11] ss:$0 sm:$0xff] }
0x2575   : > { %16669 = vpow2.f32 %v14172_v47  ;;  %v14171_v14 = vmul.f32 -1.442695, %v7655_v35  ;;  %v7828_v47 = vadd.f32 %v18818_v54, %v7826_v18 }
0x2577   : > { %16671 = vpow2.f32 %v14171_v14 }
0x2582   : > { %v16670_v24 = vpop.eup %16669 }
0x2583   : > { %v7664_v12 = vadd.f32 1.0, %v16670_v24  ;;  %v7827_v24 = vadd.f32 %v18818_v54, %v7825_v26 }
0x2584   : > { %v16672_v51 = vpop.eup %16671 }
0x2585   : > { %16673 = vrcp.f32 %v7664_v12  ;;  %v7663_v36 = vadd.f32 1.0, %v16672_v51  ;;  %v18822_v51 = vld [vmem:[#allocation8 + $0x1] ss:$0 sm:$0xff] }
0x2586   : > { %v7912_v27 = vmul.f32 %v18822_v51, %v18737_v62 }
0x2587   : > { %16675 = vrcp.f32 %v7663_v36 }
0x2592   : > { %v18759_v1 = vpop.eup %16673 }
0x2593   : > { %v7670_v32 = vmul.f32 %v18759_v1, %v18619_v8  ;;  %v18774_v8 = vld [vmem:[#allocation10 + $0x50] sm:$0xff] }
0x2594   : > { %v18763_v23 = vpop.eup %16675 }
0x2595   : > { %15828 = vmatprep.subr.mxu1 %v7670_v32  ;;  %v7669_v25 = vmul.f32 %v18763_v23, %v18623_v19  ;;  %v18778_v19 = vld [vmem:[#allocation10 + $0x48] sm:$0xff] }
0x2596   : > { %15829 = vmatpush3.msra.mxu1 %v7670_v32 }
0x2597   : > { %15830 = vmatprep.subr.mxu1 %v7669_v25  ;;  %15850 = vmatprep.mubr.msk.f32.mxu0 %vm992_vm1, %v7669_v25 }
0x2598   : > { %15831 = vmatpush3.msra.mxu1 %v7669_v25  ;;  %15851 = vmatmul.mubr.msk.f32.vlgmr.msra.gmra.mxu0 %vm992_vm1, %v7670_v32 }
0x2599   : > { %15833 = vmatmul.mubr.msk.f32.vlgmr.msra.gmra.mxu1 %vm649_vm0, %v18356_v0  ;;  %15865 = vmatpush3.msra.mxu0 %v18713_v13 }
0x259a   : > { %15839 = vmatprep.mubr.msk.f32.mxu1 %vm649_vm0, %v18361_v49  ;;  %15866 = vmatprep.subr.mxu0 %v18774_v8 }
0x259b   : > { %15867 = vmatpush3.msra.mxu0 %v18774_v8 }
0x259c   : > { %15868 = vmatprep.subr.mxu0 %v18778_v19 }
0x259d   : > { %15869 = vmatpush3.msra.mxu0 %v18778_v19 }
0x259e   : > { %15870 = vmatprep.subr.mxu0 %v18782_v11 }
0x259f   : > { %15871 = vmatpush3.msra.mxu0 %v18782_v11 }
0x2658   : > { %v15852_v61 = vpop.f32.mrf.mxu0 }
0x2659   : > { %v15834_v4 = vpop.f32.mrf.mxu1  ;;  %v7911_v14 = vadd.f32 %v15852_v61, %v7828_v47  ;;  %v8089_v47 = vmul.f32 %v18759_v1, %v18593_v39 }
0x265a   : > { %15835 = vmatprep.subr.mxu1 %v15834_v4  ;;  %v7901_v35 = vpop.f32.mrf.mxu0 }
0x265b   : > { %v7737_v43 = vpop.f32.mrf.mxu1  ;;  %15836 = vmatpush3.msra.mxu1 %v15834_v4  ;;  %v7910_v36 = vadd.f32 %v7901_v35, %v7827_v24 }
0x265c   : > { %15837 = vmatprep.subr.mxu1 %v7737_v43 }
0x265d   : > { %15838 = vmatpush3.msra.mxu1 %v7737_v43 }
0x265e   : > { %15840 = vmatmul.mubr.msk.f32.vlgmr.msra.gmra.mxu1 %vm649_vm0, %v18356_v0  ;;  %15853 = vmatprep.subr.mxu1 %v18788_v46  ;;  %v18801_v0 = vld [vmem:[#allocation10 + $0x20] sm:$0xff] }
0x265f   : > { %15854 = vmatpush3.msra.mxu1 %v18788_v46  ;;  %15861 = vmatprep.mubr.msk.f32.mxu1 %vm992_vm1, %v7737_v43  ;;  %v18828_v43 = vld [vmem:[#allocation8 + $0x2] ss:$0 sm:$0xff] }
0x2660   : > { %15855 = vmatprep.subr.mxu1 %v18793_v55 }
0x2661   : > { %15856 = vmatpush3.msra.mxu1 %v18793_v55 }
0x2662   : > { %15857 = vmatprep.subr.mxu1 %v18797_v52 }
0x2663   : > { %15858 = vmatpush3.msra.mxu1 %v18797_v52 }
0x2664   : > { %15859 = vmatprep.subr.mxu1 %v18801_v0 }
0x2665   : > { %15860 = vmatpush3.msra.mxu1 %v18801_v0 }
0x2666   : > { %15862 = vmatmul.mubr.msk.f32.vlgmr.msra.gmra.mxu1 %vm992_vm1, %v15834_v4  ;;  %v7914_v4 = vadd.f32 %v7912_v27, %v7910_v36 }
0x2667   : > { %15879 = vmatprep.mubr.msk.f32.mxu1 %vm649_vm0, %v18361_v49 }
0x271e   : > { %v15841_v60 = vpop.f32.mrf.mxu1 }
0x271f   : > { %v7822_v37 = vmul.f32 2.0, %v15841_v60  ;;  %v8000_v60 = vmul.f32 %v18828_v43, %v18734_v63  ;;  %v8091_v63 = vsub.f32 1.0, %v18759_v1  ;;  %v17113_v1 = vmov 7  }
0x2720   : > { %v7812_v33 = vpop.f32.mrf.mxu1  ;;  %16593 = vset.pattern.permute.xlu0 %v17113_v1  ;;  %16594 = vset.pattern.permute.xlu1 %v17113_v1 }
0x2721   : > { %v7821_v48 = vmul.f32 2.0, %v7812_v33  ;;  %v7824_v3 = vsub.f32 %v7822_v37, %v7670_v32  ;;  %v7999_v33 = vmul.f32 %v18828_v43, %v18748_v42 }
0x2723   : > { %v7823_v45 = vsub.f32 %v7821_v48, %v7669_v25 }
0x2725   : > { %15872 = vmatprep.mubr.msk.f32.mxu0 %vm992_vm1, %v7823_v45 }
0x2726   : > { %15873 = vmatmul.mubr.msk.f32.vlgmr.msra.gmra.mxu0 %vm992_vm1, %v7824_v3  ;;  %v15863_v12 = vpop.f32.mrf.mxu1 }
0x2727   : > { %15893 = vmatprep.mubr.msk.f32.mxu0 %vm649_vm0, %v18361_v49  ;;  %v7913_v49 = vmul.f32 %v18822_v51, %v18727_v40 }
0x2728   : > { %v7988_v56 = vpop.f32.mrf.mxu1 }
0x2729   : > { %v7915_v32 = vadd.f32 %v7913_v49, %v7911_v14  ;;  %v7997_v37 = vadd.f32 %v7988_v56, %v7914_v4  ;;  %v8090_v14 = vsub.f32 1.0, %v18763_v23  ;;  %v8088_v49 = vmul.f32 %v18763_v23, %v18599_v7  ;;  %v18860_v7 = vld [vmem:[#allocation3 + $0x8] sm:$0xff]  ;;  %v18865_v23 = vld [vmem:[#allocation3] sm:$0xff] }
0x272b   : > { %v7998_v25 = vadd.f32 %v15863_v12, %v7915_v32  ;;  %v8001_v3 = vadd.f32 %v7999_v33, %v7997_v37 }
0x272d   : > { %v8002_v48 = vadd.f32 %v8000_v60, %v7998_v25 }
0x27e6   : > { %v15874_v45 = vpop.f32.mrf.mxu0 }
0x27e7   : > { %v8085_v40 = vadd.f32 %v15874_v45, %v8002_v48 }
0x27e8   : > { %v8075_v18 = vpop.f32.mrf.mxu0 }
0x27e9   : > { %16677 = vtanh.f32 %v8085_v40  ;;  %v8084_v62 = vadd.f32 %v8075_v18, %v8001_v3 }
0x27eb   : > { %16679 = vtanh.f32 %v8084_v62 }
0x27f6   : > { %v16678_v61 = vpop.eup %16677 }
0x27f7   : > { %8096 = vrot.lane.b32.xlu0 %v16678_v61, %s17098_s18 }
0x27f8   : > { %v16680_v26 = vpop.eup %16679 }
0x27f9   : > { %8094 = vrot.lane.b32.xlu1 %v16680_v26, %s17098_s18 }
0x27fb   : > { %8106 = vrot.lane.b32.xlu0 %v18582_v6, %s17112_s0 }
0x27fd   : > { %8104 = vrot.lane.b32.xlu1 %v18586_v57, %s17112_s0 }
0x2869   : > { %v8097_v42 = vpop.permute.xlu0 %8096 }
0x286a   : > { %v8101_v35 = vmul.f32 %v8097_v42, %v8091_v63 }
0x286b   : > { %v8095_v24 = vpop.permute.xlu1 %8094 }
0x286c   : > { %v18842_v12 = vadd.f32 %v8101_v35, %v8089_v47  ;;  %v8100_v36 = vmul.f32 %v8095_v24, %v8090_v14 }
0x286d   : > { %v18846_v27 = vpop.permute.xlu0 %8106 }
0x286e   : > { %v18848_v32 = vadd.f32 %v8100_v36, %v8088_v49  ;;  %8268 = vrot.lane.b32.xlu0 %v18842_v12, %s17100_s17  ;;  %15875 = vmatprep.subr.mxu1 %v18846_v27 }
0x286f   : > { %15876 = vmatpush3.msra.mxu1 %v18846_v27  ;;  %v18854_v39 = vpop.permute.xlu1 %8104 }
0x2870   : > { %8266 = vrot.lane.b32.xlu1 %v18848_v32, %s17100_s17  ;;  %15877 = vmatprep.subr.mxu1 %v18854_v39 }
0x2871   : > { %15878 = vmatpush3.msra.mxu1 %v18854_v39 }
0x2872   : > { %15880 = vmatmul.mubr.msk.f32.vlgmr.msra.gmra.mxu1 %vm649_vm0, %v18860_v7  ;;  %8431 = vperm.xlu0 %16593, %v18582_v6  }
0x2873   : > { %15886 = vmatprep.mubr.msk.f32.mxu1 %vm649_vm0, %v18865_v23 }
0x2874   : > { %8427 = vperm.xlu1 %16594, %v18586_v57  }
0x2876   : > { %16596 = vset.pattern.permute.xlu0 %v20003_v44 }
0x2878   : > { %16595 = vset.pattern.permute.xlu1 %v20003_v44 }
0x28e0   : > { %v18872_v56 = vpop.permute.xlu0 %8268 }
0x28e1   : > { %15889 = vmatprep.subr.mxu0 %v18872_v56 }
0x28e2   : > { %15890 = vmatpush3.msra.mxu0 %v18872_v56  ;;  %v18876_v25 = vpop.permute.xlu1 %8266 }
0x28e3   : > { %15891 = vmatprep.subr.mxu0 %v18876_v25 }
0x28e4   : > { %15892 = vmatpush3.msra.mxu0 %v18876_v25 }
0x28e5   : > { %15894 = vmatmul.mubr.msk.f32.vlgmr.msra.gmra.mxu0 %vm649_vm0, %v18860_v7  ;;  %15903 = vmatprep.subr.mxu0 %v18629_v20 }
0x28e6   : > { %15904 = vmatpush3.msra.mxu0 %v18629_v20  ;;  %15911 = vmatprep.mubr.msk.f32.mxu0 %vm992_vm1, %v18876_v25 }
0x28e7   : > { %15905 = vmatprep.subr.mxu0 %v18635_v16 }
0x28e8   : > { %15906 = vmatpush3.msra.mxu0 %v18635_v16 }
0x28e9   : > { %15907 = vmatprep.subr.mxu0 %v18639_v17 }
0x28ea   : > { %15908 = vmatpush3.msra.mxu0 %v18639_v17 }
0x28eb   : > { %15909 = vmatprep.subr.mxu0 %v18643_v21 }
0x28ec   : > { %15910 = vmatpush3.msra.mxu0 %v18643_v21 }
0x28ed   : > { %15912 = vmatmul.mubr.msk.f32.vlgmr.msra.gmra.mxu0 %vm992_vm1, %v18872_v56  ;;  %15925 = vmatprep.subr.mxu0 %v18649_v22  ;;  %v18937_v37 = vpop.permute.xlu0 %8431 }
0x28ee   : > { %15926 = vmatpush3.msra.mxu0 %v18649_v22 }
0x28ef   : > { %15927 = vmatprep.subr.mxu0 %v18653_v53  ;;  %v18935_v60 = vpop.permute.xlu1 %8427 }
0x28f0   : > { %15928 = vmatpush3.msra.mxu0 %v18653_v53 }
0x28f1   : > { %15929 = vmatprep.subr.mxu0 %v18657_v58 }
0x28f2   : > { %15930 = vmatpush3.msra.mxu0 %v18657_v58 }
0x28f3   : > { %15931 = vmatprep.subr.mxu0 %v18661_v9 }
0x28f4   : > { %15932 = vmatpush3.msra.mxu0 %v18661_v9 }
0x28f5   : > { %15950 = vmatprep.subr.mxu0 %v18665_v59 }
0x2932   : > { %v15881_v44 = vpop.f32.mrf.mxu1 }
0x2933   : > { %8526 = vperm.xlu1 %16595, %v15881_v44   ;;  %15882 = vmatprep.subr.mxu1 %v15881_v44 }
0x2934   : > { %v8176_v6 = vpop.f32.mrf.mxu1  ;;  %15883 = vmatpush3.msra.mxu1 %v15881_v44 }
0x2935   : > { %8521 = vperm.xlu0 %16596, %v8176_v6   ;;  %15884 = vmatprep.subr.mxu1 %v8176_v6 }
0x2936   : > { %15885 = vmatpush3.msra.mxu1 %v8176_v6 }
0x2937   : > { %15887 = vmatmul.mubr.msk.f32.vlgmr.msra.gmra.mxu1 %vm649_vm0, %v18860_v7 }
0x2938   : > { %15900 = vmatprep.mubr.msk.f32.mxu1 %vm649_vm0, %v18865_v23 }
0x29a5   : > { %v15895_v57 = vpop.f32.mrf.mxu0 }
0x29a6   : > { %15896 = vmatprep.subr.mxu1 %v15895_v57 }
0x29a7   : > { %v8338_v20 = vpop.f32.mrf.mxu0  ;;  %15897 = vmatpush3.msra.mxu1 %v15895_v57 }
0x29a8   : > { %15898 = vmatprep.subr.mxu1 %v8338_v20 }
0x29a9   : > { %15899 = vmatpush3.msra.mxu1 %v8338_v20 }
0x29aa   : > { %15901 = vmatmul.mubr.msk.f32.vlgmr.msra.gmra.mxu1 %vm649_vm0, %v18860_v7  ;;  %15914 = vmatprep.subr.mxu1 %v18674_v50 }
0x29ab   : > { %15915 = vmatpush3.msra.mxu1 %v18674_v50  ;;  %15922 = vmatprep.mubr.msk.f32.mxu1 %vm992_vm1, %v8338_v20 }
0x29ac   : > { %15916 = vmatprep.subr.mxu1 %v18679_v10 }
0x29ad   : > { %15917 = vmatpush3.msra.mxu1 %v18679_v10  ;;  %v15913_v48 = vpop.f32.mrf.mxu0 }
0x29ae   : > { %15918 = vmatprep.subr.mxu1 %v18683_v30  ;;  %v18941_v33 = vpop.permute.xlu1 %8526 }
0x29af   : > { %15919 = vmatpush3.msra.mxu1 %v18683_v30  ;;  %v8508_v40 = vpop.f32.mrf.mxu0  ;;  %v8530_v62 = vmul.f32 %v18742_v31, %v18941_v33 }
0x29b0   : > { %15920 = vmatprep.subr.mxu1 %v18687_v2  ;;  %v18949_v3 = vpop.permute.xlu0 %8521 }
0x29b1   : > { %15921 = vmatpush3.msra.mxu1 %v18687_v2  ;;  %v8529_v63 = vmul.f32 %v18742_v31, %v18949_v3 }
0x29b2   : > { %15923 = vmatmul.mubr.msk.f32.vlgmr.msra.gmra.mxu1 %vm992_vm1, %v15895_v57 }
0x29b3   : > { %15940 = vmatprep.mubr.msk.f32.mxu1 %vm649_vm0, %v18865_v23 }
0x29f7   : > { %v15888_v16 = vpop.f32.mrf.mxu1 }
0x29f8   : > { %v8261_v17 = vmul.f32 2.0, %v15888_v16 }
0x29f9   : > { %v8251_v21 = vpop.f32.mrf.mxu1 }
0x29fa   : > { %v8263_v22 = vsub.f32 %v8261_v17, %v18846_v27  ;;  %v8260_v53 = vmul.f32 2.0, %v8251_v21 }
0x29fc   : > { %8623 = vperm.xlu1 %16595, %v8263_v22   ;;  %v8262_v58 = vsub.f32 %v8260_v53, %v18854_v39 }
0x2a00   : > { %8618 = vperm.xlu1 %16595, %v8262_v58  }
0x2a6a   : > { %v15902_v9 = vpop.f32.mrf.mxu1 }
0x2a6b   : > { %v8423_v50 = vmul.f32 2.0, %v15902_v9 }
0x2a6c   : > { %v8413_v10 = vpop.f32.mrf.mxu1 }
0x2a6d   : > { %v8422_v30 = vmul.f32 2.0, %v8413_v10  ;;  %v8425_v4 = vsub.f32 %v8423_v50, %v18872_v56 }
0x2a6f   : > { %v8424_v2 = vsub.f32 %v8422_v30, %v18876_v25 }
0x2a71   : > { %15933 = vmatprep.mubr.msk.f32.mxu0 %vm992_vm1, %v8424_v2 }
0x2a72   : > { %15934 = vmatmul.mubr.msk.f32.vlgmr.msra.gmra.mxu0 %vm992_vm1, %v8425_v4  ;;  %v15924_v61 = vpop.f32.mrf.mxu1 }
0x2a73   : > { %15951 = vmatpush3.msra.mxu0 %v18665_v59  ;;  %v8435_v59 = vmul.f32 %v18723_v34, %v18937_v37 }
0x2a74   : > { %15952 = vmatprep.subr.mxu0 %v18701_v38  ;;  %v8605_v35 = vpop.f32.mrf.mxu1 }
0x2a75   : > { %15953 = vmatpush3.msra.mxu0 %v18701_v38  ;;  %v8434_v38 = vmul.f32 %v18723_v34, %v18935_v60 }
0x2a76   : > { %15954 = vmatprep.subr.mxu0 %v18705_v5 }
0x2a77   : > { %15955 = vmatpush3.msra.mxu0 %v18705_v5  ;;  %v8437_v5 = vadd.f32 %v18731_v41, %v8435_v59  ;;  %v18946_v45 = vpop.permute.xlu1 %8623  ;;  %v8969_v59 = vmul.f32 %v18822_v51, %v18941_v33 }
0x2a78   : > { %15956 = vmatprep.subr.mxu0 %v18709_v29  ;;  %v8627_v47 = vmul.f32 %v18753_v15, %v18946_v45 }
0x2a79   : > { %15957 = vmatpush3.msra.mxu0 %v18709_v29  ;;  %v8436_v29 = vadd.f32 %v18731_v41, %v8434_v38  ;;  %v8518_v18 = vadd.f32 %v15913_v48, %v8437_v5  ;;  %v8968_v48 = vmul.f32 %v18822_v51, %v18949_v3 }
0x2a7a   : > { %15972 = vmatprep.subr.mxu0 %v18713_v13 }
0x2a7b   : > { %v8517_v26 = vadd.f32 %v8508_v40, %v8436_v29  ;;  %v18955_v34 = vpop.permute.xlu1 %8618  ;;  %v8532_v42 = vadd.f32 %v8530_v62, %v8518_v18 }
0x2a7c   : > { %v8626_v24 = vmul.f32 %v18753_v15, %v18955_v34  ;;  %v9055_v18 = vmul.f32 %v18828_v43, %v18955_v34  ;;  %v19029_v34 = vld [vmem:[%s19958_s9 + $0x8] sm:$0xff] }
0x2a7d   : > { %v8615_v41 = vadd.f32 %v15924_v61, %v8532_v42  ;;  %v8531_v14 = vadd.f32 %v8529_v63, %v8517_v26  ;;  %v19038_v42 = vld [vmem:[%s19958_s9] sm:$0xff] }
0x2a7f   : > { %v8614_v49 = vadd.f32 %v8605_v35, %v8531_v14  ;;  %v8629_v36 = vadd.f32 %v8627_v47, %v8615_v41 }
0x2a81   : > { %v8628_v1 = vadd.f32 %v8626_v24, %v8614_v49 }
0x2b32   : > { %v15935_v27 = vpop.f32.mrf.mxu0 }
0x2b33   : > { %v8712_v39 = vadd.f32 %v15935_v27, %v8629_v36 }
0x2b34   : > { %v8702_v44 = vpop.f32.mrf.mxu0 }
0x2b35   : > { %v14198_v6 = vmul.f32 -1.442695, %v8712_v39  ;;  %v8711_v31 = vadd.f32 %v8702_v44, %v8628_v1  ;;  %v20012_v44 = vld [vmem:[#allocation22_spill] sm:$0xff] }
0x2b37   : > { %16681 = vpow2.f32 %v14198_v6  ;;  %v14197_v57 = vmul.f32 -1.442695, %v8711_v31  ;;  %v20014_v6 = vld [vmem:[#allocation25_spill] sm:$0xff]  ;;  %v20015_v31 = vld [vmem:[#allocation24_spill] sm:$0xff] }
0x2b39   : > { %16683 = vpow2.f32 %v14197_v57 }
0x2b44   : > { %v16682_v20 = vpop.eup %16681 }
0x2b45   : > { %v8720_v16 = vadd.f32 1.0, %v16682_v20 }
0x2b46   : > { %v16684_v17 = vpop.eup %16683 }
0x2b47   : > { %16685 = vrcp.f32 %v8720_v16  ;;  %v8719_v21 = vadd.f32 1.0, %v16684_v17  ;;  %v19079_v17 = vld [vmem:[%s19958_s9 + $0x38] sm:$0xff] }
0x2b49   : > { %16687 = vrcp.f32 %v8719_v21  ;;  %v19084_v21 = vld [vmem:[%s19958_s9 + $0x30] sm:$0xff] }
0x2b54   : > { %v18961_v22 = vpop.eup %16685 }
0x2b55   : > { %v8726_v15 = vmul.f32 %v18961_v22, %v18872_v56  ;;  %v9147_v47 = vsub.f32 1.0, %v18961_v22  ;;  %v9145_v41 = vmul.f32 %v18961_v22, %v18842_v12  ;;  %v20013_v12 = vld [vmem:[#allocation23_spill] sm:$0xff] }
0x2b56   : > { %v18965_v53 = vpop.eup %16687  ;;  %v19094_v22 = vld [vmem:[%s19958_s9 + $0x28] sm:$0xff] }
0x2b57   : > { %15936 = vmatprep.subr.mxu1 %v8726_v15  ;;  %v8725_v58 = vmul.f32 %v18965_v53, %v18876_v25  ;;  %v9146_v24 = vsub.f32 1.0, %v18965_v53  ;;  %v9144_v27 = vmul.f32 %v18965_v53, %v18848_v32  ;;  %v19113_v53 = vld [vmem:[%s19958_s9 + $0x58] sm:$0xff] }
0x2b58   : > { %15937 = vmatpush3.msra.mxu1 %v8726_v15 }
0x2b59   : > { %15938 = vmatprep.subr.mxu1 %v8725_v58  ;;  %15958 = vmatprep.mubr.msk.f32.mxu0 %vm992_vm1, %v8725_v58 }
0x2b5a   : > { %15939 = vmatpush3.msra.mxu1 %v8725_v58  ;;  %15959 = vmatmul.mubr.msk.f32.vlgmr.msra.gmra.mxu0 %vm992_vm1, %v8726_v15 }
0x2b5b   : > { %15941 = vmatmul.mubr.msk.f32.vlgmr.msra.gmra.mxu1 %vm649_vm0, %v18860_v7  ;;  %15973 = vmatpush3.msra.mxu0 %v18713_v13 }
0x2b5c   : > { %15947 = vmatprep.mubr.msk.f32.mxu1 %vm649_vm0, %v18865_v23  ;;  %15974 = vmatprep.subr.mxu0 %v18774_v8 }
0x2b5d   : > { %15975 = vmatpush3.msra.mxu0 %v18774_v8 }
0x2b5e   : > { %15976 = vmatprep.subr.mxu0 %v18778_v19 }
0x2b5f   : > { %15977 = vmatpush3.msra.mxu0 %v18778_v19 }
0x2b60   : > { %15978 = vmatprep.subr.mxu0 %v18782_v11 }
0x2b61   : > { %15979 = vmatpush3.msra.mxu0 %v18782_v11 }
0x2c1b   : > { %v15942_v56 = vpop.f32.mrf.mxu1 }
0x2c1c   : > { %15943 = vmatprep.subr.mxu1 %v15942_v56 }
0x2c1d   : > { %v8793_v25 = vpop.f32.mrf.mxu1  ;;  %15944 = vmatpush3.msra.mxu1 %v15942_v56 }
0x2c1e   : > { %15945 = vmatprep.subr.mxu1 %v8793_v25 }
0x2c1f   : > { %15946 = vmatpush3.msra.mxu1 %v8793_v25 }
0x2c20   : > { %15948 = vmatmul.mubr.msk.f32.vlgmr.msra.gmra.mxu1 %vm649_vm0, %v18860_v7  ;;  %15961 = vmatprep.subr.mxu1 %v18788_v46 }
0x2c21   : > { %15962 = vmatpush3.msra.mxu1 %v18788_v46  ;;  %15969 = vmatprep.mubr.msk.f32.mxu1 %vm992_vm1, %v8793_v25  ;;  %v19134_v25 = vld [vmem:[%s19958_s9 + $0x40] sm:$0xff] }
0x2c22   : > { %15963 = vmatprep.subr.mxu1 %v18793_v55 }
0x2c23   : > { %15964 = vmatpush3.msra.mxu1 %v18793_v55  ;;  %v8882_v55 = vmul.f32 %v18812_v28, %v18937_v37 }
0x2c24   : > { %15965 = vmatprep.subr.mxu1 %v18797_v52 }
0x2c25   : > { %15966 = vmatpush3.msra.mxu1 %v18797_v52  ;;  %v15960_v52 = vpop.f32.mrf.mxu0  ;;  %v8884_v50 = vadd.f32 %v18818_v54, %v8882_v55  ;;  %v19142_v55 = vld [vmem:[#allocation16 + $0x18] sm:$0xff] }
0x2c26   : > { %15967 = vmatprep.subr.mxu1 %v18801_v0 }
0x2c27   : > { %15968 = vmatpush3.msra.mxu1 %v18801_v0  ;;  %v8881_v0 = vmul.f32 %v18812_v28, %v18935_v60  ;;  %v8957_v10 = vpop.f32.mrf.mxu0  ;;  %v8967_v30 = vadd.f32 %v15960_v52, %v8884_v50  ;;  %v9056_v28 = vmul.f32 %v18828_v43, %v18946_v45  ;;  %v19016_v45 = vld [vmem:[%s19958_s9 + $0x18] sm:$0xff]  ;;  %v19021_v43 = vld [vmem:[%s19958_s9 + $0x10] sm:$0xff] }
0x2c28   : > { %15970 = vmatmul.mubr.msk.f32.vlgmr.msra.gmra.mxu1 %vm992_vm1, %v15942_v56  ;;  %15997 = vmatprep.subr.mxu0 %v19016_v45  ;;  %v19127_v56 = vld [vmem:[%s19958_s9 + $0x48] sm:$0xff]  ;;  %v19154_v50 = vld [vmem:[#allocation16] sm:$0xff] }
0x2c29   : > { %15987 = vmatprep.mubr.msk.f32.mxu1 %vm649_vm0, %v18865_v23  ;;  %v8883_v2 = vadd.f32 %v18818_v54, %v8881_v0  ;;  %v8971_v5 = vadd.f32 %v8969_v59, %v8967_v30  ;;  %v19144_v52 = vld [vmem:[#allocation16 + $0x10] sm:$0xff]  ;;  %v19148_v0 = vld [vmem:[#allocation16 + $0x8] sm:$0xff] }
0x2c2b   : > { %v8966_v38 = vadd.f32 %v8957_v10, %v8883_v2  ;;  %v19158_v10 = vld [vmem:[#allocation13] ss:$0 sm:$0xff]  ;;  %v19161_v2 = vld [vmem:[#allocation14] ss:$0 sm:$0xff] }
0x2c2c   : > { %v9333_v30 = vmul.f32 0.0, %v19158_v10 }
0x2c2d   : > { %v8970_v40 = vadd.f32 %v8968_v48, %v8966_v38  ;;  %v19164_v38 = vld [vmem:[#allocation13 + $0x1] ss:$0 sm:$0xff] }
0x2c2e   : > { %v9340_v59 = vadd.f32 %v19161_v2, %v9333_v30  ;;  %v19207_v30 = vld [vmem:[#allocation16 + $0x28] sm:$0xff] }
0x2ce0   : > { %v15949_v13 = vpop.f32.mrf.mxu1 }
0x2ce1   : > { %v8878_v8 = vmul.f32 2.0, %v15949_v13 }
0x2ce2   : > { %v8868_v19 = vpop.f32.mrf.mxu1 }
0x2ce3   : > { %v8877_v11 = vmul.f32 2.0, %v8868_v19  ;;  %v8880_v9 = vsub.f32 %v8878_v8, %v8726_v15  ;;  %v19101_v15 = vld [vmem:[%s19958_s9 + $0x20] sm:$0xff] }
0x2ce5   : > { %v8879_v46 = vsub.f32 %v8877_v11, %v8725_v58  ;;  %v19120_v58 = vld [vmem:[%s19958_s9 + $0x50] sm:$0xff] }
0x2ce7   : > { %15980 = vmatprep.mubr.msk.f32.mxu0 %vm992_vm1, %v8879_v46 }
0x2ce8   : > { %15981 = vmatmul.mubr.msk.f32.vlgmr.msra.gmra.mxu0 %vm992_vm1, %v8880_v9  ;;  %v15971_v4 = vpop.f32.mrf.mxu1 }
0x2ce9   : > { %v9054_v29 = vadd.f32 %v15971_v4, %v8971_v5  ;;  %15998 = vmatpush3.msra.mxu0 %v19016_v45 }
0x2cea   : > { %v9044_v37 = vpop.f32.mrf.mxu1  ;;  %15999 = vmatprep.subr.mxu0 %v19021_v43 }
0x2ceb   : > { %v9053_v60 = vadd.f32 %v9044_v37, %v8970_v40  ;;  %v9058_v54 = vadd.f32 %v9056_v28, %v9054_v29  ;;  %16000 = vmatpush3.msra.mxu0 %v19021_v43 }
0x2cec   : > { %16001 = vmatprep.subr.mxu0 %v19029_v34 }
0x2ced   : > { %v9057_v26 = vadd.f32 %v9055_v18, %v9053_v60  ;;  %16002 = vmatpush3.msra.mxu0 %v19029_v34 }
0x2cee   : > { %16003 = vmatprep.subr.mxu0 %v19038_v42 }
0x2cef   : > { %16004 = vmatpush3.msra.mxu0 %v19038_v42 }
0x2cf0   : > { %16019 = vmatprep.subr.mxu0 %v19113_v53 }
0x2da8   : > { %v15982_v62 = vpop.f32.mrf.mxu0 }
0x2da9   : > { %v9141_v61 = vadd.f32 %v15982_v62, %v9058_v54  ;;  %v19174_v62 = vld [vmem:[#allocation13 + $0x2] ss:$0 sm:$0xff] }
0x2daa   : > { %v9131_v33 = vpop.f32.mrf.mxu0 }
0x2dab   : > { %16689 = vtanh.f32 %v9141_v61  ;;  %v9140_v63 = vadd.f32 %v9131_v33, %v9057_v26 }
0x2dad   : > { %16691 = vtanh.f32 %v9140_v63 }
0x2db8   : > { %v16690_v51 = vpop.eup %16689 }
0x2db9   : > { %9152 = vrot.lane.b32.xlu0 %v16690_v51, %s17098_s18 }
0x2dba   : > { %v16692_v3 = vpop.eup %16691 }
0x2dbb   : > { %9150 = vrot.lane.b32.xlu1 %v16692_v3, %s17098_s18 }
0x2e2b   : > { %v9153_v35 = vpop.permute.xlu0 %9152 }
0x2e2c   : > { %v9157_v14 = vmul.f32 %v9153_v35, %v9147_v47 }
0x2e2d   : > { %v9151_v49 = vpop.permute.xlu1 %9150 }
0x2e2e   : > { %v19046_v36 = vadd.f32 %v9157_v14, %v9145_v41  ;;  %v9156_v39 = vmul.f32 %v9151_v49, %v9146_v24 }
0x2e30   : > { %v19050_v1 = vadd.f32 %v9156_v39, %v9144_v27  ;;  %9169 = vrot.lane.b32.xlu0 %v19046_v36, %s17100_s17 }
0x2e32   : > { %9167 = vrot.lane.b32.xlu1 %v19050_v1, %s17100_s17 }
0x2e34   : > { %9432 = vperm.xlu0 %16596, %v20012_v44  }
0x2e36   : > { %9428 = vperm.xlu1 %16595, %v20013_v12  }
0x2e38   : > { %9537 = vperm.xlu0 %16596, %v20014_v6  }
0x2e3a   : > { %9533 = vperm.xlu1 %16595, %v20015_v31  }
0x2ea2   : > { %v19060_v57 = vpop.permute.xlu0 %9169 }
0x2ea3   : > { %15983 = vmatprep.subr.mxu1 %v19060_v57 }
0x2ea4   : > { %15984 = vmatpush3.msra.mxu1 %v19060_v57  ;;  %v19064_v32 = vpop.permute.xlu1 %9167 }
0x2ea5   : > { %15985 = vmatprep.subr.mxu1 %v19064_v32  ;;  %16005 = vmatprep.mubr.msk.f32.mxu0 %vm992_vm1, %v19064_v32 }
0x2ea6   : > { %15986 = vmatpush3.msra.mxu1 %v19064_v32  ;;  %16006 = vmatmul.mubr.msk.f32.vlgmr.msra.gmra.mxu0 %vm992_vm1, %v19060_v57 }
0x2ea7   : > { %15988 = vmatmul.mubr.msk.f32.vlgmr.msra.gmra.mxu1 %vm649_vm0, %v18860_v7  ;;  %16020 = vmatpush3.msra.mxu0 %v19113_v53 }
0x2ea8   : > { %15994 = vmatprep.mubr.msk.f32.mxu1 %vm649_vm0, %v18865_v23  ;;  %16021 = vmatprep.subr.mxu0 %v19120_v58 }
0x2ea9   : > { %16022 = vmatpush3.msra.mxu0 %v19120_v58 }
0x2eaa   : > { %16023 = vmatprep.subr.mxu0 %v19127_v56 }
0x2eab   : > { %16024 = vmatpush3.msra.mxu0 %v19127_v56 }
0x2eac   : > { %16025 = vmatprep.subr.mxu0 %v19134_v25 }
0x2ead   : > { %16026 = vmatpush3.msra.mxu0 %v19134_v25 }
0x2eae   : > { %16044 = vmatprep.subr.mxu0 %v19142_v55 }
0x2eaf   : > { %v19166_v48 = vpop.permute.xlu0 %9432 }
0x2eb0   : > { %v9440_v28 = vmul.f32 %v19164_v38, %v19166_v48 }
0x2eb1   : > { %v19168_v29 = vpop.permute.xlu1 %9428 }
0x2eb2   : > { %v9439_v18 = vmul.f32 %v19164_v38, %v19168_v29 }
0x2eb3   : > { %v19176_v61 = vpop.permute.xlu0 %9537 }
0x2eb4   : > { %v9545_v3 = vmul.f32 %v19174_v62, %v19176_v61 }
0x2eb5   : > { %v19178_v51 = vpop.permute.xlu1 %9533 }
0x2eb6   : > { %v9544_v35 = vmul.f32 %v19174_v62, %v19178_v51 }
0x2f66   : > { %v16007_v4 = vpop.f32.mrf.mxu0 }
0x2f67   : > { %v15989_v20 = vpop.f32.mrf.mxu1  ;;  %v9425_v37 = vadd.f32 %v16007_v4, %v9340_v59  ;;  %v19211_v4 = vld [vmem:[#allocation16 + $0x20] sm:$0xff] }
0x2f68   : > { %15990 = vmatprep.subr.mxu1 %v15989_v20  ;;  %v9415_v5 = vpop.f32.mrf.mxu0 }
0x2f69   : > { %v9239_v16 = vpop.f32.mrf.mxu1  ;;  %15991 = vmatpush3.msra.mxu1 %v15989_v20  ;;  %v9424_v60 = vadd.f32 %v9415_v5, %v9340_v59  ;;  %v9442_v54 = vadd.f32 %v9440_v28, %v9425_v37  ;;  %v19218_v59 = vld [vmem:[#allocation16 + $0x58] sm:$0xff]  ;;  %v19222_v5 = vld [vmem:[#allocation16 + $0x50] sm:$0xff]  ;;  %v19226_v37 = vld [vmem:[#allocation16 + $0x48] sm:$0xff] }
0x2f6a   : > { %15992 = vmatprep.subr.mxu1 %v9239_v16 }
0x2f6b   : > { %15993 = vmatpush3.msra.mxu1 %v9239_v16  ;;  %v9441_v63 = vadd.f32 %v9439_v18, %v9424_v60 }
0x2f6c   : > { %15995 = vmatmul.mubr.msk.f32.vlgmr.msra.gmra.mxu1 %vm649_vm0, %v18860_v7  ;;  %16008 = vmatprep.subr.mxu1 %v19079_v17 }
0x2f6d   : > { %16009 = vmatpush3.msra.mxu1 %v19079_v17  ;;  %16016 = vmatprep.mubr.msk.f32.mxu1 %vm992_vm1, %v9239_v16 }
0x2f6e   : > { %16010 = vmatprep.subr.mxu1 %v19084_v21 }
0x2f6f   : > { %16011 = vmatpush3.msra.mxu1 %v19084_v21 }
0x2f70   : > { %16012 = vmatprep.subr.mxu1 %v19094_v22 }
0x2f71   : > { %16013 = vmatpush3.msra.mxu1 %v19094_v22 }
0x2f72   : > { %16014 = vmatprep.subr.mxu1 %v19101_v15 }
0x2f73   : > { %16015 = vmatpush3.msra.mxu1 %v19101_v15 }
0x2f74   : > { %16017 = vmatmul.mubr.msk.f32.vlgmr.msra.gmra.mxu1 %vm992_vm1, %v15989_v20 }
0x2f75   : > { %16034 = vmatprep.mubr.msk.f32.mxu1 %vm649_vm0, %v18865_v23 }
0x302c   : > { %v15996_v13 = vpop.f32.mrf.mxu1 }
0x302d   : > { %v9324_v8 = vmul.f32 2.0, %v15996_v13 }
0x302e   : > { %v9314_v19 = vpop.f32.mrf.mxu1 }
0x302f   : > { %v9323_v11 = vmul.f32 2.0, %v9314_v19  ;;  %v9326_v9 = vsub.f32 %v9324_v8, %v19060_v57 }
0x3031   : > { %v9325_v46 = vsub.f32 %v9323_v11, %v19064_v32 }
0x3033   : > { %16027 = vmatprep.mubr.msk.f32.mxu0 %vm992_vm1, %v9325_v46 }
0x3034   : > { %16028 = vmatmul.mubr.msk.f32.vlgmr.msra.gmra.mxu0 %vm992_vm1, %v9326_v9  ;;  %v16018_v40 = vpop.f32.mrf.mxu1  ;;  %v19198_v9 = vld [vmem:[#allocation16 + $0x38] sm:$0xff] }
0x3035   : > { %16045 = vmatpush3.msra.mxu0 %v19142_v55  ;;  %v9530_v33 = vadd.f32 %v16018_v40, %v9442_v54  ;;  %v19230_v40 = vld [vmem:[#allocation16 + $0x40] sm:$0xff] }
0x3036   : > { %16046 = vmatprep.subr.mxu0 %v19144_v52  ;;  %v9520_v26 = vpop.f32.mrf.mxu1 }
0x3037   : > { %16047 = vmatpush3.msra.mxu0 %v19144_v52  ;;  %v9529_v47 = vadd.f32 %v9520_v26, %v9441_v63  ;;  %v9547_v41 = vadd.f32 %v9545_v3, %v9530_v33  ;;  %v19241_v63 = vld [vmem:[%s19960_s11] ss:$0 sm:$0xff] }
0x3038   : > { %16048 = vmatprep.subr.mxu0 %v19148_v0  ;;  %v9810_v3 = vmul.f32 0.0, %v19241_v63 }
0x3039   : > { %16049 = vmatpush3.msra.mxu0 %v19148_v0  ;;  %v9546_v49 = vadd.f32 %v9544_v35, %v9529_v47  ;;  %v19247_v47 = vld [vmem:[%s19962_s13] ss:$0 sm:$0xff] }
0x303a   : > { %16050 = vmatprep.subr.mxu0 %v19154_v50 }
0x303b   : > { %16051 = vmatpush3.msra.mxu0 %v19154_v50 }
0x303c   : > { %16066 = vmatprep.subr.mxu0 %v19218_v59 }
0x30f4   : > { %v16029_v14 = vpop.f32.mrf.mxu0 }
0x30f5   : > { %v9635_v24 = vadd.f32 %v16029_v14, %v9547_v41  ;;  %v9817_v41 = vadd.f32 %v19247_v47, %v9810_v3  ;;  %v19253_v14 = vld [vmem:[%s19960_s11 + $0x1] ss:$0 sm:$0xff] }
0x30f6   : > { %v9625_v27 = vpop.f32.mrf.mxu0 }
0x30f7   : > { %v14232_v39 = vmul.f32 -1.442695, %v9635_v24  ;;  %v9634_v44 = vadd.f32 %v9625_v27, %v9546_v49 }
0x30f9   : > { %16693 = vpow2.f32 %v14232_v39  ;;  %v14231_v12 = vmul.f32 -1.442695, %v9634_v44  ;;  %v9911_v39 = vmul.f32 %v19253_v14, %v19166_v48 }
0x30fb   : > { %16695 = vpow2.f32 %v14231_v12  ;;  %v9910_v12 = vmul.f32 %v19253_v14, %v19168_v29 }
0x3106   : > { %v16694_v6 = vpop.eup %16693 }
0x3107   : > { %v9643_v31 = vadd.f32 1.0, %v16694_v6 }
0x3108   : > { %v16696_v20 = vpop.eup %16695 }
0x3109   : > { %16697 = vrcp.f32 %v9643_v31  ;;  %v9642_v16 = vadd.f32 1.0, %v16696_v20  ;;  %v19262_v31 = vld [vmem:[%s19960_s11 + $0x2] ss:$0 sm:$0xff] }
0x310a   : > { %v10007_v48 = vmul.f32 %v19262_v31, %v19178_v51  ;;  %v19283_v51 = vld [vmem:[%s19963_s14 + $0x8] sm:$0xff] }
0x310b   : > { %16699 = vrcp.f32 %v9642_v16 }
0x3116   : > { %v19184_v13 = vpop.eup %16697 }
0x3117   : > { %v9649_v8 = vmul.f32 %v19184_v13, %v19060_v57 }
0x3118   : > { %v19188_v19 = vpop.eup %16699 }
0x3119   : > { %16030 = vmatprep.subr.mxu1 %v9649_v8  ;;  %v9648_v11 = vmul.f32 %v19188_v19, %v19064_v32  ;;  %v19200_v32 = vld [vmem:[#allocation16 + $0x30] sm:$0xff] }
0x311a   : > { %16031 = vmatpush3.msra.mxu1 %v9649_v8 }
0x311b   : > { %16032 = vmatprep.subr.mxu1 %v9648_v11  ;;  %16052 = vmatprep.mubr.msk.f32.mxu0 %vm992_vm1, %v9648_v11 }
0x311c   : > { %16033 = vmatpush3.msra.mxu1 %v9648_v11  ;;  %16053 = vmatmul.mubr.msk.f32.vlgmr.msra.gmra.mxu0 %vm992_vm1, %v9649_v8 }
0x311d   : > { %16035 = vmatmul.mubr.msk.f32.vlgmr.msra.gmra.mxu1 %vm649_vm0, %v18860_v7  ;;  %16067 = vmatpush3.msra.mxu0 %v19218_v59 }
0x311e   : > { %16041 = vmatprep.mubr.msk.f32.mxu1 %vm649_vm0, %v18865_v23  ;;  %16068 = vmatprep.subr.mxu0 %v19222_v5 }
0x311f   : > { %16069 = vmatpush3.msra.mxu0 %v19222_v5 }
0x3120   : > { %16070 = vmatprep.subr.mxu0 %v19226_v37 }
0x3121   : > { %16071 = vmatpush3.msra.mxu0 %v19226_v37 }
0x3122   : > { %16072 = vmatprep.subr.mxu0 %v19230_v40 }
0x3123   : > { %16073 = vmatpush3.msra.mxu0 %v19230_v40 }
0x31dc   : > { %v16054_v35 = vpop.f32.mrf.mxu0 }
0x31dd   : > { %v16036_v57 = vpop.f32.mrf.mxu1  ;;  %v9904_v49 = vadd.f32 %v16054_v35, %v9817_v41  ;;  %v19294_v35 = vld [vmem:[%s19963_s14] sm:$0xff] }
0x31de   : > { %16037 = vmatprep.subr.mxu1 %v16036_v57  ;;  %v9894_v24 = vpop.f32.mrf.mxu0 }
0x31df   : > { %v9716_v46 = vpop.f32.mrf.mxu1  ;;  %16038 = vmatpush3.msra.mxu1 %v16036_v57  ;;  %v9903_v44 = vadd.f32 %v9894_v24, %v9817_v41  ;;  %v9913_v6 = vadd.f32 %v9911_v39, %v9904_v49  ;;  %v10104_v41 = vsub.f32 1.0, %v19184_v13  ;;  %v10102_v49 = vmul.f32 %v19184_v13, %v19046_v36 }
0x31e0   : > { %16039 = vmatprep.subr.mxu1 %v9716_v46  ;;  %v10103_v39 = vsub.f32 1.0, %v19188_v19 }
0x31e1   : > { %16040 = vmatpush3.msra.mxu1 %v9716_v46 }
0x31e2   : > { %16042 = vmatmul.mubr.msk.f32.vlgmr.msra.gmra.mxu1 %vm649_vm0, %v18860_v7  ;;  %16055 = vmatprep.subr.mxu1 %v19198_v9 }
0x31e3   : > { %16056 = vmatpush3.msra.mxu1 %v19198_v9  ;;  %16063 = vmatprep.mubr.msk.f32.mxu1 %vm992_vm1, %v9716_v46 }
0x31e4   : > { %16057 = vmatprep.subr.mxu1 %v19200_v32 }
0x31e5   : > { %16058 = vmatpush3.msra.mxu1 %v19200_v32 }
0x31e6   : > { %16059 = vmatprep.subr.mxu1 %v19207_v30 }
0x31e7   : > { %16060 = vmatpush3.msra.mxu1 %v19207_v30 }
0x31e8   : > { %16061 = vmatprep.subr.mxu1 %v19211_v4 }
0x31e9   : > { %16062 = vmatpush3.msra.mxu1 %v19211_v4 }
0x31ea   : > { %16064 = vmatmul.mubr.msk.f32.vlgmr.msra.gmra.mxu1 %vm992_vm1, %v16036_v57 }
0x32a2   : > { %v16043_v28 = vpop.f32.mrf.mxu1 }
0x32a3   : > { %v9801_v60 = vmul.f32 2.0, %v16043_v28 }
0x32a4   : > { %v9791_v18 = vpop.f32.mrf.mxu1 }
0x32a5   : > { %v9800_v54 = vmul.f32 2.0, %v9791_v18  ;;  %v9803_v33 = vsub.f32 %v9801_v60, %v9649_v8  ;;  %v9912_v8 = vadd.f32 %v9910_v12, %v9903_v44 }
0x32a7   : > { %v9802_v26 = vsub.f32 %v9800_v54, %v9648_v11  ;;  %v10008_v11 = vmul.f32 %v19262_v31, %v19176_v61  ;;  %v19276_v61 = vld [vmem:[%s19963_s14 + $0x10] sm:$0xff] }
0x32a9   : > { %16074 = vmatprep.mubr.msk.f32.mxu0 %vm992_vm1, %v9802_v26  ;;  %v19271_v26 = vld [vmem:[%s19963_s14 + $0x18] sm:$0xff] }
0x32aa   : > { %16075 = vmatmul.mubr.msk.f32.vlgmr.msra.gmra.mxu0 %vm992_vm1, %v9803_v33  ;;  %v16065_v27 = vpop.f32.mrf.mxu1  ;;  %16077 = vmatprep.subr.mxu1 %v19271_v26 }
0x32ab   : > { %16092 = vmatprep.mubr.msk.f32.mxu0 %vm649_vm0, %v18865_v23  ;;  %v10001_v16 = vadd.f32 %v16065_v27, %v9913_v6  ;;  %16078 = vmatpush3.msra.mxu1 %v19271_v26  ;;  %v10101_v6 = vmul.f32 %v19188_v19, %v19050_v1  ;;  %v19322_v1 = vld [vmem:[#allocation2] ss:$0 sm:$0xff] }
0x32ac   : > { %v9991_v20 = vpop.f32.mrf.mxu1  ;;  %16079 = vmatprep.subr.mxu1 %v19276_v61 }
0x32ad   : > { %v10000_v57 = vadd.f32 %v9991_v20, %v9912_v8  ;;  %v10010_v46 = vadd.f32 %v10008_v11, %v10001_v16  ;;  %16080 = vmatpush3.msra.mxu1 %v19276_v61 }
0x32ae   : > { %16081 = vmatprep.subr.mxu1 %v19283_v51 }
0x32af   : > { %v10009_v29 = vadd.f32 %v10007_v48, %v10000_v57  ;;  %16082 = vmatpush3.msra.mxu1 %v19283_v51 }
0x32b0   : > { %16083 = vmatprep.subr.mxu1 %v19294_v35 }
0x32b1   : > { %16084 = vmatpush3.msra.mxu1 %v19294_v35 }
0x336a   : > { %v16076_v28 = vpop.f32.mrf.mxu0 }
0x336b   : > { %v10098_v60 = vadd.f32 %v16076_v28, %v10010_v46 }
0x336c   : > { %v10088_v18 = vpop.f32.mrf.mxu0 }
0x336d   : > { %16701 = vtanh.f32 %v10098_v60  ;;  %v10097_v54 = vadd.f32 %v10088_v18, %v10009_v29 }
0x336f   : > { %16703 = vtanh.f32 %v10097_v54 }
0x337a   : > { %v16702_v33 = vpop.eup %16701 }
0x337b   : > { %10109 = vrot.lane.b32.xlu1 %v16702_v33, %s17098_s18 }
0x337c   : > { %v16704_v3 = vpop.eup %16703 }
0x337d   : > { %10107 = vrot.lane.b32.xlu0 %v16704_v3, %s17098_s18 }
0x33ed   : > { %v10110_v24 = vpop.permute.xlu1 %10109 }
0x33ee   : > { %v10114_v27 = vmul.f32 %v10110_v24, %v10104_v41 }
0x33ef   : > { %v10108_v44 = vpop.permute.xlu0 %10107 }
0x33f0   : > { %v19302_v12 = vadd.f32 %v10114_v27, %v10102_v49  ;;  %v10113_v20 = vmul.f32 %v10108_v44, %v10103_v39 }
0x33f2   : > { %v19306_v16 = vadd.f32 %v10113_v20, %v10101_v6  ;;  %10127 = vrot.lane.b32.xlu1 %v19302_v12, %s17100_s17 }
0x33f4   : > { %10125 = vrot.lane.b32.xlu0 %v19306_v16, %s17100_s17 }
0x3464   : > { %v19314_v13 = vpop.permute.xlu1 %10127 }
0x3466   : > { %v19312_v36 = vpop.permute.xlu0 %10125 }
0x3467   : > { %16085 = vmatprep.mubr.msk.f32.mxu1 %vm992_vm1, %v19312_v36 }
0x3468   : > { %16086 = vmatmul.mubr.msk.f32.vlgmr.msra.gmra.mxu1 %vm992_vm1, %v19314_v13 }
0x3469   : > { %16099 = vmatprep.mubr.msk.f32.mxu1 %vm649_vm0, %v18865_v23 }
0x3528   : > { %v16087_v19 = vpop.f32.mrf.mxu1 }
0x3529   : > { %v19332_v8 = vadd.f32 %v16087_v19, %v19322_v1 }
0x352a   : > { %v10199_v11 = vpop.f32.mrf.mxu1 }
0x352b   : > { %v19335_v57 = vadd.f32 %v19322_v1, %v10199_v11  ;;  %10530 = vperm.xlu0 %16596, %v19332_v8   ;;  %16088 = vmatprep.subr.mxu0 %v19332_v8  ;;  %10210 = vst.msk [vmem:[%s19329_s22 + $0x8] sm:$0xff] %vm10208_vm2, %v19332_v8 }
0x352c   : > { %16089 = vmatpush3.msra.mxu0 %v19332_v8 }
0x352d   : > { %10525 = vperm.xlu1 %16595, %v19335_v57   ;;  %16090 = vmatprep.subr.mxu0 %v19335_v57  ;;  %10209 = vst.msk [vmem:[%s19329_s22] sm:$0xff] %vm10208_vm2, %v19335_v57 }
0x352e   : > { %16091 = vmatpush3.msra.mxu0 %v19335_v57 }
0x352f   : > { %16093 = vmatmul.mubr.msk.f32.vlgmr.msra.gmra.mxu0 %vm649_vm0, %v18860_v7  ;;  %16102 = vmatprep.subr.mxu0 %v19314_v13 }
0x3530   : > { %16103 = vmatpush3.msra.mxu0 %v19314_v13  ;;  %16106 = vmatprep.mubr.msk.f32.mxu0 %vm649_vm0, %v18865_v23 }
0x3531   : > { %16104 = vmatprep.subr.mxu0 %v19312_v36 }
0x3532   : > { %16105 = vmatpush3.msra.mxu0 %v19312_v36 }
0x3533   : > { %16107 = vmatmul.mubr.msk.f32.vlgmr.msra.gmra.mxu0 %vm649_vm0, %v18860_v7  ;;  %16116 = vmatprep.subr.mxu0 %v19016_v45 }
0x3534   : > { %16117 = vmatpush3.msra.mxu0 %v19016_v45  ;;  %16124 = vmatprep.mubr.msk.f32.mxu0 %vm992_vm1, %v19312_v36 }
0x3535   : > { %16118 = vmatprep.subr.mxu0 %v19021_v43 }
0x3536   : > { %16119 = vmatpush3.msra.mxu0 %v19021_v43 }
0x3537   : > { %16120 = vmatprep.subr.mxu0 %v19029_v34 }
0x3538   : > { %16121 = vmatpush3.msra.mxu0 %v19029_v34 }
0x3539   : > { %16122 = vmatprep.subr.mxu0 %v19038_v42 }
0x353a   : > { %16123 = vmatpush3.msra.mxu0 %v19038_v42 }
0x353b   : > { %16125 = vmatmul.mubr.msk.f32.vlgmr.msra.gmra.mxu0 %vm992_vm1, %v19314_v13  ;;  %16138 = vmatprep.subr.mxu0 %v19113_v53 }
0x353c   : > { %16139 = vmatpush3.msra.mxu0 %v19113_v53 }
0x353d   : > { %16140 = vmatprep.subr.mxu0 %v19120_v58 }
0x353e   : > { %16141 = vmatpush3.msra.mxu0 %v19120_v58 }
0x353f   : > { %16142 = vmatprep.subr.mxu0 %v19127_v56 }
0x3540   : > { %16143 = vmatpush3.msra.mxu0 %v19127_v56 }
0x3541   : > { %16144 = vmatprep.subr.mxu0 %v19134_v25 }
0x3542   : > { %16145 = vmatpush3.msra.mxu0 %v19134_v25 }
0x3543   : > { %16163 = vmatprep.subr.mxu0 %v19142_v55 }
0x35a6   : > { %v19412_v6 = vpop.permute.xlu0 %10530 }
0x35a8   : > { %v19414_v20 = vpop.permute.xlu1 %10525 }
0x35ef   : > { %v16094_v48 = vpop.f32.mrf.mxu0 }
0x35f0   : > { %10636 = vperm.xlu0 %16596, %v16094_v48   ;;  %16095 = vmatprep.subr.mxu1 %v16094_v48 }
0x35f1   : > { %v10277_v46 = vpop.f32.mrf.mxu0  ;;  %16096 = vmatpush3.msra.mxu1 %v16094_v48 }
0x35f2   : > { %10631 = vperm.xlu1 %16595, %v10277_v46   ;;  %16097 = vmatprep.subr.mxu1 %v10277_v46 }
0x35f3   : > { %16098 = vmatpush3.msra.mxu1 %v10277_v46  ;;  %v16108_v28 = vpop.f32.mrf.mxu0 }
0x35f4   : > { %16100 = vmatmul.mubr.msk.f32.vlgmr.msra.gmra.mxu1 %vm649_vm0, %v18860_v7  ;;  %16109 = vmatprep.subr.mxu1 %v16108_v28 }
0x35f5   : > { %v10433_v60 = vpop.f32.mrf.mxu0  ;;  %16110 = vmatpush3.msra.mxu1 %v16108_v28  ;;  %16113 = vmatprep.mubr.msk.f32.mxu1 %vm649_vm0, %v18865_v23 }
0x35f6   : > { %16111 = vmatprep.subr.mxu1 %v10433_v60 }
0x35f7   : > { %16112 = vmatpush3.msra.mxu1 %v10433_v60 }
0x35f8   : > { %16114 = vmatmul.mubr.msk.f32.vlgmr.msra.gmra.mxu1 %vm649_vm0, %v18860_v7  ;;  %16127 = vmatprep.subr.mxu1 %v19079_v17  ;;  %v19394_v7 = vld [vmem:[#allocation3] sm:$0xff] }
0x35f9   : > { %16128 = vmatpush3.msra.mxu1 %v19079_v17  ;;  %16135 = vmatprep.mubr.msk.f32.mxu1 %vm992_vm1, %v10433_v60 }
0x35fa   : > { %16129 = vmatprep.subr.mxu1 %v19084_v21 }
0x35fb   : > { %16130 = vmatpush3.msra.mxu1 %v19084_v21  ;;  %v16126_v19 = vpop.f32.mrf.mxu0 }
0x35fc   : > { %16131 = vmatprep.subr.mxu1 %v19094_v22 }
0x35fd   : > { %16132 = vmatpush3.msra.mxu1 %v19094_v22 }
0x35fe   : > { %16133 = vmatprep.subr.mxu1 %v19101_v15 }
0x35ff   : > { %16134 = vmatpush3.msra.mxu1 %v19101_v15 }
0x3600   : > { %16136 = vmatmul.mubr.msk.f32.vlgmr.msra.gmra.mxu1 %vm992_vm1, %v16108_v28 }
0x3601   : > { %16153 = vmatprep.mubr.msk.f32.mxu1 %vm649_vm0, %v19394_v7 }
0x36b4   : > { %v16101_v23 = vpop.f32.mrf.mxu1 }
0x36b5   : > { %v10362_v29 = vmul.f32 2.0, %v16101_v23 }
0x36b6   : > { %v10352_v18 = vpop.f32.mrf.mxu1 }
0x36b7   : > { %v10364_v54 = vsub.f32 %v10362_v29, %v19332_v8  ;;  %v10361_v33 = vmul.f32 2.0, %v10352_v18  ;;  %v19418_v8 = vpop.permute.xlu0 %10636 }
0x36b8   : > { %v16115_v3 = vpop.f32.mrf.mxu1 }
0x36b9   : > { %v10363_v41 = vsub.f32 %v10361_v33, %v19335_v57  ;;  %10742 = vperm.xlu0 %16596, %v10364_v54   ;;  %v10518_v24 = vmul.f32 2.0, %v16115_v3  ;;  %v10644_v57 = vmul.f32 %v19164_v38, %v19418_v8 }
0x36ba   : > { %v10508_v49 = vpop.f32.mrf.mxu1 }
0x36bb   : > { %v10517_v27 = vmul.f32 2.0, %v10508_v49  ;;  %10737 = vperm.xlu1 %16595, %v10363_v41   ;;  %v10520_v44 = vsub.f32 %v10518_v24, %v19314_v13 }
0x36bd   : > { %v10519_v39 = vsub.f32 %v10517_v27, %v19312_v36 }
0x36bf   : > { %16146 = vmatprep.mubr.msk.f32.mxu0 %vm992_vm1, %v10519_v39 }
0x36c0   : > { %16147 = vmatmul.mubr.msk.f32.vlgmr.msra.gmra.mxu0 %vm992_vm1, %v10520_v44  ;;  %v16137_v48 = vpop.f32.mrf.mxu1 }
0x36c1   : > { %16164 = vmatpush3.msra.mxu0 %v19142_v55  ;;  %v10538_v55 = vmul.f32 %v19158_v10, %v19412_v6 }
0x36c2   : > { %16165 = vmatprep.subr.mxu0 %v19144_v52  ;;  %v10723_v3 = vpop.f32.mrf.mxu1 }
0x36c3   : > { %16166 = vmatpush3.msra.mxu0 %v19144_v52  ;;  %v10537_v52 = vmul.f32 %v19158_v10, %v19414_v20  ;;  %v10546_v11 = vadd.f32 %v19161_v2, %v10538_v55 }
0x36c4   : > { %16167 = vmatprep.subr.mxu0 %v19148_v0 }
0x36c5   : > { %16168 = vmatpush3.msra.mxu0 %v19148_v0  ;;  %v19422_v0 = vpop.permute.xlu1 %10631  ;;  %v10627_v28 = vadd.f32 %v16126_v19, %v10546_v11  ;;  %v10545_v60 = vadd.f32 %v19161_v2, %v10537_v52 }
0x36c6   : > { %16169 = vmatprep.subr.mxu0 %v19154_v50  ;;  %v10643_v23 = vmul.f32 %v19164_v38, %v19422_v0 }
0x36c7   : > { %16170 = vmatpush3.msra.mxu0 %v19154_v50  ;;  %v10617_v50 = vpop.f32.mrf.mxu0  ;;  %v10646_v54 = vadd.f32 %v10644_v57, %v10627_v28 }
0x36c8   : > { %16185 = vmatprep.subr.mxu0 %v19218_v59  ;;  %v10626_v18 = vadd.f32 %v10617_v50, %v10545_v60 }
0x36c9   : > { %v10733_v41 = vadd.f32 %v16137_v48, %v10646_v54 }
0x36ca   : > { %v10645_v24 = vadd.f32 %v10643_v23, %v10626_v18 }
0x36cc   : > { %v10732_v27 = vadd.f32 %v10723_v3, %v10645_v24  ;;  %v11014_v3 = vmul.f32 %v19241_v63, %v19414_v20 }
0x3734   : > { %v19427_v46 = vpop.permute.xlu0 %10742 }
0x3735   : > { %v10750_v33 = vmul.f32 %v19174_v62, %v19427_v46  ;;  %v11213_v20 = vmul.f32 %v19262_v31, %v19427_v46 }
0x3736   : > { %v19432_v29 = vpop.permute.xlu1 %10737 }
0x3737   : > { %v10749_v49 = vmul.f32 %v19174_v62, %v19432_v29  ;;  %v10752_v39 = vadd.f32 %v10750_v33, %v10733_v41  ;;  %v19448_v33 = vld [vmem:[#allocation3 + $0x8] sm:$0xff] }
0x3739   : > { %v10751_v19 = vadd.f32 %v10749_v49, %v10732_v27  ;;  %v11022_v27 = vadd.f32 %v19247_v47, %v11014_v3 }
0x3780   : > { %v16148_v44 = vpop.f32.mrf.mxu0 }
0x3781   : > { %v10839_v55 = vadd.f32 %v16148_v44, %v10752_v39  ;;  %v11117_v44 = vmul.f32 %v19253_v14, %v19418_v8 }
0x3782   : > { %v10829_v52 = vpop.f32.mrf.mxu0 }
0x3783   : > { %v14277_v38 = vmul.f32 -1.442695, %v10839_v55  ;;  %v10838_v11 = vadd.f32 %v10829_v52, %v10751_v19  ;;  %v11116_v19 = vmul.f32 %v19253_v14, %v19422_v0 }
0x3785   : > { %16705 = vpow2.f32 %v14277_v38  ;;  %v14276_v50 = vmul.f32 -1.442695, %v10838_v11 }
0x3787   : > { %16707 = vpow2.f32 %v14276_v50 }
0x3792   : > { %v16706_v57 = vpop.eup %16705 }
0x3793   : > { %v10847_v28 = vadd.f32 1.0, %v16706_v57  ;;  %v11212_v57 = vmul.f32 %v19262_v31, %v19432_v29 }
0x3794   : > { %v16708_v60 = vpop.eup %16707 }
0x3795   : > { %16709 = vrcp.f32 %v10847_v28  ;;  %v10846_v48 = vadd.f32 1.0, %v16708_v60 }
0x3797   : > { %16711 = vrcp.f32 %v10846_v48 }
0x37a2   : > { %v19438_v23 = vpop.eup %16709 }
0x37a3   : > { %v10853_v62 = vmul.f32 %v19438_v23, %v19314_v13  ;;  %v11308_v46 = vsub.f32 1.0, %v19438_v23  ;;  %v11306_v31 = vmul.f32 %v19438_v23, %v19302_v12 }
0x37a4   : > { %v19442_v18 = vpop.eup %16711 }
0x37a5   : > { %16149 = vmatprep.subr.mxu1 %v10853_v62  ;;  %v10852_v54 = vmul.f32 %v19442_v18, %v19312_v36 }
0x37a6   : > { %16150 = vmatpush3.msra.mxu1 %v10853_v62 }
0x37a7   : > { %16151 = vmatprep.subr.mxu1 %v10852_v54  ;;  %16171 = vmatprep.mubr.msk.f32.mxu0 %vm992_vm1, %v10852_v54 }
0x37a8   : > { %16152 = vmatpush3.msra.mxu1 %v10852_v54  ;;  %16172 = vmatmul.mubr.msk.f32.vlgmr.msra.gmra.mxu0 %vm992_vm1, %v10853_v62 }
0x37a9   : > { %16154 = vmatmul.mubr.msk.f32.vlgmr.msra.gmra.mxu1 %vm649_vm0, %v19448_v33  ;;  %16186 = vmatpush3.msra.mxu0 %v19218_v59 }
0x37aa   : > { %16160 = vmatprep.mubr.msk.f32.mxu1 %vm649_vm0, %v19394_v7  ;;  %16187 = vmatprep.subr.mxu0 %v19222_v5 }
0x37ab   : > { %16188 = vmatpush3.msra.mxu0 %v19222_v5 }
0x37ac   : > { %16189 = vmatprep.subr.mxu0 %v19226_v37 }
0x37ad   : > { %16190 = vmatpush3.msra.mxu0 %v19226_v37  ;;  %v11015_v37 = vmul.f32 %v19241_v63, %v19412_v6 }
0x37ae   : > { %16191 = vmatprep.subr.mxu0 %v19230_v40 }
0x37af   : > { %16192 = vmatpush3.msra.mxu0 %v19230_v40  ;;  %v11023_v41 = vadd.f32 %v19247_v47, %v11015_v37 }
0x3868   : > { %v16173_v40 = vpop.f32.mrf.mxu0 }
0x3869   : > { %v16155_v36 = vpop.f32.mrf.mxu1  ;;  %v11110_v49 = vadd.f32 %v16173_v40, %v11023_v41 }
0x386a   : > { %16156 = vmatprep.subr.mxu1 %v16155_v36  ;;  %v11100_v24 = vpop.f32.mrf.mxu0 }
0x386b   : > { %v10920_v13 = vpop.f32.mrf.mxu1  ;;  %16157 = vmatpush3.msra.mxu1 %v16155_v36  ;;  %v11109_v55 = vadd.f32 %v11100_v24, %v11022_v27  ;;  %v11119_v52 = vadd.f32 %v11117_v44, %v11110_v49  ;;  %v19591_v24 = vld [vmem:[#allocation16 + $0x18] sm:$0xff]  ;;  %v19593_v49 = vld [vmem:[#allocation16 + $0x10] sm:$0xff]  ;;  %v19597_v27 = vld [vmem:[#allocation16 + $0x8] sm:$0xff] }
0x386c   : > { %16158 = vmatprep.subr.mxu1 %v10920_v13 }
0x386d   : > { %16159 = vmatpush3.msra.mxu1 %v10920_v13  ;;  %v11118_v11 = vadd.f32 %v11116_v19, %v11109_v55 }
0x386e   : > { %16161 = vmatmul.mubr.msk.f32.vlgmr.msra.gmra.mxu1 %vm649_vm0, %v19448_v33  ;;  %16174 = vmatprep.subr.mxu1 %v19198_v9 }
0x386f   : > { %16175 = vmatpush3.msra.mxu1 %v19198_v9  ;;  %16182 = vmatprep.mubr.msk.f32.mxu1 %vm992_vm1, %v10920_v13 }
0x3870   : > { %16176 = vmatprep.subr.mxu1 %v19200_v32 }
0x3871   : > { %16177 = vmatpush3.msra.mxu1 %v19200_v32 }
0x3872   : > { %16178 = vmatprep.subr.mxu1 %v19207_v30 }
0x3873   : > { %16179 = vmatpush3.msra.mxu1 %v19207_v30 }
0x3874   : > { %16180 = vmatprep.subr.mxu1 %v19211_v4 }
0x3875   : > { %16181 = vmatpush3.msra.mxu1 %v19211_v4 }
0x3876   : > { %16183 = vmatmul.mubr.msk.f32.vlgmr.msra.gmra.mxu1 %vm992_vm1, %v16155_v36  ;;  %16196 = vmatprep.subr.mxu1 %v19271_v26  ;;  %v11307_v36 = vsub.f32 1.0, %v19442_v18 }
0x3877   : > { %16197 = vmatpush3.msra.mxu1 %v19271_v26 }
0x3878   : > { %16198 = vmatprep.subr.mxu1 %v19276_v61 }
0x3879   : > { %16199 = vmatpush3.msra.mxu1 %v19276_v61 }
0x387a   : > { %16200 = vmatprep.subr.mxu1 %v19283_v51 }
0x387b   : > { %16201 = vmatpush3.msra.mxu1 %v19283_v51 }
0x387c   : > { %16202 = vmatprep.subr.mxu1 %v19294_v35 }
0x387d   : > { %16203 = vmatpush3.msra.mxu1 %v19294_v35 }
0x392e   : > { %v16162_v9 = vpop.f32.mrf.mxu1 }
0x392f   : > { %v11005_v32 = vmul.f32 2.0, %v16162_v9 }
0x3930   : > { %v10995_v30 = vpop.f32.mrf.mxu1 }
0x3931   : > { %v11004_v4 = vmul.f32 2.0, %v10995_v30  ;;  %v11007_v5 = vsub.f32 %v11005_v32, %v10853_v62  ;;  %v11305_v32 = vmul.f32 %v19442_v18, %v19306_v16 }
0x3933   : > { %v11006_v59 = vsub.f32 %v11004_v4, %v10852_v54 }
0x3935   : > { %16193 = vmatprep.mubr.msk.f32.mxu0 %vm992_vm1, %v11006_v59 }
0x3936   : > { %16194 = vmatmul.mubr.msk.f32.vlgmr.msra.gmra.mxu0 %vm992_vm1, %v11007_v5  ;;  %v16184_v39 = vpop.f32.mrf.mxu1 }
0x3937   : > { %16211 = vmatprep.mubr.msk.f32.mxu0 %vm649_vm0, %v19394_v7  ;;  %v11206_v38 = vadd.f32 %v16184_v39, %v11119_v52  ;;  %v19603_v39 = vld [vmem:[#allocation16] sm:$0xff] }
0x3938   : > { %v11196_v6 = vpop.f32.mrf.mxu1 }
0x3939   : > { %v11205_v50 = vadd.f32 %v11196_v6, %v11118_v11  ;;  %v11215_v47 = vadd.f32 %v11213_v20, %v11206_v38  ;;  %v19613_v6 = vld [vmem:[#allocation13 + $0x1] ss:$0 sm:$0xff] }
0x393b   : > { %v11214_v48 = vadd.f32 %v11212_v57, %v11205_v50 }
0x39f6   : > { %v16195_v28 = vpop.f32.mrf.mxu0 }
0x39f7   : > { %v11302_v60 = vadd.f32 %v16195_v28, %v11215_v47 }
0x39f8   : > { %v11292_v8 = vpop.f32.mrf.mxu0 }
0x39f9   : > { %16713 = vtanh.f32 %v11302_v60  ;;  %v11301_v62 = vadd.f32 %v11292_v8, %v11214_v48  ;;  %v19624_v60 = vld [vmem:[#allocation13 + $0x2] ss:$0 sm:$0xff] }
0x39fb   : > { %16715 = vtanh.f32 %v11301_v62 }
0x3a06   : > { %v16714_v14 = vpop.eup %16713 }
0x3a07   : > { %11313 = vrot.lane.b32.xlu1 %v16714_v14, %s17098_s18 }
0x3a08   : > { %v16716_v0 = vpop.eup %16715 }
0x3a09   : > { %11311 = vrot.lane.b32.xlu0 %v16716_v0, %s17098_s18 }
0x3a79   : > { %v11314_v54 = vpop.permute.xlu1 %11313 }
0x3a7a   : > { %v11318_v29 = vmul.f32 %v11314_v54, %v11308_v46 }
0x3a7b   : > { %v11312_v13 = vpop.permute.xlu0 %11311 }
0x3a7c   : > { %v19505_v9 = vadd.f32 %v11318_v29, %v11306_v31  ;;  %v11317_v30 = vmul.f32 %v11312_v13, %v11307_v36 }
0x3a7e   : > { %v19509_v4 = vadd.f32 %v11317_v30, %v11305_v32  ;;  %11325 = vrot.lane.b32.xlu1 %v19505_v9, %s17100_s17 }
0x3a80   : > { %11323 = vrot.lane.b32.xlu0 %v19509_v4, %s17100_s17 }
0x3af0   : > { %v19517_v12 = vpop.permute.xlu1 %11325 }
0x3af2   : > { %v19515_v59 = vpop.permute.xlu0 %11323 }
0x3af3   : > { %16204 = vmatprep.mubr.msk.f32.mxu1 %vm992_vm1, %v19515_v59 }
0x3af4   : > { %16205 = vmatmul.mubr.msk.f32.vlgmr.msra.gmra.mxu1 %vm992_vm1, %v19517_v12 }
0x3af5   : > { %16218 = vmatprep.mubr.msk.f32.mxu1 %vm649_vm0, %v19394_v7 }
0x3bb4   : > { %v16206_v16 = vpop.f32.mrf.mxu1 }
0x3bb5   : > { %v19526_v23 = vadd.f32 %v16206_v16, %v19322_v1 }
0x3bb6   : > { %v11397_v18 = vpop.f32.mrf.mxu1 }
0x3bb7   : > { %v19529_v5 = vadd.f32 %v19322_v1, %v11397_v18  ;;  %11734 = vperm.xlu0 %16596, %v19526_v23   ;;  %16207 = vmatprep.subr.mxu0 %v19526_v23 }
0x3bb8   : > { %16208 = vmatpush3.msra.mxu0 %v19526_v23 }
0x3bb9   : > { %11730 = vperm.xlu1 %16595, %v19529_v5   ;;  %16209 = vmatprep.subr.mxu0 %v19529_v5 }
0x3bba   : > { %16210 = vmatpush3.msra.mxu0 %v19529_v5 }
0x3bbb   : > { %16212 = vmatmul.mubr.msk.f32.vlgmr.msra.gmra.mxu0 %vm649_vm0, %v19448_v33  ;;  %16221 = vmatprep.subr.mxu0 %v19517_v12 }
0x3bbc   : > { %16222 = vmatpush3.msra.mxu0 %v19517_v12  ;;  %16225 = vmatprep.mubr.msk.f32.mxu0 %vm649_vm0, %v19394_v7 }
0x3bbd   : > { %16223 = vmatprep.subr.mxu0 %v19515_v59 }
0x3bbe   : > { %16224 = vmatpush3.msra.mxu0 %v19515_v59 }
0x3bbf   : > { %16226 = vmatmul.mubr.msk.f32.vlgmr.msra.gmra.mxu0 %vm649_vm0, %v19448_v33  ;;  %16235 = vmatprep.subr.mxu0 %v19016_v45 }
0x3bc0   : > { %16236 = vmatpush3.msra.mxu0 %v19016_v45  ;;  %16243 = vmatprep.mubr.msk.f32.mxu0 %vm992_vm1, %v19515_v59 }
0x3bc1   : > { %16237 = vmatprep.subr.mxu0 %v19021_v43 }
0x3bc2   : > { %16238 = vmatpush3.msra.mxu0 %v19021_v43 }
0x3bc3   : > { %16239 = vmatprep.subr.mxu0 %v19029_v34 }
0x3bc4   : > { %16240 = vmatpush3.msra.mxu0 %v19029_v34 }
0x3bc5   : > { %16241 = vmatprep.subr.mxu0 %v19038_v42 }
0x3bc6   : > { %16242 = vmatpush3.msra.mxu0 %v19038_v42 }
0x3bc7   : > { %16244 = vmatmul.mubr.msk.f32.vlgmr.msra.gmra.mxu0 %vm992_vm1, %v19517_v12  ;;  %16257 = vmatprep.subr.mxu0 %v19113_v53 }
0x3bc8   : > { %16258 = vmatpush3.msra.mxu0 %v19113_v53 }
0x3bc9   : > { %16259 = vmatprep.subr.mxu0 %v19120_v58 }
0x3bca   : > { %16260 = vmatpush3.msra.mxu0 %v19120_v58 }
0x3bcb   : > { %16261 = vmatprep.subr.mxu0 %v19127_v56 }
0x3bcc   : > { %16262 = vmatpush3.msra.mxu0 %v19127_v56 }
0x3bcd   : > { %16263 = vmatprep.subr.mxu0 %v19134_v25 }
0x3bce   : > { %16264 = vmatpush3.msra.mxu0 %v19134_v25 }
0x3bcf   : > { %16282 = vmatprep.subr.mxu0 %v19591_v24 }
0x3c32   : > { %v19607_v44 = vpop.permute.xlu0 %11734 }
0x3c33   : > { %v11742_v19 = vmul.f32 %v19158_v10, %v19607_v44 }
0x3c34   : > { %v19609_v55 = vpop.permute.xlu1 %11730 }
0x3c35   : > { %v11741_v11 = vmul.f32 %v19158_v10, %v19609_v55  ;;  %v11750_v50 = vadd.f32 %v19161_v2, %v11742_v19  ;;  %v19679_v19 = vld [vmem:[#allocation16 + $0x58] sm:$0xff] }
0x3c37   : > { %v11749_v62 = vadd.f32 %v19161_v2, %v11741_v11 }
0x3c7b   : > { %v16213_v45 = vpop.f32.mrf.mxu0 }
0x3c7c   : > { %11840 = vperm.xlu0 %16596, %v16213_v45   ;;  %16214 = vmatprep.subr.mxu1 %v16213_v45 }
0x3c7d   : > { %v11483_v43 = vpop.f32.mrf.mxu0  ;;  %16215 = vmatpush3.msra.mxu1 %v16213_v45 }
0x3c7e   : > { %11835 = vperm.xlu1 %16595, %v11483_v43   ;;  %16216 = vmatprep.subr.mxu1 %v11483_v43 }
0x3c7f   : > { %16217 = vmatpush3.msra.mxu1 %v11483_v43  ;;  %v16227_v34 = vpop.f32.mrf.mxu0 }
0x3c80   : > { %16219 = vmatmul.mubr.msk.f32.vlgmr.msra.gmra.mxu1 %vm649_vm0, %v19448_v33  ;;  %16228 = vmatprep.subr.mxu1 %v16227_v34 }
0x3c81   : > { %v11639_v42 = vpop.f32.mrf.mxu0  ;;  %16229 = vmatpush3.msra.mxu1 %v16227_v34  ;;  %16232 = vmatprep.mubr.msk.f32.mxu1 %vm649_vm0, %v19394_v7 }
0x3c82   : > { %16230 = vmatprep.subr.mxu1 %v11639_v42 }
0x3c83   : > { %16231 = vmatpush3.msra.mxu1 %v11639_v42 }
0x3c84   : > { %16233 = vmatmul.mubr.msk.f32.vlgmr.msra.gmra.mxu1 %vm649_vm0, %v19448_v33  ;;  %16246 = vmatprep.subr.mxu1 %v19079_v17 }
0x3c85   : > { %16247 = vmatpush3.msra.mxu1 %v19079_v17  ;;  %16254 = vmatprep.mubr.msk.f32.mxu1 %vm992_vm1, %v11639_v42 }
0x3c86   : > { %16248 = vmatprep.subr.mxu1 %v19084_v21 }
0x3c87   : > { %16249 = vmatpush3.msra.mxu1 %v19084_v21  ;;  %v16245_v52 = vpop.f32.mrf.mxu0 }
0x3c88   : > { %16250 = vmatprep.subr.mxu1 %v19094_v22  ;;  %v11831_v8 = vadd.f32 %v16245_v52, %v11750_v50  ;;  %v19683_v52 = vld [vmem:[#allocation16 + $0x50] sm:$0xff] }
0x3c89   : > { %16251 = vmatpush3.msra.mxu1 %v19094_v22  ;;  %v11821_v57 = vpop.f32.mrf.mxu0 }
0x3c8a   : > { %16252 = vmatprep.subr.mxu1 %v19101_v15  ;;  %v11830_v0 = vadd.f32 %v11821_v57, %v11749_v62 }
0x3c8b   : > { %16253 = vmatpush3.msra.mxu1 %v19101_v15 }
0x3c8c   : > { %16255 = vmatmul.mubr.msk.f32.vlgmr.msra.gmra.mxu1 %vm992_vm1, %v16227_v34 }
0x3c8d   : > { %16272 = vmatprep.mubr.msk.f32.mxu1 %vm649_vm0, %v19394_v7 }
0x3cf7   : > { %v19615_v38 = vpop.permute.xlu0 %11840 }
0x3cf8   : > { %v11848_v47 = vmul.f32 %v19613_v6, %v19615_v38 }
0x3cf9   : > { %v19619_v20 = vpop.permute.xlu1 %11835 }
0x3cfa   : > { %v11847_v14 = vmul.f32 %v19613_v6, %v19619_v20  ;;  %v11850_v46 = vadd.f32 %v11848_v47, %v11831_v8  ;;  %v19704_v8 = vld [vmem:[%s19962_s13] ss:$0 sm:$0xff] }
0x3cfc   : > { %v11849_v36 = vadd.f32 %v11847_v14, %v11830_v0  ;;  %v12218_v14 = vmul.f32 %v19241_v63, %v19609_v55  ;;  %v19722_v55 = vld [vmem:[%s19960_s11 + $0x2] ss:$0 sm:$0xff] }
0x3d40   : > { %v16220_v17 = vpop.f32.mrf.mxu1 }
0x3d41   : > { %v11568_v53 = vmul.f32 2.0, %v16220_v17 }
0x3d42   : > { %v11558_v58 = vpop.f32.mrf.mxu1 }
0x3d43   : > { %v11570_v56 = vsub.f32 %v11568_v53, %v19526_v23  ;;  %v11567_v25 = vmul.f32 2.0, %v11558_v58 }
0x3d44   : > { %v16234_v21 = vpop.f32.mrf.mxu1 }
0x3d45   : > { %v11569_v37 = vsub.f32 %v11567_v25, %v19529_v5  ;;  %11946 = vperm.xlu0 %16596, %v11570_v56   ;;  %v11724_v22 = vmul.f32 2.0, %v16234_v21 }
0x3d46   : > { %v11714_v40 = vpop.f32.mrf.mxu1 }
0x3d47   : > { %v11723_v3 = vmul.f32 2.0, %v11714_v40  ;;  %11941 = vperm.xlu1 %16595, %v11569_v37   ;;  %v11726_v41 = vsub.f32 %v11724_v22, %v19517_v12 }
0x3d49   : > { %v11725_v15 = vsub.f32 %v11723_v3, %v19515_v59  ;;  %v19651_v3 = vld [vmem:[#allocation16 + $0x38] sm:$0xff] }
0x3d4b   : > { %16265 = vmatprep.mubr.msk.f32.mxu0 %vm992_vm1, %v11725_v15  ;;  %v19660_v15 = vld [vmem:[#allocation16 + $0x28] sm:$0xff] }
0x3d4c   : > { %16266 = vmatmul.mubr.msk.f32.vlgmr.msra.gmra.mxu0 %vm992_vm1, %v11726_v41  ;;  %v16256_v28 = vpop.f32.mrf.mxu1  ;;  %v19664_v41 = vld [vmem:[#allocation16 + $0x20] sm:$0xff] }
0x3d4d   : > { %16283 = vmatpush3.msra.mxu0 %v19591_v24  ;;  %v11937_v29 = vadd.f32 %v16256_v28, %v11850_v46  ;;  %v12219_v28 = vmul.f32 %v19241_v63, %v19607_v44  ;;  %v19712_v46 = vld [vmem:[%s19960_s11 + $0x1] ss:$0 sm:$0xff]  ;;  %v12226_v44 = vadd.f32 %v19704_v8, %v12218_v14 }
0x3d4e   : > { %16284 = vmatprep.subr.mxu0 %v19593_v49  ;;  %v11927_v31 = vpop.f32.mrf.mxu1  ;;  %v12955_v14 = vld [vmem:[%s19958_s9] sm:$0xff] }
0x3d4f   : > { %16285 = vmatpush3.msra.mxu0 %v19593_v49  ;;  %v11936_v32 = vadd.f32 %v11927_v31, %v11849_v36  ;;  %v12227_v0 = vadd.f32 %v19704_v8, %v12219_v28  ;;  %v12321_v36 = vmul.f32 %v19712_v46, %v19615_v38  ;;  %v12957_v28 = vld [vmem:[%s19958_s9 + $0x10] sm:$0xff] }
0x3d50   : > { %16286 = vmatprep.subr.mxu0 %v19597_v27 }
0x3d51   : > { %16287 = vmatpush3.msra.mxu0 %v19597_v27 }
0x3d52   : > { %16288 = vmatprep.subr.mxu0 %v19603_v39 }
0x3d53   : > { %16289 = vmatpush3.msra.mxu0 %v19603_v39 }
0x3d54   : > { %16304 = vmatprep.subr.mxu0 %v19679_v19 }
0x3dc0   : > { %v19626_v48 = vpop.permute.xlu0 %11946 }
0x3dc1   : > { %v11954_v54 = vmul.f32 %v19624_v60, %v19626_v48 }
0x3dc2   : > { %v19631_v10 = vpop.permute.xlu1 %11941 }
0x3dc3   : > { %v11953_v13 = vmul.f32 %v19624_v60, %v19631_v10  ;;  %v11956_v30 = vadd.f32 %v11954_v54, %v11937_v29  ;;  %v12416_v38 = vmul.f32 %v19722_v55, %v19631_v10 }
0x3dc5   : > { %v11955_v18 = vadd.f32 %v11953_v13, %v11936_v32  ;;  %v12320_v32 = vmul.f32 %v19712_v46, %v19619_v20 }
0x3e0c   : > { %v16267_v16 = vpop.f32.mrf.mxu0 }
0x3e0d   : > { %v12043_v2 = vadd.f32 %v16267_v16, %v11956_v30 }
0x3e0e   : > { %v12033_v45 = vpop.f32.mrf.mxu0 }
0x3e0f   : > { %v14321_v43 = vmul.f32 -1.442695, %v12043_v2  ;;  %v12042_v34 = vadd.f32 %v12033_v45, %v11955_v18  ;;  %v12417_v18 = vmul.f32 %v19722_v55, %v19626_v48 }
0x3e11   : > { %16717 = vpow2.f32 %v14321_v43  ;;  %v14320_v42 = vmul.f32 -1.442695, %v12042_v34 }
0x3e13   : > { %16719 = vpow2.f32 %v14320_v42 }
0x3e1e   : > { %v16718_v17 = vpop.eup %16717 }
0x3e1f   : > { %v12051_v53 = vadd.f32 1.0, %v16718_v17 }
0x3e20   : > { %v16720_v58 = vpop.eup %16719 }
0x3e21   : > { %16721 = vrcp.f32 %v12051_v53  ;;  %v12050_v56 = vadd.f32 1.0, %v16720_v58 }
0x3e23   : > { %16723 = vrcp.f32 %v12050_v56 }
0x3e2e   : > { %v19637_v25 = vpop.eup %16721 }
0x3e2f   : > { %v12057_v21 = vmul.f32 %v19637_v25, %v19517_v12  ;;  %v12512_v48 = vsub.f32 1.0, %v19637_v25  ;;  %v12510_v10 = vmul.f32 %v19637_v25, %v19505_v9 }
0x3e30   : > { %v19641_v37 = vpop.eup %16723 }
0x3e31   : > { %16268 = vmatprep.subr.mxu1 %v12057_v21  ;;  %v12056_v22 = vmul.f32 %v19641_v37, %v19515_v59  ;;  %v19653_v59 = vld [vmem:[#allocation16 + $0x30] sm:$0xff] }
0x3e32   : > { %16269 = vmatpush3.msra.mxu1 %v12057_v21 }
0x3e33   : > { %16270 = vmatprep.subr.mxu1 %v12056_v22  ;;  %16290 = vmatprep.mubr.msk.f32.mxu0 %vm992_vm1, %v12056_v22 }
0x3e34   : > { %16271 = vmatpush3.msra.mxu1 %v12056_v22  ;;  %16291 = vmatmul.mubr.msk.f32.vlgmr.msra.gmra.mxu0 %vm992_vm1, %v12057_v21 }
0x3e35   : > { %16273 = vmatmul.mubr.msk.f32.vlgmr.msra.gmra.mxu1 %vm649_vm0, %v19448_v33  ;;  %16305 = vmatpush3.msra.mxu0 %v19679_v19 }
0x3e36   : > { %16279 = vmatprep.mubr.msk.f32.mxu1 %vm649_vm0, %v19394_v7  ;;  %16306 = vmatprep.subr.mxu0 %v19683_v52 }
0x3e37   : > { %16307 = vmatpush3.msra.mxu0 %v19683_v52 }
0x3ef4   : > { %v16292_v62 = vpop.f32.mrf.mxu0 }
0x3ef5   : > { %v16274_v12 = vpop.f32.mrf.mxu1  ;;  %v12314_v31 = vadd.f32 %v16292_v62, %v12227_v0  ;;  %v12956_v62 = vld [vmem:[%s19958_s9 + $0x8] sm:$0xff] }
0x3ef6   : > { %16275 = vmatprep.subr.mxu1 %v16274_v12  ;;  %v12304_v54 = vpop.f32.mrf.mxu0 }
0x3ef7   : > { %v12124_v40 = vpop.f32.mrf.mxu1  ;;  %16276 = vmatpush3.msra.mxu1 %v16274_v12  ;;  %v12313_v13 = vadd.f32 %v12304_v54, %v12226_v44  ;;  %v12323_v63 = vadd.f32 %v12321_v36, %v12314_v31  ;;  %v14353_v36 = vld [vmem:[%s19958_s9 + $0x30] sm:$0xff] }
0x3ef8   : > { %16277 = vmatprep.subr.mxu1 %v12124_v40 }
0x3ef9   : > { %16278 = vmatpush3.msra.mxu1 %v12124_v40  ;;  %v12322_v2 = vadd.f32 %v12320_v32, %v12313_v13  ;;  %v14352_v13 = vld [vmem:[%s19958_s9 + $0x28] sm:$0xff]  ;;  %v14351_v32 = vld [vmem:[%s19958_s9 + $0x20] sm:$0xff] }
0x3efa   : > { %16280 = vmatmul.mubr.msk.f32.vlgmr.msra.gmra.mxu1 %vm649_vm0, %v19448_v33  ;;  %16293 = vmatprep.subr.mxu1 %v19651_v3 }
0x3efb   : > { %16294 = vmatpush3.msra.mxu1 %v19651_v3  ;;  %16301 = vmatprep.mubr.msk.f32.mxu1 %vm992_vm1, %v12124_v40 }
0x3efc   : > { %16295 = vmatprep.subr.mxu1 %v19653_v59 }
0x3efd   : > { %16296 = vmatpush3.msra.mxu1 %v19653_v59 }
0x3efe   : > { %16297 = vmatprep.subr.mxu1 %v19660_v15 }
0x3eff   : > { %16298 = vmatpush3.msra.mxu1 %v19660_v15 }
0x3f00   : > { %16299 = vmatprep.subr.mxu1 %v19664_v41 }
0x3f01   : > { %16300 = vmatpush3.msra.mxu1 %v19664_v41 }
0x3f02   : > { %16302 = vmatmul.mubr.msk.f32.vlgmr.msra.gmra.mxu1 %vm992_vm1, %v16274_v12  ;;  %16315 = vmatprep.subr.mxu1 %v19271_v26  ;;  %v12511_v12 = vsub.f32 1.0, %v19641_v37 }
0x3f03   : > { %16316 = vmatpush3.msra.mxu1 %v19271_v26  ;;  %v19687_v26 = vld [vmem:[#allocation16 + $0x48] sm:$0xff] }
0x3f04   : > { %16317 = vmatprep.subr.mxu1 %v19276_v61  ;;  %16308 = vmatprep.subr.mxu0 %v19687_v26 }
0x3f05   : > { %16318 = vmatpush3.msra.mxu1 %v19276_v61  ;;  %16309 = vmatpush3.msra.mxu0 %v19687_v26  ;;  %v19691_v61 = vld [vmem:[#allocation16 + $0x40] sm:$0xff] }
0x3f06   : > { %16319 = vmatprep.subr.mxu1 %v19283_v51  ;;  %16310 = vmatprep.subr.mxu0 %v19691_v61 }
0x3f07   : > { %16320 = vmatpush3.msra.mxu1 %v19283_v51  ;;  %16311 = vmatpush3.msra.mxu0 %v19691_v61 }
0x3f08   : > { %16321 = vmatprep.subr.mxu1 %v19294_v35 }
0x3f09   : > { %16322 = vmatpush3.msra.mxu1 %v19294_v35 }
0x3fba   : > { %v16281_v51 = vpop.f32.mrf.mxu1 }
0x3fbb   : > { %v12209_v35 = vmul.f32 2.0, %v16281_v51 }
0x3fbc   : > { %v12199_v11 = vpop.f32.mrf.mxu1 }
0x3fbd   : > { %v12208_v50 = vmul.f32 2.0, %v12199_v11  ;;  %v12211_v47 = vsub.f32 %v12209_v35, %v12057_v21  ;;  %v12509_v35 = vmul.f32 %v19641_v37, %v19509_v4 }
0x3fbf   : > { %v12210_v57 = vsub.f32 %v12208_v50, %v12056_v22 }
0x3fc1   : > { %16312 = vmatprep.mubr.msk.f32.mxu0 %vm992_vm1, %v12210_v57 }
0x3fc2   : > { %16313 = vmatmul.mubr.msk.f32.vlgmr.msra.gmra.mxu0 %vm992_vm1, %v12211_v47  ;;  %v16303_v29 = vpop.f32.mrf.mxu1 }
0x3fc3   : > { %16330 = vmatprep.mubr.msk.f32.mxu0 %vm649_vm0, %v19394_v7  ;;  %v12410_v16 = vadd.f32 %v16303_v29, %v12323_v63  ;;  %v14354_v29 = vld [vmem:[%s19958_s9 + $0x38] sm:$0xff] }
0x3fc4   : > { %v12400_v30 = vpop.f32.mrf.mxu1  ;;  %v14361_v63 = vld [vmem:[%s19958_s9 + $0x58] sm:$0xff] }
0x3fc5   : > { %v12409_v45 = vadd.f32 %v12400_v30, %v12322_v2  ;;  %v12419_v43 = vadd.f32 %v12417_v18, %v12410_v16  ;;  %v14360_v30 = vld [vmem:[%s19958_s9 + $0x50] sm:$0xff]  ;;  %v14359_v16 = vld [vmem:[%s19958_s9 + $0x48] sm:$0xff] }
0x3fc7   : > { %v12418_v20 = vadd.f32 %v12416_v38, %v12409_v45 }
0x4082   : > { %v16314_v34 = vpop.f32.mrf.mxu0 }
0x4083   : > { %v12506_v42 = vadd.f32 %v16314_v34, %v12419_v43 }
0x4084   : > { %v12496_v17 = vpop.f32.mrf.mxu0 }
0x4085   : > { %16725 = vtanh.f32 %v12506_v42  ;;  %v12505_v53 = vadd.f32 %v12496_v17, %v12418_v20 }
0x4087   : > { %16727 = vtanh.f32 %v12505_v53 }
0x4092   : > { %v16726_v58 = vpop.eup %16725 }
0x4093   : > { %12517 = vrot.lane.b32.xlu1 %v16726_v58, %s17098_s18 }
0x4094   : > { %v16728_v56 = vpop.eup %16727 }
0x4095   : > { %12515 = vrot.lane.b32.xlu0 %v16728_v56, %s17098_s18 }
0x4105   : > { %v12518_v21 = vpop.permute.xlu1 %12517 }
0x4106   : > { %v12522_v22 = vmul.f32 %v12518_v21, %v12512_v48  ;;  %v14346_v48 = vld [vmem:[#allocation13] ss:$0 sm:$0xff] }
0x4107   : > { %v12516_v40 = vpop.permute.xlu0 %12515 }
0x4108   : > { %v19734_v51 = vadd.f32 %v12522_v22, %v12510_v10  ;;  %v12521_v11 = vmul.f32 %v12516_v40, %v12511_v12  ;;  %v14347_v12 = vld [vmem:[#allocation14] ss:$0 sm:$0xff] }
0x410a   : > { %v19738_v50 = vadd.f32 %v12521_v11, %v12509_v35  ;;  %12529 = vrot.lane.b32.xlu1 %v19734_v51, %s17100_s17 }
0x410c   : > { %12527 = vrot.lane.b32.xlu0 %v19738_v50, %s17100_s17 }
0x417c   : > { %v19746_v9 = vpop.permute.xlu1 %12529 }
0x417e   : > { %v19744_v57 = vpop.permute.xlu0 %12527 }
0x417f   : > { %16323 = vmatprep.mubr.msk.f32.mxu1 %vm992_vm1, %v19744_v57 }
0x4180   : > { %16324 = vmatmul.mubr.msk.f32.vlgmr.msra.gmra.mxu1 %vm992_vm1, %v19746_v9 }
0x4181   : > { %16337 = vmatprep.mubr.msk.f32.mxu1 %vm649_vm0, %v19394_v7 }
0x4240   : > { %v16325_v4 = vpop.f32.mrf.mxu1 }
0x4241   : > { %v19755_v25 = vadd.f32 %v16325_v4, %v19322_v1 }
0x4242   : > { %v12601_v37 = vpop.f32.mrf.mxu1 }
0x4243   : > { %v19758_v47 = vadd.f32 %v19322_v1, %v12601_v37  ;;  %12938 = vperm.xlu0 %16596, %v19755_v25   ;;  %16326 = vmatprep.subr.mxu0 %v19755_v25  ;;  %v12958_v1 = vld [vmem:[%s19958_s9 + $0x18] sm:$0xff] }
0x4244   : > { %16327 = vmatpush3.msra.mxu0 %v19755_v25 }
0x4245   : > { %12934 = vperm.xlu1 %16595, %v19758_v47   ;;  %16328 = vmatprep.subr.mxu0 %v19758_v47 }
0x4246   : > { %16329 = vmatpush3.msra.mxu0 %v19758_v47 }
0x4247   : > { %16331 = vmatmul.mubr.msk.f32.vlgmr.msra.gmra.mxu0 %vm649_vm0, %v19448_v33  ;;  %16340 = vmatprep.subr.mxu0 %v19746_v9 }
0x4248   : > { %16341 = vmatpush3.msra.mxu0 %v19746_v9  ;;  %16344 = vmatprep.mubr.msk.f32.mxu0 %vm649_vm0, %v19394_v7 }
0x4249   : > { %16342 = vmatprep.subr.mxu0 %v19744_v57 }
0x424a   : > { %16343 = vmatpush3.msra.mxu0 %v19744_v57 }
0x424b   : > { %16345 = vmatmul.mubr.msk.f32.vlgmr.msra.gmra.mxu0 %vm649_vm0, %v19448_v33  ;;  %16354 = vmatprep.subr.mxu0 %v12958_v1 }
0x424c   : > { %16355 = vmatpush3.msra.mxu0 %v12958_v1  ;;  %16362 = vmatprep.mubr.msk.f32.mxu0 %vm992_vm1, %v19744_v57 }
0x424d   : > { %16356 = vmatprep.subr.mxu0 %v12957_v28 }
0x424e   : > { %16357 = vmatpush3.msra.mxu0 %v12957_v28 }
0x424f   : > { %16358 = vmatprep.subr.mxu0 %v12956_v62 }
0x4250   : > { %16359 = vmatpush3.msra.mxu0 %v12956_v62 }
0x4251   : > { %16360 = vmatprep.subr.mxu0 %v12955_v14 }
0x4252   : > { %16361 = vmatpush3.msra.mxu0 %v12955_v14 }
0x4253   : > { %16363 = vmatmul.mubr.msk.f32.vlgmr.msra.gmra.mxu0 %vm992_vm1, %v19746_v9  ;;  %16376 = vmatprep.subr.mxu0 %v14361_v63 }
0x4254   : > { %16377 = vmatpush3.msra.mxu0 %v14361_v63 }
0x4255   : > { %16378 = vmatprep.subr.mxu0 %v14360_v30 }
0x4256   : > { %16379 = vmatpush3.msra.mxu0 %v14360_v30 }
0x4257   : > { %16380 = vmatprep.subr.mxu0 %v14359_v16 }
0x4258   : > { %16381 = vmatpush3.msra.mxu0 %v14359_v16 }
0x42be   : > { %v19841_v21 = vpop.permute.xlu0 %12938 }
0x42c0   : > { %v19843_v10 = vpop.permute.xlu1 %12934 }
0x42c1   : > { %v12945_v40 = vmul.f32 %v14346_v48, %v19843_v10 }
0x42c3   : > { %v12953_v28 = vadd.f32 %v14347_v12, %v12945_v40 }
0x4307   : > { %v16332_v0 = vpop.f32.mrf.mxu0 }
0x4308   : > { %13044 = vperm.xlu0 %16596, %v16332_v0   ;;  %16333 = vmatprep.subr.mxu1 %v16332_v0 }
0x4309   : > { %v12687_v54 = vpop.f32.mrf.mxu0  ;;  %16334 = vmatpush3.msra.mxu1 %v16332_v0 }
0x430a   : > { %13039 = vperm.xlu1 %16595, %v12687_v54   ;;  %16335 = vmatprep.subr.mxu1 %v12687_v54 }
0x430b   : > { %16336 = vmatpush3.msra.mxu1 %v12687_v54  ;;  %v16346_v31 = vpop.f32.mrf.mxu0 }
0x430c   : > { %16338 = vmatmul.mubr.msk.f32.vlgmr.msra.gmra.mxu1 %vm649_vm0, %v19448_v33  ;;  %16347 = vmatprep.subr.mxu1 %v16346_v31 }
0x430d   : > { %v12843_v44 = vpop.f32.mrf.mxu0  ;;  %16348 = vmatpush3.msra.mxu1 %v16346_v31  ;;  %16351 = vmatprep.mubr.msk.f32.mxu1 %vm649_vm0, %v19394_v7 }
0x430e   : > { %16349 = vmatprep.subr.mxu1 %v12843_v44 }
0x430f   : > { %16350 = vmatpush3.msra.mxu1 %v12843_v44 }
0x4310   : > { %16352 = vmatmul.mubr.msk.f32.vlgmr.msra.gmra.mxu1 %vm649_vm0, %v19448_v33  ;;  %16365 = vmatprep.subr.mxu1 %v14354_v29 }
0x4311   : > { %16366 = vmatpush3.msra.mxu1 %v14354_v29  ;;  %16373 = vmatprep.mubr.msk.f32.mxu1 %vm992_vm1, %v12843_v44 }
0x4312   : > { %16367 = vmatprep.subr.mxu1 %v14353_v36 }
0x4313   : > { %16368 = vmatpush3.msra.mxu1 %v14353_v36  ;;  %v16364_v22 = vpop.f32.mrf.mxu0 }
0x4314   : > { %16369 = vmatprep.subr.mxu1 %v14352_v13 }
0x4315   : > { %16370 = vmatpush3.msra.mxu1 %v14352_v13  ;;  %v13025_v11 = vpop.f32.mrf.mxu0 }
0x4316   : > { %16371 = vmatprep.subr.mxu1 %v14351_v32  ;;  %v13034_v0 = vadd.f32 %v13025_v11, %v12953_v28 }
0x4317   : > { %16372 = vmatpush3.msra.mxu1 %v14351_v32 }
0x4318   : > { %16374 = vmatmul.mubr.msk.f32.vlgmr.msra.gmra.mxu1 %vm992_vm1, %v16346_v31 }
0x4319   : > { %16391 = vmatprep.mubr.msk.f32.mxu1 %vm649_vm0, %v19394_v7  ;;  %v14358_v7 = vld [vmem:[%s19958_s9 + $0x40] sm:$0xff] }
0x431a   : > { %16382 = vmatprep.subr.mxu0 %v14358_v7 }
0x431b   : > { %16383 = vmatpush3.msra.mxu0 %v14358_v7 }
0x431c   : > { %16401 = vmatprep.subr.mxu0 %v19591_v24 }
0x43cc   : > { %v16339_v2 = vpop.f32.mrf.mxu1 }
0x43cd   : > { %v12772_v18 = vmul.f32 2.0, %v16339_v2 }
0x43ce   : > { %v12762_v45 = vpop.f32.mrf.mxu1 }
0x43cf   : > { %v12774_v38 = vsub.f32 %v12772_v18, %v19755_v25  ;;  %v12771_v43 = vmul.f32 2.0, %v12762_v45 }
0x43d0   : > { %v16353_v34 = vpop.f32.mrf.mxu1 }
0x43d1   : > { %v12773_v42 = vsub.f32 %v12771_v43, %v19758_v47  ;;  %13150 = vperm.xlu0 %16596, %v12774_v38   ;;  %v12928_v20 = vmul.f32 2.0, %v16353_v34 }
0x43d2   : > { %v12918_v17 = vpop.f32.mrf.mxu1 }
0x43d3   : > { %v12927_v53 = vmul.f32 2.0, %v12918_v17  ;;  %13145 = vperm.xlu1 %16595, %v12773_v42   ;;  %v12930_v56 = vsub.f32 %v12928_v20, %v19746_v9 }
0x43d5   : > { %v12929_v58 = vsub.f32 %v12927_v53, %v19744_v57 }
0x43d7   : > { %16384 = vmatprep.mubr.msk.f32.mxu0 %vm992_vm1, %v12929_v58  ;;  %v16817_v58 = vld [vmem:[#allocation3] sm:$0xff] }
0x43d8   : > { %16385 = vmatmul.mubr.msk.f32.vlgmr.msra.gmra.mxu0 %vm992_vm1, %v12930_v56  ;;  %v16375_v4 = vpop.f32.mrf.mxu1 }
0x43d9   : > { %16402 = vmatpush3.msra.mxu0 %v19591_v24  ;;  %v12946_v24 = vmul.f32 %v14346_v48, %v19841_v21  ;;  %v14370_v48 = vld [vmem:[%s19960_s11] ss:$0 sm:$0xff] }
0x43da   : > { %16403 = vmatprep.subr.mxu0 %v19593_v49  ;;  %v13131_v44 = vpop.f32.mrf.mxu1 }
0x43db   : > { %16404 = vmatpush3.msra.mxu0 %v19593_v49  ;;  %v19846_v49 = vpop.permute.xlu0 %13044  ;;  %v12954_v35 = vadd.f32 %v14347_v12, %v12946_v24  ;;  %v13423_v24 = vmul.f32 %v14370_v48, %v19841_v21  ;;  %v13422_v12 = vmul.f32 %v14370_v48, %v19843_v10 }
0x43dc   : > { %16405 = vmatprep.subr.mxu0 %v19597_v27 }
0x43dd   : > { %16406 = vmatpush3.msra.mxu0 %v19597_v27  ;;  %v19849_v27 = vpop.permute.xlu1 %13039  ;;  %v13035_v1 = vadd.f32 %v16364_v22, %v12954_v35  ;;  %v13431_v40 = vadd.f32 %v19704_v8, %v13423_v24 }
0x43de   : > { %16407 = vmatprep.subr.mxu0 %v19603_v39  ;;  %v13051_v62 = vmul.f32 %v19613_v6, %v19849_v27 }
0x43df   : > { %16408 = vmatpush3.msra.mxu0 %v19603_v39  ;;  %v13052_v39 = vmul.f32 %v19613_v6, %v19846_v49 }
0x43e0   : > { %16423 = vmatprep.subr.mxu0 %v19679_v19  ;;  %v13053_v36 = vadd.f32 %v13051_v62, %v13034_v0  ;;  %v13524_v62 = vmul.f32 %v19712_v46, %v19849_v27 }
0x43e1   : > { %v13054_v54 = vadd.f32 %v13052_v39, %v13035_v1  ;;  %v13430_v39 = vadd.f32 %v19704_v8, %v13422_v12  ;;  %v13525_v1 = vmul.f32 %v19712_v46, %v19846_v49 }
0x43e2   : > { %v13140_v32 = vadd.f32 %v13131_v44, %v13053_v36 }
0x43e3   : > { %v13141_v29 = vadd.f32 %v16375_v4, %v13054_v54 }
0x444c   : > { %v19853_v37 = vpop.permute.xlu0 %13150 }
0x444d   : > { %v13158_v31 = vmul.f32 %v19624_v60, %v19853_v37  ;;  %v13621_v10 = vmul.f32 %v19722_v55, %v19853_v37 }
0x444e   : > { %v19857_v14 = vpop.permute.xlu1 %13145 }
0x444f   : > { %v13157_v13 = vmul.f32 %v19624_v60, %v19857_v14  ;;  %v13160_v63 = vadd.f32 %v13158_v31, %v13141_v29  ;;  %v13620_v29 = vmul.f32 %v19722_v55, %v19857_v14 }
0x4451   : > { %v13159_v7 = vadd.f32 %v13157_v13, %v13140_v32 }
0x4498   : > { %v16386_v30 = vpop.f32.mrf.mxu0 }
0x4499   : > { %v13247_v16 = vadd.f32 %v16386_v30, %v13160_v63 }
0x449a   : > { %v13237_v2 = vpop.f32.mrf.mxu0 }
0x449b   : > { %v14365_v6 = vmul.f32 -1.442695, %v13247_v16  ;;  %v13246_v18 = vadd.f32 %v13237_v2, %v13159_v7 }
0x449d   : > { %16729 = vpow2.f32 %v14365_v6  ;;  %v14364_v45 = vmul.f32 -1.442695, %v13246_v18 }
0x449f   : > { %16731 = vpow2.f32 %v14364_v45 }
0x44aa   : > { %v16730_v38 = vpop.eup %16729 }
0x44ab   : > { %v13255_v43 = vadd.f32 1.0, %v16730_v38 }
0x44ac   : > { %v16732_v34 = vpop.eup %16731 }
0x44ad   : > { %16733 = vrcp.f32 %v13255_v43  ;;  %v13254_v42 = vadd.f32 1.0, %v16732_v34 }
0x44af   : > { %16735 = vrcp.f32 %v13254_v42 }
0x44ba   : > { %v19863_v20 = vpop.eup %16733 }
0x44bb   : > { %v13261_v60 = vmul.f32 %v19863_v20, %v19746_v9  ;;  %v13716_v37 = vsub.f32 1.0, %v19863_v20  ;;  %v13714_v55 = vmul.f32 %v19863_v20, %v19734_v51 }
0x44bc   : > { %v19867_v17 = vpop.eup %16735 }
0x44bd   : > { %16387 = vmatprep.subr.mxu1 %v13261_v60  ;;  %v13260_v53 = vmul.f32 %v19867_v17, %v19744_v57  ;;  %v13715_v16 = vsub.f32 1.0, %v19867_v17  ;;  %v13713_v6 = vmul.f32 %v19867_v17, %v19738_v50 }
0x44be   : > { %16388 = vmatpush3.msra.mxu1 %v13261_v60 }
0x44bf   : > { %16389 = vmatprep.subr.mxu1 %v13260_v53  ;;  %16409 = vmatprep.mubr.msk.f32.mxu0 %vm992_vm1, %v13260_v53 }
0x44c0   : > { %16390 = vmatpush3.msra.mxu1 %v13260_v53  ;;  %16410 = vmatmul.mubr.msk.f32.vlgmr.msra.gmra.mxu0 %vm992_vm1, %v13261_v60 }
0x44c1   : > { %16392 = vmatmul.mubr.msk.f32.vlgmr.msra.gmra.mxu1 %vm649_vm0, %v19448_v33  ;;  %16424 = vmatpush3.msra.mxu0 %v19679_v19 }
0x44c2   : > { %16398 = vmatprep.mubr.msk.f32.mxu1 %vm649_vm0, %v16817_v58  ;;  %16425 = vmatprep.subr.mxu0 %v19683_v52 }
0x44c3   : > { %16426 = vmatpush3.msra.mxu0 %v19683_v52 }
0x44c4   : > { %16427 = vmatprep.subr.mxu0 %v19687_v26 }
0x44c5   : > { %16428 = vmatpush3.msra.mxu0 %v19687_v26 }
0x44c6   : > { %16429 = vmatprep.subr.mxu0 %v19691_v61 }
0x44c7   : > { %16430 = vmatpush3.msra.mxu0 %v19691_v61 }
0x4580   : > { %v16411_v22 = vpop.f32.mrf.mxu0 }
0x4581   : > { %v16393_v57 = vpop.f32.mrf.mxu1  ;;  %v13518_v11 = vadd.f32 %v16411_v22, %v13431_v40 }
0x4582   : > { %16394 = vmatprep.subr.mxu1 %v16393_v57  ;;  %v13508_v35 = vpop.f32.mrf.mxu0 }
0x4583   : > { %v13328_v9 = vpop.f32.mrf.mxu1  ;;  %16395 = vmatpush3.msra.mxu1 %v16393_v57  ;;  %v13517_v28 = vadd.f32 %v13508_v35, %v13430_v39  ;;  %v13527_v0 = vadd.f32 %v13525_v1, %v13518_v11 }
0x4584   : > { %16396 = vmatprep.subr.mxu1 %v13328_v9 }
0x4585   : > { %16397 = vmatpush3.msra.mxu1 %v13328_v9  ;;  %v13526_v31 = vadd.f32 %v13524_v62, %v13517_v28 }
0x4586   : > { %16399 = vmatmul.mubr.msk.f32.vlgmr.msra.gmra.mxu1 %vm649_vm0, %v19448_v33  ;;  %16412 = vmatprep.subr.mxu1 %v19651_v3  ;;  %v16818_v33 = vld [vmem:[%s19963_s14 + $0x18] sm:$0xff] }
0x4587   : > { %16413 = vmatpush3.msra.mxu1 %v19651_v3  ;;  %16420 = vmatprep.mubr.msk.f32.mxu1 %vm992_vm1, %v13328_v9  ;;  %v16819_v3 = vld [vmem:[%s19963_s14 + $0x10] sm:$0xff] }
0x4588   : > { %16414 = vmatprep.subr.mxu1 %v19653_v59 }
0x4589   : > { %16415 = vmatpush3.msra.mxu1 %v19653_v59  ;;  %v16820_v59 = vld [vmem:[%s19963_s14 + $0x8] sm:$0xff] }
0x458a   : > { %16416 = vmatprep.subr.mxu1 %v19660_v15 }
0x458b   : > { %16417 = vmatpush3.msra.mxu1 %v19660_v15  ;;  %v16821_v15 = vld [vmem:[%s19963_s14] sm:$0xff] }
0x458c   : > { %16418 = vmatprep.subr.mxu1 %v19664_v41 }
0x458d   : > { %16419 = vmatpush3.msra.mxu1 %v19664_v41 }
0x458e   : > { %16421 = vmatmul.mubr.msk.f32.vlgmr.msra.gmra.mxu1 %vm992_vm1, %v16393_v57  ;;  %16434 = vmatprep.subr.mxu1 %v16818_v33 }
0x458f   : > { %16435 = vmatpush3.msra.mxu1 %v16818_v33 }
0x4590   : > { %16436 = vmatprep.subr.mxu1 %v16819_v3 }
0x4591   : > { %16437 = vmatpush3.msra.mxu1 %v16819_v3 }
0x4592   : > { %16438 = vmatprep.subr.mxu1 %v16820_v59 }
0x4593   : > { %16439 = vmatpush3.msra.mxu1 %v16820_v59 }
0x4594   : > { %16440 = vmatprep.subr.mxu1 %v16821_v15 }
0x4595   : > { %16441 = vmatpush3.msra.mxu1 %v16821_v15 }
0x4646   : > { %v16400_v41 = vpop.f32.mrf.mxu1 }
0x4647   : > { %v13413_v19 = vmul.f32 2.0, %v16400_v41 }
0x4648   : > { %v13403_v52 = vpop.f32.mrf.mxu1 }
0x4649   : > { %v13412_v26 = vmul.f32 2.0, %v13403_v52  ;;  %v13415_v56 = vsub.f32 %v13413_v19, %v13261_v60 }
0x464b   : > { %v13414_v61 = vsub.f32 %v13412_v26, %v13260_v53 }
0x464d   : > { %16431 = vmatprep.mubr.msk.f32.mxu0 %vm992_vm1, %v13414_v61 }
0x464e   : > { %16432 = vmatmul.mubr.msk.f32.vlgmr.msra.gmra.mxu0 %vm992_vm1, %v13415_v56  ;;  %v16422_v4 = vpop.f32.mrf.mxu1 }
0x464f   : > { %v13614_v21 = vadd.f32 %v16422_v4, %v13527_v0 }
0x4650   : > { %v13604_v54 = vpop.f32.mrf.mxu1 }
0x4651   : > { %v13613_v44 = vadd.f32 %v13604_v54, %v13526_v31  ;;  %v13623_v8 = vadd.f32 %v13621_v10, %v13614_v21 }
0x4653   : > { %v13622_v32 = vadd.f32 %v13620_v29, %v13613_v44 }
0x470e   : > { %v16433_v36 = vpop.f32.mrf.mxu0 }
0x470f   : > { %v13710_v13 = vadd.f32 %v16433_v36, %v13623_v8 }
0x4710   : > { %v13700_v49 = vpop.f32.mrf.mxu0 }
0x4711   : > { %16737 = vtanh.f32 %v13710_v13  ;;  %v13709_v63 = vadd.f32 %v13700_v49, %v13622_v32 }
0x4713   : > { %16739 = vtanh.f32 %v13709_v63 }
0x471e   : > { %v16738_v46 = vpop.eup %16737 }
0x471f   : > { %13721 = vrot.lane.b32.xlu1 %v16738_v46, %s17098_s18 }
0x4720   : > { %v16740_v27 = vpop.eup %16739 }
0x4721   : > { %13719 = vrot.lane.b32.xlu0 %v16740_v27, %s17098_s18  ;;  %s17114_s18 = smov 1  }
0x4791   : > { %v13722_v30 = vpop.permute.xlu1 %13721 }
0x4792   : > { %v13726_v14 = vmul.f32 %v13722_v30, %v13716_v37 }
0x4793   : > { %v13720_v7 = vpop.permute.xlu0 %13719 }
0x4794   : > { %v13728_v2 = vadd.f32 %v13726_v14, %v13714_v55  ;;  %v13725_v18 = vmul.f32 %v13720_v7, %v13715_v16 }
0x4796   : > { %v13727_v45 = vadd.f32 %v13725_v18, %v13713_v6  ;;  %13733 = vrot.lane.b32.xlu1 %v13728_v2, %s17100_s17 }
0x4798   : > { %13731 = vrot.lane.b32.xlu0 %v13727_v45, %s17100_s17  ;;  %s17116_s17 = smov 3  }
0x479a   : > { %11410 = vrot.lane.b32.xlu1 %v19526_v23, %s17114_s18 }
0x479c   : > { %11408 = vrot.lane.b32.xlu0 %v19529_v5, %s17114_s18 }
0x479e   : > { %12614 = vrot.lane.b32.xlu1 %v19755_v25, %s17115_s27 }
0x47a0   : > { %12612 = vrot.lane.b32.xlu0 %v19758_v47, %s17115_s27  ;;  %v16822_v47 = vld [vmem:[#allocation2] ss:$0 sm:$0xff] }
0x4808   : > { %v13734_v51 = vpop.permute.xlu1 %13733 }
0x480a   : > { %v13732_v50 = vpop.permute.xlu0 %13731 }
0x480b   : > { %16442 = vmatprep.mubr.msk.f32.mxu1 %vm992_vm1, %v13732_v50 }
0x480c   : > { %v11411_v38 = vpop.permute.xlu1 %11410  ;;  %16443 = vmatmul.mubr.msk.f32.vlgmr.msra.gmra.mxu1 %vm992_vm1, %v13734_v51 }
0x480d   : > { %11416 = vst.msk [vmem:[%s19329_s22 + $0x8] sm:$0xff] %vm11414_vm3, %v11411_v38 }
0x480e   : > { %v11409_v43 = vpop.permute.xlu0 %11408 }
0x480f   : > { %11415 = vst.msk [vmem:[%s19329_s22] sm:$0xff] %vm11414_vm3, %v11409_v43 }
0x4810   : > { %v12615_v23 = vpop.permute.xlu1 %12614 }
0x4811   : > { %12620 = vst.msk [vmem:[%s19329_s22 + $0x8] sm:$0xff] %vm12618_vm4, %v12615_v23 }
0x4812   : > { %v12613_v5 = vpop.permute.xlu0 %12612 }
0x4813   : > { %12619 = vst.msk [vmem:[%s19329_s22] sm:$0xff] %vm12618_vm4, %v12613_v5 }
0x48cc   : > { %v16444_v25 = vpop.f32.mrf.mxu1 }
0x48cd   : > { %v13811_v34 = vadd.f32 %v16822_v47, %v16444_v25 }
0x48ce   : > { %v13805_v42 = vpop.f32.mrf.mxu1 }
0x48cf   : > { %v13806_v20 = vadd.f32 %v16822_v47, %v13805_v42  ;;  %13818 = vrot.lane.b32.xlu1 %v13811_v34, %s17116_s17 }
0x48d1   : > { %13816 = vrot.lane.b32.xlu0 %v13806_v20, %s17116_s17 }
0x4941   : > { %v13819_v60 = vpop.permute.xlu1 %13818 }
0x4942   : > { %13824 = vst.msk [vmem:[%s19329_s22 + $0x8] sm:$0xff] %vm13822_vm5, %v13819_v60 }
0x4943   : > { %v13817_v17 = vpop.permute.xlu0 %13816 }
0x4944   : > { %13823 = vst.msk [vmem:[%s19329_s22] sm:$0xff] %vm13822_vm5, %v13817_v17 }
0x4945 PF: > { %s33_s23 = sadd.s32 1, %s17083_s23  }
0x4946   : > { %p30_p2 = scmp.ge.s32.totalorder %s33_s23, 4  }
0x4948   :  { %32 = sbr.rel (!%p30_p2) target bundleno = 8 (0x8), region = 159 }
0x494d   :  { %13846 = vsyncpa [#allocation4], 1 }
0x494e   :  { %13848 = vsyncpa [#allocation4 + $0x1], 1 }
0x494f   :  { %13849 = vsyncpa [#allocation6], 1 }
0x4950   :  { %13850 = vsyncpa [#allocation9], 1 }
0x4951   :  { %13851 = vsyncpa [#allocation12], 1 }
0x4952   :  { %13852 = vsyncpa [#allocation15], 1 }

</bundles_post_ra>
